<compile_context>
chip_gen: v6e
topology: v6e:2x2x1
jax: 0.10.0
libtpu: 0.0.40
codegen_flags: <defaults>
</compile_context>

<pallas_src>
import functools

import numpy as np

import jax
import jax.numpy as jnp
from jax.experimental import pallas as pl
from jax.experimental.pallas import tpu as pltpu


# ---------------------------------------------------------------------------
# helpers
# ---------------------------------------------------------------------------

def _full_spec(shape):
    """Whole-array block (every operand here easily fits VMEM)."""
    return pl.BlockSpec(shape, lambda *_: (0,) * len(shape))


def _build_tap_masks(N, H, W):
    """(9, N*H*W) f32 validity masks for the 9 taps of a 3x3 / pad=1 conv.

    Column m indexes the flattened (n, i, j) pixel; tap t = dy*3+dx reads flat
    column m + (dy-1)*W + (dx-1), which is the intended neighbour only when
    (i+dy-1, j+dx-1) stays inside the image -> out-of-image taps masked to 0.
    """
    m = np.arange(N * H * W)
    j = m % W
    i = (m // W) % H
    masks = np.zeros((9, N * H * W), np.float32)
    for dy in range(3):
        for dx in range(3):
            valid = ((j + dx - 1 >= 0) & (j + dx - 1 < W) &
                     (i + dy - 1 >= 0) & (i + dy - 1 < H))
            masks[dy * 3 + dx] = valid.astype(np.float32)
    return jnp.asarray(masks)


# ---------------------------------------------------------------------------
# Pallas kernels
# ---------------------------------------------------------------------------

def _conv3x3_cm(h, w, m_ref, hpad_ref, cols_ref, *, W):
    """3x3 / pad=1 conv of a channel-major activation, fully inside the kernel.

    h        : (C, M) f32 value, conv input (already pre-activated).
    w        : (Cout, 9*C) value, tap-major weight.
    m_ref    : (9, M) f32 tap validity masks.
    hpad_ref : (C, M + 2*(W+1)) f32 VMEM scratch; guard columns stay zero.
    cols_ref : (9*C, M) f32 VMEM scratch holding the in-VMEM im2col matrix.
    """
    C, M = h.shape
    G = W + 1
    hpad_ref[:, G:G + M] = h
    for dy in range(3):
        for dx in range(3):
            t = dy * 3 + dx
            s = (dy - 1) * W + (dx - 1)
            tap = hpad_ref[:, G + s:G + s + M]
            if dy == 1 and dx == 1:                      # centre tap always valid
                cols_ref[t * C:(t + 1) * C, :] = tap
            else:
                cols_ref[t * C:(t + 1) * C, :] = tap * m_ref[t:t + 1, :]
    # bf16 into the MXU, f32 accumulation
    return jnp.dot(w.astype(jnp.bfloat16),
                   cols_ref[...].astype(jnp.bfloat16),
                   preferred_element_type=jnp.float32)


def _resblock3_kernel(x_ref, m_ref, s1_ref, t1_ref, w1_ref, s2_ref, t2_ref,
                      w2_ref, o_ref, hpad_ref, cols_ref, *, W):
    """Fused ResBlock2d (3x3): BN+ReLU -> conv -> BN+ReLU -> conv -> + x."""
    hpad_ref[...] = jnp.zeros(hpad_ref.shape, jnp.float32)   # zero halo guards once
    x = x_ref[...]
    h = jnp.maximum(x * s1_ref[...] + t1_ref[...], 0.0)
    h = _conv3x3_cm(h, w1_ref[...], m_ref, hpad_ref, cols_ref, W=W)
    h = jnp.maximum(h * s2_ref[...] + t2_ref[...], 0.0)
    h = _conv3x3_cm(h, w2_ref[...], m_ref, hpad_ref, cols_ref, W=W)
    o_ref[...] = h + x


def _conv3x3_kernel(x_ref, m_ref, w_ref, o_ref, hpad_ref, cols_ref, *, W, relu_out):
    """Plain 3x3 / pad=1 conv (stem conv), optional fused ReLU epilogue."""
    hpad_ref[...] = jnp.zeros(hpad_ref.shape, jnp.float32)
    y = _conv3x3_cm(x_ref[...], w_ref[...], m_ref, hpad_ref, cols_ref, W=W)
    if relu_out:
        y = jnp.maximum(y, 0.0)
    o_ref[...] = y


def _resblock1_kernel(x_ref, s1_ref, t1_ref, w1_ref, s2_ref, t2_ref, w2_ref, o_ref):
    """Fused ResBlock2d (1x1): BN+ReLU -> 1x1 -> BN+ReLU -> 1x1 -> + x."""
    x = x_ref[...]
    h = jnp.maximum(x * s1_ref[...] + t1_ref[...], 0.0)
    h = jnp.dot(w1_ref[...].astype(jnp.bfloat16), h.astype(jnp.bfloat16),
                preferred_element_type=jnp.float32)
    h = jnp.maximum(h * s2_ref[...] + t2_ref[...], 0.0)
    h = jnp.dot(w2_ref[...].astype(jnp.bfloat16), h.astype(jnp.bfloat16),
                preferred_element_type=jnp.float32)
    o_ref[...] = h + x


def _matmul_kernel(*refs, pre_affine, pre_relu, has_bias, has_res, relu_out):
    """out = W @ f(A) (+bias) (+residual) (+ReLU); f = optional affine/ReLU prologue."""
    it = iter(refs)
    a_ref, w_ref = next(it), next(it)
    s_ref = next(it) if pre_affine else None
    t_ref = next(it) if pre_affine else None
    b_ref = next(it) if has_bias else None
    r_ref = next(it) if has_res else None
    o_ref = next(it)

    a = a_ref[...]
    if pre_affine:
        a = a * s_ref[...] + t_ref[...]
    if pre_relu:
        a = jnp.maximum(a, 0.0)
    acc = jnp.dot(w_ref[...].astype(jnp.bfloat16), a.astype(jnp.bfloat16),
                  preferred_element_type=jnp.float32)
    if has_bias:
        acc = acc + b_ref[...]
    if has_res:
        acc = acc + r_ref[...]
    if relu_out:
        acc = jnp.maximum(acc, 0.0)
    o_ref[...] = acc


# ---------------------------------------------------------------------------
# pallas_call wrappers
# ---------------------------------------------------------------------------

def fused_matmul(a, w, *, scale=None, shift=None, bias=None, residual=None,
                 pre_relu=False, relu_out=False, tile_m=256):
    """out(Cout, M) = w(Cout, K) @ a(K, M), tiled over the lane-dense M axis."""
    K, M = a.shape
    Cout = w.shape[0]
    tm = min(tile_m, M)
    if M % tm:
        tm = M
    pre_affine = scale is not None
    has_bias = bias is not None
    has_res = residual is not None

    in_specs = [pl.BlockSpec((K, tm), lambda i: (0, i)),
                pl.BlockSpec((Cout, K), lambda i: (0, 0))]       # weights resident
    operands = [a, w]
    if pre_affine:
        in_specs += [pl.BlockSpec((K, 1), lambda i: (0, 0)),
                     pl.BlockSpec((K, 1), lambda i: (0, 0))]
        operands += [scale, shift]
    if has_bias:
        in_specs.append(pl.BlockSpec((Cout, 1), lambda i: (0, 0)))
        operands.append(bias)
    if has_res:
        in_specs.append(pl.BlockSpec((Cout, tm), lambda i: (0, i)))
        operands.append(residual)

    kern = functools.partial(_matmul_kernel, pre_affine=pre_affine,
                             pre_relu=pre_relu, has_bias=has_bias,
                             has_res=has_res, relu_out=relu_out)
    return pl.pallas_call(
        kern,
        grid=(M // tm,),
        in_specs=in_specs,
        out_specs=pl.BlockSpec((Cout, tm), lambda i: (0, i)),
        out_shape=jax.ShapeDtypeStruct((Cout, M), jnp.float32),
        compiler_params=pltpu.CompilerParams(
            dimension_semantics=("parallel",)),       # megacore split on v7x
    )(*operands)


def conv3x3(x_cm, w, *, N, H, W, relu_out=False):
    cin, M = x_cm.shape
    cin_pad = -(-cin // 8) * 8                  # keep sublane slices 8-aligned
    if cin_pad != cin:
        x_cm = jnp.pad(x_cm, ((0, cin_pad - cin), (0, 0)))
    cout = w.shape[0]
    masks = _build_tap_masks(N, H, W)
    G = W + 1
    kern = functools.partial(_conv3x3_kernel, W=W, relu_out=relu_out)
    return pl.pallas_call(
        kern,
        grid=(1,),
        in_specs=[_full_spec((cin_pad, M)), _full_spec((9, M)),
                  _full_spec((cout, 9 * cin_pad))],
        out_specs=_full_spec((cout, M)),
        out_shape=jax.ShapeDtypeStruct((cout, M), jnp.float32),
        scratch_shapes=[pltpu.VMEM((cin_pad, M + 2 * G), jnp.float32),
                        pltpu.VMEM((9 * cin_pad, M), jnp.float32)],
        compiler_params=pltpu.CompilerParams(
            dimension_semantics=("arbitrary",)),
    )(x_cm, masks, w)


def resblock3(x_cm, p, *, N, H, W):
    C, M = x_cm.shape
    masks = _build_tap_masks(N, H, W)
    G = W + 1
    kern = functools.partial(_resblock3_kernel, W=W)
    return pl.pallas_call(
        kern,
        grid=(1,),
        in_specs=[_full_spec((C, M)), _full_spec((9, M)),
                  _full_spec((C, 1)), _full_spec((C, 1)), _full_spec((C, 9 * C)),
                  _full_spec((C, 1)), _full_spec((C, 1)), _full_spec((C, 9 * C))],
        out_specs=_full_spec((C, M)),
        out_shape=jax.ShapeDtypeStruct((C, M), jnp.float32),
        scratch_shapes=[pltpu.VMEM((C, M + 2 * G), jnp.float32),
                        pltpu.VMEM((9 * C, M), jnp.float32)],
        compiler_params=pltpu.CompilerParams(
            dimension_semantics=("arbitrary",)),
    )(x_cm, masks, p['s1'], p['t1'], p['w1'], p['s2'], p['t2'], p['w2'])


def resblock1(x_cm, p):
    C, M = x_cm.shape
    return pl.pallas_call(
        _resblock1_kernel,
        grid=(1,),
        in_specs=[_full_spec((C, M)),
                  _full_spec((C, 1)), _full_spec((C, 1)), _full_spec((C, C)),
                  _full_spec((C, 1)), _full_spec((C, 1)), _full_spec((C, C))],
        out_specs=_full_spec((C, M)),
        out_shape=jax.ShapeDtypeStruct((C, M), jnp.float32),
        compiler_params=pltpu.CompilerParams(
            dimension_semantics=("arbitrary",)),
    )(x_cm, p['s1'], p['t1'], p['w1'], p['s2'], p['t2'], p['w2'])


# ---------------------------------------------------------------------------
# layout glue (plain JAX, pure permutations -- no data duplication)
# ---------------------------------------------------------------------------

def space_to_depth_cm(x_cm, N, H, W):
    # (C, N*H*W) -> (4*C, N*(H/2)*(W/2)), row index = (dy*2+dx)*C + c
    C = x_cm.shape[0]
    x = x_cm.reshape(C, N, H // 2, 2, W // 2, 2)
    x = x.transpose(3, 5, 0, 1, 2, 4)
    return x.reshape(4 * C, N * (H // 2) * (W // 2))


def depth_to_space_cm(y, N, H, W):
    # (4*Cout, N*H*W) with row index (dy*2+dx)*Cout + co -> (Cout, N*(2H)*(2W))
    cout = y.shape[0] // 4
    y = y.reshape(2, 2, cout, N, H, W)
    y = y.transpose(2, 3, 4, 0, 5, 1)
    return y.reshape(cout, N * (2 * H) * (2 * W))


# ---------------------------------------------------------------------------
# UNet blocks
# ---------------------------------------------------------------------------

def down_block(x_cm, p, *, N, H, W):
    # BatchNorm -> Conv(k=2, s=2, no bias) -> ReLU -> (Identity dropout) -> 3x ResBlock
    cols = space_to_depth_cm(x_cm, N, H, W)
    h = fused_matmul(cols, p['w_pool'], scale=p['bn_s4'], shift=p['bn_t4'],
                     relu_out=True)
    H2, W2 = H // 2, W // 2
    for rb in p['rbs']:
        h = resblock3(h, rb, N=N, H=H2, W=W2)
    return h


def up_block(x_cm, p, *, N, H, W):
    # 3x ResBlock -> BatchNorm -> ConvTranspose(k=2, s=2, no bias) -> ReLU
    h = x_cm
    for rb in p['rbs']:
        h = resblock3(h, rb, N=N, H=H, W=W)
    y = fused_matmul(h, p['w_up'], scale=p['bn_s'], shift=p['bn_t'], relu_out=True)
    return depth_to_space_cm(y, N, H, W)


def out_path(x_cm, p):
    # ResBlock2d(n, n, k=1) -> PreActivation2d(n, n_out, k=1, bias) -> BatchNorm2d(n_out)
    h = resblock1(x_cm, p['rb'])
    # trailing BN already folded into pa_w / pa_b
    return fused_matmul(h, p['pa_w'], scale=p['pa_s'], shift=p['pa_t'],
                        bias=p['pa_b'], pre_relu=True)


def unet2d_forward(params, x_nchw):
    N, Cin, H, W = x_nchw.shape
    # channel-major layout: lane dim = flattened spatial -> lane-dense outputs
    x_cm = x_nchw.transpose(1, 0, 2, 3).reshape(Cin, N * H * W)

    x0 = conv3x3(x_cm, params['init_conv'], N=N, H=H, W=W, relu_out=True)
    for rb in params['init_rbs']:
        x0 = resblock3(x0, rb, N=N, H=H, W=W)

    x1 = down_block(x0, params['down1'], N=N, H=H, W=W)
    x2 = down_block(x1, params['down2'], N=N, H=H // 2, W=W // 2)
    x3 = down_block(x2, params['down3'], N=N, H=H // 4, W=W // 4)

    x2_up = up_block(x3, params['up3'], N=N, H=H // 8, W=W // 8)
    # skip additions fused as the residual operand of the 1x1 shortcut convs
    s2 = fused_matmul(x2, params['shortcut2'][0], bias=params['shortcut2'][1],
                      residual=x2_up)
    x1_up = up_block(s2, params['up2'], N=N, H=H // 4, W=W // 4)
    s1 = fused_matmul(x1, params['shortcut1'][0], bias=params['shortcut1'][1],
                      residual=x1_up)
    x0_up = up_block(s1, params['up1'], N=N, H=H // 2, W=W // 2)
    s0 = fused_matmul(x0, params['shortcut0'][0], bias=params['shortcut0'][1],
                      residual=x0_up)

    out = out_path(s0, params['out'])                       # (n_out, N*H*W)
    n_out = out.shape[0]
    return out.reshape(n_out, N, H, W).transpose(1, 0, 2, 3)  # back to NCHW


# ---------------------------------------------------------------------------
# deterministic parameter initialization (kernel-friendly layouts)
# ---------------------------------------------------------------------------

class KeyGen:
    def __init__(self, key):
        self.key = key

    def __call__(self):
        self.key, sub = jax.random.split(self.key)
        return sub


def _bn_cm(key, c, eps=1e-5):
    # TODO(synk): inference-mode BatchNorm (running stats folded into scale/shift)
    k1, k2, k3, k4 = jax.random.split(key, 4)
    gamma = 1.0 + 0.1 * jax.random.normal(k1, (c, 1), jnp.float32)
    beta = 0.1 * jax.random.normal(k2, (c, 1), jnp.float32)
    mean = 0.1 * jax.random.normal(k3, (c, 1), jnp.float32)
    var = 1.0 + 0.1 * jnp.abs(jax.random.normal(k4, (c, 1), jnp.float32))
    scale = gamma / jnp.sqrt(var + eps)
    shift = beta - mean * scale
    return scale, shift


def _conv3_w(key, cin, cout):
    cin_pad = -(-cin // 8) * 8
    w = jax.random.normal(key, (cout, 3, 3, cin), jnp.float32) / float(np.sqrt(9 * cin))
    if cin_pad != cin:
        w = jnp.pad(w, ((0, 0), (0, 0), (0, 0), (0, cin_pad - cin)))
    return w.reshape(cout, 9 * cin_pad)          # tap-major: k = (dy*3+dx)*cin + ci


def _conv1_w(key, cin, cout):
    return jax.random.normal(key, (cout, cin), jnp.float32) / float(np.sqrt(cin))


def _pool_w(key, cin, cout):
    w = jax.random.normal(key, (cout, 2, 2, cin), jnp.float32) / float(np.sqrt(4 * cin))
    return w.reshape(cout, 4 * cin)              # matches space_to_depth_cm ordering


def _convT_w(key, cin, cout):
    w = jax.random.normal(key, (2, 2, cout, cin), jnp.float32) / float(np.sqrt(cin))
    return w.reshape(4 * cout, cin)              # matches depth_to_space_cm ordering


def _resblock3_p(key, c):
    ks = jax.random.split(key, 4)
    s1, t1 = _bn_cm(ks[0], c)
    s2, t2 = _bn_cm(ks[2], c)
    return {'s1': s1, 't1': t1, 'w1': _conv3_w(ks[1], c, c),
            's2': s2, 't2': t2, 'w2': _conv3_w(ks[3], c, c)}


def _resblock1_p(key, c):
    ks = jax.random.split(key, 4)
    s1, t1 = _bn_cm(ks[0], c)
    s2, t2 = _bn_cm(ks[2], c)
    return {'s1': s1, 't1': t1, 'w1': _conv1_w(ks[1], c, c),
            's2': s2, 't2': t2, 'w2': _conv1_w(ks[3], c, c)}


def init_params(key, n_chans_in, n_chans_out, n=8):
    kg = KeyGen(key)
    p = {}
    p['init_conv'] = _conv3_w(kg(), n_chans_in, n)
    p['init_rbs'] = [_resblock3_p(kg(), n) for _ in range(3)]

    def shortcut(c):
        return (_conv1_w(kg(), c, c),
                0.1 * jax.random.normal(kg(), (c, 1), jnp.float32))

    def down(cin):
        s, t = _bn_cm(kg(), cin)
        return {'bn_s4': jnp.tile(s, (4, 1)), 'bn_t4': jnp.tile(t, (4, 1)),
                'w_pool': _pool_w(kg(), cin, cin * 2),
                'rbs': [_resblock3_p(kg(), cin * 2) for _ in range(3)]}

    def up(cin):
        s, t = _bn_cm(kg(), cin)
        return {'rbs': [_resblock3_p(kg(), cin) for _ in range(3)],
                'bn_s': s, 'bn_t': t,
                'w_up': _convT_w(kg(), cin, cin // 2)}

    p['shortcut0'] = shortcut(n)
    p['down1'] = down(n)
    p['shortcut1'] = shortcut(2 * n)
    p['down2'] = down(2 * n)
    p['shortcut2'] = shortcut(4 * n)
    p['down3'] = down(4 * n)
    p['up3'] = up(8 * n)
    p['up2'] = up(4 * n)
    p['up1'] = up(2 * n)

    rb = _resblock1_p(kg(), n)
    pa_s, pa_t = _bn_cm(kg(), n)
    pa_w = _conv1_w(kg(), n, n_chans_out)
    pa_b = 0.1 * jax.random.normal(kg(), (n_chans_out, 1), jnp.float32)
    so, to = _bn_cm(kg(), n_chans_out)
    # fold the trailing inference-mode BatchNorm2d(n_out) into the 1x1 conv (free rewrite)
    p['out'] = {'rb': rb, 'pa_s': pa_s, 'pa_t': pa_t,
                'pa_w': so * pa_w, 'pa_b': so * pa_b + to}
    return p


# ---------------------------------------------------------------------------

if __name__ == "__main__":
    key = jax.random.PRNGKey(0)
    kp, kx = jax.random.split(key)

    n_chans_in, n_chans_out, n_filters_init = 4, 2, 8
    params = init_params(kp, n_chans_in, n_chans_out, n=n_filters_init)

    x = jax.random.normal(kx, (2, n_chans_in, 16, 16), jnp.float32)  # NCHW input

    fwd = jax.jit(unet2d_forward)
    out = fwd(params, x)
    jax.block_until_ready(out)

    assert out.shape == (2, n_chans_out, 16, 16), out.shape
    assert bool(jnp.all(jnp.isfinite(out)))
    print("KERNEL_OK")
</pallas_src>

<mosaic_0001>
module attributes {stable_mosaic.version = 11 : i64} {
  func.func @_conv3x3_kernel(%arg0: i32, %arg1: memref<8x512xf32, #tpu.memory_space<vmem>>, %arg2: memref<9x512xf32, #tpu.memory_space<vmem>>, %arg3: memref<8x72xf32, #tpu.memory_space<vmem>>, %arg4: memref<8x512xf32, #tpu.memory_space<vmem>>, %arg5: memref<8x546xf32, #tpu.memory_space<vmem>>, %arg6: memref<72x512xf32, #tpu.memory_space<vmem>>) attributes {dimension_semantics = [#tpu.dimension_semantics<arbitrary>], iteration_bounds = array<i64: 1>, scalar_prefetch = 0 : i64, scratch_operands = 2 : i64, tpu.core_type = #tpu.core_type<tc>, window_params = [{pipeline_mode = #tpu.pipeline_mode<synchronous>, transform_indices = @transform_0, window_bounds = array<i64: 8, 512>}, {pipeline_mode = #tpu.pipeline_mode<synchronous>, transform_indices = @transform_1, window_bounds = array<i64: 9, 512>}, {pipeline_mode = #tpu.pipeline_mode<synchronous>, transform_indices = @transform_2, window_bounds = array<i64: 8, 72>}, {pipeline_mode = #tpu.pipeline_mode<synchronous>, transform_indices = @transform_3, window_bounds = array<i64: 8, 512>}]} {
    %cst = arith.constant 0.000000e+00 : f32
    %0 = vector.broadcast %cst : f32 to vector<8x546xf32>
    %c0 = arith.constant 0 : index
    %c0_0 = arith.constant 0 : index
    %1 = vector.load %arg5[%c0, %c0_0] : memref<8x546xf32, #tpu.memory_space<vmem>>, vector<8x546xf32>
    tpu.vector_store %arg5[%c0, %c0_0], %0 {strides = array<i32>} : memref<8x546xf32, #tpu.memory_space<vmem>>, vector<8x546xf32>,
    %c0_1 = arith.constant 0 : index
    %c0_2 = arith.constant 0 : index
    %2 = vector.load %arg1[%c0_1, %c0_2] : memref<8x512xf32, #tpu.memory_space<vmem>>, vector<8x512xf32>
    %c0_3 = arith.constant 0 : index
    %c0_4 = arith.constant 0 : index
    %3 = vector.load %arg3[%c0_3, %c0_4] : memref<8x72xf32, #tpu.memory_space<vmem>>, vector<8x72xf32>
    %c0_5 = arith.constant 0 : index
    %c17 = arith.constant 17 : index
    %4 = vector.load %arg5[%c0_5, %c17] : memref<8x546xf32, #tpu.memory_space<vmem>>, vector<8x512xf32>
    tpu.vector_store %arg5[%c0_5, %c17], %2 {strides = array<i32>} : memref<8x546xf32, #tpu.memory_space<vmem>>, vector<8x512xf32>,
    %c0_6 = arith.constant 0 : index
    %c0_7 = arith.constant 0 : index
    %5 = vector.load %arg5[%c0_6, %c0_7] : memref<8x546xf32, #tpu.memory_space<vmem>>, vector<8x512xf32>
    %c0_8 = arith.constant 0 : index
    %c0_9 = arith.constant 0 : index
    %6 = vector.load %arg2[%c0_8, %c0_9] : memref<9x512xf32, #tpu.memory_space<vmem>>, vector<1x512xf32>
    %7 = vector.broadcast %6 : vector<1x512xf32> to vector<8x512xf32>
    %8 = arith.mulf %5, %7 : vector<8x512xf32>
    %c0_10 = arith.constant 0 : index
    %c0_11 = arith.constant 0 : index
    %9 = vector.load %arg6[%c0_10, %c0_11] : memref<72x512xf32, #tpu.memory_space<vmem>>, vector<8x512xf32>
    tpu.vector_store %arg6[%c0_10, %c0_11], %8 {strides = array<i32>} : memref<72x512xf32, #tpu.memory_space<vmem>>, vector<8x512xf32>,
    %c0_12 = arith.constant 0 : index
    %c1 = arith.constant 1 : index
    %10 = vector.load %arg5[%c0_12, %c1] : memref<8x546xf32, #tpu.memory_space<vmem>>, vector<8x512xf32>
    %c1_13 = arith.constant 1 : index
    %c0_14 = arith.constant 0 : index
    %11 = vector.load %arg2[%c1_13, %c0_14] : memref<9x512xf32, #tpu.memory_space<vmem>>, vector<1x512xf32>
    %12 = vector.broadcast %11 : vector<1x512xf32> to vector<8x512xf32>
    %13 = arith.mulf %10, %12 : vector<8x512xf32>
    %c8 = arith.constant 8 : index
    %c0_15 = arith.constant 0 : index
    %14 = vector.load %arg6[%c8, %c0_15] : memref<72x512xf32, #tpu.memory_space<vmem>>, vector<8x512xf32>
    tpu.vector_store %arg6[%c8, %c0_15], %13 {strides = array<i32>} : memref<72x512xf32, #tpu.memory_space<vmem>>, vector<8x512xf32>,
    %c0_16 = arith.constant 0 : index
    %c2 = arith.constant 2 : index
    %15 = vector.load %arg5[%c0_16, %c2] : memref<8x546xf32, #tpu.memory_space<vmem>>, vector<8x512xf32>
    %c2_17 = arith.constant 2 : index
    %c0_18 = arith.constant 0 : index
    %16 = vector.load %arg2[%c2_17, %c0_18] : memref<9x512xf32, #tpu.memory_space<vmem>>, vector<1x512xf32>
    %17 = vector.broadcast %16 : vector<1x512xf32> to vector<8x512xf32>
    %18 = arith.mulf %15, %17 : vector<8x512xf32>
    %c16 = arith.constant 16 : index
    %c0_19 = arith.constant 0 : index
    %19 = vector.load %arg6[%c16, %c0_19] : memref<72x512xf32, #tpu.memory_space<vmem>>, vector<8x512xf32>
    tpu.vector_store %arg6[%c16, %c0_19], %18 {strides = array<i32>} : memref<72x512xf32, #tpu.memory_space<vmem>>, vector<8x512xf32>,
    %c0_20 = arith.constant 0 : index
    %c16_21 = arith.constant 16 : index
    %20 = vector.load %arg5[%c0_20, %c16_21] : memref<8x546xf32, #tpu.memory_space<vmem>>, vector<8x512xf32>
    %c3 = arith.constant 3 : index
    %c0_22 = arith.constant 0 : index
    %21 = vector.load %arg2[%c3, %c0_22] : memref<9x512xf32, #tpu.memory_space<vmem>>, vector<1x512xf32>
    %22 = vector.broadcast %21 : vector<1x512xf32> to vector<8x512xf32>
    %23 = arith.mulf %20, %22 : vector<8x512xf32>
    %c24 = arith.constant 24 : index
    %c0_23 = arith.constant 0 : index
    %24 = vector.load %arg6[%c24, %c0_23] : memref<72x512xf32, #tpu.memory_space<vmem>>, vector<8x512xf32>
    tpu.vector_store %arg6[%c24, %c0_23], %23 {strides = array<i32>} : memref<72x512xf32, #tpu.memory_space<vmem>>, vector<8x512xf32>,
    %c0_24 = arith.constant 0 : index
    %c17_25 = arith.constant 17 : index
    %25 = vector.load %arg5[%c0_24, %c17_25] : memref<8x546xf32, #tpu.memory_space<vmem>>, vector<8x512xf32>
    %c32 = arith.constant 32 : index
    %c0_26 = arith.constant 0 : index
    %26 = vector.load %arg6[%c32, %c0_26] : memref<72x512xf32, #tpu.memory_space<vmem>>, vector<8x512xf32>
    tpu.vector_store %arg6[%c32, %c0_26], %25 {strides = array<i32>} : memref<72x512xf32, #tpu.memory_space<vmem>>, vector<8x512xf32>,
    %c0_27 = arith.constant 0 : index
    %c18 = arith.constant 18 : index
    %27 = vector.load %arg5[%c0_27, %c18] : memref<8x546xf32, #tpu.memory_space<vmem>>, vector<8x512xf32>
    %c5 = arith.constant 5 : index
    %c0_28 = arith.constant 0 : index
    %28 = vector.load %arg2[%c5, %c0_28] : memref<9x512xf32, #tpu.memory_space<vmem>>, vector<1x512xf32>
    %29 = vector.broadcast %28 : vector<1x512xf32> to vector<8x512xf32>
    %30 = arith.mulf %27, %29 : vector<8x512xf32>
    %c40 = arith.constant 40 : index
    %c0_29 = arith.constant 0 : index
    %31 = vector.load %arg6[%c40, %c0_29] : memref<72x512xf32, #tpu.memory_space<vmem>>, vector<8x512xf32>
    tpu.vector_store %arg6[%c40, %c0_29], %30 {strides = array<i32>} : memref<72x512xf32, #tpu.memory_space<vmem>>, vector<8x512xf32>,
    %c0_30 = arith.constant 0 : index
    %c32_31 = arith.constant 32 : index
    %32 = vector.load %arg5[%c0_30, %c32_31] : memref<8x546xf32, #tpu.memory_space<vmem>>, vector<8x512xf32>
    %c6 = arith.constant 6 : index
    %c0_32 = arith.constant 0 : index
    %33 = vector.load %arg2[%c6, %c0_32] : memref<9x512xf32, #tpu.memory_space<vmem>>, vector<1x512xf32>
    %34 = vector.broadcast %33 : vector<1x512xf32> to vector<8x512xf32>
    %35 = arith.mulf %32, %34 : vector<8x512xf32>
    %c48 = arith.constant 48 : index
    %c0_33 = arith.constant 0 : index
    %36 = vector.load %arg6[%c48, %c0_33] : memref<72x512xf32, #tpu.memory_space<vmem>>, vector<8x512xf32>
    tpu.vector_store %arg6[%c48, %c0_33], %35 {strides = array<i32>} : memref<72x512xf32, #tpu.memory_space<vmem>>, vector<8x512xf32>,
    %c0_34 = arith.constant 0 : index
    %c33 = arith.constant 33 : index
    %37 = vector.load %arg5[%c0_34, %c33] : memref<8x546xf32, #tpu.memory_space<vmem>>, vector<8x512xf32>
    %c7 = arith.constant 7 : index
    %c0_35 = arith.constant 0 : index
    %38 = vector.load %arg2[%c7, %c0_35] : memref<9x512xf32, #tpu.memory_space<vmem>>, vector<1x512xf32>
    %39 = vector.broadcast %38 : vector<1x512xf32> to vector<8x512xf32>
    %40 = arith.mulf %37, %39 : vector<8x512xf32>
    %c56 = arith.constant 56 : index
    %c0_36 = arith.constant 0 : index
    %41 = vector.load %arg6[%c56, %c0_36] : memref<72x512xf32, #tpu.memory_space<vmem>>, vector<8x512xf32>
    tpu.vector_store %arg6[%c56, %c0_36], %40 {strides = array<i32>} : memref<72x512xf32, #tpu.memory_space<vmem>>, vector<8x512xf32>,
    %c0_37 = arith.constant 0 : index
    %c34 = arith.constant 34 : index
    %42 = vector.load %arg5[%c0_37, %c34] : memref<8x546xf32, #tpu.memory_space<vmem>>, vector<8x512xf32>
    %c8_38 = arith.constant 8 : index
    %c0_39 = arith.constant 0 : index
    %43 = vector.load %arg2[%c8_38, %c0_39] : memref<9x512xf32, #tpu.memory_space<vmem>>, vector<1x512xf32>
    %44 = vector.broadcast %43 : vector<1x512xf32> to vector<8x512xf32>
    %45 = arith.mulf %42, %44 : vector<8x512xf32>
    %c64 = arith.constant 64 : index
    %c0_40 = arith.constant 0 : index
    %46 = vector.load %arg6[%c64, %c0_40] : memref<72x512xf32, #tpu.memory_space<vmem>>, vector<8x512xf32>
    tpu.vector_store %arg6[%c64, %c0_40], %45 {strides = array<i32>} : memref<72x512xf32, #tpu.memory_space<vmem>>, vector<8x512xf32>,
    %47 = arith.truncf %3 : vector<8x72xf32> to vector<8x72xbf16>
    %c0_41 = arith.constant 0 : index
    %c0_42 = arith.constant 0 : index
    %48 = vector.load %arg6[%c0_41, %c0_42] : memref<72x512xf32, #tpu.memory_space<vmem>>, vector<72x512xf32>
    %49 = arith.truncf %48 : vector<72x512xf32> to vector<72x512xbf16>
    %cst_43 = arith.constant dense<0.000000e+00> : vector<8x512xf32>
    %50 = tpu.matmul %47, %49, %cst_43 {dimension_numbers = #tpu.dot_dimension_numbers<[1], [0], [0], [1], [0, 0, 1, 1], [], []>} : vector<8x72xbf16>, vector<72x512xbf16>, vector<8x512xf32> -> vector<8x512xf32>
    %cst_44 = arith.constant 0.000000e+00 : f32
    %51 = vector.broadcast %cst_44 : f32 to vector<8x512xf32>
    %52 = arith.maximumf %50, %51 : vector<8x512xf32>
    %c0_45 = arith.constant 0 : index
    %c0_46 = arith.constant 0 : index
    %53 = vector.load %arg4[%c0_45, %c0_46] : memref<8x512xf32, #tpu.memory_space<vmem>>, vector<8x512xf32>
    tpu.vector_store %arg4[%c0_45, %c0_46], %52 {strides = array<i32>} : memref<8x512xf32, #tpu.memory_space<vmem>>, vector<8x512xf32>,
    return
  }
  func.func @transform_0(%arg0: i32) -> (i32, i32) {
    %c0_i32 = arith.constant 0 : i32
    %c0_i32_0 = arith.constant 0 : i32
    %c0_i32_1 = arith.constant 0 : i32
    return %c0_i32, %c0_i32_0 : i32, i32
  }
  func.func @transform_1(%arg0: i32) -> (i32, i32) {
    %c0_i32 = arith.constant 0 : i32
    %c0_i32_0 = arith.constant 0 : i32
    %c0_i32_1 = arith.constant 0 : i32
    return %c0_i32, %c0_i32_0 : i32, i32
  }
  func.func @transform_2(%arg0: i32) -> (i32, i32) {
    %c0_i32 = arith.constant 0 : i32
    %c0_i32_0 = arith.constant 0 : i32
    %c0_i32_1 = arith.constant 0 : i32
    return %c0_i32, %c0_i32_0 : i32, i32
  }
  func.func @transform_3(%arg0: i32) -> (i32, i32) {
    %c0_i32 = arith.constant 0 : i32
    %c0_i32_0 = arith.constant 0 : i32
    %c0_i32_1 = arith.constant 0 : i32
    return %c0_i32, %c0_i32_0 : i32, i32
  }
}

module attributes {stable_mosaic.version = 11 : i64} {
  func.func @_resblock3_kernel(%arg0: i32, %arg1: memref<8x512xf32, #tpu.memory_space<vmem>>, %arg2: memref<9x512xf32, #tpu.memory_space<vmem>>, %arg3: memref<8x1xf32, #tpu.memory_space<vmem>>, %arg4: memref<8x1xf32, #tpu.memory_space<vmem>>, %arg5: memref<8x72xf32, #tpu.memory_space<vmem>>, %arg6: memref<8x1xf32, #tpu.memory_space<vmem>>, %arg7: memref<8x1xf32, #tpu.memory_space<vmem>>, %arg8: memref<8x72xf32, #tpu.memory_space<vmem>>, %arg9: memref<8x512xf32, #tpu.memory_space<vmem>>, %arg10: memref<8x546xf32, #tpu.memory_space<vmem>>, %arg11: memref<72x512xf32, #tpu.memory_space<vmem>>) attributes {dimension_semantics = [#tpu.dimension_semantics<arbitrary>], iteration_bounds = array<i64: 1>, scalar_prefetch = 0 : i64, scratch_operands = 2 : i64, tpu.core_type = #tpu.core_type<tc>, window_params = [{pipeline_mode = #tpu.pipeline_mode<synchronous>, transform_indices = @transform_0, window_bounds = array<i64: 8, 512>}, {pipeline_mode = #tpu.pipeline_mode<synchronous>, transform_indices = @transform_1, window_bounds = array<i64: 9, 512>}, {pipeline_mode = #tpu.pipeline_mode<synchronous>, transform_indices = @transform_2, window_bounds = array<i64: 8, 1>}, {pipeline_mode = #tpu.pipeline_mode<synchronous>, transform_indices = @transform_3, window_bounds = array<i64: 8, 1>}, {pipeline_mode = #tpu.pipeline_mode<synchronous>, transform_indices = @transform_4, window_bounds = array<i64: 8, 72>}, {pipeline_mode = #tpu.pipeline_mode<synchronous>, transform_indices = @transform_5, window_bounds = array<i64: 8, 1>}, {pipeline_mode = #tpu.pipeline_mode<synchronous>, transform_indices = @transform_6, window_bounds = array<i64: 8, 1>}, {pipeline_mode = #tpu.pipeline_mode<synchronous>, transform_indices = @transform_7, window_bounds = array<i64: 8, 72>}, {pipeline_mode = #tpu.pipeline_mode<synchronous>, transform_indices = @transform_8, window_bounds = array<i64: 8, 512>}]} {
    %cst = arith.constant 0.000000e+00 : f32
    %0 = vector.broadcast %cst : f32 to vector<8x546xf32>
    %c0 = arith.constant 0 : index
    %c0_0 = arith.constant 0 : index
    %1 = vector.load %arg10[%c0, %c0_0] : memref<8x546xf32, #tpu.memory_space<vmem>>, vector<8x546xf32>
    tpu.vector_store %arg10[%c0, %c0_0], %0 {strides = array<i32>} : memref<8x546xf32, #tpu.memory_space<vmem>>, vector<8x546xf32>,
    %c0_1 = arith.constant 0 : index
    %c0_2 = arith.constant 0 : index
    %2 = vector.load %arg1[%c0_1, %c0_2] : memref<8x512xf32, #tpu.memory_space<vmem>>, vector<8x512xf32>
    %c0_3 = arith.constant 0 : index
    %c0_4 = arith.constant 0 : index
    %3 = vector.load %arg3[%c0_3, %c0_4] : memref<8x1xf32, #tpu.memory_space<vmem>>, vector<8x1xf32>
    %4 = vector.broadcast %3 : vector<8x1xf32> to vector<8x512xf32>
    %5 = arith.mulf %2, %4 : vector<8x512xf32>
    %c0_5 = arith.constant 0 : index
    %c0_6 = arith.constant 0 : index
    %6 = vector.load %arg4[%c0_5, %c0_6] : memref<8x1xf32, #tpu.memory_space<vmem>>, vector<8x1xf32>
    %7 = vector.broadcast %6 : vector<8x1xf32> to vector<8x512xf32>
    %8 = arith.addf %5, %7 : vector<8x512xf32>
    %cst_7 = arith.constant 0.000000e+00 : f32
    %9 = vector.broadcast %cst_7 : f32 to vector<8x512xf32>
    %10 = arith.maximumf %8, %9 : vector<8x512xf32>
    %c0_8 = arith.constant 0 : index
    %c0_9 = arith.constant 0 : index
    %11 = vector.load %arg5[%c0_8, %c0_9] : memref<8x72xf32, #tpu.memory_space<vmem>>, vector<8x72xf32>
    %c0_10 = arith.constant 0 : index
    %c17 = arith.constant 17 : index
    %12 = vector.load %arg10[%c0_10, %c17] : memref<8x546xf32, #tpu.memory_space<vmem>>, vector<8x512xf32>
    tpu.vector_store %arg10[%c0_10, %c17], %10 {strides = array<i32>} : memref<8x546xf32, #tpu.memory_space<vmem>>, vector<8x512xf32>,
    %c0_11 = arith.constant 0 : index
    %c0_12 = arith.constant 0 : index
    %13 = vector.load %arg10[%c0_11, %c0_12] : memref<8x546xf32, #tpu.memory_space<vmem>>, vector<8x512xf32>
    %c0_13 = arith.constant 0 : index
    %c0_14 = arith.constant 0 : index
    %14 = vector.load %arg2[%c0_13, %c0_14] : memref<9x512xf32, #tpu.memory_space<vmem>>, vector<1x512xf32>
    %15 = vector.broadcast %14 : vector<1x512xf32> to vector<8x512xf32>
    %16 = arith.mulf %13, %15 : vector<8x512xf32>
    %c0_15 = arith.constant 0 : index
    %c0_16 = arith.constant 0 : index
    %17 = vector.load %arg11[%c0_15, %c0_16] : memref<72x512xf32, #tpu.memory_space<vmem>>, vector<8x512xf32>
    tpu.vector_store %arg11[%c0_15, %c0_16], %16 {strides = array<i32>} : memref<72x512xf32, #tpu.memory_space<vmem>>, vector<8x512xf32>,
    %c0_17 = arith.constant 0 : index
    %c1 = arith.constant 1 : index
    %18 = vector.load %arg10[%c0_17, %c1] : memref<8x546xf32, #tpu.memory_space<vmem>>, vector<8x512xf32>
    %c1_18 = arith.constant 1 : index
    %c0_19 = arith.constant 0 : index
    %19 = vector.load %arg2[%c1_18, %c0_19] : memref<9x512xf32, #tpu.memory_space<vmem>>, vector<1x512xf32>
    %20 = vector.broadcast %19 : vector<1x512xf32> to vector<8x512xf32>
    %21 = arith.mulf %18, %20 : vector<8x512xf32>
    %c8 = arith.constant 8 : index
    %c0_20 = arith.constant 0 : index
    %22 = vector.load %arg11[%c8, %c0_20] : memref<72x512xf32, #tpu.memory_space<vmem>>, vector<8x512xf32>
    tpu.vector_store %arg11[%c8, %c0_20], %21 {strides = array<i32>} : memref<72x512xf32, #tpu.memory_space<vmem>>, vector<8x512xf32>,
    %c0_21 = arith.constant 0 : index
    %c2 = arith.constant 2 : index
    %23 = vector.load %arg10[%c0_21, %c2] : memref<8x546xf32, #tpu.memory_space<vmem>>, vector<8x512xf32>
    %c2_22 = arith.constant 2 : index
    %c0_23 = arith.constant 0 : index
    %24 = vector.load %arg2[%c2_22, %c0_23] : memref<9x512xf32, #tpu.memory_space<vmem>>, vector<1x512xf32>
    %25 = vector.broadcast %24 : vector<1x512xf32> to vector<8x512xf32>
    %26 = arith.mulf %23, %25 : vector<8x512xf32>
    %c16 = arith.constant 16 : index
    %c0_24 = arith.constant 0 : index
    %27 = vector.load %arg11[%c16, %c0_24] : memref<72x512xf32, #tpu.memory_space<vmem>>, vector<8x512xf32>
    tpu.vector_store %arg11[%c16, %c0_24], %26 {strides = array<i32>} : memref<72x512xf32, #tpu.memory_space<vmem>>, vector<8x512xf32>,
    %c0_25 = arith.constant 0 : index
    %c16_26 = arith.constant 16 : index
    %28 = vector.load %arg10[%c0_25, %c16_26] : memref<8x546xf32, #tpu.memory_space<vmem>>, vector<8x512xf32>
    %c3 = arith.constant 3 : index
    %c0_27 = arith.constant 0 : index
    %29 = vector.load %arg2[%c3, %c0_27] : memref<9x512xf32, #tpu.memory_space<vmem>>, vector<1x512xf32>
    %30 = vector.broadcast %29 : vector<1x512xf32> to vector<8x512xf32>
    %31 = arith.mulf %28, %30 : vector<8x512xf32>
    %c24 = arith.constant 24 : index
    %c0_28 = arith.constant 0 : index
    %32 = vector.load %arg11[%c24, %c0_28] : memref<72x512xf32, #tpu.memory_space<vmem>>, vector<8x512xf32>
    tpu.vector_store %arg11[%c24, %c0_28], %31 {strides = array<i32>} : memref<72x512xf32, #tpu.memory_space<vmem>>, vector<8x512xf32>,
    %c0_29 = arith.constant 0 : index
    %c17_30 = arith.constant 17 : index
    %33 = vector.load %arg10[%c0_29, %c17_30] : memref<8x546xf32, #tpu.memory_space<vmem>>, vector<8x512xf32>
    %c32 = arith.constant 32 : index
    %c0_31 = arith.constant 0 : index
    %34 = vector.load %arg11[%c32, %c0_31] : memref<72x512xf32, #tpu.memory_space<vmem>>, vector<8x512xf32>
    tpu.vector_store %arg11[%c32, %c0_31], %33 {strides = array<i32>} : memref<72x512xf32, #tpu.memory_space<vmem>>, vector<8x512xf32>,
    %c0_32 = arith.constant 0 : index
    %c18 = arith.constant 18 : index
    %35 = vector.load %arg10[%c0_32, %c18] : memref<8x546xf32, #tpu.memory_space<vmem>>, vector<8x512xf32>
    %c5 = arith.constant 5 : index
    %c0_33 = arith.constant 0 : index
    %36 = vector.load %arg2[%c5, %c0_33] : memref<9x512xf32, #tpu.memory_space<vmem>>, vector<1x512xf32>
    %37 = vector.broadcast %36 : vector<1x512xf32> to vector<8x512xf32>
    %38 = arith.mulf %35, %37 : vector<8x512xf32>
    %c40 = arith.constant 40 : index
    %c0_34 = arith.constant 0 : index
    %39 = vector.load %arg11[%c40, %c0_34] : memref<72x512xf32, #tpu.memory_space<vmem>>, vector<8x512xf32>
    tpu.vector_store %arg11[%c40, %c0_34], %38 {strides = array<i32>} : memref<72x512xf32, #tpu.memory_space<vmem>>, vector<8x512xf32>,
    %c0_35 = arith.constant 0 : index
    %c32_36 = arith.constant 32 : index
    %40 = vector.load %arg10[%c0_35, %c32_36] : memref<8x546xf32, #tpu.memory_space<vmem>>, vector<8x512xf32>
    %c6 = arith.constant 6 : index
    %c0_37 = arith.constant 0 : index
    %41 = vector.load %arg2[%c6, %c0_37] : memref<9x512xf32, #tpu.memory_space<vmem>>, vector<1x512xf32>
    %42 = vector.broadcast %41 : vector<1x512xf32> to vector<8x512xf32>
    %43 = arith.mulf %40, %42 : vector<8x512xf32>
    %c48 = arith.constant 48 : index
    %c0_38 = arith.constant 0 : index
    %44 = vector.load %arg11[%c48, %c0_38] : memref<72x512xf32, #tpu.memory_space<vmem>>, vector<8x512xf32>
    tpu.vector_store %arg11[%c48, %c0_38], %43 {strides = array<i32>} : memref<72x512xf32, #tpu.memory_space<vmem>>, vector<8x512xf32>,
    %c0_39 = arith.constant 0 : index
    %c33 = arith.constant 33 : index
    %45 = vector.load %arg10[%c0_39, %c33] : memref<8x546xf32, #tpu.memory_space<vmem>>, vector<8x512xf32>
    %c7 = arith.constant 7 : index
    %c0_40 = arith.constant 0 : index
    %46 = vector.load %arg2[%c7, %c0_40] : memref<9x512xf32, #tpu.memory_space<vmem>>, vector<1x512xf32>
    %47 = vector.broadcast %46 : vector<1x512xf32> to vector<8x512xf32>
    %48 = arith.mulf %45, %47 : vector<8x512xf32>
    %c56 = arith.constant 56 : index
    %c0_41 = arith.constant 0 : index
    %49 = vector.load %arg11[%c56, %c0_41] : memref<72x512xf32, #tpu.memory_space<vmem>>, vector<8x512xf32>
    tpu.vector_store %arg11[%c56, %c0_41], %48 {strides = array<i32>} : memref<72x512xf32, #tpu.memory_space<vmem>>, vector<8x512xf32>,
    %c0_42 = arith.constant 0 : index
    %c34 = arith.constant 34 : index
    %50 = vector.load %arg10[%c0_42, %c34] : memref<8x546xf32, #tpu.memory_space<vmem>>, vector<8x512xf32>
    %c8_43 = arith.constant 8 : index
    %c0_44 = arith.constant 0 : index
    %51 = vector.load %arg2[%c8_43, %c0_44] : memref<9x512xf32, #tpu.memory_space<vmem>>, vector<1x512xf32>
    %52 = vector.broadcast %51 : vector<1x512xf32> to vector<8x512xf32>
    %53 = arith.mulf %50, %52 : vector<8x512xf32>
    %c64 = arith.constant 64 : index
    %c0_45 = arith.constant 0 : index
    %54 = vector.load %arg11[%c64, %c0_45] : memref<72x512xf32, #tpu.memory_space<vmem>>, vector<8x512xf32>
    tpu.vector_store %arg11[%c64, %c0_45], %53 {strides = array<i32>} : memref<72x512xf32, #tpu.memory_space<vmem>>, vector<8x512xf32>,
    %55 = arith.truncf %11 : vector<8x72xf32> to vector<8x72xbf16>
    %c0_46 = arith.constant 0 : index
    %c0_47 = arith.constant 0 : index
    %56 = vector.load %arg11[%c0_46, %c0_47] : memref<72x512xf32, #tpu.memory_space<vmem>>, vector<72x512xf32>
    %57 = arith.truncf %56 : vector<72x512xf32> to vector<72x512xbf16>
    %cst_48 = arith.constant dense<0.000000e+00> : vector<8x512xf32>
    %58 = tpu.matmul %55, %57, %cst_48 {dimension_numbers = #tpu.dot_dimension_numbers<[1], [0], [0], [1], [0, 0, 1, 1], [], []>} : vector<8x72xbf16>, vector<72x512xbf16>, vector<8x512xf32> -> vector<8x512xf32>
    %c0_49 = arith.constant 0 : index
    %c0_50 = arith.constant 0 : index
    %59 = vector.load %arg6[%c0_49, %c0_50] : memref<8x1xf32, #tpu.memory_space<vmem>>, vector<8x1xf32>
    %60 = vector.broadcast %59 : vector<8x1xf32> to vector<8x512xf32>
    %61 = arith.mulf %58, %60 : vector<8x512xf32>
    %c0_51 = arith.constant 0 : index
    %c0_52 = arith.constant 0 : index
    %62 = vector.load %arg7[%c0_51, %c0_52] : memref<8x1xf32, #tpu.memory_space<vmem>>, vector<8x1xf32>
    %63 = vector.broadcast %62 : vector<8x1xf32> to vector<8x512xf32>
    %64 = arith.addf %61, %63 : vector<8x512xf32>
    %cst_53 = arith.constant 0.000000e+00 : f32
    %65 = vector.broadcast %cst_53 : f32 to vector<8x512xf32>
    %66 = arith.maximumf %64, %65 : vector<8x512xf32>
    %c0_54 = arith.constant 0 : index
    %c0_55 = arith.constant 0 : index
    %67 = vector.load %arg8[%c0_54, %c0_55] : memref<8x72xf32, #tpu.memory_space<vmem>>, vector<8x72xf32>
    %c0_56 = arith.constant 0 : index
    %c17_57 = arith.constant 17 : index
    %68 = vector.load %arg10[%c0_56, %c17_57] : memref<8x546xf32, #tpu.memory_space<vmem>>, vector<8x512xf32>
    tpu.vector_store %arg10[%c0_56, %c17_57], %66 {strides = array<i32>} : memref<8x546xf32, #tpu.memory_space<vmem>>, vector<8x512xf32>,
    %c0_58 = arith.constant 0 : index
    %c0_59 = arith.constant 0 : index
    %69 = vector.load %arg10[%c0_58, %c0_59] : memref<8x546xf32, #tpu.memory_space<vmem>>, vector<8x512xf32>
    %c0_60 = arith.constant 0 : index
    %c0_61 = arith.constant 0 : index
    %70 = vector.load %arg2[%c0_60, %c0_61] : memref<9x512xf32, #tpu.memory_space<vmem>>, vector<1x512xf32>
    %71 = vector.broadcast %70 : vector<1x512xf32> to vector<8x512xf32>
    %72 = arith.mulf %69, %71 : vector<8x512xf32>
    %c0_62 = arith.constant 0 : index
    %c0_63 = arith.constant 0 : index
    %73 = vector.load %arg11[%c0_62, %c0_63] : memref<72x512xf32, #tpu.memory_space<vmem>>, vector<8x512xf32>
    tpu.vector_store %arg11[%c0_62, %c0_63], %72 {strides = array<i32>} : memref<72x512xf32, #tpu.memory_space<vmem>>, vector<8x512xf32>,
    %c0_64 = arith.constant 0 : index
    %c1_65 = arith.constant 1 : index
    %74 = vector.load %arg10[%c0_64, %c1_65] : memref<8x546xf32, #tpu.memory_space<vmem>>, vector<8x512xf32>
    %c1_66 = arith.constant 1 : index
    %c0_67 = arith.constant 0 : index
    %75 = vector.load %arg2[%c1_66, %c0_67] : memref<9x512xf32, #tpu.memory_space<vmem>>, vector<1x512xf32>
    %76 = vector.broadcast %75 : vector<1x512xf32> to vector<8x512xf32>
    %77 = arith.mulf %74, %76 : vector<8x512xf32>
    %c8_68 = arith.constant 8 : index
    %c0_69 = arith.constant 0 : index
    %78 = vector.load %arg11[%c8_68, %c0_69] : memref<72x512xf32, #tpu.memory_space<vmem>>, vector<8x512xf32>
    tpu.vector_store %arg11[%c8_68, %c0_69], %77 {strides = array<i32>} : memref<72x512xf32, #tpu.memory_space<vmem>>, vector<8x512xf32>,
    %c0_70 = arith.constant 0 : index
    %c2_71 = arith.constant 2 : index
    %79 = vector.load %arg10[%c0_70, %c2_71] : memref<8x546xf32, #tpu.memory_space<vmem>>, vector<8x512xf32>
    %c2_72 = arith.constant 2 : index
    %c0_73 = arith.constant 0 : index
    %80 = vector.load %arg2[%c2_72, %c0_73] : memref<9x512xf32, #tpu.memory_space<vmem>>, vector<1x512xf32>
    %81 = vector.broadcast %80 : vector<1x512xf32> to vector<8x512xf32>
    %82 = arith.mulf %79, %81 : vector<8x512xf32>
    %c16_74 = arith.constant 16 : index
    %c0_75 = arith.constant 0 : index
    %83 = vector.load %arg11[%c16_74, %c0_75] : memref<72x512xf32, #tpu.memory_space<vmem>>, vector<8x512xf32>
    tpu.vector_store %arg11[%c16_74, %c0_75], %82 {strides = array<i32>} : memref<72x512xf32, #tpu.memory_space<vmem>>, vector<8x512xf32>,
    %c0_76 = arith.constant 0 : index
    %c16_77 = arith.constant 16 : index
    %84 = vector.load %arg10[%c0_76, %c16_77] : memref<8x546xf32, #tpu.memory_space<vmem>>, vector<8x512xf32>
    %c3_78 = arith.constant 3 : index
    %c0_79 = arith.constant 0 : index
    %85 = vector.load %arg2[%c3_78, %c0_79] : memref<9x512xf32, #tpu.memory_space<vmem>>, vector<1x512xf32>
    %86 = vector.broadcast %85 : vector<1x512xf32> to vector<8x512xf32>
    %87 = arith.mulf %84, %86 : vector<8x512xf32>
    %c24_80 = arith.constant 24 : index
    %c0_81 = arith.constant 0 : index
    %88 = vector.load %arg11[%c24_80, %c0_81] : memref<72x512xf32, #tpu.memory_space<vmem>>, vector<8x512xf32>
    tpu.vector_store %arg11[%c24_80, %c0_81], %87 {strides = array<i32>} : memref<72x512xf32, #tpu.memory_space<vmem>>, vector<8x512xf32>,
    %c0_82 = arith.constant 0 : index
    %c17_83 = arith.constant 17 : index
    %89 = vector.load %arg10[%c0_82, %c17_83] : memref<8x546xf32, #tpu.memory_space<vmem>>, vector<8x512xf32>
    %c32_84 = arith.constant 32 : index
    %c0_85 = arith.constant 0 : index
    %90 = vector.load %arg11[%c32_84, %c0_85] : memref<72x512xf32, #tpu.memory_space<vmem>>, vector<8x512xf32>
    tpu.vector_store %arg11[%c32_84, %c0_85], %89 {strides = array<i32>} : memref<72x512xf32, #tpu.memory_space<vmem>>, vector<8x512xf32>,
    %c0_86 = arith.constant 0 : index
    %c18_87 = arith.constant 18 : index
    %91 = vector.load %arg10[%c0_86, %c18_87] : memref<8x546xf32, #tpu.memory_space<vmem>>, vector<8x512xf32>
    %c5_88 = arith.constant 5 : index
    %c0_89 = arith.constant 0 : index
    %92 = vector.load %arg2[%c5_88, %c0_89] : memref<9x512xf32, #tpu.memory_space<vmem>>, vector<1x512xf32>
    %93 = vector.broadcast %92 : vector<1x512xf32> to vector<8x512xf32>
    %94 = arith.mulf %91, %93 : vector<8x512xf32>
    %c40_90 = arith.constant 40 : index
    %c0_91 = arith.constant 0 : index
    %95 = vector.load %arg11[%c40_90, %c0_91] : memref<72x512xf32, #tpu.memory_space<vmem>>, vector<8x512xf32>
    tpu.vector_store %arg11[%c40_90, %c0_91], %94 {strides = array<i32>} : memref<72x512xf32, #tpu.memory_space<vmem>>, vector<8x512xf32>,
    %c0_92 = arith.constant 0 : index
    %c32_93 = arith.constant 32 : index
    %96 = vector.load %arg10[%c0_92, %c32_93] : memref<8x546xf32, #tpu.memory_space<vmem>>, vector<8x512xf32>
    %c6_94 = arith.constant 6 : index
    %c0_95 = arith.constant 0 : index
    %97 = vector.load %arg2[%c6_94, %c0_95] : memref<9x512xf32, #tpu.memory_space<vmem>>, vector<1x512xf32>
    %98 = vector.broadcast %97 : vector<1x512xf32> to vector<8x512xf32>
    %99 = arith.mulf %96, %98 : vector<8x512xf32>
    %c48_96 = arith.constant 48 : index
    %c0_97 = arith.constant 0 : index
    %100 = vector.load %arg11[%c48_96, %c0_97] : memref<72x512xf32, #tpu.memory_space<vmem>>, vector<8x512xf32>
    tpu.vector_store %arg11[%c48_96, %c0_97], %99 {strides = array<i32>} : memref<72x512xf32, #tpu.memory_space<vmem>>, vector<8x512xf32>,
    %c0_98 = arith.constant 0 : index
    %c33_99 = arith.constant 33 : index
    %101 = vector.load %arg10[%c0_98, %c33_99] : memref<8x546xf32, #tpu.memory_space<vmem>>, vector<8x512xf32>
    %c7_100 = arith.constant 7 : index
    %c0_101 = arith.constant 0 : index
    %102 = vector.load %arg2[%c7_100, %c0_101] : memref<9x512xf32, #tpu.memory_space<vmem>>, vector<1x512xf32>
    %103 = vector.broadcast %102 : vector<1x512xf32> to vector<8x512xf32>
    %104 = arith.mulf %101, %103 : vector<8x512xf32>
    %c56_102 = arith.constant 56 : index
    %c0_103 = arith.constant 0 : index
    %105 = vector.load %arg11[%c56_102, %c0_103] : memref<72x512xf32, #tpu.memory_space<vmem>>, vector<8x512xf32>
    tpu.vector_store %arg11[%c56_102, %c0_103], %104 {strides = array<i32>} : memref<72x512xf32, #tpu.memory_space<vmem>>, vector<8x512xf32>,
    %c0_104 = arith.constant 0 : index
    %c34_105 = arith.constant 34 : index
    %106 = vector.load %arg10[%c0_104, %c34_105] : memref<8x546xf32, #tpu.memory_space<vmem>>, vector<8x512xf32>
    %c8_106 = arith.constant 8 : index
    %c0_107 = arith.constant 0 : index
    %107 = vector.load %arg2[%c8_106, %c0_107] : memref<9x512xf32, #tpu.memory_space<vmem>>, vector<1x512xf32>
    %108 = vector.broadcast %107 : vector<1x512xf32> to vector<8x512xf32>
    %109 = arith.mulf %106, %108 : vector<8x512xf32>
    %c64_108 = arith.constant 64 : index
    %c0_109 = arith.constant 0 : index
    %110 = vector.load %arg11[%c64_108, %c0_109] : memref<72x512xf32, #tpu.memory_space<vmem>>, vector<8x512xf32>
    tpu.vector_store %arg11[%c64_108, %c0_109], %109 {strides = array<i32>} : memref<72x512xf32, #tpu.memory_space<vmem>>, vector<8x512xf32>,
    %111 = arith.truncf %67 : vector<8x72xf32> to vector<8x72xbf16>
    %c0_110 = arith.constant 0 : index
    %c0_111 = arith.constant 0 : index
    %112 = vector.load %arg11[%c0_110, %c0_111] : memref<72x512xf32, #tpu.memory_space<vmem>>, vector<72x512xf32>
    %113 = arith.truncf %112 : vector<72x512xf32> to vector<72x512xbf16>
    %cst_112 = arith.constant dense<0.000000e+00> : vector<8x512xf32>
    %114 = tpu.matmul %111, %113, %cst_112 {dimension_numbers = #tpu.dot_dimension_numbers<[1], [0], [0], [1], [0, 0, 1, 1], [], []>} : vector<8x72xbf16>, vector<72x512xbf16>, vector<8x512xf32> -> vector<8x512xf32>
    %115 = arith.addf %114, %2 : vector<8x512xf32>
    %c0_113 = arith.constant 0 : index
    %c0_114 = arith.constant 0 : index
    %116 = vector.load %arg9[%c0_113, %c0_114] : memref<8x512xf32, #tpu.memory_space<vmem>>, vector<8x512xf32>
    tpu.vector_store %arg9[%c0_113, %c0_114], %115 {strides = array<i32>} : memref<8x512xf32, #tpu.memory_space<vmem>>, vector<8x512xf32>,
    return
  }
  func.func @transform_0(%arg0: i32) -> (i32, i32) {
    %c0_i32 = arith.constant 0 : i32
    %c0_i32_0 = arith.constant 0 : i32
    %c0_i32_1 = arith.constant 0 : i32
    return %c0_i32, %c0_i32_0 : i32, i32
  }
  func.func @transform_1(%arg0: i32) -> (i32, i32) {
    %c0_i32 = arith.constant 0 : i32
    %c0_i32_0 = arith.constant 0 : i32
    %c0_i32_1 = arith.constant 0 : i32
    return %c0_i32, %c0_i32_0 : i32, i32
  }
  func.func @transform_2(%arg0: i32) -> (i32, i32) {
    %c0_i32 = arith.constant 0 : i32
    %c0_i32_0 = arith.constant 0 : i32
    %c0_i32_1 = arith.constant 0 : i32
    return %c0_i32, %c0_i32_0 : i32, i32
  }
  func.func @transform_3(%arg0: i32) -> (i32, i32) {
    %c0_i32 = arith.constant 0 : i32
    %c0_i32_0 = arith.constant 0 : i32
    %c0_i32_1 = arith.constant 0 : i32
    return %c0_i32, %c0_i32_0 : i32, i32
  }
  func.func @transform_4(%arg0: i32) -> (i32, i32) {
    %c0_i32 = arith.constant 0 : i32
    %c0_i32_0 = arith.constant 0 : i32
    %c0_i32_1 = arith.constant 0 : i32
    return %c0_i32, %c0_i32_0 : i32, i32
  }
  func.func @transform_5(%arg0: i32) -> (i32, i32) {
    %c0_i32 = arith.constant 0 : i32
    %c0_i32_0 = arith.constant 0 : i32
    %c0_i32_1 = arith.constant 0 : i32
    return %c0_i32, %c0_i32_0 : i32, i32
  }
  func.func @transform_6(%arg0: i32) -> (i32, i32) {
    %c0_i32 = arith.constant 0 : i32
    %c0_i32_0 = arith.constant 0 : i32
    %c0_i32_1 = arith.constant 0 : i32
    return %c0_i32, %c0_i32_0 : i32, i32
  }
  func.func @transform_7(%arg0: i32) -> (i32, i32) {
    %c0_i32 = arith.constant 0 : i32
    %c0_i32_0 = arith.constant 0 : i32
    %c0_i32_1 = arith.constant 0 : i32
    return %c0_i32, %c0_i32_0 : i32, i32
  }
  func.func @transform_8(%arg0: i32) -> (i32, i32) {
    %c0_i32 = arith.constant 0 : i32
    %c0_i32_0 = arith.constant 0 : i32
    %c0_i32_1 = arith.constant 0 : i32
    return %c0_i32, %c0_i32_0 : i32, i32
  }
}

module attributes {stable_mosaic.version = 11 : i64} {
  func.func @_matmul_kernel(%arg0: i32, %arg1: memref<32x128xf32, #tpu.memory_space<vmem>>, %arg2: memref<16x32xf32, #tpu.memory_space<vmem>>, %arg3: memref<32x1xf32, #tpu.memory_space<vmem>>, %arg4: memref<32x1xf32, #tpu.memory_space<vmem>>, %arg5: memref<16x128xf32, #tpu.memory_space<vmem>>) attributes {dimension_semantics = [#tpu.dimension_semantics<parallel>], iteration_bounds = array<i64: 1>, scalar_prefetch = 0 : i64, scratch_operands = 0 : i64, tpu.core_type = #tpu.core_type<tc>, window_params = [{transform_indices = @transform_0, window_bounds = array<i64: 32, 128>}, {pipeline_mode = #tpu.pipeline_mode<synchronous>, transform_indices = @transform_1, window_bounds = array<i64: 16, 32>}, {pipeline_mode = #tpu.pipeline_mode<synchronous>, transform_indices = @transform_2, window_bounds = array<i64: 32, 1>}, {pipeline_mode = #tpu.pipeline_mode<synchronous>, transform_indices = @transform_3, window_bounds = array<i64: 32, 1>}, {transform_indices = @transform_4, window_bounds = array<i64: 16, 128>}]} {
    %c0 = arith.constant 0 : index
    %c0_0 = arith.constant 0 : index
    %0 = vector.load %arg1[%c0, %c0_0] : memref<32x128xf32, #tpu.memory_space<vmem>>, vector<32x128xf32>
    %c0_1 = arith.constant 0 : index
    %c0_2 = arith.constant 0 : index
    %1 = vector.load %arg3[%c0_1, %c0_2] : memref<32x1xf32, #tpu.memory_space<vmem>>, vector<32x1xf32>
    %2 = vector.broadcast %1 : vector<32x1xf32> to vector<32x128xf32>
    %3 = arith.mulf %0, %2 : vector<32x128xf32>
    %c0_3 = arith.constant 0 : index
    %c0_4 = arith.constant 0 : index
    %4 = vector.load %arg4[%c0_3, %c0_4] : memref<32x1xf32, #tpu.memory_space<vmem>>, vector<32x1xf32>
    %5 = vector.broadcast %4 : vector<32x1xf32> to vector<32x128xf32>
    %6 = arith.addf %3, %5 : vector<32x128xf32>
    %c0_5 = arith.constant 0 : index
    %c0_6 = arith.constant 0 : index
    %7 = vector.load %arg2[%c0_5, %c0_6] : memref<16x32xf32, #tpu.memory_space<vmem>>, vector<16x32xf32>
    %8 = arith.truncf %7 : vector<16x32xf32> to vector<16x32xbf16>
    %9 = arith.truncf %6 : vector<32x128xf32> to vector<32x128xbf16>
    %cst = arith.constant dense<0.000000e+00> : vector<16x128xf32>
    %10 = tpu.matmul %8, %9, %cst {dimension_numbers = #tpu.dot_dimension_numbers<[1], [0], [0], [1], [0, 0, 1, 1], [], []>} : vector<16x32xbf16>, vector<32x128xbf16>, vector<16x128xf32> -> vector<16x128xf32>
    %cst_7 = arith.constant 0.000000e+00 : f32
    %11 = vector.broadcast %cst_7 : f32 to vector<16x128xf32>
    %12 = arith.maximumf %10, %11 : vector<16x128xf32>
    %c0_8 = arith.constant 0 : index
    %c0_9 = arith.constant 0 : index
    %13 = vector.load %arg5[%c0_8, %c0_9] : memref<16x128xf32, #tpu.memory_space<vmem>>, vector<16x128xf32>
    tpu.vector_store %arg5[%c0_8, %c0_9], %12 {strides = array<i32>} : memref<16x128xf32, #tpu.memory_space<vmem>>, vector<16x128xf32>,
    return
  }
  func.func @transform_0(%arg0: i32) -> (i32, i32) {
    %c0_i32 = arith.constant 0 : i32
    %c0_i32_0 = arith.constant 0 : i32
    return %c0_i32, %arg0 : i32, i32
  }
  func.func @transform_1(%arg0: i32) -> (i32, i32) {
    %c0_i32 = arith.constant 0 : i32
    %c0_i32_0 = arith.constant 0 : i32
    %c0_i32_1 = arith.constant 0 : i32
    return %c0_i32, %c0_i32_0 : i32, i32
  }
  func.func @transform_2(%arg0: i32) -> (i32, i32) {
    %c0_i32 = arith.constant 0 : i32
    %c0_i32_0 = arith.constant 0 : i32
    %c0_i32_1 = arith.constant 0 : i32
    return %c0_i32, %c0_i32_0 : i32, i32
  }
  func.func @transform_3(%arg0: i32) -> (i32, i32) {
    %c0_i32 = arith.constant 0 : i32
    %c0_i32_0 = arith.constant 0 : i32
    %c0_i32_1 = arith.constant 0 : i32
    return %c0_i32, %c0_i32_0 : i32, i32
  }
  func.func @transform_4(%arg0: i32) -> (i32, i32) {
    %c0_i32 = arith.constant 0 : i32
    %c0_i32_0 = arith.constant 0 : i32
    return %c0_i32, %arg0 : i32, i32
  }
}

module attributes {stable_mosaic.version = 11 : i64} {
  func.func @_resblock3_kernel(%arg0: i32, %arg1: memref<16x128xf32, #tpu.memory_space<vmem>>, %arg2: memref<9x128xf32, #tpu.memory_space<vmem>>, %arg3: memref<16x1xf32, #tpu.memory_space<vmem>>, %arg4: memref<16x1xf32, #tpu.memory_space<vmem>>, %arg5: memref<16x144xf32, #tpu.memory_space<vmem>>, %arg6: memref<16x1xf32, #tpu.memory_space<vmem>>, %arg7: memref<16x1xf32, #tpu.memory_space<vmem>>, %arg8: memref<16x144xf32, #tpu.memory_space<vmem>>, %arg9: memref<16x128xf32, #tpu.memory_space<vmem>>, %arg10: memref<16x146xf32, #tpu.memory_space<vmem>>, %arg11: memref<144x128xf32, #tpu.memory_space<vmem>>) attributes {dimension_semantics = [#tpu.dimension_semantics<arbitrary>], iteration_bounds = array<i64: 1>, scalar_prefetch = 0 : i64, scratch_operands = 2 : i64, tpu.core_type = #tpu.core_type<tc>, window_params = [{pipeline_mode = #tpu.pipeline_mode<synchronous>, transform_indices = @transform_0, window_bounds = array<i64: 16, 128>}, {pipeline_mode = #tpu.pipeline_mode<synchronous>, transform_indices = @transform_1, window_bounds = array<i64: 9, 128>}, {pipeline_mode = #tpu.pipeline_mode<synchronous>, transform_indices = @transform_2, window_bounds = array<i64: 16, 1>}, {pipeline_mode = #tpu.pipeline_mode<synchronous>, transform_indices = @transform_3, window_bounds = array<i64: 16, 1>}, {pipeline_mode = #tpu.pipeline_mode<synchronous>, transform_indices = @transform_4, window_bounds = array<i64: 16, 144>}, {pipeline_mode = #tpu.pipeline_mode<synchronous>, transform_indices = @transform_5, window_bounds = array<i64: 16, 1>}, {pipeline_mode = #tpu.pipeline_mode<synchronous>, transform_indices = @transform_6, window_bounds = array<i64: 16, 1>}, {pipeline_mode = #tpu.pipeline_mode<synchronous>, transform_indices = @transform_7, window_bounds = array<i64: 16, 144>}, {pipeline_mode = #tpu.pipeline_mode<synchronous>, transform_indices = @transform_8, window_bounds = array<i64: 16, 128>}]} {
    %cst = arith.constant 0.000000e+00 : f32
    %0 = vector.broadcast %cst : f32 to vector<16x146xf32>
    %c0 = arith.constant 0 : index
    %c0_0 = arith.constant 0 : index
    %1 = vector.load %arg10[%c0, %c0_0] : memref<16x146xf32, #tpu.memory_space<vmem>>, vector<16x146xf32>
    tpu.vector_store %arg10[%c0, %c0_0], %0 {strides = array<i32>} : memref<16x146xf32, #tpu.memory_space<vmem>>, vector<16x146xf32>,
    %c0_1 = arith.constant 0 : index
    %c0_2 = arith.constant 0 : index
    %2 = vector.load %arg1[%c0_1, %c0_2] : memref<16x128xf32, #tpu.memory_space<vmem>>, vector<16x128xf32>
    %c0_3 = arith.constant 0 : index
    %c0_4 = arith.constant 0 : index
    %3 = vector.load %arg3[%c0_3, %c0_4] : memref<16x1xf32, #tpu.memory_space<vmem>>, vector<16x1xf32>
    %4 = vector.broadcast %3 : vector<16x1xf32> to vector<16x128xf32>
    %5 = arith.mulf %2, %4 : vector<16x128xf32>
    %c0_5 = arith.constant 0 : index
    %c0_6 = arith.constant 0 : index
    %6 = vector.load %arg4[%c0_5, %c0_6] : memref<16x1xf32, #tpu.memory_space<vmem>>, vector<16x1xf32>
    %7 = vector.broadcast %6 : vector<16x1xf32> to vector<16x128xf32>
    %8 = arith.addf %5, %7 : vector<16x128xf32>
    %cst_7 = arith.constant 0.000000e+00 : f32
    %9 = vector.broadcast %cst_7 : f32 to vector<16x128xf32>
    %10 = arith.maximumf %8, %9 : vector<16x128xf32>
    %c0_8 = arith.constant 0 : index
    %c0_9 = arith.constant 0 : index
    %11 = vector.load %arg5[%c0_8, %c0_9] : memref<16x144xf32, #tpu.memory_space<vmem>>, vector<16x144xf32>
    %c0_10 = arith.constant 0 : index
    %c9 = arith.constant 9 : index
    %12 = vector.load %arg10[%c0_10, %c9] : memref<16x146xf32, #tpu.memory_space<vmem>>, vector<16x128xf32>
    tpu.vector_store %arg10[%c0_10, %c9], %10 {strides = array<i32>} : memref<16x146xf32, #tpu.memory_space<vmem>>, vector<16x128xf32>,
    %c0_11 = arith.constant 0 : index
    %c0_12 = arith.constant 0 : index
    %13 = vector.load %arg10[%c0_11, %c0_12] : memref<16x146xf32, #tpu.memory_space<vmem>>, vector<16x128xf32>
    %c0_13 = arith.constant 0 : index
    %c0_14 = arith.constant 0 : index
    %14 = vector.load %arg2[%c0_13, %c0_14] : memref<9x128xf32, #tpu.memory_space<vmem>>, vector<1x128xf32>
    %15 = vector.broadcast %14 : vector<1x128xf32> to vector<16x128xf32>
    %16 = arith.mulf %13, %15 : vector<16x128xf32>
    %c0_15 = arith.constant 0 : index
    %c0_16 = arith.constant 0 : index
    %17 = vector.load %arg11[%c0_15, %c0_16] : memref<144x128xf32, #tpu.memory_space<vmem>>, vector<16x128xf32>
    tpu.vector_store %arg11[%c0_15, %c0_16], %16 {strides = array<i32>} : memref<144x128xf32, #tpu.memory_space<vmem>>, vector<16x128xf32>,
    %c0_17 = arith.constant 0 : index
    %c1 = arith.constant 1 : index
    %18 = vector.load %arg10[%c0_17, %c1] : memref<16x146xf32, #tpu.memory_space<vmem>>, vector<16x128xf32>
    %c1_18 = arith.constant 1 : index
    %c0_19 = arith.constant 0 : index
    %19 = vector.load %arg2[%c1_18, %c0_19] : memref<9x128xf32, #tpu.memory_space<vmem>>, vector<1x128xf32>
    %20 = vector.broadcast %19 : vector<1x128xf32> to vector<16x128xf32>
    %21 = arith.mulf %18, %20 : vector<16x128xf32>
    %c16 = arith.constant 16 : index
    %c0_20 = arith.constant 0 : index
    %22 = vector.load %arg11[%c16, %c0_20] : memref<144x128xf32, #tpu.memory_space<vmem>>, vector<16x128xf32>
    tpu.vector_store %arg11[%c16, %c0_20], %21 {strides = array<i32>} : memref<144x128xf32, #tpu.memory_space<vmem>>, vector<16x128xf32>,
    %c0_21 = arith.constant 0 : index
    %c2 = arith.constant 2 : index
    %23 = vector.load %arg10[%c0_21, %c2] : memref<16x146xf32, #tpu.memory_space<vmem>>, vector<16x128xf32>
    %c2_22 = arith.constant 2 : index
    %c0_23 = arith.constant 0 : index
    %24 = vector.load %arg2[%c2_22, %c0_23] : memref<9x128xf32, #tpu.memory_space<vmem>>, vector<1x128xf32>
    %25 = vector.broadcast %24 : vector<1x128xf32> to vector<16x128xf32>
    %26 = arith.mulf %23, %25 : vector<16x128xf32>
    %c32 = arith.constant 32 : index
    %c0_24 = arith.constant 0 : index
    %27 = vector.load %arg11[%c32, %c0_24] : memref<144x128xf32, #tpu.memory_space<vmem>>, vector<16x128xf32>
    tpu.vector_store %arg11[%c32, %c0_24], %26 {strides = array<i32>} : memref<144x128xf32, #tpu.memory_space<vmem>>, vector<16x128xf32>,
    %c0_25 = arith.constant 0 : index
    %c8 = arith.constant 8 : index
    %28 = vector.load %arg10[%c0_25, %c8] : memref<16x146xf32, #tpu.memory_space<vmem>>, vector<16x128xf32>
    %c3 = arith.constant 3 : index
    %c0_26 = arith.constant 0 : index
    %29 = vector.load %arg2[%c3, %c0_26] : memref<9x128xf32, #tpu.memory_space<vmem>>, vector<1x128xf32>
    %30 = vector.broadcast %29 : vector<1x128xf32> to vector<16x128xf32>
    %31 = arith.mulf %28, %30 : vector<16x128xf32>
    %c48 = arith.constant 48 : index
    %c0_27 = arith.constant 0 : index
    %32 = vector.load %arg11[%c48, %c0_27] : memref<144x128xf32, #tpu.memory_space<vmem>>, vector<16x128xf32>
    tpu.vector_store %arg11[%c48, %c0_27], %31 {strides = array<i32>} : memref<144x128xf32, #tpu.memory_space<vmem>>, vector<16x128xf32>,
    %c0_28 = arith.constant 0 : index
    %c9_29 = arith.constant 9 : index
    %33 = vector.load %arg10[%c0_28, %c9_29] : memref<16x146xf32, #tpu.memory_space<vmem>>, vector<16x128xf32>
    %c64 = arith.constant 64 : index
    %c0_30 = arith.constant 0 : index
    %34 = vector.load %arg11[%c64, %c0_30] : memref<144x128xf32, #tpu.memory_space<vmem>>, vector<16x128xf32>
    tpu.vector_store %arg11[%c64, %c0_30], %33 {strides = array<i32>} : memref<144x128xf32, #tpu.memory_space<vmem>>, vector<16x128xf32>,
    %c0_31 = arith.constant 0 : index
    %c10 = arith.constant 10 : index
    %35 = vector.load %arg10[%c0_31, %c10] : memref<16x146xf32, #tpu.memory_space<vmem>>, vector<16x128xf32>
    %c5 = arith.constant 5 : index
    %c0_32 = arith.constant 0 : index
    %36 = vector.load %arg2[%c5, %c0_32] : memref<9x128xf32, #tpu.memory_space<vmem>>, vector<1x128xf32>
    %37 = vector.broadcast %36 : vector<1x128xf32> to vector<16x128xf32>
    %38 = arith.mulf %35, %37 : vector<16x128xf32>
    %c80 = arith.constant 80 : index
    %c0_33 = arith.constant 0 : index
    %39 = vector.load %arg11[%c80, %c0_33] : memref<144x128xf32, #tpu.memory_space<vmem>>, vector<16x128xf32>
    tpu.vector_store %arg11[%c80, %c0_33], %38 {strides = array<i32>} : memref<144x128xf32, #tpu.memory_space<vmem>>, vector<16x128xf32>,
    %c0_34 = arith.constant 0 : index
    %c16_35 = arith.constant 16 : index
    %40 = vector.load %arg10[%c0_34, %c16_35] : memref<16x146xf32, #tpu.memory_space<vmem>>, vector<16x128xf32>
    %c6 = arith.constant 6 : index
    %c0_36 = arith.constant 0 : index
    %41 = vector.load %arg2[%c6, %c0_36] : memref<9x128xf32, #tpu.memory_space<vmem>>, vector<1x128xf32>
    %42 = vector.broadcast %41 : vector<1x128xf32> to vector<16x128xf32>
    %43 = arith.mulf %40, %42 : vector<16x128xf32>
    %c96 = arith.constant 96 : index
    %c0_37 = arith.constant 0 : index
    %44 = vector.load %arg11[%c96, %c0_37] : memref<144x128xf32, #tpu.memory_space<vmem>>, vector<16x128xf32>
    tpu.vector_store %arg11[%c96, %c0_37], %43 {strides = array<i32>} : memref<144x128xf32, #tpu.memory_space<vmem>>, vector<16x128xf32>,
    %c0_38 = arith.constant 0 : index
    %c17 = arith.constant 17 : index
    %45 = vector.load %arg10[%c0_38, %c17] : memref<16x146xf32, #tpu.memory_space<vmem>>, vector<16x128xf32>
    %c7 = arith.constant 7 : index
    %c0_39 = arith.constant 0 : index
    %46 = vector.load %arg2[%c7, %c0_39] : memref<9x128xf32, #tpu.memory_space<vmem>>, vector<1x128xf32>
    %47 = vector.broadcast %46 : vector<1x128xf32> to vector<16x128xf32>
    %48 = arith.mulf %45, %47 : vector<16x128xf32>
    %c112 = arith.constant 112 : index
    %c0_40 = arith.constant 0 : index
    %49 = vector.load %arg11[%c112, %c0_40] : memref<144x128xf32, #tpu.memory_space<vmem>>, vector<16x128xf32>
    tpu.vector_store %arg11[%c112, %c0_40], %48 {strides = array<i32>} : memref<144x128xf32, #tpu.memory_space<vmem>>, vector<16x128xf32>,
    %c0_41 = arith.constant 0 : index
    %c18 = arith.constant 18 : index
    %50 = vector.load %arg10[%c0_41, %c18] : memref<16x146xf32, #tpu.memory_space<vmem>>, vector<16x128xf32>
    %c8_42 = arith.constant 8 : index
    %c0_43 = arith.constant 0 : index
    %51 = vector.load %arg2[%c8_42, %c0_43] : memref<9x128xf32, #tpu.memory_space<vmem>>, vector<1x128xf32>
    %52 = vector.broadcast %51 : vector<1x128xf32> to vector<16x128xf32>
    %53 = arith.mulf %50, %52 : vector<16x128xf32>
    %c128 = arith.constant 128 : index
    %c0_44 = arith.constant 0 : index
    %54 = vector.load %arg11[%c128, %c0_44] : memref<144x128xf32, #tpu.memory_space<vmem>>, vector<16x128xf32>
    tpu.vector_store %arg11[%c128, %c0_44], %53 {strides = array<i32>} : memref<144x128xf32, #tpu.memory_space<vmem>>, vector<16x128xf32>,
    %55 = arith.truncf %11 : vector<16x144xf32> to vector<16x144xbf16>
    %c0_45 = arith.constant 0 : index
    %c0_46 = arith.constant 0 : index
    %56 = vector.load %arg11[%c0_45, %c0_46] : memref<144x128xf32, #tpu.memory_space<vmem>>, vector<144x128xf32>
    %57 = arith.truncf %56 : vector<144x128xf32> to vector<144x128xbf16>
    %cst_47 = arith.constant dense<0.000000e+00> : vector<16x128xf32>
    %58 = tpu.matmul %55, %57, %cst_47 {dimension_numbers = #tpu.dot_dimension_numbers<[1], [0], [0], [1], [0, 0, 1, 1], [], []>} : vector<16x144xbf16>, vector<144x128xbf16>, vector<16x128xf32> -> vector<16x128xf32>
    %c0_48 = arith.constant 0 : index
    %c0_49 = arith.constant 0 : index
    %59 = vector.load %arg6[%c0_48, %c0_49] : memref<16x1xf32, #tpu.memory_space<vmem>>, vector<16x1xf32>
    %60 = vector.broadcast %59 : vector<16x1xf32> to vector<16x128xf32>
    %61 = arith.mulf %58, %60 : vector<16x128xf32>
    %c0_50 = arith.constant 0 : index
    %c0_51 = arith.constant 0 : index
    %62 = vector.load %arg7[%c0_50, %c0_51] : memref<16x1xf32, #tpu.memory_space<vmem>>, vector<16x1xf32>
    %63 = vector.broadcast %62 : vector<16x1xf32> to vector<16x128xf32>
    %64 = arith.addf %61, %63 : vector<16x128xf32>
    %cst_52 = arith.constant 0.000000e+00 : f32
    %65 = vector.broadcast %cst_52 : f32 to vector<16x128xf32>
    %66 = arith.maximumf %64, %65 : vector<16x128xf32>
    %c0_53 = arith.constant 0 : index
    %c0_54 = arith.constant 0 : index
    %67 = vector.load %arg8[%c0_53, %c0_54] : memref<16x144xf32, #tpu.memory_space<vmem>>, vector<16x144xf32>
    %c0_55 = arith.constant 0 : index
    %c9_56 = arith.constant 9 : index
    %68 = vector.load %arg10[%c0_55, %c9_56] : memref<16x146xf32, #tpu.memory_space<vmem>>, vector<16x128xf32>
    tpu.vector_store %arg10[%c0_55, %c9_56], %66 {strides = array<i32>} : memref<16x146xf32, #tpu.memory_space<vmem>>, vector<16x128xf32>,
    %c0_57 = arith.constant 0 : index
    %c0_58 = arith.constant 0 : index
    %69 = vector.load %arg10[%c0_57, %c0_58] : memref<16x146xf32, #tpu.memory_space<vmem>>, vector<16x128xf32>
    %c0_59 = arith.constant 0 : index
    %c0_60 = arith.constant 0 : index
    %70 = vector.load %arg2[%c0_59, %c0_60] : memref<9x128xf32, #tpu.memory_space<vmem>>, vector<1x128xf32>
    %71 = vector.broadcast %70 : vector<1x128xf32> to vector<16x128xf32>
    %72 = arith.mulf %69, %71 : vector<16x128xf32>
    %c0_61 = arith.constant 0 : index
    %c0_62 = arith.constant 0 : index
    %73 = vector.load %arg11[%c0_61, %c0_62] : memref<144x128xf32, #tpu.memory_space<vmem>>, vector<16x128xf32>
    tpu.vector_store %arg11[%c0_61, %c0_62], %72 {strides = array<i32>} : memref<144x128xf32, #tpu.memory_space<vmem>>, vector<16x128xf32>,
    %c0_63 = arith.constant 0 : index
    %c1_64 = arith.constant 1 : index
    %74 = vector.load %arg10[%c0_63, %c1_64] : memref<16x146xf32, #tpu.memory_space<vmem>>, vector<16x128xf32>
    %c1_65 = arith.constant 1 : index
    %c0_66 = arith.constant 0 : index
    %75 = vector.load %arg2[%c1_65, %c0_66] : memref<9x128xf32, #tpu.memory_space<vmem>>, vector<1x128xf32>
    %76 = vector.broadcast %75 : vector<1x128xf32> to vector<16x128xf32>
    %77 = arith.mulf %74, %76 : vector<16x128xf32>
    %c16_67 = arith.constant 16 : index
    %c0_68 = arith.constant 0 : index
    %78 = vector.load %arg11[%c16_67, %c0_68] : memref<144x128xf32, #tpu.memory_space<vmem>>, vector<16x128xf32>
    tpu.vector_store %arg11[%c16_67, %c0_68], %77 {strides = array<i32>} : memref<144x128xf32, #tpu.memory_space<vmem>>, vector<16x128xf32>,
    %c0_69 = arith.constant 0 : index
    %c2_70 = arith.constant 2 : index
    %79 = vector.load %arg10[%c0_69, %c2_70] : memref<16x146xf32, #tpu.memory_space<vmem>>, vector<16x128xf32>
    %c2_71 = arith.constant 2 : index
    %c0_72 = arith.constant 0 : index
    %80 = vector.load %arg2[%c2_71, %c0_72] : memref<9x128xf32, #tpu.memory_space<vmem>>, vector<1x128xf32>
    %81 = vector.broadcast %80 : vector<1x128xf32> to vector<16x128xf32>
    %82 = arith.mulf %79, %81 : vector<16x128xf32>
    %c32_73 = arith.constant 32 : index
    %c0_74 = arith.constant 0 : index
    %83 = vector.load %arg11[%c32_73, %c0_74] : memref<144x128xf32, #tpu.memory_space<vmem>>, vector<16x128xf32>
    tpu.vector_store %arg11[%c32_73, %c0_74], %82 {strides = array<i32>} : memref<144x128xf32, #tpu.memory_space<vmem>>, vector<16x128xf32>,
    %c0_75 = arith.constant 0 : index
    %c8_76 = arith.constant 8 : index
    %84 = vector.load %arg10[%c0_75, %c8_76] : memref<16x146xf32, #tpu.memory_space<vmem>>, vector<16x128xf32>
    %c3_77 = arith.constant 3 : index
    %c0_78 = arith.constant 0 : index
    %85 = vector.load %arg2[%c3_77, %c0_78] : memref<9x128xf32, #tpu.memory_space<vmem>>, vector<1x128xf32>
    %86 = vector.broadcast %85 : vector<1x128xf32> to vector<16x128xf32>
    %87 = arith.mulf %84, %86 : vector<16x128xf32>
    %c48_79 = arith.constant 48 : index
    %c0_80 = arith.constant 0 : index
    %88 = vector.load %arg11[%c48_79, %c0_80] : memref<144x128xf32, #tpu.memory_space<vmem>>, vector<16x128xf32>
    tpu.vector_store %arg11[%c48_79, %c0_80], %87 {strides = array<i32>} : memref<144x128xf32, #tpu.memory_space<vmem>>, vector<16x128xf32>,
    %c0_81 = arith.constant 0 : index
    %c9_82 = arith.constant 9 : index
    %89 = vector.load %arg10[%c0_81, %c9_82] : memref<16x146xf32, #tpu.memory_space<vmem>>, vector<16x128xf32>
    %c64_83 = arith.constant 64 : index
    %c0_84 = arith.constant 0 : index
    %90 = vector.load %arg11[%c64_83, %c0_84] : memref<144x128xf32, #tpu.memory_space<vmem>>, vector<16x128xf32>
    tpu.vector_store %arg11[%c64_83, %c0_84], %89 {strides = array<i32>} : memref<144x128xf32, #tpu.memory_space<vmem>>, vector<16x128xf32>,
    %c0_85 = arith.constant 0 : index
    %c10_86 = arith.constant 10 : index
    %91 = vector.load %arg10[%c0_85, %c10_86] : memref<16x146xf32, #tpu.memory_space<vmem>>, vector<16x128xf32>
    %c5_87 = arith.constant 5 : index
    %c0_88 = arith.constant 0 : index
    %92 = vector.load %arg2[%c5_87, %c0_88] : memref<9x128xf32, #tpu.memory_space<vmem>>, vector<1x128xf32>
    %93 = vector.broadcast %92 : vector<1x128xf32> to vector<16x128xf32>
    %94 = arith.mulf %91, %93 : vector<16x128xf32>
    %c80_89 = arith.constant 80 : index
    %c0_90 = arith.constant 0 : index
    %95 = vector.load %arg11[%c80_89, %c0_90] : memref<144x128xf32, #tpu.memory_space<vmem>>, vector<16x128xf32>
    tpu.vector_store %arg11[%c80_89, %c0_90], %94 {strides = array<i32>} : memref<144x128xf32, #tpu.memory_space<vmem>>, vector<16x128xf32>,
    %c0_91 = arith.constant 0 : index
    %c16_92 = arith.constant 16 : index
    %96 = vector.load %arg10[%c0_91, %c16_92] : memref<16x146xf32, #tpu.memory_space<vmem>>, vector<16x128xf32>
    %c6_93 = arith.constant 6 : index
    %c0_94 = arith.constant 0 : index
    %97 = vector.load %arg2[%c6_93, %c0_94] : memref<9x128xf32, #tpu.memory_space<vmem>>, vector<1x128xf32>
    %98 = vector.broadcast %97 : vector<1x128xf32> to vector<16x128xf32>
    %99 = arith.mulf %96, %98 : vector<16x128xf32>
    %c96_95 = arith.constant 96 : index
    %c0_96 = arith.constant 0 : index
    %100 = vector.load %arg11[%c96_95, %c0_96] : memref<144x128xf32, #tpu.memory_space<vmem>>, vector<16x128xf32>
    tpu.vector_store %arg11[%c96_95, %c0_96], %99 {strides = array<i32>} : memref<144x128xf32, #tpu.memory_space<vmem>>, vector<16x128xf32>,
    %c0_97 = arith.constant 0 : index
    %c17_98 = arith.constant 17 : index
    %101 = vector.load %arg10[%c0_97, %c17_98] : memref<16x146xf32, #tpu.memory_space<vmem>>, vector<16x128xf32>
    %c7_99 = arith.constant 7 : index
    %c0_100 = arith.constant 0 : index
    %102 = vector.load %arg2[%c7_99, %c0_100] : memref<9x128xf32, #tpu.memory_space<vmem>>, vector<1x128xf32>
    %103 = vector.broadcast %102 : vector<1x128xf32> to vector<16x128xf32>
    %104 = arith.mulf %101, %103 : vector<16x128xf32>
    %c112_101 = arith.constant 112 : index
    %c0_102 = arith.constant 0 : index
    %105 = vector.load %arg11[%c112_101, %c0_102] : memref<144x128xf32, #tpu.memory_space<vmem>>, vector<16x128xf32>
    tpu.vector_store %arg11[%c112_101, %c0_102], %104 {strides = array<i32>} : memref<144x128xf32, #tpu.memory_space<vmem>>, vector<16x128xf32>,
    %c0_103 = arith.constant 0 : index
    %c18_104 = arith.constant 18 : index
    %106 = vector.load %arg10[%c0_103, %c18_104] : memref<16x146xf32, #tpu.memory_space<vmem>>, vector<16x128xf32>
    %c8_105 = arith.constant 8 : index
    %c0_106 = arith.constant 0 : index
    %107 = vector.load %arg2[%c8_105, %c0_106] : memref<9x128xf32, #tpu.memory_space<vmem>>, vector<1x128xf32>
    %108 = vector.broadcast %107 : vector<1x128xf32> to vector<16x128xf32>
    %109 = arith.mulf %106, %108 : vector<16x128xf32>
    %c128_107 = arith.constant 128 : index
    %c0_108 = arith.constant 0 : index
    %110 = vector.load %arg11[%c128_107, %c0_108] : memref<144x128xf32, #tpu.memory_space<vmem>>, vector<16x128xf32>
    tpu.vector_store %arg11[%c128_107, %c0_108], %109 {strides = array<i32>} : memref<144x128xf32, #tpu.memory_space<vmem>>, vector<16x128xf32>,
    %111 = arith.truncf %67 : vector<16x144xf32> to vector<16x144xbf16>
    %c0_109 = arith.constant 0 : index
    %c0_110 = arith.constant 0 : index
    %112 = vector.load %arg11[%c0_109, %c0_110] : memref<144x128xf32, #tpu.memory_space<vmem>>, vector<144x128xf32>
    %113 = arith.truncf %112 : vector<144x128xf32> to vector<144x128xbf16>
    %cst_111 = arith.constant dense<0.000000e+00> : vector<16x128xf32>
    %114 = tpu.matmul %111, %113, %cst_111 {dimension_numbers = #tpu.dot_dimension_numbers<[1], [0], [0], [1], [0, 0, 1, 1], [], []>} : vector<16x144xbf16>, vector<144x128xbf16>, vector<16x128xf32> -> vector<16x128xf32>
    %115 = arith.addf %114, %2 : vector<16x128xf32>
    %c0_112 = arith.constant 0 : index
    %c0_113 = arith.constant 0 : index
    %116 = vector.load %arg9[%c0_112, %c0_113] : memref<16x128xf32, #tpu.memory_space<vmem>>, vector<16x128xf32>
    tpu.vector_store %arg9[%c0_112, %c0_113], %115 {strides = array<i32>} : memref<16x128xf32, #tpu.memory_space<vmem>>, vector<16x128xf32>,
    return
  }
  func.func @transform_0(%arg0: i32) -> (i32, i32) {
    %c0_i32 = arith.constant 0 : i32
    %c0_i32_0 = arith.constant 0 : i32
    %c0_i32_1 = arith.constant 0 : i32
    return %c0_i32, %c0_i32_0 : i32, i32
  }
  func.func @transform_1(%arg0: i32) -> (i32, i32) {
    %c0_i32 = arith.constant 0 : i32
    %c0_i32_0 = arith.constant 0 : i32
    %c0_i32_1 = arith.constant 0 : i32
    return %c0_i32, %c0_i32_0 : i32, i32
  }
  func.func @transform_2(%arg0: i32) -> (i32, i32) {
    %c0_i32 = arith.constant 0 : i32
    %c0_i32_0 = arith.constant 0 : i32
    %c0_i32_1 = arith.constant 0 : i32
    return %c0_i32, %c0_i32_0 : i32, i32
  }
  func.func @transform_3(%arg0: i32) -> (i32, i32) {
    %c0_i32 = arith.constant 0 : i32
    %c0_i32_0 = arith.constant 0 : i32
    %c0_i32_1 = arith.constant 0 : i32
    return %c0_i32, %c0_i32_0 : i32, i32
  }
  func.func @transform_4(%arg0: i32) -> (i32, i32) {
    %c0_i32 = arith.constant 0 : i32
    %c0_i32_0 = arith.constant 0 : i32
    %c0_i32_1 = arith.constant 0 : i32
    return %c0_i32, %c0_i32_0 : i32, i32
  }
  func.func @transform_5(%arg0: i32) -> (i32, i32) {
    %c0_i32 = arith.constant 0 : i32
    %c0_i32_0 = arith.constant 0 : i32
    %c0_i32_1 = arith.constant 0 : i32
    return %c0_i32, %c0_i32_0 : i32, i32
  }
  func.func @transform_6(%arg0: i32) -> (i32, i32) {
    %c0_i32 = arith.constant 0 : i32
    %c0_i32_0 = arith.constant 0 : i32
    %c0_i32_1 = arith.constant 0 : i32
    return %c0_i32, %c0_i32_0 : i32, i32
  }
  func.func @transform_7(%arg0: i32) -> (i32, i32) {
    %c0_i32 = arith.constant 0 : i32
    %c0_i32_0 = arith.constant 0 : i32
    %c0_i32_1 = arith.constant 0 : i32
    return %c0_i32, %c0_i32_0 : i32, i32
  }
  func.func @transform_8(%arg0: i32) -> (i32, i32) {
    %c0_i32 = arith.constant 0 : i32
    %c0_i32_0 = arith.constant 0 : i32
    %c0_i32_1 = arith.constant 0 : i32
    return %c0_i32, %c0_i32_0 : i32, i32
  }
}

module attributes {stable_mosaic.version = 11 : i64} {
  func.func @_matmul_kernel(%arg0: i32, %arg1: memref<64x32xf32, #tpu.memory_space<vmem>>, %arg2: memref<32x64xf32, #tpu.memory_space<vmem>>, %arg3: memref<64x1xf32, #tpu.memory_space<vmem>>, %arg4: memref<64x1xf32, #tpu.memory_space<vmem>>, %arg5: memref<32x32xf32, #tpu.memory_space<vmem>>) attributes {dimension_semantics = [#tpu.dimension_semantics<parallel>], iteration_bounds = array<i64: 1>, scalar_prefetch = 0 : i64, scratch_operands = 0 : i64, tpu.core_type = #tpu.core_type<tc>, window_params = [{transform_indices = @transform_0, window_bounds = array<i64: 64, 32>}, {pipeline_mode = #tpu.pipeline_mode<synchronous>, transform_indices = @transform_1, window_bounds = array<i64: 32, 64>}, {pipeline_mode = #tpu.pipeline_mode<synchronous>, transform_indices = @transform_2, window_bounds = array<i64: 64, 1>}, {pipeline_mode = #tpu.pipeline_mode<synchronous>, transform_indices = @transform_3, window_bounds = array<i64: 64, 1>}, {transform_indices = @transform_4, window_bounds = array<i64: 32, 32>}]} {
    %c0 = arith.constant 0 : index
    %c0_0 = arith.constant 0 : index
    %0 = vector.load %arg1[%c0, %c0_0] : memref<64x32xf32, #tpu.memory_space<vmem>>, vector<64x32xf32>
    %c0_1 = arith.constant 0 : index
    %c0_2 = arith.constant 0 : index
    %1 = vector.load %arg3[%c0_1, %c0_2] : memref<64x1xf32, #tpu.memory_space<vmem>>, vector<64x1xf32>
    %2 = vector.broadcast %1 : vector<64x1xf32> to vector<64x32xf32>
    %3 = arith.mulf %0, %2 : vector<64x32xf32>
    %c0_3 = arith.constant 0 : index
    %c0_4 = arith.constant 0 : index
    %4 = vector.load %arg4[%c0_3, %c0_4] : memref<64x1xf32, #tpu.memory_space<vmem>>, vector<64x1xf32>
    %5 = vector.broadcast %4 : vector<64x1xf32> to vector<64x32xf32>
    %6 = arith.addf %3, %5 : vector<64x32xf32>
    %c0_5 = arith.constant 0 : index
    %c0_6 = arith.constant 0 : index
    %7 = vector.load %arg2[%c0_5, %c0_6] : memref<32x64xf32, #tpu.memory_space<vmem>>, vector<32x64xf32>
    %8 = arith.truncf %7 : vector<32x64xf32> to vector<32x64xbf16>
    %9 = arith.truncf %6 : vector<64x32xf32> to vector<64x32xbf16>
    %cst = arith.constant dense<0.000000e+00> : vector<32x32xf32>
    %10 = tpu.matmul %8, %9, %cst {dimension_numbers = #tpu.dot_dimension_numbers<[1], [0], [0], [1], [0, 0, 1, 1], [], []>} : vector<32x64xbf16>, vector<64x32xbf16>, vector<32x32xf32> -> vector<32x32xf32>
    %cst_7 = arith.constant 0.000000e+00 : f32
    %11 = vector.broadcast %cst_7 : f32 to vector<32x32xf32>
    %12 = arith.maximumf %10, %11 : vector<32x32xf32>
    %c0_8 = arith.constant 0 : index
    %c0_9 = arith.constant 0 : index
    %13 = vector.load %arg5[%c0_8, %c0_9] : memref<32x32xf32, #tpu.memory_space<vmem>>, vector<32x32xf32>
    tpu.vector_store %arg5[%c0_8, %c0_9], %12 {strides = array<i32>} : memref<32x32xf32, #tpu.memory_space<vmem>>, vector<32x32xf32>,
    return
  }
  func.func @transform_0(%arg0: i32) -> (i32, i32) {
    %c0_i32 = arith.constant 0 : i32
    %c0_i32_0 = arith.constant 0 : i32
    return %c0_i32, %arg0 : i32, i32
  }
  func.func @transform_1(%arg0: i32) -> (i32, i32) {
    %c0_i32 = arith.constant 0 : i32
    %c0_i32_0 = arith.constant 0 : i32
    %c0_i32_1 = arith.constant 0 : i32
    return %c0_i32, %c0_i32_0 : i32, i32
  }
  func.func @transform_2(%arg0: i32) -> (i32, i32) {
    %c0_i32 = arith.constant 0 : i32
    %c0_i32_0 = arith.constant 0 : i32
    %c0_i32_1 = arith.constant 0 : i32
    return %c0_i32, %c0_i32_0 : i32, i32
  }
  func.func @transform_3(%arg0: i32) -> (i32, i32) {
    %c0_i32 = arith.constant 0 : i32
    %c0_i32_0 = arith.constant 0 : i32
    %c0_i32_1 = arith.constant 0 : i32
    return %c0_i32, %c0_i32_0 : i32, i32
  }
  func.func @transform_4(%arg0: i32) -> (i32, i32) {
    %c0_i32 = arith.constant 0 : i32
    %c0_i32_0 = arith.constant 0 : i32
    return %c0_i32, %arg0 : i32, i32
  }
}

module attributes {stable_mosaic.version = 11 : i64} {
  func.func @_resblock3_kernel(%arg0: i32, %arg1: memref<32x32xf32, #tpu.memory_space<vmem>>, %arg2: memref<9x32xf32, #tpu.memory_space<vmem>>, %arg3: memref<32x1xf32, #tpu.memory_space<vmem>>, %arg4: memref<32x1xf32, #tpu.memory_space<vmem>>, %arg5: memref<32x288xf32, #tpu.memory_space<vmem>>, %arg6: memref<32x1xf32, #tpu.memory_space<vmem>>, %arg7: memref<32x1xf32, #tpu.memory_space<vmem>>, %arg8: memref<32x288xf32, #tpu.memory_space<vmem>>, %arg9: memref<32x32xf32, #tpu.memory_space<vmem>>, %arg10: memref<32x42xf32, #tpu.memory_space<vmem>>, %arg11: memref<288x32xf32, #tpu.memory_space<vmem>>) attributes {dimension_semantics = [#tpu.dimension_semantics<arbitrary>], iteration_bounds = array<i64: 1>, scalar_prefetch = 0 : i64, scratch_operands = 2 : i64, tpu.core_type = #tpu.core_type<tc>, window_params = [{pipeline_mode = #tpu.pipeline_mode<synchronous>, transform_indices = @transform_0, window_bounds = array<i64: 32, 32>}, {pipeline_mode = #tpu.pipeline_mode<synchronous>, transform_indices = @transform_1, window_bounds = array<i64: 9, 32>}, {pipeline_mode = #tpu.pipeline_mode<synchronous>, transform_indices = @transform_2, window_bounds = array<i64: 32, 1>}, {pipeline_mode = #tpu.pipeline_mode<synchronous>, transform_indices = @transform_3, window_bounds = array<i64: 32, 1>}, {pipeline_mode = #tpu.pipeline_mode<synchronous>, transform_indices = @transform_4, window_bounds = array<i64: 32, 288>}, {pipeline_mode = #tpu.pipeline_mode<synchronous>, transform_indices = @transform_5, window_bounds = array<i64: 32, 1>}, {pipeline_mode = #tpu.pipeline_mode<synchronous>, transform_indices = @transform_6, window_bounds = array<i64: 32, 1>}, {pipeline_mode = #tpu.pipeline_mode<synchronous>, transform_indices = @transform_7, window_bounds = array<i64: 32, 288>}, {pipeline_mode = #tpu.pipeline_mode<synchronous>, transform_indices = @transform_8, window_bounds = array<i64: 32, 32>}]} {
    %cst = arith.constant 0.000000e+00 : f32
    %0 = vector.broadcast %cst : f32 to vector<32x42xf32>
    %c0 = arith.constant 0 : index
    %c0_0 = arith.constant 0 : index
    %1 = vector.load %arg10[%c0, %c0_0] : memref<32x42xf32, #tpu.memory_space<vmem>>, vector<32x42xf32>
    tpu.vector_store %arg10[%c0, %c0_0], %0 {strides = array<i32>} : memref<32x42xf32, #tpu.memory_space<vmem>>, vector<32x42xf32>,
    %c0_1 = arith.constant 0 : index
    %c0_2 = arith.constant 0 : index
    %2 = vector.load %arg1[%c0_1, %c0_2] : memref<32x32xf32, #tpu.memory_space<vmem>>, vector<32x32xf32>
    %c0_3 = arith.constant 0 : index
    %c0_4 = arith.constant 0 : index
    %3 = vector.load %arg3[%c0_3, %c0_4] : memref<32x1xf32, #tpu.memory_space<vmem>>, vector<32x1xf32>
    %4 = vector.broadcast %3 : vector<32x1xf32> to vector<32x32xf32>
    %5 = arith.mulf %2, %4 : vector<32x32xf32>
    %c0_5 = arith.constant 0 : index
    %c0_6 = arith.constant 0 : index
    %6 = vector.load %arg4[%c0_5, %c0_6] : memref<32x1xf32, #tpu.memory_space<vmem>>, vector<32x1xf32>
    %7 = vector.broadcast %6 : vector<32x1xf32> to vector<32x32xf32>
    %8 = arith.addf %5, %7 : vector<32x32xf32>
    %cst_7 = arith.constant 0.000000e+00 : f32
    %9 = vector.broadcast %cst_7 : f32 to vector<32x32xf32>
    %10 = arith.maximumf %8, %9 : vector<32x32xf32>
    %c0_8 = arith.constant 0 : index
    %c0_9 = arith.constant 0 : index
    %11 = vector.load %arg5[%c0_8, %c0_9] : memref<32x288xf32, #tpu.memory_space<vmem>>, vector<32x288xf32>
    %c0_10 = arith.constant 0 : index
    %c5 = arith.constant 5 : index
    %12 = vector.load %arg10[%c0_10, %c5] : memref<32x42xf32, #tpu.memory_space<vmem>>, vector<32x32xf32>
    tpu.vector_store %arg10[%c0_10, %c5], %10 {strides = array<i32>} : memref<32x42xf32, #tpu.memory_space<vmem>>, vector<32x32xf32>,
    %c0_11 = arith.constant 0 : index
    %c0_12 = arith.constant 0 : index
    %13 = vector.load %arg10[%c0_11, %c0_12] : memref<32x42xf32, #tpu.memory_space<vmem>>, vector<32x32xf32>
    %c0_13 = arith.constant 0 : index
    %c0_14 = arith.constant 0 : index
    %14 = vector.load %arg2[%c0_13, %c0_14] : memref<9x32xf32, #tpu.memory_space<vmem>>, vector<1x32xf32>
    %15 = vector.broadcast %14 : vector<1x32xf32> to vector<32x32xf32>
    %16 = arith.mulf %13, %15 : vector<32x32xf32>
    %c0_15 = arith.constant 0 : index
    %c0_16 = arith.constant 0 : index
    %17 = vector.load %arg11[%c0_15, %c0_16] : memref<288x32xf32, #tpu.memory_space<vmem>>, vector<32x32xf32>
    tpu.vector_store %arg11[%c0_15, %c0_16], %16 {strides = array<i32>} : memref<288x32xf32, #tpu.memory_space<vmem>>, vector<32x32xf32>,
    %c0_17 = arith.constant 0 : index
    %c1 = arith.constant 1 : index
    %18 = vector.load %arg10[%c0_17, %c1] : memref<32x42xf32, #tpu.memory_space<vmem>>, vector<32x32xf32>
    %c1_18 = arith.constant 1 : index
    %c0_19 = arith.constant 0 : index
    %19 = vector.load %arg2[%c1_18, %c0_19] : memref<9x32xf32, #tpu.memory_space<vmem>>, vector<1x32xf32>
    %20 = vector.broadcast %19 : vector<1x32xf32> to vector<32x32xf32>
    %21 = arith.mulf %18, %20 : vector<32x32xf32>
    %c32 = arith.constant 32 : index
    %c0_20 = arith.constant 0 : index
    %22 = vector.load %arg11[%c32, %c0_20] : memref<288x32xf32, #tpu.memory_space<vmem>>, vector<32x32xf32>
    tpu.vector_store %arg11[%c32, %c0_20], %21 {strides = array<i32>} : memref<288x32xf32, #tpu.memory_space<vmem>>, vector<32x32xf32>,
    %c0_21 = arith.constant 0 : index
    %c2 = arith.constant 2 : index
    %23 = vector.load %arg10[%c0_21, %c2] : memref<32x42xf32, #tpu.memory_space<vmem>>, vector<32x32xf32>
    %c2_22 = arith.constant 2 : index
    %c0_23 = arith.constant 0 : index
    %24 = vector.load %arg2[%c2_22, %c0_23] : memref<9x32xf32, #tpu.memory_space<vmem>>, vector<1x32xf32>
    %25 = vector.broadcast %24 : vector<1x32xf32> to vector<32x32xf32>
    %26 = arith.mulf %23, %25 : vector<32x32xf32>
    %c64 = arith.constant 64 : index
    %c0_24 = arith.constant 0 : index
    %27 = vector.load %arg11[%c64, %c0_24] : memref<288x32xf32, #tpu.memory_space<vmem>>, vector<32x32xf32>
    tpu.vector_store %arg11[%c64, %c0_24], %26 {strides = array<i32>} : memref<288x32xf32, #tpu.memory_space<vmem>>, vector<32x32xf32>,
    %c0_25 = arith.constant 0 : index
    %c4 = arith.constant 4 : index
    %28 = vector.load %arg10[%c0_25, %c4] : memref<32x42xf32, #tpu.memory_space<vmem>>, vector<32x32xf32>
    %c3 = arith.constant 3 : index
    %c0_26 = arith.constant 0 : index
    %29 = vector.load %arg2[%c3, %c0_26] : memref<9x32xf32, #tpu.memory_space<vmem>>, vector<1x32xf32>
    %30 = vector.broadcast %29 : vector<1x32xf32> to vector<32x32xf32>
    %31 = arith.mulf %28, %30 : vector<32x32xf32>
    %c96 = arith.constant 96 : index
    %c0_27 = arith.constant 0 : index
    %32 = vector.load %arg11[%c96, %c0_27] : memref<288x32xf32, #tpu.memory_space<vmem>>, vector<32x32xf32>
    tpu.vector_store %arg11[%c96, %c0_27], %31 {strides = array<i32>} : memref<288x32xf32, #tpu.memory_space<vmem>>, vector<32x32xf32>,
    %c0_28 = arith.constant 0 : index
    %c5_29 = arith.constant 5 : index
    %33 = vector.load %arg10[%c0_28, %c5_29] : memref<32x42xf32, #tpu.memory_space<vmem>>, vector<32x32xf32>
    %c128 = arith.constant 128 : index
    %c0_30 = arith.constant 0 : index
    %34 = vector.load %arg11[%c128, %c0_30] : memref<288x32xf32, #tpu.memory_space<vmem>>, vector<32x32xf32>
    tpu.vector_store %arg11[%c128, %c0_30], %33 {strides = array<i32>} : memref<288x32xf32, #tpu.memory_space<vmem>>, vector<32x32xf32>,
    %c0_31 = arith.constant 0 : index
    %c6 = arith.constant 6 : index
    %35 = vector.load %arg10[%c0_31, %c6] : memref<32x42xf32, #tpu.memory_space<vmem>>, vector<32x32xf32>
    %c5_32 = arith.constant 5 : index
    %c0_33 = arith.constant 0 : index
    %36 = vector.load %arg2[%c5_32, %c0_33] : memref<9x32xf32, #tpu.memory_space<vmem>>, vector<1x32xf32>
    %37 = vector.broadcast %36 : vector<1x32xf32> to vector<32x32xf32>
    %38 = arith.mulf %35, %37 : vector<32x32xf32>
    %c160 = arith.constant 160 : index
    %c0_34 = arith.constant 0 : index
    %39 = vector.load %arg11[%c160, %c0_34] : memref<288x32xf32, #tpu.memory_space<vmem>>, vector<32x32xf32>
    tpu.vector_store %arg11[%c160, %c0_34], %38 {strides = array<i32>} : memref<288x32xf32, #tpu.memory_space<vmem>>, vector<32x32xf32>,
    %c0_35 = arith.constant 0 : index
    %c8 = arith.constant 8 : index
    %40 = vector.load %arg10[%c0_35, %c8] : memref<32x42xf32, #tpu.memory_space<vmem>>, vector<32x32xf32>
    %c6_36 = arith.constant 6 : index
    %c0_37 = arith.constant 0 : index
    %41 = vector.load %arg2[%c6_36, %c0_37] : memref<9x32xf32, #tpu.memory_space<vmem>>, vector<1x32xf32>
    %42 = vector.broadcast %41 : vector<1x32xf32> to vector<32x32xf32>
    %43 = arith.mulf %40, %42 : vector<32x32xf32>
    %c192 = arith.constant 192 : index
    %c0_38 = arith.constant 0 : index
    %44 = vector.load %arg11[%c192, %c0_38] : memref<288x32xf32, #tpu.memory_space<vmem>>, vector<32x32xf32>
    tpu.vector_store %arg11[%c192, %c0_38], %43 {strides = array<i32>} : memref<288x32xf32, #tpu.memory_space<vmem>>, vector<32x32xf32>,
    %c0_39 = arith.constant 0 : index
    %c9 = arith.constant 9 : index
    %45 = vector.load %arg10[%c0_39, %c9] : memref<32x42xf32, #tpu.memory_space<vmem>>, vector<32x32xf32>
    %c7 = arith.constant 7 : index
    %c0_40 = arith.constant 0 : index
    %46 = vector.load %arg2[%c7, %c0_40] : memref<9x32xf32, #tpu.memory_space<vmem>>, vector<1x32xf32>
    %47 = vector.broadcast %46 : vector<1x32xf32> to vector<32x32xf32>
    %48 = arith.mulf %45, %47 : vector<32x32xf32>
    %c224 = arith.constant 224 : index
    %c0_41 = arith.constant 0 : index
    %49 = vector.load %arg11[%c224, %c0_41] : memref<288x32xf32, #tpu.memory_space<vmem>>, vector<32x32xf32>
    tpu.vector_store %arg11[%c224, %c0_41], %48 {strides = array<i32>} : memref<288x32xf32, #tpu.memory_space<vmem>>, vector<32x32xf32>,
    %c0_42 = arith.constant 0 : index
    %c10 = arith.constant 10 : index
    %50 = vector.load %arg10[%c0_42, %c10] : memref<32x42xf32, #tpu.memory_space<vmem>>, vector<32x32xf32>
    %c8_43 = arith.constant 8 : index
    %c0_44 = arith.constant 0 : index
    %51 = vector.load %arg2[%c8_43, %c0_44] : memref<9x32xf32, #tpu.memory_space<vmem>>, vector<1x32xf32>
    %52 = vector.broadcast %51 : vector<1x32xf32> to vector<32x32xf32>
    %53 = arith.mulf %50, %52 : vector<32x32xf32>
    %c256 = arith.constant 256 : index
    %c0_45 = arith.constant 0 : index
    %54 = vector.load %arg11[%c256, %c0_45] : memref<288x32xf32, #tpu.memory_space<vmem>>, vector<32x32xf32>
    tpu.vector_store %arg11[%c256, %c0_45], %53 {strides = array<i32>} : memref<288x32xf32, #tpu.memory_space<vmem>>, vector<32x32xf32>,
    %55 = arith.truncf %11 : vector<32x288xf32> to vector<32x288xbf16>
    %c0_46 = arith.constant 0 : index
    %c0_47 = arith.constant 0 : index
    %56 = vector.load %arg11[%c0_46, %c0_47] : memref<288x32xf32, #tpu.memory_space<vmem>>, vector<288x32xf32>
    %57 = arith.truncf %56 : vector<288x32xf32> to vector<288x32xbf16>
    %cst_48 = arith.constant dense<0.000000e+00> : vector<32x32xf32>
    %58 = tpu.matmul %55, %57, %cst_48 {dimension_numbers = #tpu.dot_dimension_numbers<[1], [0], [0], [1], [0, 0, 1, 1], [], []>} : vector<32x288xbf16>, vector<288x32xbf16>, vector<32x32xf32> -> vector<32x32xf32>
    %c0_49 = arith.constant 0 : index
    %c0_50 = arith.constant 0 : index
    %59 = vector.load %arg6[%c0_49, %c0_50] : memref<32x1xf32, #tpu.memory_space<vmem>>, vector<32x1xf32>
    %60 = vector.broadcast %59 : vector<32x1xf32> to vector<32x32xf32>
    %61 = arith.mulf %58, %60 : vector<32x32xf32>
    %c0_51 = arith.constant 0 : index
    %c0_52 = arith.constant 0 : index
    %62 = vector.load %arg7[%c0_51, %c0_52] : memref<32x1xf32, #tpu.memory_space<vmem>>, vector<32x1xf32>
    %63 = vector.broadcast %62 : vector<32x1xf32> to vector<32x32xf32>
    %64 = arith.addf %61, %63 : vector<32x32xf32>
    %cst_53 = arith.constant 0.000000e+00 : f32
    %65 = vector.broadcast %cst_53 : f32 to vector<32x32xf32>
    %66 = arith.maximumf %64, %65 : vector<32x32xf32>
    %c0_54 = arith.constant 0 : index
    %c0_55 = arith.constant 0 : index
    %67 = vector.load %arg8[%c0_54, %c0_55] : memref<32x288xf32, #tpu.memory_space<vmem>>, vector<32x288xf32>
    %c0_56 = arith.constant 0 : index
    %c5_57 = arith.constant 5 : index
    %68 = vector.load %arg10[%c0_56, %c5_57] : memref<32x42xf32, #tpu.memory_space<vmem>>, vector<32x32xf32>
    tpu.vector_store %arg10[%c0_56, %c5_57], %66 {strides = array<i32>} : memref<32x42xf32, #tpu.memory_space<vmem>>, vector<32x32xf32>,
    %c0_58 = arith.constant 0 : index
    %c0_59 = arith.constant 0 : index
    %69 = vector.load %arg10[%c0_58, %c0_59] : memref<32x42xf32, #tpu.memory_space<vmem>>, vector<32x32xf32>
    %c0_60 = arith.constant 0 : index
    %c0_61 = arith.constant 0 : index
    %70 = vector.load %arg2[%c0_60, %c0_61] : memref<9x32xf32, #tpu.memory_space<vmem>>, vector<1x32xf32>
    %71 = vector.broadcast %70 : vector<1x32xf32> to vector<32x32xf32>
    %72 = arith.mulf %69, %71 : vector<32x32xf32>
    %c0_62 = arith.constant 0 : index
    %c0_63 = arith.constant 0 : index
    %73 = vector.load %arg11[%c0_62, %c0_63] : memref<288x32xf32, #tpu.memory_space<vmem>>, vector<32x32xf32>
    tpu.vector_store %arg11[%c0_62, %c0_63], %72 {strides = array<i32>} : memref<288x32xf32, #tpu.memory_space<vmem>>, vector<32x32xf32>,
    %c0_64 = arith.constant 0 : index
    %c1_65 = arith.constant 1 : index
    %74 = vector.load %arg10[%c0_64, %c1_65] : memref<32x42xf32, #tpu.memory_space<vmem>>, vector<32x32xf32>
    %c1_66 = arith.constant 1 : index
    %c0_67 = arith.constant 0 : index
    %75 = vector.load %arg2[%c1_66, %c0_67] : memref<9x32xf32, #tpu.memory_space<vmem>>, vector<1x32xf32>
    %76 = vector.broadcast %75 : vector<1x32xf32> to vector<32x32xf32>
    %77 = arith.mulf %74, %76 : vector<32x32xf32>
    %c32_68 = arith.constant 32 : index
    %c0_69 = arith.constant 0 : index
    %78 = vector.load %arg11[%c32_68, %c0_69] : memref<288x32xf32, #tpu.memory_space<vmem>>, vector<32x32xf32>
    tpu.vector_store %arg11[%c32_68, %c0_69], %77 {strides = array<i32>} : memref<288x32xf32, #tpu.memory_space<vmem>>, vector<32x32xf32>,
    %c0_70 = arith.constant 0 : index
    %c2_71 = arith.constant 2 : index
    %79 = vector.load %arg10[%c0_70, %c2_71] : memref<32x42xf32, #tpu.memory_space<vmem>>, vector<32x32xf32>
    %c2_72 = arith.constant 2 : index
    %c0_73 = arith.constant 0 : index
    %80 = vector.load %arg2[%c2_72, %c0_73] : memref<9x32xf32, #tpu.memory_space<vmem>>, vector<1x32xf32>
    %81 = vector.broadcast %80 : vector<1x32xf32> to vector<32x32xf32>
    %82 = arith.mulf %79, %81 : vector<32x32xf32>
    %c64_74 = arith.constant 64 : index
    %c0_75 = arith.constant 0 : index
    %83 = vector.load %arg11[%c64_74, %c0_75] : memref<288x32xf32, #tpu.memory_space<vmem>>, vector<32x32xf32>
    tpu.vector_store %arg11[%c64_74, %c0_75], %82 {strides = array<i32>} : memref<288x32xf32, #tpu.memory_space<vmem>>, vector<32x32xf32>,
    %c0_76 = arith.constant 0 : index
    %c4_77 = arith.constant 4 : index
    %84 = vector.load %arg10[%c0_76, %c4_77] : memref<32x42xf32, #tpu.memory_space<vmem>>, vector<32x32xf32>
    %c3_78 = arith.constant 3 : index
    %c0_79 = arith.constant 0 : index
    %85 = vector.load %arg2[%c3_78, %c0_79] : memref<9x32xf32, #tpu.memory_space<vmem>>, vector<1x32xf32>
    %86 = vector.broadcast %85 : vector<1x32xf32> to vector<32x32xf32>
    %87 = arith.mulf %84, %86 : vector<32x32xf32>
    %c96_80 = arith.constant 96 : index
    %c0_81 = arith.constant 0 : index
    %88 = vector.load %arg11[%c96_80, %c0_81] : memref<288x32xf32, #tpu.memory_space<vmem>>, vector<32x32xf32>
    tpu.vector_store %arg11[%c96_80, %c0_81], %87 {strides = array<i32>} : memref<288x32xf32, #tpu.memory_space<vmem>>, vector<32x32xf32>,
    %c0_82 = arith.constant 0 : index
    %c5_83 = arith.constant 5 : index
    %89 = vector.load %arg10[%c0_82, %c5_83] : memref<32x42xf32, #tpu.memory_space<vmem>>, vector<32x32xf32>
    %c128_84 = arith.constant 128 : index
    %c0_85 = arith.constant 0 : index
    %90 = vector.load %arg11[%c128_84, %c0_85] : memref<288x32xf32, #tpu.memory_space<vmem>>, vector<32x32xf32>
    tpu.vector_store %arg11[%c128_84, %c0_85], %89 {strides = array<i32>} : memref<288x32xf32, #tpu.memory_space<vmem>>, vector<32x32xf32>,
    %c0_86 = arith.constant 0 : index
    %c6_87 = arith.constant 6 : index
    %91 = vector.load %arg10[%c0_86, %c6_87] : memref<32x42xf32, #tpu.memory_space<vmem>>, vector<32x32xf32>
    %c5_88 = arith.constant 5 : index
    %c0_89 = arith.constant 0 : index
    %92 = vector.load %arg2[%c5_88, %c0_89] : memref<9x32xf32, #tpu.memory_space<vmem>>, vector<1x32xf32>
    %93 = vector.broadcast %92 : vector<1x32xf32> to vector<32x32xf32>
    %94 = arith.mulf %91, %93 : vector<32x32xf32>
    %c160_90 = arith.constant 160 : index
    %c0_91 = arith.constant 0 : index
    %95 = vector.load %arg11[%c160_90, %c0_91] : memref<288x32xf32, #tpu.memory_space<vmem>>, vector<32x32xf32>
    tpu.vector_store %arg11[%c160_90, %c0_91], %94 {strides = array<i32>} : memref<288x32xf32, #tpu.memory_space<vmem>>, vector<32x32xf32>,
    %c0_92 = arith.constant 0 : index
    %c8_93 = arith.constant 8 : index
    %96 = vector.load %arg10[%c0_92, %c8_93] : memref<32x42xf32, #tpu.memory_space<vmem>>, vector<32x32xf32>
    %c6_94 = arith.constant 6 : index
    %c0_95 = arith.constant 0 : index
    %97 = vector.load %arg2[%c6_94, %c0_95] : memref<9x32xf32, #tpu.memory_space<vmem>>, vector<1x32xf32>
    %98 = vector.broadcast %97 : vector<1x32xf32> to vector<32x32xf32>
    %99 = arith.mulf %96, %98 : vector<32x32xf32>
    %c192_96 = arith.constant 192 : index
    %c0_97 = arith.constant 0 : index
    %100 = vector.load %arg11[%c192_96, %c0_97] : memref<288x32xf32, #tpu.memory_space<vmem>>, vector<32x32xf32>
    tpu.vector_store %arg11[%c192_96, %c0_97], %99 {strides = array<i32>} : memref<288x32xf32, #tpu.memory_space<vmem>>, vector<32x32xf32>,
    %c0_98 = arith.constant 0 : index
    %c9_99 = arith.constant 9 : index
    %101 = vector.load %arg10[%c0_98, %c9_99] : memref<32x42xf32, #tpu.memory_space<vmem>>, vector<32x32xf32>
    %c7_100 = arith.constant 7 : index
    %c0_101 = arith.constant 0 : index
    %102 = vector.load %arg2[%c7_100, %c0_101] : memref<9x32xf32, #tpu.memory_space<vmem>>, vector<1x32xf32>
    %103 = vector.broadcast %102 : vector<1x32xf32> to vector<32x32xf32>
    %104 = arith.mulf %101, %103 : vector<32x32xf32>
    %c224_102 = arith.constant 224 : index
    %c0_103 = arith.constant 0 : index
    %105 = vector.load %arg11[%c224_102, %c0_103] : memref<288x32xf32, #tpu.memory_space<vmem>>, vector<32x32xf32>
    tpu.vector_store %arg11[%c224_102, %c0_103], %104 {strides = array<i32>} : memref<288x32xf32, #tpu.memory_space<vmem>>, vector<32x32xf32>,
    %c0_104 = arith.constant 0 : index
    %c10_105 = arith.constant 10 : index
    %106 = vector.load %arg10[%c0_104, %c10_105] : memref<32x42xf32, #tpu.memory_space<vmem>>, vector<32x32xf32>
    %c8_106 = arith.constant 8 : index
    %c0_107 = arith.constant 0 : index
    %107 = vector.load %arg2[%c8_106, %c0_107] : memref<9x32xf32, #tpu.memory_space<vmem>>, vector<1x32xf32>
    %108 = vector.broadcast %107 : vector<1x32xf32> to vector<32x32xf32>
    %109 = arith.mulf %106, %108 : vector<32x32xf32>
    %c256_108 = arith.constant 256 : index
    %c0_109 = arith.constant 0 : index
    %110 = vector.load %arg11[%c256_108, %c0_109] : memref<288x32xf32, #tpu.memory_space<vmem>>, vector<32x32xf32>
    tpu.vector_store %arg11[%c256_108, %c0_109], %109 {strides = array<i32>} : memref<288x32xf32, #tpu.memory_space<vmem>>, vector<32x32xf32>,
    %111 = arith.truncf %67 : vector<32x288xf32> to vector<32x288xbf16>
    %c0_110 = arith.constant 0 : index
    %c0_111 = arith.constant 0 : index
    %112 = vector.load %arg11[%c0_110, %c0_111] : memref<288x32xf32, #tpu.memory_space<vmem>>, vector<288x32xf32>
    %113 = arith.truncf %112 : vector<288x32xf32> to vector<288x32xbf16>
    %cst_112 = arith.constant dense<0.000000e+00> : vector<32x32xf32>
    %114 = tpu.matmul %111, %113, %cst_112 {dimension_numbers = #tpu.dot_dimension_numbers<[1], [0], [0], [1], [0, 0, 1, 1], [], []>} : vector<32x288xbf16>, vector<288x32xbf16>, vector<32x32xf32> -> vector<32x32xf32>
    %115 = arith.addf %114, %2 : vector<32x32xf32>
    %c0_113 = arith.constant 0 : index
    %c0_114 = arith.constant 0 : index
    %116 = vector.load %arg9[%c0_113, %c0_114] : memref<32x32xf32, #tpu.memory_space<vmem>>, vector<32x32xf32>
    tpu.vector_store %arg9[%c0_113, %c0_114], %115 {strides = array<i32>} : memref<32x32xf32, #tpu.memory_space<vmem>>, vector<32x32xf32>,
    return
  }
  func.func @transform_0(%arg0: i32) -> (i32, i32) {
    %c0_i32 = arith.constant 0 : i32
    %c0_i32_0 = arith.constant 0 : i32
    %c0_i32_1 = arith.constant 0 : i32
    return %c0_i32, %c0_i32_0 : i32, i32
  }
  func.func @transform_1(%arg0: i32) -> (i32, i32) {
    %c0_i32 = arith.constant 0 : i32
    %c0_i32_0 = arith.constant 0 : i32
    %c0_i32_1 = arith.constant 0 : i32
    return %c0_i32, %c0_i32_0 : i32, i32
  }
  func.func @transform_2(%arg0: i32) -> (i32, i32) {
    %c0_i32 = arith.constant 0 : i32
    %c0_i32_0 = arith.constant 0 : i32
    %c0_i32_1 = arith.constant 0 : i32
    return %c0_i32, %c0_i32_0 : i32, i32
  }
  func.func @transform_3(%arg0: i32) -> (i32, i32) {
    %c0_i32 = arith.constant 0 : i32
    %c0_i32_0 = arith.constant 0 : i32
    %c0_i32_1 = arith.constant 0 : i32
    return %c0_i32, %c0_i32_0 : i32, i32
  }
  func.func @transform_4(%arg0: i32) -> (i32, i32) {
    %c0_i32 = arith.constant 0 : i32
    %c0_i32_0 = arith.constant 0 : i32
    %c0_i32_1 = arith.constant 0 : i32
    return %c0_i32, %c0_i32_0 : i32, i32
  }
  func.func @transform_5(%arg0: i32) -> (i32, i32) {
    %c0_i32 = arith.constant 0 : i32
    %c0_i32_0 = arith.constant 0 : i32
    %c0_i32_1 = arith.constant 0 : i32
    return %c0_i32, %c0_i32_0 : i32, i32
  }
  func.func @transform_6(%arg0: i32) -> (i32, i32) {
    %c0_i32 = arith.constant 0 : i32
    %c0_i32_0 = arith.constant 0 : i32
    %c0_i32_1 = arith.constant 0 : i32
    return %c0_i32, %c0_i32_0 : i32, i32
  }
  func.func @transform_7(%arg0: i32) -> (i32, i32) {
    %c0_i32 = arith.constant 0 : i32
    %c0_i32_0 = arith.constant 0 : i32
    %c0_i32_1 = arith.constant 0 : i32
    return %c0_i32, %c0_i32_0 : i32, i32
  }
  func.func @transform_8(%arg0: i32) -> (i32, i32) {
    %c0_i32 = arith.constant 0 : i32
    %c0_i32_0 = arith.constant 0 : i32
    %c0_i32_1 = arith.constant 0 : i32
    return %c0_i32, %c0_i32_0 : i32, i32
  }
}

module attributes {stable_mosaic.version = 11 : i64} {
  func.func @_matmul_kernel(%arg0: i32, %arg1: memref<128x8xf32, #tpu.memory_space<vmem>>, %arg2: memref<64x128xf32, #tpu.memory_space<vmem>>, %arg3: memref<128x1xf32, #tpu.memory_space<vmem>>, %arg4: memref<128x1xf32, #tpu.memory_space<vmem>>, %arg5: memref<64x8xf32, #tpu.memory_space<vmem>>) attributes {dimension_semantics = [#tpu.dimension_semantics<parallel>], iteration_bounds = array<i64: 1>, scalar_prefetch = 0 : i64, scratch_operands = 0 : i64, tpu.core_type = #tpu.core_type<tc>, window_params = [{transform_indices = @transform_0, window_bounds = array<i64: 128, 8>}, {pipeline_mode = #tpu.pipeline_mode<synchronous>, transform_indices = @transform_1, window_bounds = array<i64: 64, 128>}, {pipeline_mode = #tpu.pipeline_mode<synchronous>, transform_indices = @transform_2, window_bounds = array<i64: 128, 1>}, {pipeline_mode = #tpu.pipeline_mode<synchronous>, transform_indices = @transform_3, window_bounds = array<i64: 128, 1>}, {transform_indices = @transform_4, window_bounds = array<i64: 64, 8>}]} {
    %c0 = arith.constant 0 : index
    %c0_0 = arith.constant 0 : index
    %0 = vector.load %arg1[%c0, %c0_0] : memref<128x8xf32, #tpu.memory_space<vmem>>, vector<128x8xf32>
    %c0_1 = arith.constant 0 : index
    %c0_2 = arith.constant 0 : index
    %1 = vector.load %arg3[%c0_1, %c0_2] : memref<128x1xf32, #tpu.memory_space<vmem>>, vector<128x1xf32>
    %2 = vector.broadcast %1 : vector<128x1xf32> to vector<128x8xf32>
    %3 = arith.mulf %0, %2 : vector<128x8xf32>
    %c0_3 = arith.constant 0 : index
    %c0_4 = arith.constant 0 : index
    %4 = vector.load %arg4[%c0_3, %c0_4] : memref<128x1xf32, #tpu.memory_space<vmem>>, vector<128x1xf32>
    %5 = vector.broadcast %4 : vector<128x1xf32> to vector<128x8xf32>
    %6 = arith.addf %3, %5 : vector<128x8xf32>
    %c0_5 = arith.constant 0 : index
    %c0_6 = arith.constant 0 : index
    %7 = vector.load %arg2[%c0_5, %c0_6] : memref<64x128xf32, #tpu.memory_space<vmem>>, vector<64x128xf32>
    %8 = arith.truncf %7 : vector<64x128xf32> to vector<64x128xbf16>
    %9 = arith.truncf %6 : vector<128x8xf32> to vector<128x8xbf16>
    %cst = arith.constant dense<0.000000e+00> : vector<64x8xf32>
    %10 = tpu.matmul %8, %9, %cst {dimension_numbers = #tpu.dot_dimension_numbers<[1], [0], [0], [1], [0, 0, 1, 1], [], []>} : vector<64x128xbf16>, vector<128x8xbf16>, vector<64x8xf32> -> vector<64x8xf32>
    %cst_7 = arith.constant 0.000000e+00 : f32
    %11 = vector.broadcast %cst_7 : f32 to vector<64x8xf32>
    %12 = arith.maximumf %10, %11 : vector<64x8xf32>
    %c0_8 = arith.constant 0 : index
    %c0_9 = arith.constant 0 : index
    %13 = vector.load %arg5[%c0_8, %c0_9] : memref<64x8xf32, #tpu.memory_space<vmem>>, vector<64x8xf32>
    tpu.vector_store %arg5[%c0_8, %c0_9], %12 {strides = array<i32>} : memref<64x8xf32, #tpu.memory_space<vmem>>, vector<64x8xf32>,
    return
  }
  func.func @transform_0(%arg0: i32) -> (i32, i32) {
    %c0_i32 = arith.constant 0 : i32
    %c0_i32_0 = arith.constant 0 : i32
    return %c0_i32, %arg0 : i32, i32
  }
  func.func @transform_1(%arg0: i32) -> (i32, i32) {
    %c0_i32 = arith.constant 0 : i32
    %c0_i32_0 = arith.constant 0 : i32
    %c0_i32_1 = arith.constant 0 : i32
    return %c0_i32, %c0_i32_0 : i32, i32
  }
  func.func @transform_2(%arg0: i32) -> (i32, i32) {
    %c0_i32 = arith.constant 0 : i32
    %c0_i32_0 = arith.constant 0 : i32
    %c0_i32_1 = arith.constant 0 : i32
    return %c0_i32, %c0_i32_0 : i32, i32
  }
  func.func @transform_3(%arg0: i32) -> (i32, i32) {
    %c0_i32 = arith.constant 0 : i32
    %c0_i32_0 = arith.constant 0 : i32
    %c0_i32_1 = arith.constant 0 : i32
    return %c0_i32, %c0_i32_0 : i32, i32
  }
  func.func @transform_4(%arg0: i32) -> (i32, i32) {
    %c0_i32 = arith.constant 0 : i32
    %c0_i32_0 = arith.constant 0 : i32
    return %c0_i32, %arg0 : i32, i32
  }
}

module attributes {stable_mosaic.version = 11 : i64} {
  func.func @_resblock3_kernel(%arg0: i32, %arg1: memref<64x8xf32, #tpu.memory_space<vmem>>, %arg2: memref<9x8xf32, #tpu.memory_space<vmem>>, %arg3: memref<64x1xf32, #tpu.memory_space<vmem>>, %arg4: memref<64x1xf32, #tpu.memory_space<vmem>>, %arg5: memref<64x576xf32, #tpu.memory_space<vmem>>, %arg6: memref<64x1xf32, #tpu.memory_space<vmem>>, %arg7: memref<64x1xf32, #tpu.memory_space<vmem>>, %arg8: memref<64x576xf32, #tpu.memory_space<vmem>>, %arg9: memref<64x8xf32, #tpu.memory_space<vmem>>, %arg10: memref<64x14xf32, #tpu.memory_space<vmem>>, %arg11: memref<576x8xf32, #tpu.memory_space<vmem>>) attributes {dimension_semantics = [#tpu.dimension_semantics<arbitrary>], iteration_bounds = array<i64: 1>, scalar_prefetch = 0 : i64, scratch_operands = 2 : i64, tpu.core_type = #tpu.core_type<tc>, window_params = [{pipeline_mode = #tpu.pipeline_mode<synchronous>, transform_indices = @transform_0, window_bounds = array<i64: 64, 8>}, {pipeline_mode = #tpu.pipeline_mode<synchronous>, transform_indices = @transform_1, window_bounds = array<i64: 9, 8>}, {pipeline_mode = #tpu.pipeline_mode<synchronous>, transform_indices = @transform_2, window_bounds = array<i64: 64, 1>}, {pipeline_mode = #tpu.pipeline_mode<synchronous>, transform_indices = @transform_3, window_bounds = array<i64: 64, 1>}, {pipeline_mode = #tpu.pipeline_mode<synchronous>, transform_indices = @transform_4, window_bounds = array<i64: 64, 576>}, {pipeline_mode = #tpu.pipeline_mode<synchronous>, transform_indices = @transform_5, window_bounds = array<i64: 64, 1>}, {pipeline_mode = #tpu.pipeline_mode<synchronous>, transform_indices = @transform_6, window_bounds = array<i64: 64, 1>}, {pipeline_mode = #tpu.pipeline_mode<synchronous>, transform_indices = @transform_7, window_bounds = array<i64: 64, 576>}, {pipeline_mode = #tpu.pipeline_mode<synchronous>, transform_indices = @transform_8, window_bounds = array<i64: 64, 8>}]} {
    %cst = arith.constant 0.000000e+00 : f32
    %0 = vector.broadcast %cst : f32 to vector<64x14xf32>
    %c0 = arith.constant 0 : index
    %c0_0 = arith.constant 0 : index
    %1 = vector.load %arg10[%c0, %c0_0] : memref<64x14xf32, #tpu.memory_space<vmem>>, vector<64x14xf32>
    tpu.vector_store %arg10[%c0, %c0_0], %0 {strides = array<i32>} : memref<64x14xf32, #tpu.memory_space<vmem>>, vector<64x14xf32>,
    %c0_1 = arith.constant 0 : index
    %c0_2 = arith.constant 0 : index
    %2 = vector.load %arg1[%c0_1, %c0_2] : memref<64x8xf32, #tpu.memory_space<vmem>>, vector<64x8xf32>
    %c0_3 = arith.constant 0 : index
    %c0_4 = arith.constant 0 : index
    %3 = vector.load %arg3[%c0_3, %c0_4] : memref<64x1xf32, #tpu.memory_space<vmem>>, vector<64x1xf32>
    %4 = vector.broadcast %3 : vector<64x1xf32> to vector<64x8xf32>
    %5 = arith.mulf %2, %4 : vector<64x8xf32>
    %c0_5 = arith.constant 0 : index
    %c0_6 = arith.constant 0 : index
    %6 = vector.load %arg4[%c0_5, %c0_6] : memref<64x1xf32, #tpu.memory_space<vmem>>, vector<64x1xf32>
    %7 = vector.broadcast %6 : vector<64x1xf32> to vector<64x8xf32>
    %8 = arith.addf %5, %7 : vector<64x8xf32>
    %cst_7 = arith.constant 0.000000e+00 : f32
    %9 = vector.broadcast %cst_7 : f32 to vector<64x8xf32>
    %10 = arith.maximumf %8, %9 : vector<64x8xf32>
    %c0_8 = arith.constant 0 : index
    %c0_9 = arith.constant 0 : index
    %11 = vector.load %arg5[%c0_8, %c0_9] : memref<64x576xf32, #tpu.memory_space<vmem>>, vector<64x576xf32>
    %c0_10 = arith.constant 0 : index
    %c3 = arith.constant 3 : index
    %12 = vector.load %arg10[%c0_10, %c3] : memref<64x14xf32, #tpu.memory_space<vmem>>, vector<64x8xf32>
    tpu.vector_store %arg10[%c0_10, %c3], %10 {strides = array<i32>} : memref<64x14xf32, #tpu.memory_space<vmem>>, vector<64x8xf32>,
    %c0_11 = arith.constant 0 : index
    %c0_12 = arith.constant 0 : index
    %13 = vector.load %arg10[%c0_11, %c0_12] : memref<64x14xf32, #tpu.memory_space<vmem>>, vector<64x8xf32>
    %c0_13 = arith.constant 0 : index
    %c0_14 = arith.constant 0 : index
    %14 = vector.load %arg2[%c0_13, %c0_14] : memref<9x8xf32, #tpu.memory_space<vmem>>, vector<1x8xf32>
    %15 = vector.broadcast %14 : vector<1x8xf32> to vector<64x8xf32>
    %16 = arith.mulf %13, %15 : vector<64x8xf32>
    %c0_15 = arith.constant 0 : index
    %c0_16 = arith.constant 0 : index
    %17 = vector.load %arg11[%c0_15, %c0_16] : memref<576x8xf32, #tpu.memory_space<vmem>>, vector<64x8xf32>
    tpu.vector_store %arg11[%c0_15, %c0_16], %16 {strides = array<i32>} : memref<576x8xf32, #tpu.memory_space<vmem>>, vector<64x8xf32>,
    %c0_17 = arith.constant 0 : index
    %c1 = arith.constant 1 : index
    %18 = vector.load %arg10[%c0_17, %c1] : memref<64x14xf32, #tpu.memory_space<vmem>>, vector<64x8xf32>
    %c1_18 = arith.constant 1 : index
    %c0_19 = arith.constant 0 : index
    %19 = vector.load %arg2[%c1_18, %c0_19] : memref<9x8xf32, #tpu.memory_space<vmem>>, vector<1x8xf32>
    %20 = vector.broadcast %19 : vector<1x8xf32> to vector<64x8xf32>
    %21 = arith.mulf %18, %20 : vector<64x8xf32>
    %c64 = arith.constant 64 : index
    %c0_20 = arith.constant 0 : index
    %22 = vector.load %arg11[%c64, %c0_20] : memref<576x8xf32, #tpu.memory_space<vmem>>, vector<64x8xf32>
    tpu.vector_store %arg11[%c64, %c0_20], %21 {strides = array<i32>} : memref<576x8xf32, #tpu.memory_space<vmem>>, vector<64x8xf32>,
    %c0_21 = arith.constant 0 : index
    %c2 = arith.constant 2 : index
    %23 = vector.load %arg10[%c0_21, %c2] : memref<64x14xf32, #tpu.memory_space<vmem>>, vector<64x8xf32>
    %c2_22 = arith.constant 2 : index
    %c0_23 = arith.constant 0 : index
    %24 = vector.load %arg2[%c2_22, %c0_23] : memref<9x8xf32, #tpu.memory_space<vmem>>, vector<1x8xf32>
    %25 = vector.broadcast %24 : vector<1x8xf32> to vector<64x8xf32>
    %26 = arith.mulf %23, %25 : vector<64x8xf32>
    %c128 = arith.constant 128 : index
    %c0_24 = arith.constant 0 : index
    %27 = vector.load %arg11[%c128, %c0_24] : memref<576x8xf32, #tpu.memory_space<vmem>>, vector<64x8xf32>
    tpu.vector_store %arg11[%c128, %c0_24], %26 {strides = array<i32>} : memref<576x8xf32, #tpu.memory_space<vmem>>, vector<64x8xf32>,
    %c0_25 = arith.constant 0 : index
    %c2_26 = arith.constant 2 : index
    %28 = vector.load %arg10[%c0_25, %c2_26] : memref<64x14xf32, #tpu.memory_space<vmem>>, vector<64x8xf32>
    %c3_27 = arith.constant 3 : index
    %c0_28 = arith.constant 0 : index
    %29 = vector.load %arg2[%c3_27, %c0_28] : memref<9x8xf32, #tpu.memory_space<vmem>>, vector<1x8xf32>
    %30 = vector.broadcast %29 : vector<1x8xf32> to vector<64x8xf32>
    %31 = arith.mulf %28, %30 : vector<64x8xf32>
    %c192 = arith.constant 192 : index
    %c0_29 = arith.constant 0 : index
    %32 = vector.load %arg11[%c192, %c0_29] : memref<576x8xf32, #tpu.memory_space<vmem>>, vector<64x8xf32>
    tpu.vector_store %arg11[%c192, %c0_29], %31 {strides = array<i32>} : memref<576x8xf32, #tpu.memory_space<vmem>>, vector<64x8xf32>,
    %c0_30 = arith.constant 0 : index
    %c3_31 = arith.constant 3 : index
    %33 = vector.load %arg10[%c0_30, %c3_31] : memref<64x14xf32, #tpu.memory_space<vmem>>, vector<64x8xf32>
    %c256 = arith.constant 256 : index
    %c0_32 = arith.constant 0 : index
    %34 = vector.load %arg11[%c256, %c0_32] : memref<576x8xf32, #tpu.memory_space<vmem>>, vector<64x8xf32>
    tpu.vector_store %arg11[%c256, %c0_32], %33 {strides = array<i32>} : memref<576x8xf32, #tpu.memory_space<vmem>>, vector<64x8xf32>,
    %c0_33 = arith.constant 0 : index
    %c4 = arith.constant 4 : index
    %35 = vector.load %arg10[%c0_33, %c4] : memref<64x14xf32, #tpu.memory_space<vmem>>, vector<64x8xf32>
    %c5 = arith.constant 5 : index
    %c0_34 = arith.constant 0 : index
    %36 = vector.load %arg2[%c5, %c0_34] : memref<9x8xf32, #tpu.memory_space<vmem>>, vector<1x8xf32>
    %37 = vector.broadcast %36 : vector<1x8xf32> to vector<64x8xf32>
    %38 = arith.mulf %35, %37 : vector<64x8xf32>
    %c320 = arith.constant 320 : index
    %c0_35 = arith.constant 0 : index
    %39 = vector.load %arg11[%c320, %c0_35] : memref<576x8xf32, #tpu.memory_space<vmem>>, vector<64x8xf32>
    tpu.vector_store %arg11[%c320, %c0_35], %38 {strides = array<i32>} : memref<576x8xf32, #tpu.memory_space<vmem>>, vector<64x8xf32>,
    %c0_36 = arith.constant 0 : index
    %c4_37 = arith.constant 4 : index
    %40 = vector.load %arg10[%c0_36, %c4_37] : memref<64x14xf32, #tpu.memory_space<vmem>>, vector<64x8xf32>
    %c6 = arith.constant 6 : index
    %c0_38 = arith.constant 0 : index
    %41 = vector.load %arg2[%c6, %c0_38] : memref<9x8xf32, #tpu.memory_space<vmem>>, vector<1x8xf32>
    %42 = vector.broadcast %41 : vector<1x8xf32> to vector<64x8xf32>
    %43 = arith.mulf %40, %42 : vector<64x8xf32>
    %c384 = arith.constant 384 : index
    %c0_39 = arith.constant 0 : index
    %44 = vector.load %arg11[%c384, %c0_39] : memref<576x8xf32, #tpu.memory_space<vmem>>, vector<64x8xf32>
    tpu.vector_store %arg11[%c384, %c0_39], %43 {strides = array<i32>} : memref<576x8xf32, #tpu.memory_space<vmem>>, vector<64x8xf32>,
    %c0_40 = arith.constant 0 : index
    %c5_41 = arith.constant 5 : index
    %45 = vector.load %arg10[%c0_40, %c5_41] : memref<64x14xf32, #tpu.memory_space<vmem>>, vector<64x8xf32>
    %c7 = arith.constant 7 : index
    %c0_42 = arith.constant 0 : index
    %46 = vector.load %arg2[%c7, %c0_42] : memref<9x8xf32, #tpu.memory_space<vmem>>, vector<1x8xf32>
    %47 = vector.broadcast %46 : vector<1x8xf32> to vector<64x8xf32>
    %48 = arith.mulf %45, %47 : vector<64x8xf32>
    %c448 = arith.constant 448 : index
    %c0_43 = arith.constant 0 : index
    %49 = vector.load %arg11[%c448, %c0_43] : memref<576x8xf32, #tpu.memory_space<vmem>>, vector<64x8xf32>
    tpu.vector_store %arg11[%c448, %c0_43], %48 {strides = array<i32>} : memref<576x8xf32, #tpu.memory_space<vmem>>, vector<64x8xf32>,
    %c0_44 = arith.constant 0 : index
    %c6_45 = arith.constant 6 : index
    %50 = vector.load %arg10[%c0_44, %c6_45] : memref<64x14xf32, #tpu.memory_space<vmem>>, vector<64x8xf32>
    %c8 = arith.constant 8 : index
    %c0_46 = arith.constant 0 : index
    %51 = vector.load %arg2[%c8, %c0_46] : memref<9x8xf32, #tpu.memory_space<vmem>>, vector<1x8xf32>
    %52 = vector.broadcast %51 : vector<1x8xf32> to vector<64x8xf32>
    %53 = arith.mulf %50, %52 : vector<64x8xf32>
    %c512 = arith.constant 512 : index
    %c0_47 = arith.constant 0 : index
    %54 = vector.load %arg11[%c512, %c0_47] : memref<576x8xf32, #tpu.memory_space<vmem>>, vector<64x8xf32>
    tpu.vector_store %arg11[%c512, %c0_47], %53 {strides = array<i32>} : memref<576x8xf32, #tpu.memory_space<vmem>>, vector<64x8xf32>,
    %55 = arith.truncf %11 : vector<64x576xf32> to vector<64x576xbf16>
    %c0_48 = arith.constant 0 : index
    %c0_49 = arith.constant 0 : index
    %56 = vector.load %arg11[%c0_48, %c0_49] : memref<576x8xf32, #tpu.memory_space<vmem>>, vector<576x8xf32>
    %57 = arith.truncf %56 : vector<576x8xf32> to vector<576x8xbf16>
    %cst_50 = arith.constant dense<0.000000e+00> : vector<64x8xf32>
    %58 = tpu.matmul %55, %57, %cst_50 {dimension_numbers = #tpu.dot_dimension_numbers<[1], [0], [0], [1], [0, 0, 1, 1], [], []>} : vector<64x576xbf16>, vector<576x8xbf16>, vector<64x8xf32> -> vector<64x8xf32>
    %c0_51 = arith.constant 0 : index
    %c0_52 = arith.constant 0 : index
    %59 = vector.load %arg6[%c0_51, %c0_52] : memref<64x1xf32, #tpu.memory_space<vmem>>, vector<64x1xf32>
    %60 = vector.broadcast %59 : vector<64x1xf32> to vector<64x8xf32>
    %61 = arith.mulf %58, %60 : vector<64x8xf32>
    %c0_53 = arith.constant 0 : index
    %c0_54 = arith.constant 0 : index
    %62 = vector.load %arg7[%c0_53, %c0_54] : memref<64x1xf32, #tpu.memory_space<vmem>>, vector<64x1xf32>
    %63 = vector.broadcast %62 : vector<64x1xf32> to vector<64x8xf32>
    %64 = arith.addf %61, %63 : vector<64x8xf32>
    %cst_55 = arith.constant 0.000000e+00 : f32
    %65 = vector.broadcast %cst_55 : f32 to vector<64x8xf32>
    %66 = arith.maximumf %64, %65 : vector<64x8xf32>
    %c0_56 = arith.constant 0 : index
    %c0_57 = arith.constant 0 : index
    %67 = vector.load %arg8[%c0_56, %c0_57] : memref<64x576xf32, #tpu.memory_space<vmem>>, vector<64x576xf32>
    %c0_58 = arith.constant 0 : index
    %c3_59 = arith.constant 3 : index
    %68 = vector.load %arg10[%c0_58, %c3_59] : memref<64x14xf32, #tpu.memory_space<vmem>>, vector<64x8xf32>
    tpu.vector_store %arg10[%c0_58, %c3_59], %66 {strides = array<i32>} : memref<64x14xf32, #tpu.memory_space<vmem>>, vector<64x8xf32>,
    %c0_60 = arith.constant 0 : index
    %c0_61 = arith.constant 0 : index
    %69 = vector.load %arg10[%c0_60, %c0_61] : memref<64x14xf32, #tpu.memory_space<vmem>>, vector<64x8xf32>
    %c0_62 = arith.constant 0 : index
    %c0_63 = arith.constant 0 : index
    %70 = vector.load %arg2[%c0_62, %c0_63] : memref<9x8xf32, #tpu.memory_space<vmem>>, vector<1x8xf32>
    %71 = vector.broadcast %70 : vector<1x8xf32> to vector<64x8xf32>
    %72 = arith.mulf %69, %71 : vector<64x8xf32>
    %c0_64 = arith.constant 0 : index
    %c0_65 = arith.constant 0 : index
    %73 = vector.load %arg11[%c0_64, %c0_65] : memref<576x8xf32, #tpu.memory_space<vmem>>, vector<64x8xf32>
    tpu.vector_store %arg11[%c0_64, %c0_65], %72 {strides = array<i32>} : memref<576x8xf32, #tpu.memory_space<vmem>>, vector<64x8xf32>,
    %c0_66 = arith.constant 0 : index
    %c1_67 = arith.constant 1 : index
    %74 = vector.load %arg10[%c0_66, %c1_67] : memref<64x14xf32, #tpu.memory_space<vmem>>, vector<64x8xf32>
    %c1_68 = arith.constant 1 : index
    %c0_69 = arith.constant 0 : index
    %75 = vector.load %arg2[%c1_68, %c0_69] : memref<9x8xf32, #tpu.memory_space<vmem>>, vector<1x8xf32>
    %76 = vector.broadcast %75 : vector<1x8xf32> to vector<64x8xf32>
    %77 = arith.mulf %74, %76 : vector<64x8xf32>
    %c64_70 = arith.constant 64 : index
    %c0_71 = arith.constant 0 : index
    %78 = vector.load %arg11[%c64_70, %c0_71] : memref<576x8xf32, #tpu.memory_space<vmem>>, vector<64x8xf32>
    tpu.vector_store %arg11[%c64_70, %c0_71], %77 {strides = array<i32>} : memref<576x8xf32, #tpu.memory_space<vmem>>, vector<64x8xf32>,
    %c0_72 = arith.constant 0 : index
    %c2_73 = arith.constant 2 : index
    %79 = vector.load %arg10[%c0_72, %c2_73] : memref<64x14xf32, #tpu.memory_space<vmem>>, vector<64x8xf32>
    %c2_74 = arith.constant 2 : index
    %c0_75 = arith.constant 0 : index
    %80 = vector.load %arg2[%c2_74, %c0_75] : memref<9x8xf32, #tpu.memory_space<vmem>>, vector<1x8xf32>
    %81 = vector.broadcast %80 : vector<1x8xf32> to vector<64x8xf32>
    %82 = arith.mulf %79, %81 : vector<64x8xf32>
    %c128_76 = arith.constant 128 : index
    %c0_77 = arith.constant 0 : index
    %83 = vector.load %arg11[%c128_76, %c0_77] : memref<576x8xf32, #tpu.memory_space<vmem>>, vector<64x8xf32>
    tpu.vector_store %arg11[%c128_76, %c0_77], %82 {strides = array<i32>} : memref<576x8xf32, #tpu.memory_space<vmem>>, vector<64x8xf32>,
    %c0_78 = arith.constant 0 : index
    %c2_79 = arith.constant 2 : index
    %84 = vector.load %arg10[%c0_78, %c2_79] : memref<64x14xf32, #tpu.memory_space<vmem>>, vector<64x8xf32>
    %c3_80 = arith.constant 3 : index
    %c0_81 = arith.constant 0 : index
    %85 = vector.load %arg2[%c3_80, %c0_81] : memref<9x8xf32, #tpu.memory_space<vmem>>, vector<1x8xf32>
    %86 = vector.broadcast %85 : vector<1x8xf32> to vector<64x8xf32>
    %87 = arith.mulf %84, %86 : vector<64x8xf32>
    %c192_82 = arith.constant 192 : index
    %c0_83 = arith.constant 0 : index
    %88 = vector.load %arg11[%c192_82, %c0_83] : memref<576x8xf32, #tpu.memory_space<vmem>>, vector<64x8xf32>
    tpu.vector_store %arg11[%c192_82, %c0_83], %87 {strides = array<i32>} : memref<576x8xf32, #tpu.memory_space<vmem>>, vector<64x8xf32>,
    %c0_84 = arith.constant 0 : index
    %c3_85 = arith.constant 3 : index
    %89 = vector.load %arg10[%c0_84, %c3_85] : memref<64x14xf32, #tpu.memory_space<vmem>>, vector<64x8xf32>
    %c256_86 = arith.constant 256 : index
    %c0_87 = arith.constant 0 : index
    %90 = vector.load %arg11[%c256_86, %c0_87] : memref<576x8xf32, #tpu.memory_space<vmem>>, vector<64x8xf32>
    tpu.vector_store %arg11[%c256_86, %c0_87], %89 {strides = array<i32>} : memref<576x8xf32, #tpu.memory_space<vmem>>, vector<64x8xf32>,
    %c0_88 = arith.constant 0 : index
    %c4_89 = arith.constant 4 : index
    %91 = vector.load %arg10[%c0_88, %c4_89] : memref<64x14xf32, #tpu.memory_space<vmem>>, vector<64x8xf32>
    %c5_90 = arith.constant 5 : index
    %c0_91 = arith.constant 0 : index
    %92 = vector.load %arg2[%c5_90, %c0_91] : memref<9x8xf32, #tpu.memory_space<vmem>>, vector<1x8xf32>
    %93 = vector.broadcast %92 : vector<1x8xf32> to vector<64x8xf32>
    %94 = arith.mulf %91, %93 : vector<64x8xf32>
    %c320_92 = arith.constant 320 : index
    %c0_93 = arith.constant 0 : index
    %95 = vector.load %arg11[%c320_92, %c0_93] : memref<576x8xf32, #tpu.memory_space<vmem>>, vector<64x8xf32>
    tpu.vector_store %arg11[%c320_92, %c0_93], %94 {strides = array<i32>} : memref<576x8xf32, #tpu.memory_space<vmem>>, vector<64x8xf32>,
    %c0_94 = arith.constant 0 : index
    %c4_95 = arith.constant 4 : index
    %96 = vector.load %arg10[%c0_94, %c4_95] : memref<64x14xf32, #tpu.memory_space<vmem>>, vector<64x8xf32>
    %c6_96 = arith.constant 6 : index
    %c0_97 = arith.constant 0 : index
    %97 = vector.load %arg2[%c6_96, %c0_97] : memref<9x8xf32, #tpu.memory_space<vmem>>, vector<1x8xf32>
    %98 = vector.broadcast %97 : vector<1x8xf32> to vector<64x8xf32>
    %99 = arith.mulf %96, %98 : vector<64x8xf32>
    %c384_98 = arith.constant 384 : index
    %c0_99 = arith.constant 0 : index
    %100 = vector.load %arg11[%c384_98, %c0_99] : memref<576x8xf32, #tpu.memory_space<vmem>>, vector<64x8xf32>
    tpu.vector_store %arg11[%c384_98, %c0_99], %99 {strides = array<i32>} : memref<576x8xf32, #tpu.memory_space<vmem>>, vector<64x8xf32>,
    %c0_100 = arith.constant 0 : index
    %c5_101 = arith.constant 5 : index
    %101 = vector.load %arg10[%c0_100, %c5_101] : memref<64x14xf32, #tpu.memory_space<vmem>>, vector<64x8xf32>
    %c7_102 = arith.constant 7 : index
    %c0_103 = arith.constant 0 : index
    %102 = vector.load %arg2[%c7_102, %c0_103] : memref<9x8xf32, #tpu.memory_space<vmem>>, vector<1x8xf32>
    %103 = vector.broadcast %102 : vector<1x8xf32> to vector<64x8xf32>
    %104 = arith.mulf %101, %103 : vector<64x8xf32>
    %c448_104 = arith.constant 448 : index
    %c0_105 = arith.constant 0 : index
    %105 = vector.load %arg11[%c448_104, %c0_105] : memref<576x8xf32, #tpu.memory_space<vmem>>, vector<64x8xf32>
    tpu.vector_store %arg11[%c448_104, %c0_105], %104 {strides = array<i32>} : memref<576x8xf32, #tpu.memory_space<vmem>>, vector<64x8xf32>,
    %c0_106 = arith.constant 0 : index
    %c6_107 = arith.constant 6 : index
    %106 = vector.load %arg10[%c0_106, %c6_107] : memref<64x14xf32, #tpu.memory_space<vmem>>, vector<64x8xf32>
    %c8_108 = arith.constant 8 : index
    %c0_109 = arith.constant 0 : index
    %107 = vector.load %arg2[%c8_108, %c0_109] : memref<9x8xf32, #tpu.memory_space<vmem>>, vector<1x8xf32>
    %108 = vector.broadcast %107 : vector<1x8xf32> to vector<64x8xf32>
    %109 = arith.mulf %106, %108 : vector<64x8xf32>
    %c512_110 = arith.constant 512 : index
    %c0_111 = arith.constant 0 : index
    %110 = vector.load %arg11[%c512_110, %c0_111] : memref<576x8xf32, #tpu.memory_space<vmem>>, vector<64x8xf32>
    tpu.vector_store %arg11[%c512_110, %c0_111], %109 {strides = array<i32>} : memref<576x8xf32, #tpu.memory_space<vmem>>, vector<64x8xf32>,
    %111 = arith.truncf %67 : vector<64x576xf32> to vector<64x576xbf16>
    %c0_112 = arith.constant 0 : index
    %c0_113 = arith.constant 0 : index
    %112 = vector.load %arg11[%c0_112, %c0_113] : memref<576x8xf32, #tpu.memory_space<vmem>>, vector<576x8xf32>
    %113 = arith.truncf %112 : vector<576x8xf32> to vector<576x8xbf16>
    %cst_114 = arith.constant dense<0.000000e+00> : vector<64x8xf32>
    %114 = tpu.matmul %111, %113, %cst_114 {dimension_numbers = #tpu.dot_dimension_numbers<[1], [0], [0], [1], [0, 0, 1, 1], [], []>} : vector<64x576xbf16>, vector<576x8xbf16>, vector<64x8xf32> -> vector<64x8xf32>
    %115 = arith.addf %114, %2 : vector<64x8xf32>
    %c0_115 = arith.constant 0 : index
    %c0_116 = arith.constant 0 : index
    %116 = vector.load %arg9[%c0_115, %c0_116] : memref<64x8xf32, #tpu.memory_space<vmem>>, vector<64x8xf32>
    tpu.vector_store %arg9[%c0_115, %c0_116], %115 {strides = array<i32>} : memref<64x8xf32, #tpu.memory_space<vmem>>, vector<64x8xf32>,
    return
  }
  func.func @transform_0(%arg0: i32) -> (i32, i32) {
    %c0_i32 = arith.constant 0 : i32
    %c0_i32_0 = arith.constant 0 : i32
    %c0_i32_1 = arith.constant 0 : i32
    return %c0_i32, %c0_i32_0 : i32, i32
  }
  func.func @transform_1(%arg0: i32) -> (i32, i32) {
    %c0_i32 = arith.constant 0 : i32
    %c0_i32_0 = arith.constant 0 : i32
    %c0_i32_1 = arith.constant 0 : i32
    return %c0_i32, %c0_i32_0 : i32, i32
  }
  func.func @transform_2(%arg0: i32) -> (i32, i32) {
    %c0_i32 = arith.constant 0 : i32
    %c0_i32_0 = arith.constant 0 : i32
    %c0_i32_1 = arith.constant 0 : i32
    return %c0_i32, %c0_i32_0 : i32, i32
  }
  func.func @transform_3(%arg0: i32) -> (i32, i32) {
    %c0_i32 = arith.constant 0 : i32
    %c0_i32_0 = arith.constant 0 : i32
    %c0_i32_1 = arith.constant 0 : i32
    return %c0_i32, %c0_i32_0 : i32, i32
  }
  func.func @transform_4(%arg0: i32) -> (i32, i32) {
    %c0_i32 = arith.constant 0 : i32
    %c0_i32_0 = arith.constant 0 : i32
    %c0_i32_1 = arith.constant 0 : i32
    return %c0_i32, %c0_i32_0 : i32, i32
  }
  func.func @transform_5(%arg0: i32) -> (i32, i32) {
    %c0_i32 = arith.constant 0 : i32
    %c0_i32_0 = arith.constant 0 : i32
    %c0_i32_1 = arith.constant 0 : i32
    return %c0_i32, %c0_i32_0 : i32, i32
  }
  func.func @transform_6(%arg0: i32) -> (i32, i32) {
    %c0_i32 = arith.constant 0 : i32
    %c0_i32_0 = arith.constant 0 : i32
    %c0_i32_1 = arith.constant 0 : i32
    return %c0_i32, %c0_i32_0 : i32, i32
  }
  func.func @transform_7(%arg0: i32) -> (i32, i32) {
    %c0_i32 = arith.constant 0 : i32
    %c0_i32_0 = arith.constant 0 : i32
    %c0_i32_1 = arith.constant 0 : i32
    return %c0_i32, %c0_i32_0 : i32, i32
  }
  func.func @transform_8(%arg0: i32) -> (i32, i32) {
    %c0_i32 = arith.constant 0 : i32
    %c0_i32_0 = arith.constant 0 : i32
    %c0_i32_1 = arith.constant 0 : i32
    return %c0_i32, %c0_i32_0 : i32, i32
  }
}

module attributes {stable_mosaic.version = 11 : i64} {
  func.func @_matmul_kernel(%arg0: i32, %arg1: memref<64x8xf32, #tpu.memory_space<vmem>>, %arg2: memref<128x64xf32, #tpu.memory_space<vmem>>, %arg3: memref<64x1xf32, #tpu.memory_space<vmem>>, %arg4: memref<64x1xf32, #tpu.memory_space<vmem>>, %arg5: memref<128x8xf32, #tpu.memory_space<vmem>>) attributes {dimension_semantics = [#tpu.dimension_semantics<parallel>], iteration_bounds = array<i64: 1>, scalar_prefetch = 0 : i64, scratch_operands = 0 : i64, tpu.core_type = #tpu.core_type<tc>, window_params = [{transform_indices = @transform_0, window_bounds = array<i64: 64, 8>}, {pipeline_mode = #tpu.pipeline_mode<synchronous>, transform_indices = @transform_1, window_bounds = array<i64: 128, 64>}, {pipeline_mode = #tpu.pipeline_mode<synchronous>, transform_indices = @transform_2, window_bounds = array<i64: 64, 1>}, {pipeline_mode = #tpu.pipeline_mode<synchronous>, transform_indices = @transform_3, window_bounds = array<i64: 64, 1>}, {transform_indices = @transform_4, window_bounds = array<i64: 128, 8>}]} {
    %c0 = arith.constant 0 : index
    %c0_0 = arith.constant 0 : index
    %0 = vector.load %arg1[%c0, %c0_0] : memref<64x8xf32, #tpu.memory_space<vmem>>, vector<64x8xf32>
    %c0_1 = arith.constant 0 : index
    %c0_2 = arith.constant 0 : index
    %1 = vector.load %arg3[%c0_1, %c0_2] : memref<64x1xf32, #tpu.memory_space<vmem>>, vector<64x1xf32>
    %2 = vector.broadcast %1 : vector<64x1xf32> to vector<64x8xf32>
    %3 = arith.mulf %0, %2 : vector<64x8xf32>
    %c0_3 = arith.constant 0 : index
    %c0_4 = arith.constant 0 : index
    %4 = vector.load %arg4[%c0_3, %c0_4] : memref<64x1xf32, #tpu.memory_space<vmem>>, vector<64x1xf32>
    %5 = vector.broadcast %4 : vector<64x1xf32> to vector<64x8xf32>
    %6 = arith.addf %3, %5 : vector<64x8xf32>
    %c0_5 = arith.constant 0 : index
    %c0_6 = arith.constant 0 : index
    %7 = vector.load %arg2[%c0_5, %c0_6] : memref<128x64xf32, #tpu.memory_space<vmem>>, vector<128x64xf32>
    %8 = arith.truncf %7 : vector<128x64xf32> to vector<128x64xbf16>
    %9 = arith.truncf %6 : vector<64x8xf32> to vector<64x8xbf16>
    %cst = arith.constant dense<0.000000e+00> : vector<128x8xf32>
    %10 = tpu.matmul %8, %9, %cst {dimension_numbers = #tpu.dot_dimension_numbers<[1], [0], [0], [1], [0, 0, 1, 1], [], []>} : vector<128x64xbf16>, vector<64x8xbf16>, vector<128x8xf32> -> vector<128x8xf32>
    %cst_7 = arith.constant 0.000000e+00 : f32
    %11 = vector.broadcast %cst_7 : f32 to vector<128x8xf32>
    %12 = arith.maximumf %10, %11 : vector<128x8xf32>
    %c0_8 = arith.constant 0 : index
    %c0_9 = arith.constant 0 : index
    %13 = vector.load %arg5[%c0_8, %c0_9] : memref<128x8xf32, #tpu.memory_space<vmem>>, vector<128x8xf32>
    tpu.vector_store %arg5[%c0_8, %c0_9], %12 {strides = array<i32>} : memref<128x8xf32, #tpu.memory_space<vmem>>, vector<128x8xf32>,
    return
  }
  func.func @transform_0(%arg0: i32) -> (i32, i32) {
    %c0_i32 = arith.constant 0 : i32
    %c0_i32_0 = arith.constant 0 : i32
    return %c0_i32, %arg0 : i32, i32
  }
  func.func @transform_1(%arg0: i32) -> (i32, i32) {
    %c0_i32 = arith.constant 0 : i32
    %c0_i32_0 = arith.constant 0 : i32
    %c0_i32_1 = arith.constant 0 : i32
    return %c0_i32, %c0_i32_0 : i32, i32
  }
  func.func @transform_2(%arg0: i32) -> (i32, i32) {
    %c0_i32 = arith.constant 0 : i32
    %c0_i32_0 = arith.constant 0 : i32
    %c0_i32_1 = arith.constant 0 : i32
    return %c0_i32, %c0_i32_0 : i32, i32
  }
  func.func @transform_3(%arg0: i32) -> (i32, i32) {
    %c0_i32 = arith.constant 0 : i32
    %c0_i32_0 = arith.constant 0 : i32
    %c0_i32_1 = arith.constant 0 : i32
    return %c0_i32, %c0_i32_0 : i32, i32
  }
  func.func @transform_4(%arg0: i32) -> (i32, i32) {
    %c0_i32 = arith.constant 0 : i32
    %c0_i32_0 = arith.constant 0 : i32
    return %c0_i32, %arg0 : i32, i32
  }
}

module attributes {stable_mosaic.version = 11 : i64} {
  func.func @_matmul_kernel(%arg0: i32, %arg1: memref<32x32xf32, #tpu.memory_space<vmem>>, %arg2: memref<64x32xf32, #tpu.memory_space<vmem>>, %arg3: memref<32x1xf32, #tpu.memory_space<vmem>>, %arg4: memref<32x1xf32, #tpu.memory_space<vmem>>, %arg5: memref<64x32xf32, #tpu.memory_space<vmem>>) attributes {dimension_semantics = [#tpu.dimension_semantics<parallel>], iteration_bounds = array<i64: 1>, scalar_prefetch = 0 : i64, scratch_operands = 0 : i64, tpu.core_type = #tpu.core_type<tc>, window_params = [{transform_indices = @transform_0, window_bounds = array<i64: 32, 32>}, {pipeline_mode = #tpu.pipeline_mode<synchronous>, transform_indices = @transform_1, window_bounds = array<i64: 64, 32>}, {pipeline_mode = #tpu.pipeline_mode<synchronous>, transform_indices = @transform_2, window_bounds = array<i64: 32, 1>}, {pipeline_mode = #tpu.pipeline_mode<synchronous>, transform_indices = @transform_3, window_bounds = array<i64: 32, 1>}, {transform_indices = @transform_4, window_bounds = array<i64: 64, 32>}]} {
    %c0 = arith.constant 0 : index
    %c0_0 = arith.constant 0 : index
    %0 = vector.load %arg1[%c0, %c0_0] : memref<32x32xf32, #tpu.memory_space<vmem>>, vector<32x32xf32>
    %c0_1 = arith.constant 0 : index
    %c0_2 = arith.constant 0 : index
    %1 = vector.load %arg3[%c0_1, %c0_2] : memref<32x1xf32, #tpu.memory_space<vmem>>, vector<32x1xf32>
    %2 = vector.broadcast %1 : vector<32x1xf32> to vector<32x32xf32>
    %3 = arith.mulf %0, %2 : vector<32x32xf32>
    %c0_3 = arith.constant 0 : index
    %c0_4 = arith.constant 0 : index
    %4 = vector.load %arg4[%c0_3, %c0_4] : memref<32x1xf32, #tpu.memory_space<vmem>>, vector<32x1xf32>
    %5 = vector.broadcast %4 : vector<32x1xf32> to vector<32x32xf32>
    %6 = arith.addf %3, %5 : vector<32x32xf32>
    %c0_5 = arith.constant 0 : index
    %c0_6 = arith.constant 0 : index
    %7 = vector.load %arg2[%c0_5, %c0_6] : memref<64x32xf32, #tpu.memory_space<vmem>>, vector<64x32xf32>
    %8 = arith.truncf %7 : vector<64x32xf32> to vector<64x32xbf16>
    %9 = arith.truncf %6 : vector<32x32xf32> to vector<32x32xbf16>
    %cst = arith.constant dense<0.000000e+00> : vector<64x32xf32>
    %10 = tpu.matmul %8, %9, %cst {dimension_numbers = #tpu.dot_dimension_numbers<[1], [0], [0], [1], [0, 0, 1, 1], [], []>} : vector<64x32xbf16>, vector<32x32xbf16>, vector<64x32xf32> -> vector<64x32xf32>
    %cst_7 = arith.constant 0.000000e+00 : f32
    %11 = vector.broadcast %cst_7 : f32 to vector<64x32xf32>
    %12 = arith.maximumf %10, %11 : vector<64x32xf32>
    %c0_8 = arith.constant 0 : index
    %c0_9 = arith.constant 0 : index
    %13 = vector.load %arg5[%c0_8, %c0_9] : memref<64x32xf32, #tpu.memory_space<vmem>>, vector<64x32xf32>
    tpu.vector_store %arg5[%c0_8, %c0_9], %12 {strides = array<i32>} : memref<64x32xf32, #tpu.memory_space<vmem>>, vector<64x32xf32>,
    return
  }
  func.func @transform_0(%arg0: i32) -> (i32, i32) {
    %c0_i32 = arith.constant 0 : i32
    %c0_i32_0 = arith.constant 0 : i32
    return %c0_i32, %arg0 : i32, i32
  }
  func.func @transform_1(%arg0: i32) -> (i32, i32) {
    %c0_i32 = arith.constant 0 : i32
    %c0_i32_0 = arith.constant 0 : i32
    %c0_i32_1 = arith.constant 0 : i32
    return %c0_i32, %c0_i32_0 : i32, i32
  }
  func.func @transform_2(%arg0: i32) -> (i32, i32) {
    %c0_i32 = arith.constant 0 : i32
    %c0_i32_0 = arith.constant 0 : i32
    %c0_i32_1 = arith.constant 0 : i32
    return %c0_i32, %c0_i32_0 : i32, i32
  }
  func.func @transform_3(%arg0: i32) -> (i32, i32) {
    %c0_i32 = arith.constant 0 : i32
    %c0_i32_0 = arith.constant 0 : i32
    %c0_i32_1 = arith.constant 0 : i32
    return %c0_i32, %c0_i32_0 : i32, i32
  }
  func.func @transform_4(%arg0: i32) -> (i32, i32) {
    %c0_i32 = arith.constant 0 : i32
    %c0_i32_0 = arith.constant 0 : i32
    return %c0_i32, %arg0 : i32, i32
  }
}

module attributes {stable_mosaic.version = 11 : i64} {
  func.func @_matmul_kernel(%arg0: i32, %arg1: memref<32x32xf32, #tpu.memory_space<vmem>>, %arg2: memref<32x32xf32, #tpu.memory_space<vmem>>, %arg3: memref<32x1xf32, #tpu.memory_space<vmem>>, %arg4: memref<32x32xf32, #tpu.memory_space<vmem>>, %arg5: memref<32x32xf32, #tpu.memory_space<vmem>>) attributes {dimension_semantics = [#tpu.dimension_semantics<parallel>], iteration_bounds = array<i64: 1>, scalar_prefetch = 0 : i64, scratch_operands = 0 : i64, tpu.core_type = #tpu.core_type<tc>, window_params = [{transform_indices = @transform_0, window_bounds = array<i64: 32, 32>}, {pipeline_mode = #tpu.pipeline_mode<synchronous>, transform_indices = @transform_1, window_bounds = array<i64: 32, 32>}, {pipeline_mode = #tpu.pipeline_mode<synchronous>, transform_indices = @transform_2, window_bounds = array<i64: 32, 1>}, {transform_indices = @transform_3, window_bounds = array<i64: 32, 32>}, {transform_indices = @transform_4, window_bounds = array<i64: 32, 32>}]} {
    %c0 = arith.constant 0 : index
    %c0_0 = arith.constant 0 : index
    %0 = vector.load %arg1[%c0, %c0_0] : memref<32x32xf32, #tpu.memory_space<vmem>>, vector<32x32xf32>
    %c0_1 = arith.constant 0 : index
    %c0_2 = arith.constant 0 : index
    %1 = vector.load %arg2[%c0_1, %c0_2] : memref<32x32xf32, #tpu.memory_space<vmem>>, vector<32x32xf32>
    %2 = arith.truncf %1 : vector<32x32xf32> to vector<32x32xbf16>
    %3 = arith.truncf %0 : vector<32x32xf32> to vector<32x32xbf16>
    %cst = arith.constant dense<0.000000e+00> : vector<32x32xf32>
    %4 = tpu.matmul %2, %3, %cst {dimension_numbers = #tpu.dot_dimension_numbers<[1], [0], [0], [1], [0, 0, 1, 1], [], []>} : vector<32x32xbf16>, vector<32x32xbf16>, vector<32x32xf32> -> vector<32x32xf32>
    %c0_3 = arith.constant 0 : index
    %c0_4 = arith.constant 0 : index
    %5 = vector.load %arg3[%c0_3, %c0_4] : memref<32x1xf32, #tpu.memory_space<vmem>>, vector<32x1xf32>
    %6 = vector.broadcast %5 : vector<32x1xf32> to vector<32x32xf32>
    %7 = arith.addf %4, %6 : vector<32x32xf32>
    %c0_5 = arith.constant 0 : index
    %c0_6 = arith.constant 0 : index
    %8 = vector.load %arg4[%c0_5, %c0_6] : memref<32x32xf32, #tpu.memory_space<vmem>>, vector<32x32xf32>
    %9 = arith.addf %7, %8 : vector<32x32xf32>
    %c0_7 = arith.constant 0 : index
    %c0_8 = arith.constant 0 : index
    %10 = vector.load %arg5[%c0_7, %c0_8] : memref<32x32xf32, #tpu.memory_space<vmem>>, vector<32x32xf32>
    tpu.vector_store %arg5[%c0_7, %c0_8], %9 {strides = array<i32>} : memref<32x32xf32, #tpu.memory_space<vmem>>, vector<32x32xf32>,
    return
  }
  func.func @transform_0(%arg0: i32) -> (i32, i32) {
    %c0_i32 = arith.constant 0 : i32
    %c0_i32_0 = arith.constant 0 : i32
    return %c0_i32, %arg0 : i32, i32
  }
  func.func @transform_1(%arg0: i32) -> (i32, i32) {
    %c0_i32 = arith.constant 0 : i32
    %c0_i32_0 = arith.constant 0 : i32
    %c0_i32_1 = arith.constant 0 : i32
    return %c0_i32, %c0_i32_0 : i32, i32
  }
  func.func @transform_2(%arg0: i32) -> (i32, i32) {
    %c0_i32 = arith.constant 0 : i32
    %c0_i32_0 = arith.constant 0 : i32
    %c0_i32_1 = arith.constant 0 : i32
    return %c0_i32, %c0_i32_0 : i32, i32
  }
  func.func @transform_3(%arg0: i32) -> (i32, i32) {
    %c0_i32 = arith.constant 0 : i32
    %c0_i32_0 = arith.constant 0 : i32
    return %c0_i32, %arg0 : i32, i32
  }
  func.func @transform_4(%arg0: i32) -> (i32, i32) {
    %c0_i32 = arith.constant 0 : i32
    %c0_i32_0 = arith.constant 0 : i32
    return %c0_i32, %arg0 : i32, i32
  }
}

module attributes {stable_mosaic.version = 11 : i64} {
  func.func @_matmul_kernel(%arg0: i32, %arg1: memref<16x128xf32, #tpu.memory_space<vmem>>, %arg2: memref<32x16xf32, #tpu.memory_space<vmem>>, %arg3: memref<16x1xf32, #tpu.memory_space<vmem>>, %arg4: memref<16x1xf32, #tpu.memory_space<vmem>>, %arg5: memref<32x128xf32, #tpu.memory_space<vmem>>) attributes {dimension_semantics = [#tpu.dimension_semantics<parallel>], iteration_bounds = array<i64: 1>, scalar_prefetch = 0 : i64, scratch_operands = 0 : i64, tpu.core_type = #tpu.core_type<tc>, window_params = [{transform_indices = @transform_0, window_bounds = array<i64: 16, 128>}, {pipeline_mode = #tpu.pipeline_mode<synchronous>, transform_indices = @transform_1, window_bounds = array<i64: 32, 16>}, {pipeline_mode = #tpu.pipeline_mode<synchronous>, transform_indices = @transform_2, window_bounds = array<i64: 16, 1>}, {pipeline_mode = #tpu.pipeline_mode<synchronous>, transform_indices = @transform_3, window_bounds = array<i64: 16, 1>}, {transform_indices = @transform_4, window_bounds = array<i64: 32, 128>}]} {
    %c0 = arith.constant 0 : index
    %c0_0 = arith.constant 0 : index
    %0 = vector.load %arg1[%c0, %c0_0] : memref<16x128xf32, #tpu.memory_space<vmem>>, vector<16x128xf32>
    %c0_1 = arith.constant 0 : index
    %c0_2 = arith.constant 0 : index
    %1 = vector.load %arg3[%c0_1, %c0_2] : memref<16x1xf32, #tpu.memory_space<vmem>>, vector<16x1xf32>
    %2 = vector.broadcast %1 : vector<16x1xf32> to vector<16x128xf32>
    %3 = arith.mulf %0, %2 : vector<16x128xf32>
    %c0_3 = arith.constant 0 : index
    %c0_4 = arith.constant 0 : index
    %4 = vector.load %arg4[%c0_3, %c0_4] : memref<16x1xf32, #tpu.memory_space<vmem>>, vector<16x1xf32>
    %5 = vector.broadcast %4 : vector<16x1xf32> to vector<16x128xf32>
    %6 = arith.addf %3, %5 : vector<16x128xf32>
    %c0_5 = arith.constant 0 : index
    %c0_6 = arith.constant 0 : index
    %7 = vector.load %arg2[%c0_5, %c0_6] : memref<32x16xf32, #tpu.memory_space<vmem>>, vector<32x16xf32>
    %8 = arith.truncf %7 : vector<32x16xf32> to vector<32x16xbf16>
    %9 = arith.truncf %6 : vector<16x128xf32> to vector<16x128xbf16>
    %cst = arith.constant dense<0.000000e+00> : vector<32x128xf32>
    %10 = tpu.matmul %8, %9, %cst {dimension_numbers = #tpu.dot_dimension_numbers<[1], [0], [0], [1], [0, 0, 1, 1], [], []>} : vector<32x16xbf16>, vector<16x128xbf16>, vector<32x128xf32> -> vector<32x128xf32>
    %cst_7 = arith.constant 0.000000e+00 : f32
    %11 = vector.broadcast %cst_7 : f32 to vector<32x128xf32>
    %12 = arith.maximumf %10, %11 : vector<32x128xf32>
    %c0_8 = arith.constant 0 : index
    %c0_9 = arith.constant 0 : index
    %13 = vector.load %arg5[%c0_8, %c0_9] : memref<32x128xf32, #tpu.memory_space<vmem>>, vector<32x128xf32>
    tpu.vector_store %arg5[%c0_8, %c0_9], %12 {strides = array<i32>} : memref<32x128xf32, #tpu.memory_space<vmem>>, vector<32x128xf32>,
    return
  }
  func.func @transform_0(%arg0: i32) -> (i32, i32) {
    %c0_i32 = arith.constant 0 : i32
    %c0_i32_0 = arith.constant 0 : i32
    return %c0_i32, %arg0 : i32, i32
  }
  func.func @transform_1(%arg0: i32) -> (i32, i32) {
    %c0_i32 = arith.constant 0 : i32
    %c0_i32_0 = arith.constant 0 : i32
    %c0_i32_1 = arith.constant 0 : i32
    return %c0_i32, %c0_i32_0 : i32, i32
  }
  func.func @transform_2(%arg0: i32) -> (i32, i32) {
    %c0_i32 = arith.constant 0 : i32
    %c0_i32_0 = arith.constant 0 : i32
    %c0_i32_1 = arith.constant 0 : i32
    return %c0_i32, %c0_i32_0 : i32, i32
  }
  func.func @transform_3(%arg0: i32) -> (i32, i32) {
    %c0_i32 = arith.constant 0 : i32
    %c0_i32_0 = arith.constant 0 : i32
    %c0_i32_1 = arith.constant 0 : i32
    return %c0_i32, %c0_i32_0 : i32, i32
  }
  func.func @transform_4(%arg0: i32) -> (i32, i32) {
    %c0_i32 = arith.constant 0 : i32
    %c0_i32_0 = arith.constant 0 : i32
    return %c0_i32, %arg0 : i32, i32
  }
}

module attributes {stable_mosaic.version = 11 : i64} {
  func.func @_matmul_kernel(%arg0: i32, %arg1: memref<16x128xf32, #tpu.memory_space<vmem>>, %arg2: memref<16x16xf32, #tpu.memory_space<vmem>>, %arg3: memref<16x1xf32, #tpu.memory_space<vmem>>, %arg4: memref<16x128xf32, #tpu.memory_space<vmem>>, %arg5: memref<16x128xf32, #tpu.memory_space<vmem>>) attributes {dimension_semantics = [#tpu.dimension_semantics<parallel>], iteration_bounds = array<i64: 1>, scalar_prefetch = 0 : i64, scratch_operands = 0 : i64, tpu.core_type = #tpu.core_type<tc>, window_params = [{transform_indices = @transform_0, window_bounds = array<i64: 16, 128>}, {pipeline_mode = #tpu.pipeline_mode<synchronous>, transform_indices = @transform_1, window_bounds = array<i64: 16, 16>}, {pipeline_mode = #tpu.pipeline_mode<synchronous>, transform_indices = @transform_2, window_bounds = array<i64: 16, 1>}, {transform_indices = @transform_3, window_bounds = array<i64: 16, 128>}, {transform_indices = @transform_4, window_bounds = array<i64: 16, 128>}]} {
    %c0 = arith.constant 0 : index
    %c0_0 = arith.constant 0 : index
    %0 = vector.load %arg1[%c0, %c0_0] : memref<16x128xf32, #tpu.memory_space<vmem>>, vector<16x128xf32>
    %c0_1 = arith.constant 0 : index
    %c0_2 = arith.constant 0 : index
    %1 = vector.load %arg2[%c0_1, %c0_2] : memref<16x16xf32, #tpu.memory_space<vmem>>, vector<16x16xf32>
    %2 = arith.truncf %1 : vector<16x16xf32> to vector<16x16xbf16>
    %3 = arith.truncf %0 : vector<16x128xf32> to vector<16x128xbf16>
    %cst = arith.constant dense<0.000000e+00> : vector<16x128xf32>
    %4 = tpu.matmul %2, %3, %cst {dimension_numbers = #tpu.dot_dimension_numbers<[1], [0], [0], [1], [0, 0, 1, 1], [], []>} : vector<16x16xbf16>, vector<16x128xbf16>, vector<16x128xf32> -> vector<16x128xf32>
    %c0_3 = arith.constant 0 : index
    %c0_4 = arith.constant 0 : index
    %5 = vector.load %arg3[%c0_3, %c0_4] : memref<16x1xf32, #tpu.memory_space<vmem>>, vector<16x1xf32>
    %6 = vector.broadcast %5 : vector<16x1xf32> to vector<16x128xf32>
    %7 = arith.addf %4, %6 : vector<16x128xf32>
    %c0_5 = arith.constant 0 : index
    %c0_6 = arith.constant 0 : index
    %8 = vector.load %arg4[%c0_5, %c0_6] : memref<16x128xf32, #tpu.memory_space<vmem>>, vector<16x128xf32>
    %9 = arith.addf %7, %8 : vector<16x128xf32>
    %c0_7 = arith.constant 0 : index
    %c0_8 = arith.constant 0 : index
    %10 = vector.load %arg5[%c0_7, %c0_8] : memref<16x128xf32, #tpu.memory_space<vmem>>, vector<16x128xf32>
    tpu.vector_store %arg5[%c0_7, %c0_8], %9 {strides = array<i32>} : memref<16x128xf32, #tpu.memory_space<vmem>>, vector<16x128xf32>,
    return
  }
  func.func @transform_0(%arg0: i32) -> (i32, i32) {
    %c0_i32 = arith.constant 0 : i32
    %c0_i32_0 = arith.constant 0 : i32
    return %c0_i32, %arg0 : i32, i32
  }
  func.func @transform_1(%arg0: i32) -> (i32, i32) {
    %c0_i32 = arith.constant 0 : i32
    %c0_i32_0 = arith.constant 0 : i32
    %c0_i32_1 = arith.constant 0 : i32
    return %c0_i32, %c0_i32_0 : i32, i32
  }
  func.func @transform_2(%arg0: i32) -> (i32, i32) {
    %c0_i32 = arith.constant 0 : i32
    %c0_i32_0 = arith.constant 0 : i32
    %c0_i32_1 = arith.constant 0 : i32
    return %c0_i32, %c0_i32_0 : i32, i32
  }
  func.func @transform_3(%arg0: i32) -> (i32, i32) {
    %c0_i32 = arith.constant 0 : i32
    %c0_i32_0 = arith.constant 0 : i32
    return %c0_i32, %arg0 : i32, i32
  }
  func.func @transform_4(%arg0: i32) -> (i32, i32) {
    %c0_i32 = arith.constant 0 : i32
    %c0_i32_0 = arith.constant 0 : i32
    return %c0_i32, %arg0 : i32, i32
  }
}

module attributes {stable_mosaic.version = 11 : i64} {
  func.func @_matmul_kernel(%arg0: i32, %arg1: memref<8x256xf32, #tpu.memory_space<vmem>>, %arg2: memref<8x8xf32, #tpu.memory_space<vmem>>, %arg3: memref<8x1xf32, #tpu.memory_space<vmem>>, %arg4: memref<8x256xf32, #tpu.memory_space<vmem>>, %arg5: memref<8x256xf32, #tpu.memory_space<vmem>>) attributes {dimension_semantics = [#tpu.dimension_semantics<parallel>], iteration_bounds = array<i64: 2>, scalar_prefetch = 0 : i64, scratch_operands = 0 : i64, tpu.core_type = #tpu.core_type<tc>, window_params = [{transform_indices = @transform_0, window_bounds = array<i64: 8, 256>}, {pipeline_mode = #tpu.pipeline_mode<synchronous>, transform_indices = @transform_1, window_bounds = array<i64: 8, 8>}, {pipeline_mode = #tpu.pipeline_mode<synchronous>, transform_indices = @transform_2, window_bounds = array<i64: 8, 1>}, {transform_indices = @transform_3, window_bounds = array<i64: 8, 256>}, {transform_indices = @transform_4, window_bounds = array<i64: 8, 256>}]} {
    %c0 = arith.constant 0 : index
    %c0_0 = arith.constant 0 : index
    %0 = vector.load %arg1[%c0, %c0_0] : memref<8x256xf32, #tpu.memory_space<vmem>>, vector<8x256xf32>
    %c0_1 = arith.constant 0 : index
    %c0_2 = arith.constant 0 : index
    %1 = vector.load %arg2[%c0_1, %c0_2] : memref<8x8xf32, #tpu.memory_space<vmem>>, vector<8x8xf32>
    %2 = arith.truncf %1 : vector<8x8xf32> to vector<8x8xbf16>
    %3 = arith.truncf %0 : vector<8x256xf32> to vector<8x256xbf16>
    %cst = arith.constant dense<0.000000e+00> : vector<8x256xf32>
    %4 = tpu.matmul %2, %3, %cst {dimension_numbers = #tpu.dot_dimension_numbers<[1], [0], [0], [1], [0, 0, 1, 1], [], []>} : vector<8x8xbf16>, vector<8x256xbf16>, vector<8x256xf32> -> vector<8x256xf32>
    %c0_3 = arith.constant 0 : index
    %c0_4 = arith.constant 0 : index
    %5 = vector.load %arg3[%c0_3, %c0_4] : memref<8x1xf32, #tpu.memory_space<vmem>>, vector<8x1xf32>
    %6 = vector.broadcast %5 : vector<8x1xf32> to vector<8x256xf32>
    %7 = arith.addf %4, %6 : vector<8x256xf32>
    %c0_5 = arith.constant 0 : index
    %c0_6 = arith.constant 0 : index
    %8 = vector.load %arg4[%c0_5, %c0_6] : memref<8x256xf32, #tpu.memory_space<vmem>>, vector<8x256xf32>
    %9 = arith.addf %7, %8 : vector<8x256xf32>
    %c0_7 = arith.constant 0 : index
    %c0_8 = arith.constant 0 : index
    %10 = vector.load %arg5[%c0_7, %c0_8] : memref<8x256xf32, #tpu.memory_space<vmem>>, vector<8x256xf32>
    tpu.vector_store %arg5[%c0_7, %c0_8], %9 {strides = array<i32>} : memref<8x256xf32, #tpu.memory_space<vmem>>, vector<8x256xf32>,
    return
  }
  func.func @transform_0(%arg0: i32) -> (i32, i32) {
    %c0_i32 = arith.constant 0 : i32
    %c0_i32_0 = arith.constant 0 : i32
    return %c0_i32, %arg0 : i32, i32
  }
  func.func @transform_1(%arg0: i32) -> (i32, i32) {
    %c0_i32 = arith.constant 0 : i32
    %c0_i32_0 = arith.constant 0 : i32
    %c0_i32_1 = arith.constant 0 : i32
    return %c0_i32, %c0_i32_0 : i32, i32
  }
  func.func @transform_2(%arg0: i32) -> (i32, i32) {
    %c0_i32 = arith.constant 0 : i32
    %c0_i32_0 = arith.constant 0 : i32
    %c0_i32_1 = arith.constant 0 : i32
    return %c0_i32, %c0_i32_0 : i32, i32
  }
  func.func @transform_3(%arg0: i32) -> (i32, i32) {
    %c0_i32 = arith.constant 0 : i32
    %c0_i32_0 = arith.constant 0 : i32
    return %c0_i32, %arg0 : i32, i32
  }
  func.func @transform_4(%arg0: i32) -> (i32, i32) {
    %c0_i32 = arith.constant 0 : i32
    %c0_i32_0 = arith.constant 0 : i32
    return %c0_i32, %arg0 : i32, i32
  }
}

module attributes {stable_mosaic.version = 11 : i64} {
  func.func @_resblock1_kernel(%arg0: i32, %arg1: memref<8x512xf32, #tpu.memory_space<vmem>>, %arg2: memref<8x1xf32, #tpu.memory_space<vmem>>, %arg3: memref<8x1xf32, #tpu.memory_space<vmem>>, %arg4: memref<8x8xf32, #tpu.memory_space<vmem>>, %arg5: memref<8x1xf32, #tpu.memory_space<vmem>>, %arg6: memref<8x1xf32, #tpu.memory_space<vmem>>, %arg7: memref<8x8xf32, #tpu.memory_space<vmem>>, %arg8: memref<8x512xf32, #tpu.memory_space<vmem>>) attributes {dimension_semantics = [#tpu.dimension_semantics<arbitrary>], iteration_bounds = array<i64: 1>, scalar_prefetch = 0 : i64, scratch_operands = 0 : i64, tpu.core_type = #tpu.core_type<tc>, window_params = [{pipeline_mode = #tpu.pipeline_mode<synchronous>, transform_indices = @transform_0, window_bounds = array<i64: 8, 512>}, {pipeline_mode = #tpu.pipeline_mode<synchronous>, transform_indices = @transform_1, window_bounds = array<i64: 8, 1>}, {pipeline_mode = #tpu.pipeline_mode<synchronous>, transform_indices = @transform_2, window_bounds = array<i64: 8, 1>}, {pipeline_mode = #tpu.pipeline_mode<synchronous>, transform_indices = @transform_3, window_bounds = array<i64: 8, 8>}, {pipeline_mode = #tpu.pipeline_mode<synchronous>, transform_indices = @transform_4, window_bounds = array<i64: 8, 1>}, {pipeline_mode = #tpu.pipeline_mode<synchronous>, transform_indices = @transform_5, window_bounds = array<i64: 8, 1>}, {pipeline_mode = #tpu.pipeline_mode<synchronous>, transform_indices = @transform_6, window_bounds = array<i64: 8, 8>}, {pipeline_mode = #tpu.pipeline_mode<synchronous>, transform_indices = @transform_7, window_bounds = array<i64: 8, 512>}]} {
    %c0 = arith.constant 0 : index
    %c0_0 = arith.constant 0 : index
    %0 = vector.load %arg1[%c0, %c0_0] : memref<8x512xf32, #tpu.memory_space<vmem>>, vector<8x512xf32>
    %c0_1 = arith.constant 0 : index
    %c0_2 = arith.constant 0 : index
    %1 = vector.load %arg2[%c0_1, %c0_2] : memref<8x1xf32, #tpu.memory_space<vmem>>, vector<8x1xf32>
    %2 = vector.broadcast %1 : vector<8x1xf32> to vector<8x512xf32>
    %3 = arith.mulf %0, %2 : vector<8x512xf32>
    %c0_3 = arith.constant 0 : index
    %c0_4 = arith.constant 0 : index
    %4 = vector.load %arg3[%c0_3, %c0_4] : memref<8x1xf32, #tpu.memory_space<vmem>>, vector<8x1xf32>
    %5 = vector.broadcast %4 : vector<8x1xf32> to vector<8x512xf32>
    %6 = arith.addf %3, %5 : vector<8x512xf32>
    %cst = arith.constant 0.000000e+00 : f32
    %7 = vector.broadcast %cst : f32 to vector<8x512xf32>
    %8 = arith.maximumf %6, %7 : vector<8x512xf32>
    %c0_5 = arith.constant 0 : index
    %c0_6 = arith.constant 0 : index
    %9 = vector.load %arg4[%c0_5, %c0_6] : memref<8x8xf32, #tpu.memory_space<vmem>>, vector<8x8xf32>
    %10 = arith.truncf %9 : vector<8x8xf32> to vector<8x8xbf16>
    %11 = arith.truncf %8 : vector<8x512xf32> to vector<8x512xbf16>
    %cst_7 = arith.constant dense<0.000000e+00> : vector<8x512xf32>
    %12 = tpu.matmul %10, %11, %cst_7 {dimension_numbers = #tpu.dot_dimension_numbers<[1], [0], [0], [1], [0, 0, 1, 1], [], []>} : vector<8x8xbf16>, vector<8x512xbf16>, vector<8x512xf32> -> vector<8x512xf32>
    %c0_8 = arith.constant 0 : index
    %c0_9 = arith.constant 0 : index
    %13 = vector.load %arg5[%c0_8, %c0_9] : memref<8x1xf32, #tpu.memory_space<vmem>>, vector<8x1xf32>
    %14 = vector.broadcast %13 : vector<8x1xf32> to vector<8x512xf32>
    %15 = arith.mulf %12, %14 : vector<8x512xf32>
    %c0_10 = arith.constant 0 : index
    %c0_11 = arith.constant 0 : index
    %16 = vector.load %arg6[%c0_10, %c0_11] : memref<8x1xf32, #tpu.memory_space<vmem>>, vector<8x1xf32>
    %17 = vector.broadcast %16 : vector<8x1xf32> to vector<8x512xf32>
    %18 = arith.addf %15, %17 : vector<8x512xf32>
    %cst_12 = arith.constant 0.000000e+00 : f32
    %19 = vector.broadcast %cst_12 : f32 to vector<8x512xf32>
    %20 = arith.maximumf %18, %19 : vector<8x512xf32>
    %c0_13 = arith.constant 0 : index
    %c0_14 = arith.constant 0 : index
    %21 = vector.load %arg7[%c0_13, %c0_14] : memref<8x8xf32, #tpu.memory_space<vmem>>, vector<8x8xf32>
    %22 = arith.truncf %21 : vector<8x8xf32> to vector<8x8xbf16>
    %23 = arith.truncf %20 : vector<8x512xf32> to vector<8x512xbf16>
    %cst_15 = arith.constant dense<0.000000e+00> : vector<8x512xf32>
    %24 = tpu.matmul %22, %23, %cst_15 {dimension_numbers = #tpu.dot_dimension_numbers<[1], [0], [0], [1], [0, 0, 1, 1], [], []>} : vector<8x8xbf16>, vector<8x512xbf16>, vector<8x512xf32> -> vector<8x512xf32>
    %25 = arith.addf %24, %0 : vector<8x512xf32>
    %c0_16 = arith.constant 0 : index
    %c0_17 = arith.constant 0 : index
    %26 = vector.load %arg8[%c0_16, %c0_17] : memref<8x512xf32, #tpu.memory_space<vmem>>, vector<8x512xf32>
    tpu.vector_store %arg8[%c0_16, %c0_17], %25 {strides = array<i32>} : memref<8x512xf32, #tpu.memory_space<vmem>>, vector<8x512xf32>,
    return
  }
  func.func @transform_0(%arg0: i32) -> (i32, i32) {
    %c0_i32 = arith.constant 0 : i32
    %c0_i32_0 = arith.constant 0 : i32
    %c0_i32_1 = arith.constant 0 : i32
    return %c0_i32, %c0_i32_0 : i32, i32
  }
  func.func @transform_1(%arg0: i32) -> (i32, i32) {
    %c0_i32 = arith.constant 0 : i32
    %c0_i32_0 = arith.constant 0 : i32
    %c0_i32_1 = arith.constant 0 : i32
    return %c0_i32, %c0_i32_0 : i32, i32
  }
  func.func @transform_2(%arg0: i32) -> (i32, i32) {
    %c0_i32 = arith.constant 0 : i32
    %c0_i32_0 = arith.constant 0 : i32
    %c0_i32_1 = arith.constant 0 : i32
    return %c0_i32, %c0_i32_0 : i32, i32
  }
  func.func @transform_3(%arg0: i32) -> (i32, i32) {
    %c0_i32 = arith.constant 0 : i32
    %c0_i32_0 = arith.constant 0 : i32
    %c0_i32_1 = arith.constant 0 : i32
    return %c0_i32, %c0_i32_0 : i32, i32
  }
  func.func @transform_4(%arg0: i32) -> (i32, i32) {
    %c0_i32 = arith.constant 0 : i32
    %c0_i32_0 = arith.constant 0 : i32
    %c0_i32_1 = arith.constant 0 : i32
    return %c0_i32, %c0_i32_0 : i32, i32
  }
  func.func @transform_5(%arg0: i32) -> (i32, i32) {
    %c0_i32 = arith.constant 0 : i32
    %c0_i32_0 = arith.constant 0 : i32
    %c0_i32_1 = arith.constant 0 : i32
    return %c0_i32, %c0_i32_0 : i32, i32
  }
  func.func @transform_6(%arg0: i32) -> (i32, i32) {
    %c0_i32 = arith.constant 0 : i32
    %c0_i32_0 = arith.constant 0 : i32
    %c0_i32_1 = arith.constant 0 : i32
    return %c0_i32, %c0_i32_0 : i32, i32
  }
  func.func @transform_7(%arg0: i32) -> (i32, i32) {
    %c0_i32 = arith.constant 0 : i32
    %c0_i32_0 = arith.constant 0 : i32
    %c0_i32_1 = arith.constant 0 : i32
    return %c0_i32, %c0_i32_0 : i32, i32
  }
}

module attributes {stable_mosaic.version = 11 : i64} {
  func.func @_matmul_kernel(%arg0: i32, %arg1: memref<8x256xf32, #tpu.memory_space<vmem>>, %arg2: memref<2x8xf32, #tpu.memory_space<vmem>>, %arg3: memref<8x1xf32, #tpu.memory_space<vmem>>, %arg4: memref<8x1xf32, #tpu.memory_space<vmem>>, %arg5: memref<2x1xf32, #tpu.memory_space<vmem>>, %arg6: memref<2x256xf32, #tpu.memory_space<vmem>>) attributes {dimension_semantics = [#tpu.dimension_semantics<parallel>], iteration_bounds = array<i64: 2>, scalar_prefetch = 0 : i64, scratch_operands = 0 : i64, tpu.core_type = #tpu.core_type<tc>, window_params = [{transform_indices = @transform_0, window_bounds = array<i64: 8, 256>}, {pipeline_mode = #tpu.pipeline_mode<synchronous>, transform_indices = @transform_1, window_bounds = array<i64: 2, 8>}, {pipeline_mode = #tpu.pipeline_mode<synchronous>, transform_indices = @transform_2, window_bounds = array<i64: 8, 1>}, {pipeline_mode = #tpu.pipeline_mode<synchronous>, transform_indices = @transform_3, window_bounds = array<i64: 8, 1>}, {pipeline_mode = #tpu.pipeline_mode<synchronous>, transform_indices = @transform_4, window_bounds = array<i64: 2, 1>}, {transform_indices = @transform_5, window_bounds = array<i64: 2, 256>}]} {
    %c0 = arith.constant 0 : index
    %c0_0 = arith.constant 0 : index
    %0 = vector.load %arg1[%c0, %c0_0] : memref<8x256xf32, #tpu.memory_space<vmem>>, vector<8x256xf32>
    %c0_1 = arith.constant 0 : index
    %c0_2 = arith.constant 0 : index
    %1 = vector.load %arg3[%c0_1, %c0_2] : memref<8x1xf32, #tpu.memory_space<vmem>>, vector<8x1xf32>
    %2 = vector.broadcast %1 : vector<8x1xf32> to vector<8x256xf32>
    %3 = arith.mulf %0, %2 : vector<8x256xf32>
    %c0_3 = arith.constant 0 : index
    %c0_4 = arith.constant 0 : index
    %4 = vector.load %arg4[%c0_3, %c0_4] : memref<8x1xf32, #tpu.memory_space<vmem>>, vector<8x1xf32>
    %5 = vector.broadcast %4 : vector<8x1xf32> to vector<8x256xf32>
    %6 = arith.addf %3, %5 : vector<8x256xf32>
    %cst = arith.constant 0.000000e+00 : f32
    %7 = vector.broadcast %cst : f32 to vector<8x256xf32>
    %8 = arith.maximumf %6, %7 : vector<8x256xf32>
    %c0_5 = arith.constant 0 : index
    %c0_6 = arith.constant 0 : index
    %9 = vector.load %arg2[%c0_5, %c0_6] : memref<2x8xf32, #tpu.memory_space<vmem>>, vector<2x8xf32>
    %10 = arith.truncf %9 : vector<2x8xf32> to vector<2x8xbf16>
    %11 = arith.truncf %8 : vector<8x256xf32> to vector<8x256xbf16>
    %cst_7 = arith.constant dense<0.000000e+00> : vector<2x256xf32>
    %12 = tpu.matmul %10, %11, %cst_7 {dimension_numbers = #tpu.dot_dimension_numbers<[1], [0], [0], [1], [0, 0, 1, 1], [], []>} : vector<2x8xbf16>, vector<8x256xbf16>, vector<2x256xf32> -> vector<2x256xf32>
    %c0_8 = arith.constant 0 : index
    %c0_9 = arith.constant 0 : index
    %13 = vector.load %arg5[%c0_8, %c0_9] : memref<2x1xf32, #tpu.memory_space<vmem>>, vector<2x1xf32>
    %14 = vector.broadcast %13 : vector<2x1xf32> to vector<2x256xf32>
    %15 = arith.addf %12, %14 : vector<2x256xf32>
    %c0_10 = arith.constant 0 : index
    %c0_11 = arith.constant 0 : index
    %16 = vector.load %arg6[%c0_10, %c0_11] : memref<2x256xf32, #tpu.memory_space<vmem>>, vector<2x256xf32>
    tpu.vector_store %arg6[%c0_10, %c0_11], %15 {strides = array<i32>} : memref<2x256xf32, #tpu.memory_space<vmem>>, vector<2x256xf32>,
    return
  }
  func.func @transform_0(%arg0: i32) -> (i32, i32) {
    %c0_i32 = arith.constant 0 : i32
    %c0_i32_0 = arith.constant 0 : i32
    return %c0_i32, %arg0 : i32, i32
  }
  func.func @transform_1(%arg0: i32) -> (i32, i32) {
    %c0_i32 = arith.constant 0 : i32
    %c0_i32_0 = arith.constant 0 : i32
    %c0_i32_1 = arith.constant 0 : i32
    return %c0_i32, %c0_i32_0 : i32, i32
  }
  func.func @transform_2(%arg0: i32) -> (i32, i32) {
    %c0_i32 = arith.constant 0 : i32
    %c0_i32_0 = arith.constant 0 : i32
    %c0_i32_1 = arith.constant 0 : i32
    return %c0_i32, %c0_i32_0 : i32, i32
  }
  func.func @transform_3(%arg0: i32) -> (i32, i32) {
    %c0_i32 = arith.constant 0 : i32
    %c0_i32_0 = arith.constant 0 : i32
    %c0_i32_1 = arith.constant 0 : i32
    return %c0_i32, %c0_i32_0 : i32, i32
  }
  func.func @transform_4(%arg0: i32) -> (i32, i32) {
    %c0_i32 = arith.constant 0 : i32
    %c0_i32_0 = arith.constant 0 : i32
    %c0_i32_1 = arith.constant 0 : i32
    return %c0_i32, %c0_i32_0 : i32, i32
  }
  func.func @transform_5(%arg0: i32) -> (i32, i32) {
    %c0_i32 = arith.constant 0 : i32
    %c0_i32_0 = arith.constant 0 : i32
    return %c0_i32, %arg0 : i32, i32
  }
}

</mosaic_0001>

<bundles_post_ra>
// kernel: unet2d_forward.37
= control target key start
LH: loop header
LB: loop body
LE: loop exit
PB: predicated region body
PF: predicated region fallthrough
CT: control target
= control target key end

     0   :  { %v153_v0 = vmov 0   ;;  %v154_v7 = vmov 0.0   ;;  %vm155_vm0 = vmmov 0   ;;  %vm83_vm1 = vcmask 261120   ;;  %s229_s3 = inlined_call_operand.vmem [shape: f32[32,1], index: 3, kind: input, shape index: {}]   ;;  %s230_s2 = inlined_call_operand.vmem [shape: f32[32,1], index: 2, kind: input, shape index: {}]   ;;  %s231_s0 = inlined_call_operand.vmem [shape: f32[32,128], index: 0, kind: input, shape index: {}]   ;;  %s232_s1 = inlined_call_operand.vmem [shape: f32[16,32], index: 1, kind: input, shape index: {}]   ;;  %s233_s4 = inlined_call_operand.vmem [shape: f32[16,128], index: 4, kind: output, shape index: {}]  }
   0x1   :  { %152 = vset.pattern.permute.xlu1 %v153_v0  ;;  %151 = vset.pattern.permute.xlu0 %v153_v0  ;;  %v52_v1 = vld [vmem:[%s229_s3 + $0x10] sm:$0xff]  ;;  %v53_v3 = vld [vmem:[%s229_s3 + $0x18] sm:$0xff]  ;;  %v23_v5 = vld [vmem:[%s230_s2 + $0x8] sm:$0xff] }
   0x2   :  { %v24_v2 = vld [vmem:[%s230_s2 + $0x10] sm:$0xff]  ;;  %66 = vperm.xlu1 %152, %v52_v1   ;;  %v25_v4 = vld [vmem:[%s230_s2 + $0x18] sm:$0xff]  ;;  %v22_v6 = vld [vmem:[%s230_s2] sm:$0xff]  ;;  %140 = vmatprep.subr.bf16.mxu0 %v154_v7 }
   0x3   :  { %38 = vperm.xlu0 %151, %v24_v2   ;;  %v51_v8 = vld [vmem:[%s229_s3 + $0x8] sm:$0xff]  ;;  %v50_v9 = vld [vmem:[%s229_s3] sm:$0xff]  ;;  %144 = vmatprep.mubr.msk.bf16.mxu0 %vm155_vm0, %v154_v7  ;;  %v20_v12 = vld [vmem:[%s231_s0 + $0x10] sm:$0xff] }
   0x4   :  { %v21_v13 = vld [vmem:[%s231_s0 + $0x18] sm:$0xff]  ;;  %v19_v21 = vld [vmem:[%s231_s0 + $0x8] sm:$0xff]  ;;  %v18_v23 = vld [vmem:[%s231_s0] sm:$0xff] }
   0x5   :  { %v78_v31 = vld [vmem:[%s232_s1] sm:$0xff]  ;;  %v79_v32 = vld [vmem:[%s232_s1 + $0x8] sm:$0xff] }
   0x6   :  { %71 = vperm.xlu1 %152, %v53_v3   ;;  %v80_v34 = vpack.c.bf16 %v79_v32, %v78_v31 }
   0x7   :  { %43 = vperm.xlu0 %151, %v25_v4  }
   0xa   :  { %33 = vperm.xlu1 %152, %v23_v5  }
   0xb   :  { %28 = vperm.xlu0 %151, %v22_v6  }
   0xe   :  { %61 = vperm.xlu1 %152, %v51_v8  }
   0xf   :  { %56 = vperm.xlu0 %151, %v50_v9  }
  0x7d   :  { %v67_v10 = vpop.permute.xlu1 %66 }
  0x7e   :  { %v39_v11 = vpop.permute.xlu0 %38 }
  0x7f   :  { %v48_v14 = vmul.f32 %v39_v11, %v20_v12 }
  0x81   :  { %v72_v15 = vpop.permute.xlu1 %71  ;;  %v76_v18 = vadd.f32 %v67_v10, %v48_v14 }
  0x82   :  { %v44_v16 = vpop.permute.xlu0 %43 }
  0x83   :  { %v49_v17 = vmul.f32 %v44_v16, %v21_v13 }
  0x85   :  { %v77_v19 = vadd.f32 %v72_v15, %v49_v17  ;;  %v34_v20 = vpop.permute.xlu1 %33 }
  0x86   :  { %v29_v22 = vpop.permute.xlu0 %28  ;;  %v47_v25 = vmul.f32 %v34_v20, %v19_v21 }
  0x87   :  { %v82_v24 = vpack.c.bf16 %v77_v19, %v76_v18  ;;  %v46_v26 = vmul.f32 %v29_v22, %v18_v23 }
  0x89   :  { %141 = vmatpush3.bf16.msra.mxu0 %v82_v24  ;;  %v62_v27 = vpop.permute.xlu1 %61 }
  0x8a   :  { %v57_v28 = vpop.permute.xlu0 %56  ;;  %142 = vmatprep.subr.bf16.mxu0 %v154_v7  ;;  %v75_v29 = vadd.f32 %v62_v27, %v47_v25 }
  0x8b   :  { %v74_v30 = vadd.f32 %v57_v28, %v46_v26 }
  0x8d   :  { %v81_v33 = vpack.c.bf16 %v75_v29, %v74_v30 }
  0x8f   :  { %143 = vmatpush3.bf16.msra.mxu0 %v81_v33 }
  0x92   :  { %145 = vmatmul.mubr.msk.bf16.vlgmr.msra.gmra.mxu0 %vm83_vm1, %v80_v34 }
 0x152   :  { %v121_v35 = vpop.f32.mrf.mxu0 }
 0x153   :  { %v128_v36 = vmax.f32 %v121_v35, 0.0 }
 0x154   :  { %v146_v37 = vpop.f32.mrf.mxu0 }
 0x155   :  { %130 = vst [vmem:[%s233_s4] sm:$0xff] %v128_v36 }
 0x156   :  { %v124_v38 = vpop.f32.mrf.mxu0 }
 0x157   :  { %v129_v39 = vmax.f32 %v124_v38, 0.0 }
 0x158   :  { %v147_v40 = vpop.f32.mrf.mxu0 }
 0x159   :  { %131 = vst [vmem:[%s233_s4 + $0x8] sm:$0xff] %v129_v39 }

// kernel: unet2d_forward.33
= control target key start
LH: loop header
LB: loop body
LE: loop exit
PB: predicated region body
PF: predicated region fallthrough
CT: control target
= control target key end

     0   :  { %v59_v0 = vlaneseq  ;;  %vm19_vm0 = vcmask 277504   ;;  %v914_v3 = vmov 0.0   ;;  %s915_s16 = smov 17   ;;  %s916_s23 = smov 34   ;;  %vm47_vm1 = vcmask 1047688   ;;  %s1240_s0 = inlined_call_operand.vmem [shape: f32[8,512], index: 0, kind: input, shape index: {}]   ;;  %s1241_s1 = inlined_call_operand.vmem [shape: f32[9,512], index: 1, kind: input, shape index: {}]   ;;  %s1242_s2 = inlined_call_operand.vmem [shape: f32[8,72], index: 2, kind: input, shape index: {}]   ;;  %s1243_s3 = inlined_call_operand.vmem [shape: f32[8,512], index: 3, kind: output, shape index: {}]  }
   0x1   :  { %v23_v1 = vld [vmem:[%s1240_s0 + $0x10] sm:$0xff]  ;;  %v21_v2 = vld [vmem:[%s1240_s0] sm:$0xff]  ;;  %15 = vst [vmem:[#allocation2] sm:$0xff] %v914_v3  ;;  %20 = vst.msk [vmem:[#allocation2 + $0x20] sm:$0xff] %vm19_vm0, %v914_v3  ;;  %s917_s27 = smov 32   ;;  %s918_s30 = smov 33  }
   0x2   :  { %34 = vrot.lane.b32.xlu1 %v23_v1, %s915_s16  ;;  %30 = vrot.lane.b32.xlu0 %v21_v2, %s915_s16  ;;  %v60_v4 = vshrl.u32 %v59_v0, 7  ;;  %v24_v5 = vld [vmem:[%s1240_s0 + $0x18] sm:$0xff]  ;;  %v22_v6 = vld [vmem:[%s1240_s0 + $0x8] sm:$0xff]  ;;  %s919_s6 = smov 18   ;;  %s920_s9 = smov 2   ;;  %vm38_vm2 = vcmask 138240  }
   0x3   :  { %v811_v7 = vld [vmem:[%s1241_s1 + $0x20] ss:$8 sm:$0xf]  ;;  %v809_v16 = vld [vmem:[%s1241_s1 + $0x6] ss:$8 sm:$0xf] }
   0x4   :  { %v968_v8 = vsub.s32 1, %v60_v4  ;;  %v970_v9 = vsub.s32 0, %v60_v4  ;;  %v974_v12 = vsub.s32 3, %v60_v4  ;;  %v976_v13 = vsub.s32 2, %v60_v4  ;;  %s921_s12 = smov 16   ;;  %s922_s15 = smov 1  }
   0x5   :  { %v986_v17 = vld [vmem:[%s1241_s1] ss:$8 sm:$0xf]  ;;  %v810_v26 = vld [vmem:[%s1241_s1 + $0x7] ss:$8 sm:$0xf] }
   0x6   :  { %36 = vrot.lane.b32.xlu1 %v24_v5, %s915_s16  ;;  %32 = vrot.lane.b32.xlu0 %v22_v6, %s915_s16  ;;  %v579_v10 = vrot.slane %v811_v7, %v968_v8  ;;  %v575_v11 = vrot.slane %v811_v7, %v970_v9  ;;  %v587_v14 = vrot.slane %v811_v7, %v974_v12  ;;  %v808_v31 = vld [vmem:[%s1241_s1 + $0x5] ss:$8 sm:$0xf]  ;;  %v806_v36 = vld [vmem:[%s1241_s1 + $0x2] ss:$8 sm:$0xf] }
   0x7   :  { %v583_v15 = vrot.slane %v811_v7, %v976_v13  ;;  %v431_v18 = vrot.slane %v809_v16, %v968_v8  ;;  %v427_v19 = vrot.slane %v809_v16, %v970_v9  ;;  %v62_v20 = vrot.slane %v986_v17, %v970_v9  ;;  %v807_v41 = vld [vmem:[%s1241_s1 + $0x3] ss:$8 sm:$0xf]  ;;  %v805_v46 = vld [vmem:[%s1241_s1 + $0x1] ss:$8 sm:$0xf] }
   0x8   :  { %v66_v21 = vrot.slane %v986_v17, %v968_v8  ;;  %v74_v22 = vrot.slane %v986_v17, %v974_v12  ;;  %v70_v23 = vrot.slane %v986_v17, %v976_v13  ;;  %v439_v24 = vrot.slane %v809_v16, %v974_v12  ;;  %s923_s1 = smov 111   ;;  %s924_s16 = smov 96  }
   0x9   :  { %v435_v25 = vrot.slane %v809_v16, %v976_v13  ;;  %v505_v27 = vrot.slane %v810_v26, %v968_v8  ;;  %v501_v28 = vrot.slane %v810_v26, %v970_v9  ;;  %v513_v29 = vrot.slane %v810_v26, %v974_v12  ;;  %s925_s17 = smov 94   ;;  %s926_s18 = smov 95  }
   0xa   :  { %590 = vrot.lane.b32.xlu1 %v579_v10, %s916_s23  ;;  %588 = vrot.lane.b32.xlu0 %v575_v11, %s916_s23  ;;  %v509_v30 = vrot.slane %v810_v26, %v976_v13  ;;  %v357_v32 = vrot.slane %v808_v31, %v968_v8  ;;  %v353_v33 = vrot.slane %v808_v31, %v970_v9  ;;  %s927_s19 = smov 110   ;;  %vm448_vm3 = vcmask 261120   ;;  %s928_s20 = smov 126  }
   0xb   :  { %v365_v34 = vrot.slane %v808_v31, %v974_v12  ;;  %v361_v35 = vrot.slane %v808_v31, %v976_v13  ;;  %v176_v37 = vrot.slane %v806_v36, %v968_v8  ;;  %v172_v38 = vrot.slane %v806_v36, %v970_v9  ;;  %s929_s21 = smov 112   ;;  %s931_s22 = smov 127  }
   0xc   :  { %v184_v39 = vrot.slane %v806_v36, %v974_v12  ;;  %v180_v40 = vrot.slane %v806_v36, %v976_v13  ;;  %v250_v42 = vrot.slane %v807_v41, %v968_v8  ;;  %v246_v43 = vrot.slane %v807_v41, %v970_v9 }
   0xd   :  { %v258_v44 = vrot.slane %v807_v41, %v974_v12  ;;  %v254_v45 = vrot.slane %v807_v41, %v976_v13  ;;  %v102_v47 = vrot.slane %v805_v46, %v968_v8  ;;  %v98_v48 = vrot.slane %v805_v46, %v970_v9 }
   0xe   :  { %594 = vrot.lane.b32.xlu1 %v587_v14, %s916_s23  ;;  %592 = vrot.lane.b32.xlu0 %v583_v15, %s916_s23  ;;  %v110_v49 = vrot.slane %v805_v46, %v974_v12  ;;  %v106_v50 = vrot.slane %v805_v46, %v976_v13  ;;  %vm522_vm4 = vcmask 269312   ;;  %vm374_vm5 = vcmask 146432  }
   0xf   :  { %vm193_vm6 = vcmask 15360   ;;  %vm267_vm7 = vcmask 130048   ;;  %vm119_vm8 = vcmask 7168   ;;  %vm624_vm9 = vcmask 769024  }
  0x10   :  { %vm698_vm10 = vcmask 1043456   ;;  %vm551_vm11 = vcmask 777216   ;;  %vm477_vm12 = vcmask 785408   ;;  %vm403_vm13 = vcmask 900096  }
  0x11   :  { %vm329_vm14 = vcmask 908288   ;;  %vm222_vm15 = vcmask 1031168  }
  0x12   :  { %442 = vrot.lane.b32.xlu1 %v431_v18, %s917_s27  ;;  %440 = vrot.lane.b32.xlu0 %v427_v19, %s917_s27 }
  0x16   :  { %446 = vrot.lane.b32.xlu1 %v439_v24, %s917_s27  ;;  %444 = vrot.lane.b32.xlu0 %v435_v25, %s917_s27 }
  0x1a   :  { %516 = vrot.lane.b32.xlu1 %v505_v27, %s918_s30  ;;  %514 = vrot.lane.b32.xlu0 %v501_v28, %s918_s30 }
  0x1e   :  { %520 = vrot.lane.b32.xlu1 %v513_v29, %s918_s30  ;;  %518 = vrot.lane.b32.xlu0 %v509_v30, %s918_s30 }
  0x22   :  { %368 = vrot.lane.b32.xlu1 %v357_v32, %s919_s6  ;;  %366 = vrot.lane.b32.xlu0 %v353_v33, %s919_s6 }
  0x26   :  { %372 = vrot.lane.b32.xlu1 %v365_v34, %s919_s6  ;;  %370 = vrot.lane.b32.xlu0 %v361_v35, %s919_s6 }
  0x2a   :  { %187 = vrot.lane.b32.xlu1 %v176_v37, %s920_s9  ;;  %185 = vrot.lane.b32.xlu0 %v172_v38, %s920_s9 }
  0x2e   :  { %191 = vrot.lane.b32.xlu1 %v184_v39, %s920_s9  ;;  %189 = vrot.lane.b32.xlu0 %v180_v40, %s920_s9 }
  0x32   :  { %261 = vrot.lane.b32.xlu1 %v250_v42, %s921_s12  ;;  %259 = vrot.lane.b32.xlu0 %v246_v43, %s921_s12 }
  0x36   :  { %265 = vrot.lane.b32.xlu1 %v258_v44, %s921_s12  ;;  %263 = vrot.lane.b32.xlu0 %v254_v45, %s921_s12 }
  0x3a   :  { %113 = vrot.lane.b32.xlu1 %v102_v47, %s922_s15  ;;  %111 = vrot.lane.b32.xlu0 %v98_v48, %s922_s15 }
  0x3e   :  { %117 = vrot.lane.b32.xlu1 %v110_v49, %s922_s15  ;;  %115 = vrot.lane.b32.xlu0 %v106_v50, %s922_s15 }
  0x74   :  { %v35_v51 = vpop.permute.xlu1 %34  ;;  %v31_v52 = vpop.permute.xlu0 %30 }
  0x75   :  { %48 = vst.msk [vmem:[#allocation2] sm:$0xff] %vm47_vm1, %v31_v52  ;;  %vm148_vm1 = vcmask 1039360  }
  0x78   :  { %v37_v53 = vpop.permute.xlu1 %36  ;;  %v33_v54 = vpop.permute.xlu0 %32 }
  0x79   :  { %v1035_v55 = vsel %vm38_vm2, %v35_v51, %v37_v53  ;;  %52 = vst.msk [vmem:[#allocation2 + $0x20] sm:$0xff] %vm38_vm2, %v37_v53  ;;  %v1037_v56 = vsel %vm38_vm2, %v31_v52, %v33_v54  ;;  %v1039_v57 = vsel %vm38_vm2, %v33_v54, %v35_v51  ;;  %vm694_vm2 = vcmask 588800  }
  0x7a   :  { %v1045_v58 = vmul.f32 %v66_v21, %v1037_v56  ;;  %v1051_v59 = vmul.f32 %v74_v22, %v1035_v55  ;;  %v1057_v60 = vmul.f32 %v70_v23, %v1039_v57  ;;  %v834_v1 = vpack.i.bf16 %v1039_v57, %v1037_v56 }
  0x7c   :  { %v591_v61 = vpop.permute.xlu1 %590  ;;  %v1059_v62 = vld [vmem:[#allocation2] sm:$0xff]  ;;  %v589_v63 = vpop.permute.xlu0 %588 }
  0x7d   :  { %319 = vrot.lane.b32.xlu1 %v1059_v62, %s923_s1  ;;  %v1066_v0 = vmul.f32 %v1059_v62, %v62_v20  ;;  %v596_v33 = vsel %vm19_vm0, %v589_v63, %v591_v61  ;;  %v604_v38 = vmul.f32 %v589_v63, %v1059_v62 }
  0x7e   :  { %v605_v39 = vmul.f32 %v596_v33, %v1037_v56 }
  0x80   :  { %v1070_v2 = vld [vmem:[#allocation2 + $0x20] sm:$0xff]  ;;  %v595_v3 = vpop.permute.xlu1 %594  ;;  %v593_v4 = vpop.permute.xlu0 %592  ;;  %v844_v53 = vpack.i.bf16 %v605_v39, %v604_v38 }
  0x81   :  { %v839_v5 = vpack.i.bf16 %v1070_v2, %v1035_v55  ;;  %835 = vrot.lane.b32.xlu1 %v834_v1, %s923_s1  ;;  %v608_v6 = vmul.f32 %v595_v3, %v1070_v2  ;;  %v597_v22 = vsel %vm19_vm0, %v591_v61, %v593_v4  ;;  %v598_v23 = vsel %vm19_vm0, %v593_v4, %v595_v3 }
  0x82   :  { %v606_v26 = vmul.f32 %v597_v22, %v1039_v57  ;;  %v607_v27 = vmul.f32 %v598_v23, %v1035_v55  ;;  %vm296_vm0 = vcmask 916480  }
  0x83   :  { %840 = vrot.lane.b32.xlu0 %v839_v5, %s923_s1 }
  0x84   :  { %v443_v7 = vpop.permute.xlu1 %442  ;;  %v441_v8 = vpop.permute.xlu0 %440  ;;  %v849_v35 = vpack.i.bf16 %v607_v27, %v606_v26 }
  0x85   :  { %v457_v9 = vmul.f32 %v1059_v62, %v441_v8  ;;  %v449_v30 = vsel %vm448_vm3, %v441_v8, %v443_v7 }
  0x86   :  { %v458_v37 = vmul.f32 %v449_v30, %v1037_v56 }
  0x87   :  { %467 = vrot.lane.b32.xlu1 %v457_v9, %s924_s16  ;;  %622 = vrot.lane.b32.xlu0 %v608_v6, %s925_s17 }
  0x88   :  { %v447_v10 = vpop.permute.xlu1 %446  ;;  %v445_v11 = vpop.permute.xlu0 %444 }
  0x89   :  { %v450_v29 = vsel %vm448_vm3, %v443_v7, %v445_v11  ;;  %v451_v42 = vsel %vm448_vm3, %v445_v11, %v447_v10  ;;  %v461_v49 = vmul.f32 %v1070_v2, %v447_v10 }
  0x8a   :  { %v459_v34 = vmul.f32 %v450_v29, %v1039_v57  ;;  %v460_v50 = vmul.f32 %v451_v42, %v1035_v55 }
  0x8c   :  { %v517_v12 = vpop.permute.xlu1 %516  ;;  %v515_v13 = vpop.permute.xlu0 %514  ;;  %v854_v46 = vpack.i.bf16 %v459_v34, %v458_v37  ;;  %v859_v8 = vpack.i.bf16 %v461_v49, %v460_v50 }
  0x8d   :  { %v531_v14 = vmul.f32 %v1059_v62, %v515_v13  ;;  %v523_v40 = vsel %vm522_vm4, %v515_v13, %v517_v12 }
  0x8e   :  { %v532_v48 = vmul.f32 %v523_v40, %v1037_v56 }
  0x8f   :  { %541 = vrot.lane.b32.xlu0 %v531_v14, %s926_s18 }
  0x90   :  { %v521_v15 = vpop.permute.xlu1 %520  ;;  %v519_v16 = vpop.permute.xlu0 %518 }
  0x91   :  { %v524_v36 = vsel %vm522_vm4, %v517_v12, %v519_v16  ;;  %v525_v63 = vsel %vm522_vm4, %v519_v16, %v521_v15  ;;  %v535_v5 = vmul.f32 %v1070_v2, %v521_v15 }
  0x92   :  { %v533_v43 = vmul.f32 %v524_v36, %v1039_v57  ;;  %v534_v9 = vmul.f32 %v525_v63, %v1035_v55  ;;  %v930_v36 = vmov 0  }
  0x93   :  { %743 = vmatprep.mubr.bf16.mxu0 %v930_v36  ;;  %784 = vmatprep.mubr.bf16.mxu1 %v930_v36 }
  0x94   :  { %v369_v17 = vpop.permute.xlu1 %368  ;;  %v367_v18 = vpop.permute.xlu0 %366  ;;  %v864_v61 = vpack.i.bf16 %v533_v43, %v532_v48  ;;  %v869_v23 = vpack.i.bf16 %v535_v5, %v534_v9 }
  0x95   :  { %v383_v19 = vmul.f32 %v1059_v62, %v367_v18  ;;  %v375_v51 = vsel %vm374_vm5, %v367_v18, %v369_v17 }
  0x96   :  { %v384_v3 = vmul.f32 %v375_v51, %v1037_v56 }
  0x97   :  { %393 = vrot.lane.b32.xlu0 %v383_v19, %s927_s19 }
  0x98   :  { %v1082_v20 = vpop.permute.xlu1 %372  ;;  %v371_v21 = vpop.permute.xlu0 %370 }
  0x99   :  { %v376_v47 = vsel %vm374_vm5, %v369_v17, %v371_v21  ;;  %v377_v10 = vsel %vm374_vm5, %v371_v21, %v1082_v20  ;;  %v387_v15 = vmul.f32 %v1070_v2, %v1082_v20 }
  0x9a   :  { %v385_v54 = vmul.f32 %v376_v47, %v1039_v57  ;;  %v386_v16 = vmul.f32 %v377_v10, %v1035_v55 }
  0x9c   :  { %v188_v24 = vpop.permute.xlu1 %187  ;;  %v186_v25 = vpop.permute.xlu0 %185  ;;  %v874_v12 = vpack.i.bf16 %v385_v54, %v384_v3  ;;  %v879_v27 = vpack.i.bf16 %v387_v15, %v386_v16 }
  0x9d   :  { %v202_v28 = vmul.f32 %v1059_v62, %v186_v25  ;;  %v194_v6 = vsel %vm193_vm6, %v186_v25, %v188_v24 }
  0x9e   :  { %v203_v14 = vmul.f32 %v194_v6, %v1037_v56 }
  0x9f   :  { %212 = vrot.lane.b32.xlu1 %v202_v28, %s928_s20 }
  0xa0   :  { %v1092_v31 = vpop.permute.xlu1 %191  ;;  %v190_v32 = vpop.permute.xlu0 %189 }
  0xa1   :  { %v195_v1 = vsel %vm193_vm6, %v188_v24, %v190_v32  ;;  %v196_v24 = vsel %vm193_vm6, %v190_v32, %v1092_v31  ;;  %v206_v28 = vmul.f32 %v1070_v2, %v1092_v31 }
  0xa2   :  { %v204_v11 = vmul.f32 %v195_v1, %v1039_v57  ;;  %v205_v29 = vmul.f32 %v196_v24, %v1035_v55 }
  0xa3   :  { %850 = vrot.lane.b32.xlu1 %v849_v35, %s925_s17 }
  0xa4   :  { %v260_v41 = vpop.permute.xlu0 %259  ;;  %v262_v44 = vpop.permute.xlu1 %261  ;;  %v884_v22 = vpack.i.bf16 %v204_v11, %v203_v14  ;;  %v889_v38 = vpack.i.bf16 %v206_v28, %v205_v29 }
  0xa5   :  { %v276_v45 = vmul.f32 %v1059_v62, %v260_v41  ;;  %v268_v17 = vsel %vm267_vm7, %v260_v41, %v262_v44 }
  0xa6   :  { %v277_v26 = vmul.f32 %v268_v17, %v1037_v56 }
  0xa7   :  { %855 = vrot.lane.b32.xlu1 %v854_v46, %s924_s16  ;;  %286 = vrot.lane.b32.xlu0 %v276_v45, %s929_s21 }
  0xa8   :  { %v264_v52 = vpop.permute.xlu0 %263  ;;  %v266_v4 = vpop.permute.xlu1 %265 }
  0xa9   :  { %v269_v13 = vsel %vm267_vm7, %v262_v44, %v264_v52  ;;  %v270_v32 = vsel %vm267_vm7, %v264_v52, %v266_v4  ;;  %v280_v37 = vmul.f32 %v1070_v2, %v266_v4 }
  0xaa   :  { %v278_v19 = vmul.f32 %v269_v13, %v1039_v57  ;;  %v279_v31 = vmul.f32 %v270_v32, %v1035_v55 }
  0xab   :  { %865 = vrot.lane.b32.xlu1 %v864_v61, %s926_s18  ;;  %845 = vrot.lane.b32.xlu0 %v844_v53, %s925_s17 }
  0xac   :  { %v112_v7 = vpop.permute.xlu0 %111  ;;  %v114_v21 = vpop.permute.xlu1 %113  ;;  %v894_v33 = vpack.i.bf16 %v278_v19, %v277_v26  ;;  %v899_v42 = vpack.i.bf16 %v280_v37, %v279_v31 }
  0xad   :  { %v120_v20 = vsel %vm119_vm8, %v112_v7, %v114_v21 }
  0xae   :  { %v129_v34 = vmul.f32 %v120_v20, %v1037_v56  ;;  %v128_v56 = vmul.f32 %v1059_v62, %v112_v7 }
  0xaf   :  { %875 = vrot.lane.b32.xlu1 %v874_v12, %s927_s19  ;;  %860 = vrot.lane.b32.xlu0 %v859_v8, %s924_s16 }
  0xb0   :  { %v116_v18 = vpop.permute.xlu0 %115  ;;  %v118_v35 = vpop.permute.xlu1 %117 }
  0xb1   :  { %v121_v25 = vsel %vm119_vm8, %v114_v21, %v116_v18  ;;  %v132_v40 = vmul.f32 %v1070_v2, %v118_v35 }
  0xb2   :  { %v130_v30 = vmul.f32 %v121_v25, %v1039_v57  ;;  %v122_v57 = vsel %vm119_vm8, %v116_v18, %v118_v35 }
  0xb3   :  { %885 = vrot.lane.b32.xlu1 %v884_v22, %s928_s20  ;;  %870 = vrot.lane.b32.xlu0 %v869_v23, %s926_s18  ;;  %v131_v41 = vmul.f32 %v122_v57, %v1035_v55 }
  0xb4   :  { %v904_v39 = vpack.i.bf16 %v130_v30, %v129_v34 }
  0xb5   :  { %v909_v43 = vpack.i.bf16 %v132_v40, %v131_v41 }
  0xb7   :  { %880 = vrot.lane.b32.xlu0 %v879_v27, %s927_s19  ;;  %895 = vrot.lane.b32.xlu1 %v894_v33, %s929_s21 }
  0xbb   :  { %890 = vrot.lane.b32.xlu0 %v889_v38, %s928_s20  ;;  %905 = vrot.lane.b32.xlu1 %v904_v39, %s931_s22 }
  0xbf   :  { %900 = vrot.lane.b32.xlu0 %v899_v42, %s929_s21  ;;  %138 = vrot.lane.b32.xlu1 %v128_v56, %s931_s22 }
  0xc3   :  { %910 = vrot.lane.b32.xlu0 %v909_v43, %s931_s22 }
  0xef   :  { %v1156_v44 = vpop.permute.xlu1 %319 }
  0xf3   :  { %v1160_v46 = vpop.permute.xlu1 %835 }
  0xf4   :  { %v838_v15 = vunpack.i.h.bf16 %v1160_v46  ;;  %v837_v16 = vunpack.i.l.bf16 %v1160_v46 }
  0xf5   :  { %v1158_v45 = vpop.permute.xlu0 %840 }
  0xf6   :  { %v843_v30 = vunpack.i.h.bf16 %v1158_v45  ;;  %v331_v35 = vsel %vm329_vm14, %v837_v16, %v838_v15  ;;  %v330_v40 = vsel %vm329_vm14, %v1156_v44, %v837_v16 }
  0xf9   :  { %v623_v47 = vpop.permute.xlu0 %622  ;;  %v468_v48 = vpop.permute.xlu1 %467 }
 0x101   :  { %v542_v49 = vpop.permute.xlu0 %541 }
 0x109   :  { %v394_v2 = vpop.permute.xlu0 %393 }
 0x111   :  { %v1162_v62 = vpop.permute.xlu1 %212 }
 0x115   :  { %v851_v50 = vpop.permute.xlu1 %850 }
 0x116   :  { %v853_v55 = vunpack.i.h.bf16 %v851_v50  ;;  %v852_v51 = vunpack.i.l.bf16 %v851_v50 }
 0x118   :  { %v628_v52 = vsel %vm624_vm9, %v853_v55, %v623_v47  ;;  %v627_v53 = vsel %vm624_vm9, %v852_v51, %v853_v55 }
 0x119   :  { %v856_v54 = vpop.permute.xlu1 %855  ;;  %v1166_v61 = vpop.permute.xlu0 %286  ;;  %v693_v63 = vpack.c.bf16 %v628_v52, %v628_v52  ;;  %v692_v1 = vpack.c.bf16 %v627_v53, %v627_v53 }
 0x11a   :  { %v858_v4 = vunpack.i.h.bf16 %v856_v54  ;;  %v857_v5 = vunpack.i.l.bf16 %v856_v54 }
 0x11b   :  { %814 = vmatprep.subr.msk.bf16.mxu1 %vm698_vm10, %v693_v63  ;;  %v706_v3 = vsel %vm698_vm10, %v692_v1, 0 }
 0x11c   :  { %759 = vmatpush1.bf16.msra.mxu1 %v706_v3  ;;  %v479_v24 = vsel %vm477_vm12, %v857_v5, %v858_v4  ;;  %v478_v34 = vsel %vm477_vm12, %v468_v48, %v857_v5  ;;  %v842_v48 = vunpack.i.l.bf16 %v1158_v45 }
 0x11d   :  { %v866_v6 = vpop.permute.xlu1 %865  ;;  %v846_v7 = vpop.permute.xlu0 %845 }
 0x11e   :  { %v868_v8 = vunpack.i.h.bf16 %v866_v6  ;;  %v867_v9 = vunpack.i.l.bf16 %v866_v6  ;;  %v848_v10 = vunpack.i.h.bf16 %v846_v7  ;;  %v847_v11 = vunpack.i.l.bf16 %v846_v7 }
 0x11f   :  { %v333_v1 = vsel %vm329_vm14, %v842_v48, %v843_v30 }
 0x120   :  { %v626_v12 = vsel %vm624_vm9, %v848_v10, %v852_v51  ;;  %v625_v13 = vsel %vm624_vm9, %v847_v11, %v848_v10  ;;  %v553_v14 = vsel %vm551_vm11, %v867_v9, %v868_v8  ;;  %v552_v20 = vsel %vm551_vm11, %v542_v49, %v867_v9 }
 0x121   :  { %v1175_v17 = vpop.permute.xlu1 %875  ;;  %v861_v18 = vpop.permute.xlu0 %860  ;;  %v691_v19 = vpack.c.bf16 %v626_v12, %v626_v12  ;;  %v690_v21 = vpack.c.bf16 %v625_v13, %v625_v13  ;;  %v687_v26 = vpack.c.bf16 %v553_v14, %v479_v24  ;;  %v686_v31 = vpack.c.bf16 %v552_v20, %v478_v34 }
 0x122   :  { %v878_v22 = vunpack.i.h.bf16 %v1175_v17  ;;  %v877_v23 = vunpack.i.l.bf16 %v1175_v17  ;;  %v863_v27 = vunpack.i.h.bf16 %v861_v18  ;;  %v862_v28 = vunpack.i.l.bf16 %v861_v18  ;;  %v25_v18 = vld [vmem:[%s1242_s2] sm:$0xff] }
 0x123   :  { %812 = vmatprep.subr.msk.bf16.mxu0 %vm698_vm10, %v691_v19  ;;  %v700_v25 = vsel %vm698_vm10, %v690_v21, 0 }
 0x124   :  { %718 = vmatpush1.bf16.msra.mxu0 %v700_v25  ;;  %v405_v29 = vsel %vm403_vm13, %v877_v23, %v878_v22  ;;  %v404_v38 = vsel %vm403_vm13, %v394_v2, %v877_v23  ;;  %v481_v41 = vsel %vm477_vm12, %v862_v28, %v863_v27  ;;  %v480_v43 = vsel %vm477_vm12, %v858_v4, %v862_v28 }
 0x125   :  { %v1185_v33 = vpop.permute.xlu1 %885  ;;  %v871_v32 = vpop.permute.xlu0 %870  ;;  %719 = vmatprep.subr.bf16.mxu0 %v687_v26  ;;  %v683_v56 = vpack.c.bf16 %v405_v29, %v331_v35  ;;  %v682_v55 = vpack.c.bf16 %v404_v38, %v330_v40  ;;  %v637_v25 = vpack.c.bf16 %v25_v18, %v25_v18 }
 0x126   :  { %v873_v36 = vunpack.i.h.bf16 %v871_v32  ;;  %v872_v37 = vunpack.i.l.bf16 %v871_v32  ;;  %v888_v39 = vunpack.i.h.bf16 %v1185_v33  ;;  %v887_v57 = vunpack.i.l.bf16 %v1185_v33 }
 0x128   :  { %720 = vmatpush1.bf16.msra.mxu0 %v686_v31  ;;  %v555_v42 = vsel %vm551_vm11, %v872_v37, %v873_v36  ;;  %v554_v47 = vsel %vm551_vm11, %v868_v8, %v872_v37  ;;  %v224_v63 = vsel %vm222_vm15, %v887_v57, %v888_v39  ;;  %v223_v3 = vsel %vm222_vm15, %v1162_v62, %v887_v57 }
 0x129   :  { %v896_v49 = vpop.permute.xlu1 %895  ;;  %v881_v2 = vpop.permute.xlu0 %880  ;;  %721 = vmatprep.subr.bf16.mxu0 %v683_v56  ;;  %v689_v50 = vpack.c.bf16 %v555_v42, %v481_v41  ;;  %v688_v51 = vpack.c.bf16 %v554_v47, %v480_v43  ;;  %v332_v62 = vsel %vm329_vm14, %v838_v15, %v842_v48 }
 0x12a   :  { %v898_v52 = vunpack.i.h.bf16 %v896_v49  ;;  %v897_v53 = vunpack.i.l.bf16 %v896_v49  ;;  %v883_v44 = vunpack.i.h.bf16 %v881_v2  ;;  %v882_v54 = vunpack.i.l.bf16 %v881_v2 }
 0x12b   :  { %760 = vmatprep.subr.bf16.mxu1 %v689_v50 }
 0x12c   :  { %722 = vmatpush1.bf16.msra.mxu0 %v682_v55  ;;  %761 = vmatpush1.bf16.msra.mxu1 %v688_v51  ;;  %v298_v45 = vsel %vm296_vm0, %v897_v53, %v898_v52  ;;  %v407_v4 = vsel %vm403_vm13, %v882_v54, %v883_v44  ;;  %v297_v5 = vsel %vm296_vm0, %v1166_v61, %v897_v53 }
 0x12d   :  { %v906_v6 = vpop.permute.xlu1 %905  ;;  %v891_v7 = vpop.permute.xlu0 %890  ;;  %v679_v8 = vpack.c.bf16 %v298_v45, %v224_v63  ;;  %v685_v9 = vpack.c.bf16 %v407_v4, %v333_v1  ;;  %v678_v10 = vpack.c.bf16 %v297_v5, %v223_v3  ;;  %v406_v11 = vsel %vm403_vm13, %v878_v22, %v882_v54 }
 0x12e   :  { %v908_v12 = vunpack.i.h.bf16 %v906_v6  ;;  %v907_v13 = vunpack.i.l.bf16 %v906_v6  ;;  %v684_v14 = vpack.c.bf16 %v406_v11, %v332_v62  ;;  %v893_v16 = vunpack.i.h.bf16 %v891_v7 }
 0x12f   :  { %723 = vmatprep.subr.bf16.mxu0 %v679_v8  ;;  %762 = vmatprep.subr.bf16.mxu1 %v685_v9  ;;  %v892_v17 = vunpack.i.l.bf16 %v891_v7 }
 0x130   :  { %724 = vmatpush1.bf16.msra.mxu0 %v678_v10  ;;  %v150_v61 = vsel %vm148_vm1, %v907_v13, %v908_v12  ;;  %763 = vmatpush1.bf16.msra.mxu1 %v684_v14 }
 0x131   :  { %v139_v19 = vpop.permute.xlu1 %138  ;;  %v901_v21 = vpop.permute.xlu0 %900  ;;  %v675_v22 = vpack.c.bf16 %v150_v61, %v1045_v58  ;;  %v226_v26 = vsel %vm222_vm15, %v892_v17, %v893_v16  ;;  %v225_v27 = vsel %vm222_vm15, %v888_v39, %v892_v17 }
 0x132   :  { %v149_v46 = vsel %vm148_vm1, %v139_v19, %v907_v13  ;;  %v903_v15 = vunpack.i.h.bf16 %v901_v21  ;;  %v902_v23 = vunpack.i.l.bf16 %v901_v21 }
 0x133   :  { %v674_v24 = vpack.c.bf16 %v149_v46, %v1066_v0  ;;  %725 = vmatprep.subr.bf16.mxu0 %v675_v22 }
 0x134   :  { %v300_v20 = vsel %vm296_vm0, %v902_v23, %v903_v15  ;;  %v299_v28 = vsel %vm296_vm0, %v898_v52, %v902_v23 }
 0x135   :  { %v911_v29 = vpop.permute.xlu0 %910  ;;  %726 = vmatpush1.bf16.msra.mxu0 %v674_v24  ;;  %v681_v30 = vpack.c.bf16 %v300_v20, %v226_v26  ;;  %v680_v58 = vpack.c.bf16 %v299_v28, %v225_v27 }
 0x136   :  { %v913_v33 = vunpack.i.h.bf16 %v911_v29  ;;  %v912_v32 = vunpack.i.l.bf16 %v911_v29 }
 0x137   :  { %764 = vmatprep.subr.bf16.mxu1 %v681_v30 }
 0x138   :  { %765 = vmatpush1.bf16.msra.mxu1 %v680_v58  ;;  %813 = vmatmul.mubr.msk.bf16.vlgmr.msra.gmra.mxu0 %vm694_vm2, %v637_v25  ;;  %v152_v0 = vsel %vm148_vm1, %v912_v32, %v913_v33  ;;  %v151_v34 = vsel %vm148_vm1, %v908_v12, %v912_v32 }
 0x139   :  { %v677_v35 = vpack.c.bf16 %v152_v0, %v1051_v59  ;;  %v676_v36 = vpack.c.bf16 %v151_v34, %v1057_v60 }
 0x13b   :  { %766 = vmatprep.subr.bf16.mxu1 %v677_v35 }
 0x13c   :  { %767 = vmatpush1.bf16.msra.mxu1 %v676_v36 }
 0x13f   :  { %815 = vmatmul.mubr.msk.bf16.vlgmr.msra.gmra.mxu1 %vm694_vm2, %v637_v25 }
 0x1f8   :  { %v745_v37 = vpop.f32.mrf.mxu0 }
 0x1f9   :  { %v793_v31 = vmax.f32 %v745_v37, 0.0 }
 0x1fa   :  { %v747_v38 = vpop.f32.mrf.mxu0 }
 0x1fb   :  { %797 = vst [vmem:[%s1243_s3] sm:$0xff] %v793_v31  ;;  %v794_v39 = vmax.f32 %v747_v38, 0.0 }
 0x1fc   :  { %v749_v57 = vpop.f32.mrf.mxu0 }
 0x1fd   :  { %798 = vst [vmem:[%s1243_s3 + $0x8] sm:$0xff] %v794_v39 }
 0x1fe   :  { %v750_v56 = vpop.f32.mrf.mxu0 }
 0x1ff   :  { %v786_v59 = vpop.f32.mrf.mxu1 }
 0x200   :  { %v795_v40 = vmax.f32 %v786_v59, 0.0 }
 0x201   :  { %v788_v60 = vpop.f32.mrf.mxu1 }
 0x202   :  { %799 = vst [vmem:[%s1243_s3 + $0x10] sm:$0xff] %v795_v40  ;;  %v796_v41 = vmax.f32 %v788_v60, 0.0 }
 0x203   :  { %v790_v42 = vpop.f32.mrf.mxu1 }
 0x204   :  { %800 = vst [vmem:[%s1243_s3 + $0x18] sm:$0xff] %v796_v41 }
 0x205   :  { %v791_v43 = vpop.f32.mrf.mxu1 }

// kernel: unet2d_forward.34
= control target key start
LH: loop header
LB: loop body
LE: loop exit
PB: predicated region body
PF: predicated region fallthrough
CT: control target
= control target key end

     0   :  { %v98_v0 = vlaneseq  ;;  %v1813_v1 = vmov 0   ;;  %s1815_s12 = smov 32   ;;  %s1816_s15 = smov 33   ;;  %vm34_vm0 = vcmask 277504   ;;  %v1818_v29 = vmov 0.0   ;;  %s2616_s2 = inlined_call_operand.vmem [shape: f32[8,1], index: 2, kind: input, shape index: {}]   ;;  %s2617_s3 = inlined_call_operand.vmem [shape: f32[8,1], index: 3, kind: input, shape index: {}]   ;;  %s2618_s1 = inlined_call_operand.vmem [shape: f32[9,512], index: 1, kind: input, shape index: {}]   ;;  %s2619_s0 = inlined_call_operand.vmem [shape: f32[8,512], index: 0, kind: input, shape index: {}]   ;;  %s2620_s5 = inlined_call_operand.vmem [shape: f32[8,1], index: 5, kind: input, shape index: {}]   ;;  %s2621_s6 = inlined_call_operand.vmem [shape: f32[8,1], index: 6, kind: input, shape index: {}]   ;;  %s2622_s4 = inlined_call_operand.vmem [shape: f32[8,72], index: 4, kind: input, shape index: {}]   ;;  %s2623_s7 = inlined_call_operand.vmem [shape: f32[8,72], index: 7, kind: input, shape index: {}]   ;;  %s2624_s8 = inlined_call_operand.vmem [shape: f32[8,512], index: 8, kind: output, shape index: {}]  }
   0x1   :  { %1647 = vset.pattern.permute.xlu0 %v1813_v1  ;;  %v40_v2 = vld [vmem:[%s2616_s2] sm:$0xff]  ;;  %782 = vmatprep.mubr.bf16.mxu0 %v1813_v1  ;;  %s1814_s2 = smov 34   ;;  %s1817_s18 = smov 18   ;;  %30 = vst [vmem:[#allocation2] sm:$0xff] %v1818_v29  ;;  %35 = vst.msk [vmem:[#allocation2 + $0x20] sm:$0xff] %vm34_vm0, %v1818_v29  ;;  %v38_v31 = vld [vmem:[%s2619_s0 + $0x10] sm:$0xff] }
   0x2   :  { %43 = vperm.xlu0 %1647, %v40_v2   ;;  %v99_v3 = vshrl.u32 %v98_v0, 7  ;;  %823 = vmatprep.mubr.bf16.mxu1 %v1813_v1  ;;  %v50_v4 = vld [vmem:[%s2617_s3] sm:$0xff]  ;;  %v37_v33 = vld [vmem:[%s2619_s0 + $0x8] sm:$0xff]  ;;  %v39_v41 = vld [vmem:[%s2619_s0 + $0x18] sm:$0xff]  ;;  %s1819_s29 = smov 17   ;;  %s1820_s30 = smov 2  }
   0x3   :  { %v1613_v5 = vld [vmem:[%s2618_s1 + $0x20] ss:$8 sm:$0xf]  ;;  %1728 = vset.pattern.permute.xlu1 %v1813_v1  ;;  %v1611_v14 = vld [vmem:[%s2618_s1 + $0x6] ss:$8 sm:$0xf] }
   0x4   :  { %v1889_v6 = vsub.s32 0, %v99_v3  ;;  %v1891_v7 = vsub.s32 1, %v99_v3  ;;  %v1893_v8 = vsub.s32 3, %v99_v3  ;;  %v1897_v11 = vsub.s32 2, %v99_v3  ;;  %v36_v32 = vld [vmem:[%s2619_s0] sm:$0xff]  ;;  %s1821_s3 = smov 16  }
   0x5   :  { %v1612_v19 = vld [vmem:[%s2618_s1 + $0x7] ss:$8 sm:$0xf]  ;;  %v1610_v24 = vld [vmem:[%s2618_s1 + $0x5] ss:$8 sm:$0xf] }
   0x6   :  { %53 = vperm.xlu0 %1647, %v50_v4   ;;  %v614_v9 = vrot.slane %v1613_v5, %v1889_v6  ;;  %v618_v10 = vrot.slane %v1613_v5, %v1891_v7  ;;  %v626_v12 = vrot.slane %v1613_v5, %v1893_v8  ;;  %v622_v13 = vrot.slane %v1613_v5, %v1897_v11  ;;  %v1608_v40 = vld [vmem:[%s2618_s1 + $0x2] ss:$8 sm:$0xf]  ;;  %v1609_v50 = vld [vmem:[%s2618_s1 + $0x3] ss:$8 sm:$0xf] }
   0x7   :  { %v470_v15 = vrot.slane %v1611_v14, %v1891_v7  ;;  %v466_v16 = vrot.slane %v1611_v14, %v1889_v6  ;;  %v478_v17 = vrot.slane %v1611_v14, %v1893_v8  ;;  %v474_v18 = vrot.slane %v1611_v14, %v1897_v11  ;;  %v1607_v56 = vld [vmem:[%s2618_s1 + $0x1] ss:$8 sm:$0xf]  ;;  %s1822_s14 = smov 1   ;;  %s1823_s16 = smov 111  }
   0x8   :  { %629 = vrot.lane.b32.xlu1 %v618_v10, %s1814_s2  ;;  %v544_v20 = vrot.slane %v1612_v19, %v1891_v7  ;;  %v540_v21 = vrot.slane %v1612_v19, %v1889_v6  ;;  %v552_v22 = vrot.slane %v1612_v19, %v1893_v8  ;;  %v548_v23 = vrot.slane %v1612_v19, %v1897_v11  ;;  %s1824_s17 = smov 96   ;;  %s1825_s19 = smov 126  }
   0x9   :  { %v396_v25 = vrot.slane %v1610_v24, %v1891_v7  ;;  %v392_v26 = vrot.slane %v1610_v24, %v1889_v6  ;;  %v404_v27 = vrot.slane %v1610_v24, %v1893_v8  ;;  %v400_v28 = vrot.slane %v1610_v24, %v1897_v11  ;;  %s1826_s20 = smov 94   ;;  %s1827_s21 = smov 95  }
   0xa   :  { %627 = vrot.lane.b32.xlu0 %v614_v9, %s1814_s2  ;;  %v211_v45 = vrot.slane %v1608_v40, %v1889_v6  ;;  %v219_v49 = vrot.slane %v1608_v40, %v1897_v11  ;;  %v285_v52 = vrot.slane %v1609_v50, %v1889_v6  ;;  %v215_v53 = vrot.slane %v1608_v40, %v1891_v7  ;;  %s1828_s22 = smov 110   ;;  %s1829_s23 = smov 112  }
   0xb   :  { %v293_v54 = vrot.slane %v1609_v50, %v1897_v11  ;;  %v223_v55 = vrot.slane %v1608_v40, %v1893_v8  ;;  %v137_v57 = vrot.slane %v1607_v56, %v1889_v6  ;;  %v289_v58 = vrot.slane %v1609_v50, %v1891_v7  ;;  %s1830_s24 = smov 127  }
   0xc   :  { %633 = vrot.lane.b32.xlu1 %v626_v12, %s1814_s2  ;;  %v297_v59 = vrot.slane %v1609_v50, %v1893_v8  ;;  %v145_v60 = vrot.slane %v1607_v56, %v1897_v11  ;;  %v141_v61 = vrot.slane %v1607_v56, %v1891_v7  ;;  %v149_v62 = vrot.slane %v1607_v56, %v1893_v8 }
   0xd   :  { %vm86_vm1 = vcmask 1047688   ;;  %vm77_vm2 = vcmask 138240   ;;  %vm487_vm3 = vcmask 261120   ;;  %vm561_vm4 = vcmask 269312  }
   0xe   :  { %631 = vrot.lane.b32.xlu0 %v622_v13, %s1814_s2  ;;  %vm413_vm5 = vcmask 146432   ;;  %vm232_vm6 = vcmask 15360   ;;  %vm306_vm7 = vcmask 130048   ;;  %vm2625_vm8 = vcmask 7168  }
   0xf   :  { %vm663_vm9 = vcmask 769024   ;;  %vm737_vm10 = vcmask 1043456   ;;  %vm590_vm11 = vcmask 777216   ;;  %vm2626_vm12 = vcmask 785408  }
  0x10   :  { %481 = vrot.lane.b32.xlu1 %v470_v15, %s1815_s12  ;;  %vm368_vm13 = vcmask 908288   ;;  %vm2627_vm14 = vcmask 900096   ;;  %vm261_vm15 = vcmask 1031168  }
  0x12   :  { %479 = vrot.lane.b32.xlu0 %v466_v16, %s1815_s12 }
  0x14   :  { %485 = vrot.lane.b32.xlu1 %v478_v17, %s1815_s12 }
  0x16   :  { %483 = vrot.lane.b32.xlu0 %v474_v18, %s1815_s12 }
  0x18   :  { %555 = vrot.lane.b32.xlu1 %v544_v20, %s1816_s15 }
  0x1a   :  { %553 = vrot.lane.b32.xlu0 %v540_v21, %s1816_s15 }
  0x1c   :  { %559 = vrot.lane.b32.xlu1 %v552_v22, %s1816_s15 }
  0x1e   :  { %557 = vrot.lane.b32.xlu0 %v548_v23, %s1816_s15 }
  0x20   :  { %407 = vrot.lane.b32.xlu1 %v396_v25, %s1817_s18 }
  0x22   :  { %405 = vrot.lane.b32.xlu0 %v392_v26, %s1817_s18 }
  0x24   :  { %411 = vrot.lane.b32.xlu1 %v404_v27, %s1817_s18 }
  0x26   :  { %409 = vrot.lane.b32.xlu0 %v400_v28, %s1817_s18 }
  0x7a   :  { %v1988_v63 = vpop.permute.xlu1 %629 }
  0x7d   :  { %v44_v30 = vpop.permute.xlu0 %43 }
  0x7e   :  { %v48_v34 = vmul.f32 %v44_v30, %v38_v31  ;;  %v46_v35 = vmul.f32 %v44_v30, %v36_v32  ;;  %v47_v39 = vmul.f32 %v44_v30, %v37_v33  ;;  %v49_v46 = vmul.f32 %v44_v30, %v39_v41  ;;  %v634_v2 = vpop.permute.xlu1 %633 }
  0x81   :  { %v54_v36 = vpop.permute.xlu0 %53 }
  0x82   :  { %v58_v37 = vadd.f32 %v54_v36, %v48_v34  ;;  %v56_v38 = vadd.f32 %v54_v36, %v46_v35  ;;  %v57_v44 = vadd.f32 %v54_v36, %v47_v39  ;;  %v59_v48 = vadd.f32 %v54_v36, %v49_v46  ;;  %v482_v4 = vpop.permute.xlu1 %481 }
  0x84   :  { %v62_v42 = vmax.f32 %v58_v37, 0.0  ;;  %v60_v43 = vmax.f32 %v56_v38, 0.0  ;;  %v61_v47 = vmax.f32 %v57_v44, 0.0  ;;  %v63_v51 = vmax.f32 %v59_v48, 0.0 }
  0x85   :  { %v1990_v0 = vpop.permute.xlu0 %627 }
  0x86   :  { %73 = vrot.lane.b32.xlu0 %v62_v42, %s1819_s29  ;;  %69 = vrot.lane.b32.xlu1 %v60_v43, %s1819_s29  ;;  %v1992_v9 = vpop.permute.xlu1 %485 }
  0x89   :  { %v632_v3 = vpop.permute.xlu0 %631 }
  0x8a   :  { %224 = vrot.lane.b32.xlu0 %v211_v45, %s1820_s30  ;;  %71 = vrot.lane.b32.xlu1 %v61_v47, %s1819_s29  ;;  %v556_v12 = vpop.permute.xlu1 %555  ;;  %v637_v35 = vsel %vm34_vm0, %v632_v3, %v634_v2  ;;  %v636_v39 = vsel %vm34_vm0, %v1988_v63, %v632_v3 }
  0x8d   :  { %v480_v5 = vpop.permute.xlu0 %479 }
  0x8e   :  { %228 = vrot.lane.b32.xlu0 %v219_v49, %s1820_s30  ;;  %75 = vrot.lane.b32.xlu1 %v63_v51, %s1819_s29  ;;  %v1996_v14 = vpop.permute.xlu1 %559  ;;  %v488_v43 = vsel %vm487_vm3, %v480_v5, %v482_v4 }
  0x91   :  { %v1994_v10 = vpop.permute.xlu0 %483 }
  0x92   :  { %298 = vrot.lane.b32.xlu0 %v285_v52, %s1821_s3  ;;  %226 = vrot.lane.b32.xlu1 %v215_v53, %s1820_s30  ;;  %v2000_v16 = vpop.permute.xlu1 %407  ;;  %v489_v44 = vsel %vm487_vm3, %v482_v4, %v1994_v10 }
  0x95   :  { %v554_v13 = vpop.permute.xlu0 %553 }
  0x96   :  { %302 = vrot.lane.b32.xlu0 %v293_v54, %s1821_s3  ;;  %230 = vrot.lane.b32.xlu1 %v223_v55, %s1820_s30  ;;  %v2004_v18 = vpop.permute.xlu1 %411  ;;  %v562_v50 = vsel %vm561_vm4, %v554_v13, %v556_v12 }
  0x99   :  { %v1998_v15 = vpop.permute.xlu0 %557 }
  0x9a   :  { %150 = vrot.lane.b32.xlu0 %v137_v57, %s1822_s14  ;;  %300 = vrot.lane.b32.xlu1 %v289_v58, %s1821_s3  ;;  %v563_v51 = vsel %vm561_vm4, %v556_v12, %v1998_v15 }
  0x9d   :  { %v2002_v17 = vpop.permute.xlu0 %405 }
  0x9e   :  { %304 = vrot.lane.b32.xlu1 %v297_v59, %s1821_s3  ;;  %154 = vrot.lane.b32.xlu0 %v145_v60, %s1822_s14  ;;  %v414_v57 = vsel %vm413_vm5, %v2002_v17, %v2000_v16 }
  0xa1   :  { %v2006_v19 = vpop.permute.xlu0 %409 }
  0xa2   :  { %152 = vrot.lane.b32.xlu1 %v141_v61, %s1822_s14  ;;  %v415_v58 = vsel %vm413_vm5, %v2000_v16, %v2006_v19 }
  0xa6   :  { %156 = vrot.lane.b32.xlu1 %v149_v62, %s1822_s14 }
  0xf8   :  { %v70_v20 = vpop.permute.xlu1 %69  ;;  %v74_v21 = vpop.permute.xlu0 %73 }
  0xf9   :  { %87 = vst.msk [vmem:[#allocation2] sm:$0xff] %vm86_vm1, %v70_v20 }
  0xfc   :  { %v72_v22 = vpop.permute.xlu1 %71  ;;  %v225_v27 = vpop.permute.xlu0 %224 }
  0xfd   :  { %v2012_v24 = vsel %vm77_vm2, %v70_v20, %v72_v22  ;;  %v2015_v25 = vsel %vm77_vm2, %v72_v22, %v74_v21 }
  0xfe   :  { %v1648_v28 = vpack.i.bf16 %v2015_v25, %v2012_v24  ;;  %v645_v42 = vmul.f32 %v636_v39, %v2015_v25  ;;  %v497_v46 = vmul.f32 %v488_v43, %v2012_v24  ;;  %v498_v47 = vmul.f32 %v489_v44, %v2015_v25 }
  0xff   :  { %v571_v54 = vmul.f32 %v562_v50, %v2012_v24  ;;  %v572_v55 = vmul.f32 %v563_v51, %v2015_v25  ;;  %v423_v61 = vmul.f32 %v414_v57, %v2012_v24  ;;  %v424_v62 = vmul.f32 %v415_v58, %v2015_v25 }
 0x100   :  { %v2009_v23 = vld [vmem:[#allocation2] sm:$0xff]  ;;  %v76_v26 = vpop.permute.xlu1 %75  ;;  %v2023_v30 = vpop.permute.xlu0 %228  ;;  %v1668_v53 = vpack.i.bf16 %v498_v47, %v497_v46  ;;  %v416_v47 = vsel %vm413_vm5, %v2006_v19, %v2004_v18 }
 0x101   :  { %91 = vst.msk [vmem:[#allocation2 + $0x20] sm:$0xff] %vm77_vm2, %v76_v26  ;;  %358 = vrot.lane.b32.xlu1 %v2009_v23, %s1823_s16  ;;  %v496_v31 = vmul.f32 %v480_v5, %v2009_v23  ;;  %v2027_v32 = vsel %vm77_vm2, %v74_v21, %v76_v26  ;;  %v241_v36 = vmul.f32 %v225_v27, %v2009_v23 }
 0x102   :  { %v646_v38 = vmul.f32 %v637_v35, %v2027_v32  ;;  %v570_v49 = vmul.f32 %v554_v13, %v2009_v23  ;;  %v422_v56 = vmul.f32 %v2002_v17, %v2009_v23  ;;  %v1678_v60 = vpack.i.bf16 %v572_v55, %v571_v54 }
 0x103   :  { %v643_v12 = vmul.f32 %v1990_v0, %v2009_v23  ;;  %v635_v13 = vsel %vm34_vm0, %v1990_v0, %v1988_v63  ;;  %v1688_v20 = vpack.i.bf16 %v424_v62, %v423_v61  ;;  %v832_v61 = vld [vmem:[%s2620_s5] sm:$0xff] }
 0x104   :  { %v227_v29 = vpop.permute.xlu1 %226  ;;  %v299_v40 = vpop.permute.xlu0 %298  ;;  %v1663_v45 = vpack.i.bf16 %v646_v38, %v645_v42  ;;  %v644_v21 = vmul.f32 %v635_v13, %v2012_v24 }
 0x105   :  { %1649 = vrot.lane.b32.xlu1 %v1648_v28, %s1823_s16  ;;  %v234_v3 = vsel %vm232_vm6, %v227_v29, %v2023_v30  ;;  %v315_v4 = vmul.f32 %v299_v40, %v2009_v23 }
 0x106   :  { %v243_v17 = vmul.f32 %v234_v3, %v2015_v25  ;;  %v1658_v63 = vpack.i.bf16 %v644_v21, %v643_v12 }
 0x108   :  { %v2029_v33 = vld [vmem:[#allocation2 + $0x20] sm:$0xff]  ;;  %v2036_v37 = vpop.permute.xlu1 %230  ;;  %v2056_v52 = vpop.permute.xlu0 %302 }
 0x109   :  { %506 = vrot.lane.b32.xlu1 %v496_v31, %s1824_s17  ;;  %v1653_v34 = vpack.i.bf16 %v2029_v33, %v2027_v32  ;;  %v647_v41 = vmul.f32 %v634_v2, %v2029_v33  ;;  %v233_v2 = vsel %vm232_vm6, %v225_v27, %v227_v29  ;;  %v500_v0 = vmul.f32 %v1992_v9, %v2029_v33 }
 0x10a   :  { %v242_v16 = vmul.f32 %v233_v2, %v2012_v24  ;;  %v490_v29 = vsel %vm487_vm3, %v1994_v10, %v1992_v9  ;;  %v564_v9 = vsel %vm561_vm4, %v1998_v15, %v1996_v14  ;;  %v426_v46 = vmul.f32 %v2004_v18, %v2029_v33 }
 0x10b   :  { %1654 = vrot.lane.b32.xlu0 %v1653_v34, %s1823_s16  ;;  %v499_v35 = vmul.f32 %v490_v29, %v2027_v32  ;;  %v573_v43 = vmul.f32 %v564_v9, %v2027_v32  ;;  %v425_v15 = vmul.f32 %v416_v47, %v2027_v32  ;;  %v245_v50 = vmul.f32 %v2036_v37, %v2029_v33 }
 0x10c   :  { %v301_v48 = vpop.permute.xlu1 %300  ;;  %v151_v5 = vpop.permute.xlu0 %150 }
 0x10d   :  { %251 = vrot.lane.b32.xlu1 %v241_v36, %s1825_s19  ;;  %v307_v22 = vsel %vm306_vm7, %v299_v40, %v301_v48  ;;  %v308_v26 = vsel %vm306_vm7, %v301_v48, %v2056_v52  ;;  %v1698_v36 = vpack.i.bf16 %v243_v17, %v242_v16  ;;  %v1673_v40 = vpack.i.bf16 %v500_v0, %v499_v35  ;;  %v1623_v17 = vld [vmem:[%s2618_s1 + $0x7] ss:$8 sm:$0xf] }
 0x10e   :  { %v316_v31 = vmul.f32 %v307_v22, %v2012_v24  ;;  %v317_v34 = vmul.f32 %v308_v26, %v2015_v25  ;;  %v1693_v51 = vpack.i.bf16 %v426_v46, %v425_v15  ;;  %v167_v19 = vmul.f32 %v2009_v23, %v151_v5 }
 0x10f   :  { %661 = vrot.lane.b32.xlu0 %v647_v41, %s1826_s20  ;;  %v574_v41 = vmul.f32 %v1996_v14, %v2029_v33  ;;  %v235_v14 = vsel %vm232_vm6, %v2023_v30, %v2036_v37  ;;  %v1313_v21 = vrot.slane %v1623_v17, %v1889_v6  ;;  %v1325_v22 = vrot.slane %v1623_v17, %v1893_v8 }
 0x110   :  { %v2070_v59 = vpop.permute.xlu1 %304  ;;  %v155_v27 = vpop.permute.xlu0 %154  ;;  %v1708_v44 = vpack.i.bf16 %v317_v34, %v316_v31  ;;  %v1321_v26 = vrot.slane %v1623_v17, %v1897_v11 }
 0x111   :  { %1664 = vrot.lane.b32.xlu1 %v1663_v45, %s1826_s20  ;;  %v1683_v45 = vpack.i.bf16 %v574_v41, %v573_v43  ;;  %v309_v18 = vsel %vm306_vm7, %v2056_v52, %v2070_v59  ;;  %v319_v55 = vmul.f32 %v2070_v59, %v2029_v33  ;;  %v842_v59 = vld [vmem:[%s2621_s6] sm:$0xff] }
 0x112   :  { %v318_v54 = vmul.f32 %v309_v18, %v2027_v32 }
 0x113   :  { %580 = vrot.lane.b32.xlu0 %v570_v49, %s1827_s21  ;;  %v244_v49 = vmul.f32 %v235_v14, %v2027_v32  ;;  %v2212_v14 = vld [vmem:[%s2618_s1] ss:$8 sm:$0xf] }
 0x114   :  { %v153_v28 = vpop.permute.xlu1 %152 }
 0x115   :  { %1669 = vrot.lane.b32.xlu1 %v1668_v53, %s1824_s17  ;;  %v159_v38 = vsel %vm2625_vm8, %v151_v5, %v153_v28  ;;  %v160_v39 = vsel %vm2625_vm8, %v153_v28, %v155_v27  ;;  %v1703_v53 = vpack.i.bf16 %v245_v50, %v244_v49 }
 0x116   :  { %v168_v10 = vmul.f32 %v159_v38, %v2012_v24  ;;  %v169_v42 = vmul.f32 %v160_v39, %v2015_v25 }
 0x117   :  { %432 = vrot.lane.b32.xlu0 %v422_v56, %s1828_s22  ;;  %v1713_v56 = vpack.i.bf16 %v319_v55, %v318_v54 }
 0x118   :  { %v1718_v48 = vpack.i.bf16 %v169_v42, %v168_v10  ;;  %v157_v30 = vpop.permute.xlu1 %156 }
 0x119   :  { %1679 = vrot.lane.b32.xlu1 %v1678_v60, %s1827_s21  ;;  %v161_v37 = vsel %vm2625_vm8, %v155_v27, %v157_v30  ;;  %v171_v57 = vmul.f32 %v2029_v33, %v157_v30  ;;  %v1624_v60 = vld [vmem:[%s2618_s1 + $0x20] ss:$8 sm:$0xf]  ;;  %v2185_v27 = vld [vmem:[%s2618_s1 + $0x5] ss:$8 sm:$0xf] }
 0x11a   :  { %v170_v52 = vmul.f32 %v161_v37, %v2027_v32  ;;  %v1388_v33 = vrot.slane %v1624_v60, %v1891_v7  ;;  %v1384_v62 = vrot.slane %v1624_v60, %v1889_v6  ;;  %v1396_v2 = vrot.slane %v1624_v60, %v1893_v8 }
 0x11b   :  { %325 = vrot.lane.b32.xlu0 %v315_v4, %s1829_s23  ;;  %v1392_v3 = vrot.slane %v1624_v60, %v1897_v11  ;;  %v1622_v4 = vld [vmem:[%s2618_s1 + $0x6] ss:$8 sm:$0xf]  ;;  %v1171_v28 = vrot.slane %v2185_v27, %v1889_v6  ;;  %vm335_vm8 = vcmask 916480  }
 0x11c   :  { %v1723_v58 = vpack.i.bf16 %v171_v57, %v170_v52  ;;  %v1246_v5 = vrot.slane %v1622_v4, %v1891_v7  ;;  %v1242_v12 = vrot.slane %v1622_v4, %v1889_v6  ;;  %v1254_v13 = vrot.slane %v1622_v4, %v1893_v8 }
 0x11d   :  { %1689 = vrot.lane.b32.xlu1 %v1688_v20, %s1828_s22  ;;  %v1250_v16 = vrot.slane %v1622_v4, %v1897_v11  ;;  %v1317_v20 = vrot.slane %v1623_v17, %v1891_v7  ;;  %v101_v52 = vrot.slane %v2212_v14, %v1889_v6 }
 0x11f   :  { %1659 = vrot.lane.b32.xlu0 %v1658_v63, %s1826_s20 }
 0x121   :  { %1699 = vrot.lane.b32.xlu1 %v1698_v36, %s1825_s19 }
 0x123   :  { %1674 = vrot.lane.b32.xlu0 %v1673_v40, %s1824_s17 }
 0x125   :  { %1709 = vrot.lane.b32.xlu1 %v1708_v44, %s1829_s23 }
 0x127   :  { %1684 = vrot.lane.b32.xlu0 %v1683_v45, %s1827_s21 }
 0x129   :  { %1719 = vrot.lane.b32.xlu1 %v1718_v48, %s1830_s24 }
 0x12b   :  { %1694 = vrot.lane.b32.xlu0 %v1693_v51, %s1828_s22 }
 0x12d   :  { %177 = vrot.lane.b32.xlu1 %v167_v19, %s1830_s24  ;;  %v105_v19 = vrot.slane %v2212_v14, %v1891_v7 }
 0x12f   :  { %1704 = vrot.lane.b32.xlu0 %v1703_v53, %s1825_s19 }
 0x131   :  { %845 = vperm.xlu1 %1728, %v842_v59  }
 0x133   :  { %1714 = vrot.lane.b32.xlu0 %v1713_v56, %s1829_s23 }
 0x135   :  { %1399 = vrot.lane.b32.xlu1 %v1388_v33, %s1814_s2 }
 0x137   :  { %1724 = vrot.lane.b32.xlu0 %v1723_v58, %s1830_s24 }
 0x139   :  { %1403 = vrot.lane.b32.xlu1 %v1396_v2, %s1814_s2 }
 0x13b   :  { %835 = vperm.xlu0 %1647, %v832_v61  }
 0x13d   :  { %1257 = vrot.lane.b32.xlu1 %v1246_v5, %s1815_s12 }
 0x13f   :  { %1397 = vrot.lane.b32.xlu0 %v1384_v62, %s1814_s2 }
 0x141   :  { %1261 = vrot.lane.b32.xlu1 %v1254_v13, %s1815_s12 }
 0x143   :  { %1401 = vrot.lane.b32.xlu0 %v1392_v3, %s1814_s2 }
 0x145   :  { %1328 = vrot.lane.b32.xlu1 %v1317_v20, %s1816_s15 }
 0x147   :  { %1255 = vrot.lane.b32.xlu0 %v1242_v12, %s1815_s12 }
 0x149   :  { %1332 = vrot.lane.b32.xlu1 %v1325_v22, %s1816_s15 }
 0x14b   :  { %1259 = vrot.lane.b32.xlu0 %v1250_v16, %s1815_s12 }
 0x14f   :  { %1326 = vrot.lane.b32.xlu0 %v1313_v21, %s1816_s15 }
 0x153   :  { %1330 = vrot.lane.b32.xlu0 %v1321_v26, %s1816_s15 }
 0x157   :  { %1184 = vrot.lane.b32.xlu0 %v1171_v28, %s1817_s18 }
 0x173   :  { %v2191_v63 = vpop.permute.xlu1 %358 }
 0x177   :  { %v2193_v0 = vpop.permute.xlu1 %1649 }
 0x178   :  { %v1652_v50 = vunpack.i.h.bf16 %v2193_v0  ;;  %v1651_v51 = vunpack.i.l.bf16 %v2193_v0 }
 0x17a   :  { %v370_v4 = vsel %vm368_vm13, %v1651_v51, %v1652_v50 }
 0x17b   :  { %v507_v29 = vpop.permute.xlu1 %506 }
 0x17d   :  { %v2195_v31 = vpop.permute.xlu0 %1654 }
 0x17e   :  { %v1657_v28 = vunpack.i.h.bf16 %v2195_v31 }
 0x17f   :  { %v2197_v34 = vpop.permute.xlu1 %251 }
 0x181   :  { %v662_v35 = vpop.permute.xlu0 %661 }
 0x183   :  { %v1665_v36 = vpop.permute.xlu1 %1664 }
 0x184   :  { %v1667_v38 = vunpack.i.h.bf16 %v1665_v36  ;;  %v1666_v39 = vunpack.i.l.bf16 %v1665_v36 }
 0x185   :  { %v581_v40 = vpop.permute.xlu0 %580 }
 0x186   :  { %v667_v41 = vsel %vm663_vm9, %v1667_v38, %v662_v35  ;;  %v666_v9 = vsel %vm663_vm9, %v1666_v39, %v1667_v38  ;;  %v1656_v35 = vunpack.i.l.bf16 %v2195_v31 }
 0x187   :  { %v2201_v10 = vpop.permute.xlu1 %1669  ;;  %v732_v42 = vpack.c.bf16 %v667_v41, %v667_v41  ;;  %v731_v43 = vpack.c.bf16 %v666_v9, %v666_v9 }
 0x188   :  { %v1672_v30 = vunpack.i.h.bf16 %v2201_v10  ;;  %v1671_v53 = vunpack.i.l.bf16 %v2201_v10 }
 0x189   :  { %v433_v44 = vpop.permute.xlu0 %432  ;;  %1616 = vmatprep.subr.msk.bf16.mxu1 %vm737_vm10, %v732_v42  ;;  %v745_v45 = vsel %vm737_vm10, %v731_v43, 0 }
 0x18a   :  { %798 = vmatpush1.bf16.msra.mxu1 %v745_v45  ;;  %v518_v2 = vsel %vm2626_vm12, %v1671_v53, %v1672_v30  ;;  %v517_v22 = vsel %vm2626_vm12, %v507_v29, %v1671_v53 }
 0x18b   :  { %v2205_v46 = vpop.permute.xlu1 %1679 }
 0x18c   :  { %v1682_v15 = vunpack.i.h.bf16 %v2205_v46  ;;  %v1681_v48 = vunpack.i.l.bf16 %v2205_v46 }
 0x18d   :  { %v2207_v47 = vpop.permute.xlu0 %325 }
 0x18e   :  { %v592_v56 = vsel %vm590_vm11, %v1681_v48, %v1682_v15  ;;  %v591_v3 = vsel %vm590_vm11, %v581_v40, %v1681_v48 }
 0x18f   :  { %v2216_v49 = vpop.permute.xlu1 %1689  ;;  %v726_v17 = vpack.c.bf16 %v592_v56, %v518_v2  ;;  %v725_v38 = vpack.c.bf16 %v591_v3, %v517_v22 }
 0x190   :  { %v1692_v57 = vunpack.i.h.bf16 %v2216_v49  ;;  %v1691_v58 = vunpack.i.l.bf16 %v2216_v49 }
 0x191   :  { %v1660_v18 = vpop.permute.xlu0 %1659 }
 0x192   :  { %v1662_v54 = vunpack.i.h.bf16 %v1660_v18  ;;  %v1661_v55 = vunpack.i.l.bf16 %v1660_v18  ;;  %v444_v26 = vsel %vm2627_vm14, %v1691_v58, %v1692_v57 }
 0x193   :  { %v2224_v37 = vpop.permute.xlu1 %1699  ;;  %v722_v42 = vpack.c.bf16 %v444_v26, %v370_v4 }
 0x194   :  { %v665_v59 = vsel %vm663_vm9, %v1662_v54, %v1666_v39  ;;  %v664_v60 = vsel %vm663_vm9, %v1661_v55, %v1662_v54  ;;  %v443_v39 = vsel %vm2627_vm14, %v433_v44, %v1691_v58  ;;  %v1702_v40 = vunpack.i.h.bf16 %v2224_v37 }
 0x195   :  { %v1675_v61 = vpop.permute.xlu0 %1674  ;;  %v730_v33 = vpack.c.bf16 %v665_v59, %v665_v59  ;;  %v729_v62 = vpack.c.bf16 %v664_v60, %v664_v60  ;;  %v1701_v41 = vunpack.i.l.bf16 %v2224_v37  ;;  %v369_v55 = vsel %vm368_vm13, %v2191_v63, %v1651_v51 }
 0x196   :  { %v1677_v5 = vunpack.i.h.bf16 %v1675_v61  ;;  %v1676_v12 = vunpack.i.l.bf16 %v1675_v61  ;;  %v721_v59 = vpack.c.bf16 %v443_v39, %v369_v55  ;;  %v371_v63 = vsel %vm368_vm13, %v1652_v50, %v1656_v35 }
 0x197   :  { %1614 = vmatprep.subr.msk.bf16.mxu0 %vm737_vm10, %v730_v33  ;;  %v739_v13 = vsel %vm737_vm10, %v729_v62, 0  ;;  %v2240_v16 = vpop.permute.xlu1 %1709  ;;  %v263_v60 = vsel %vm261_vm15, %v1701_v41, %v1702_v40  ;;  %v372_v33 = vsel %vm368_vm13, %v1656_v35, %v1657_v28  ;;  %v262_v0 = vsel %vm261_vm15, %v2197_v34, %v1701_v41  ;;  %v64_v34 = vld [vmem:[%s2622_s4] sm:$0xff] }
 0x198   :  { %757 = vmatpush1.bf16.msra.mxu0 %v739_v13  ;;  %v1712_v20 = vunpack.i.h.bf16 %v2240_v16  ;;  %v1711_v21 = vunpack.i.l.bf16 %v2240_v16  ;;  %v520_v43 = vsel %vm2626_vm12, %v1676_v12, %v1677_v5  ;;  %v519_v45 = vsel %vm2626_vm12, %v1672_v30, %v1676_v12 }
 0x199   :  { %v1685_v36 = vpop.permute.xlu0 %1684  ;;  %758 = vmatprep.subr.bf16.mxu0 %v726_v17  ;;  %vm187_vm12 = vcmask 1039360   ;;  %v119_v5 = vmul.f32 %v105_v19, %v2012_v24  ;;  %v676_v28 = vpack.c.bf16 %v64_v34, %v64_v34  ;;  %v113_v35 = vrot.slane %v2212_v14, %v1893_v8 }
 0x19a   :  { %v1687_v9 = vunpack.i.h.bf16 %v1685_v36  ;;  %v1686_v10 = vunpack.i.l.bf16 %v1685_v36  ;;  %v337_v31 = vsel %vm335_vm8, %v1711_v21, %v1712_v20  ;;  %v109_v36 = vrot.slane %v2212_v14, %v1897_v11 }
 0x19b   :  { %v2253_v29 = vpop.permute.xlu1 %1719  ;;  %v718_v61 = vpack.c.bf16 %v337_v31, %v263_v60  ;;  %v121_v14 = vmul.f32 %v113_v35, %v2027_v32  ;;  %v1179_v32 = vrot.slane %v2185_v27, %v1897_v11 }
 0x19c   :  { %759 = vmatpush1.bf16.msra.mxu0 %v725_v38  ;;  %v1722_v44 = vunpack.i.h.bf16 %v2253_v29  ;;  %v1721_v46 = vunpack.i.l.bf16 %v2253_v29  ;;  %v594_v48 = vsel %vm590_vm11, %v1686_v10, %v1687_v9  ;;  %v593_v18 = vsel %vm590_vm11, %v1682_v15, %v1686_v10 }
 0x19d   :  { %v1695_v53 = vpop.permute.xlu0 %1694  ;;  %760 = vmatprep.subr.bf16.mxu0 %v722_v42  ;;  %v728_v54 = vpack.c.bf16 %v594_v48, %v520_v43  ;;  %v727_v30 = vpack.c.bf16 %v593_v18, %v519_v45  ;;  %v336_v15 = vsel %vm335_vm8, %v2207_v47, %v1711_v21  ;;  %v118_v21 = vmul.f32 %v2009_v23, %v101_v52 }
 0x19e   :  { %v1697_v56 = vunpack.i.h.bf16 %v1695_v53  ;;  %v1696_v58 = vunpack.i.l.bf16 %v1695_v53  ;;  %v189_v3 = vsel %vm187_vm12, %v1721_v46, %v1722_v44  ;;  %v717_v12 = vpack.c.bf16 %v336_v15, %v262_v0  ;;  %1188 = vrot.lane.b32.xlu0 %v1179_v32, %s1817_s18 }
 0x19f   :  { %799 = vmatprep.subr.bf16.mxu1 %v728_v54  ;;  %v178_v51 = vpop.permute.xlu1 %177  ;;  %v120_v45 = vmul.f32 %v109_v36, %v2015_v25  ;;  %v1175_v25 = vrot.slane %v2185_v27, %v1891_v7  ;;  %v1183_v29 = vrot.slane %v2185_v27, %v1893_v8 }
 0x1a0   :  { %761 = vmatpush1.bf16.msra.mxu0 %v721_v59  ;;  %800 = vmatpush1.bf16.msra.mxu1 %v727_v30  ;;  %v446_v62 = vsel %vm2627_vm14, %v1696_v58, %v1697_v56  ;;  %v445_v2 = vsel %vm2627_vm14, %v1692_v57, %v1696_v58  ;;  %v188_v49 = vsel %vm187_vm12, %v178_v51, %v1721_v46  ;;  %vm733_vm14 = vcmask 588800  }
 0x1a1   :  { %v1705_v4 = vpop.permute.xlu0 %1704  ;;  %762 = vmatprep.subr.bf16.mxu0 %v718_v61  ;;  %v724_v47 = vpack.c.bf16 %v446_v62, %v372_v33  ;;  %v723_v50 = vpack.c.bf16 %v445_v2, %v371_v63  ;;  %v714_v57 = vpack.c.bf16 %v189_v3, %v119_v5  ;;  %v713_v24 = vpack.c.bf16 %v188_v49, %v118_v21  ;;  %v1619_v63 = vld [vmem:[%s2618_s1 + $0x2] ss:$8 sm:$0xf] }
 0x1a2   :  { %v1707_v13 = vunpack.i.h.bf16 %v1705_v4  ;;  %v1706_v17 = vunpack.i.l.bf16 %v1705_v4  ;;  %1186 = vrot.lane.b32.xlu1 %v1175_v25, %s1817_s18  ;;  %v997_v4 = vrot.slane %v1619_v63, %v1889_v6  ;;  %v1005_v0 = vrot.slane %v1619_v63, %v1897_v11 }
 0x1a3   :  { %801 = vmatprep.subr.bf16.mxu1 %v724_v47  ;;  %v1001_v47 = vrot.slane %v1619_v63, %v1891_v7  ;;  %v1009_v5 = vrot.slane %v1619_v63, %v1893_v8 }
 0x1a4   :  { %763 = vmatpush1.bf16.msra.mxu0 %v717_v12  ;;  %802 = vmatpush1.bf16.msra.mxu1 %v723_v50  ;;  %v265_v23 = vsel %vm261_vm15, %v1706_v17, %v1707_v13  ;;  %v264_v38 = vsel %vm261_vm15, %v1702_v40, %v1706_v17  ;;  %v1620_v50 = vld [vmem:[%s2618_s1 + $0x3] ss:$8 sm:$0xf]  ;;  %v1618_v13 = vld [vmem:[%s2618_s1 + $0x1] ss:$8 sm:$0xf] }
 0x1a5   :  { %v1715_v22 = vpop.permute.xlu0 %1714  ;;  %764 = vmatprep.subr.bf16.mxu0 %v714_v57  ;;  %v1068_v12 = vrot.slane %v1620_v50, %v1889_v6  ;;  %v1072_v49 = vrot.slane %v1620_v50, %v1891_v7  ;;  %v1076_v57 = vrot.slane %v1620_v50, %v1897_v11  ;;  %v1080_v17 = vrot.slane %v1620_v50, %v1893_v8 }
 0x1a6   :  { %v1717_v19 = vunpack.i.h.bf16 %v1715_v22  ;;  %v1716_v26 = vunpack.i.l.bf16 %v1715_v22  ;;  %1190 = vrot.lane.b32.xlu1 %v1183_v29, %s1817_s18  ;;  %v926_v21 = vrot.slane %v1618_v13, %v1889_v6  ;;  %v930_v34 = vrot.slane %v1618_v13, %v1891_v7 }
 0x1a7   :  { %v934_v22 = vrot.slane %v1618_v13, %v1897_v11 }
 0x1a8   :  { %765 = vmatpush1.bf16.msra.mxu0 %v713_v24  ;;  %v339_v52 = vsel %vm335_vm8, %v1716_v26, %v1717_v19  ;;  %v338_v39 = vsel %vm335_vm8, %v1712_v20, %v1716_v26  ;;  %v938_v24 = vrot.slane %v1618_v13, %v1893_v8 }
 0x1a9   :  { %v1725_v41 = vpop.permute.xlu0 %1724  ;;  %v720_v9 = vpack.c.bf16 %v339_v52, %v265_v23  ;;  %v719_v10 = vpack.c.bf16 %v338_v39, %v264_v38 }
 0x1aa   :  { %v1727_v42 = vunpack.i.h.bf16 %v1725_v41  ;;  %v1726_v43 = vunpack.i.l.bf16 %v1725_v41 }
 0x1ab   :  { %1615 = vmatmul.mubr.msk.bf16.vlgmr.msra.gmra.mxu0 %vm733_vm14, %v676_v28  ;;  %803 = vmatprep.subr.bf16.mxu1 %v720_v9 }
 0x1ac   :  { %804 = vmatpush1.bf16.msra.mxu1 %v719_v10  ;;  %v191_v37 = vsel %vm187_vm12, %v1726_v43, %v1727_v42  ;;  %v190_v16 = vsel %vm187_vm12, %v1722_v44, %v1726_v43  ;;  %1549 = vmatprep.mubr.bf16.mxu0 %v1813_v1  ;;  %v846_v46 = vpop.permute.xlu1 %845 }
 0x1ad   :  { %v716_v20 = vpack.c.bf16 %v191_v37, %v121_v14  ;;  %v715_v40 = vpack.c.bf16 %v190_v16, %v120_v45 }
 0x1af   :  { %805 = vmatprep.subr.bf16.mxu1 %v716_v20 }
 0x1b0   :  { %806 = vmatpush1.bf16.msra.mxu1 %v715_v40  ;;  %v2366_v26 = vpop.permute.xlu1 %1399 }
 0x1b3   :  { %1617 = vmatmul.mubr.msk.bf16.vlgmr.msra.gmra.mxu1 %vm733_vm14, %v676_v28 }
 0x1b4   :  { %1590 = vmatprep.mubr.bf16.mxu1 %v1813_v1  ;;  %v1404_v35 = vpop.permute.xlu1 %1403 }
 0x1b6   :  { %v836_v31 = vpop.permute.xlu0 %835 }
 0x1b8   :  { %v1258_v23 = vpop.permute.xlu1 %1257 }
 0x1ba   :  { %v2364_v19 = vpop.permute.xlu0 %1397 }
 0x1bc   :  { %v2370_v38 = vpop.permute.xlu1 %1261 }
 0x1be   :  { %v1402_v28 = vpop.permute.xlu0 %1401 }
 0x1c0   :  { %v1329_v41 = vpop.permute.xlu1 %1328 }
 0x1c2   :  { %v1256_v36 = vpop.permute.xlu0 %1255 }
 0x1c4   :  { %v2374_v10 = vpop.permute.xlu1 %1332 }
 0x1c6   :  { %v2368_v52 = vpop.permute.xlu0 %1259 }
 0x1ca   :  { %v1327_v39 = vpop.permute.xlu0 %1326 }
 0x1ce   :  { %v2372_v9 = vpop.permute.xlu0 %1330 }
 0x1d2   :  { %v2376_v42 = vpop.permute.xlu0 %1184 }
 0x210   :  { %v2378_v14 = vpop.permute.xlu0 %1188 }
 0x214   :  { %v1187_v43 = vpop.permute.xlu1 %1186 }
 0x218   :  { %v2380_v45 = vpop.permute.xlu1 %1190 }
 0x26b   :  { %v784_v44 = vpop.f32.mrf.mxu0 }
 0x26c   :  { %v838_v48 = vmul.f32 %v836_v31, %v784_v44 }
 0x26d   :  { %v786_v1 = vpop.f32.mrf.mxu0 }
 0x26e   :  { %v839_v18 = vmul.f32 %v836_v31, %v786_v1  ;;  %v848_v53 = vadd.f32 %v846_v46, %v838_v48 }
 0x26f   :  { %v788_v54 = vpop.f32.mrf.mxu0 }
 0x270   :  { %v849_v55 = vadd.f32 %v846_v46, %v839_v18  ;;  %v852_v30 = vmax.f32 %v848_v53, 0.0 }
 0x271   :  { %v789_v56 = vpop.f32.mrf.mxu0 }
 0x272   :  { %v853_v58 = vmax.f32 %v849_v55, 0.0  ;;  %861 = vrot.lane.b32.xlu0 %v852_v30, %s1819_s29  ;;  %v1407_v55 = vsel %vm34_vm0, %v1402_v28, %v1404_v35 }
 0x273   :  { %v825_v59 = vpop.f32.mrf.mxu1 }
 0x274   :  { %v840_v60 = vmul.f32 %v836_v31, %v825_v59  ;;  %863 = vrot.lane.b32.xlu1 %v853_v58, %s1819_s29  ;;  %v1406_v58 = vsel %vm34_vm0, %v2366_v26, %v1402_v28 }
 0x275   :  { %v827_v27 = vpop.f32.mrf.mxu1 }
 0x276   :  { %v850_v61 = vadd.f32 %v846_v46, %v840_v60  ;;  %v841_v33 = vmul.f32 %v836_v31, %v827_v27 }
 0x277   :  { %v829_v15 = vpop.f32.mrf.mxu1 }
 0x278   :  { %v854_v51 = vmax.f32 %v850_v61, 0.0  ;;  %v851_v62 = vadd.f32 %v846_v46, %v841_v33  ;;  %v1264_v33 = vsel %vm487_vm3, %v1258_v23, %v2368_v52 }
 0x279   :  { %v830_v2 = vpop.f32.mrf.mxu1 }
 0x27a   :  { %v855_v3 = vmax.f32 %v851_v62, 0.0  ;;  %865 = vrot.lane.b32.xlu0 %v854_v51, %s1819_s29  ;;  %v1263_v62 = vsel %vm487_vm3, %v1256_v36, %v1258_v23 }
 0x27c   :  { %867 = vrot.lane.b32.xlu1 %v855_v3, %s1819_s29 }
 0x27e   :  { %1010 = vrot.lane.b32.xlu0 %v997_v4, %s1820_s30 }
 0x280   :  { %1012 = vrot.lane.b32.xlu1 %v1001_v47, %s1820_s30  ;;  %v1335_v47 = vsel %vm561_vm4, %v1329_v41, %v2372_v9 }
 0x282   :  { %1014 = vrot.lane.b32.xlu0 %v1005_v0, %s1820_s30 }
 0x284   :  { %1016 = vrot.lane.b32.xlu1 %v1009_v5, %s1820_s30 }
 0x286   :  { %1081 = vrot.lane.b32.xlu0 %v1068_v12, %s1821_s3  ;;  %v1334_v12 = vsel %vm561_vm4, %v1327_v39, %v1329_v41  ;;  %v1265_v41 = vsel %vm487_vm3, %v2368_v52, %v2370_v38  ;;  %vm2631_vm3 = vcmask 785408  }
 0x288   :  { %1083 = vrot.lane.b32.xlu1 %v1072_v49, %s1821_s3 }
 0x28a   :  { %1085 = vrot.lane.b32.xlu0 %v1076_v57, %s1821_s3 }
 0x28c   :  { %1087 = vrot.lane.b32.xlu1 %v1080_v17, %s1821_s3  ;;  %v1405_v17 = vsel %vm34_vm0, %v2364_v19, %v2366_v26  ;;  %vm2628_vm0 = vcmask 7168  }
 0x28e   :  { %939 = vrot.lane.b32.xlu0 %v926_v21, %s1822_s14  ;;  %v1193_v21 = vsel %vm413_vm5, %v1187_v43, %v2378_v14 }
 0x290   :  { %941 = vrot.lane.b32.xlu1 %v930_v34, %s1822_s14 }
 0x292   :  { %943 = vrot.lane.b32.xlu0 %v934_v22, %s1822_s14 }
 0x294   :  { %945 = vrot.lane.b32.xlu1 %v938_v24, %s1822_s14 }
 0x2e4   :  { %v862_v37 = vpop.permute.xlu0 %861 }
 0x2e5   :  { %877 = vst.msk [vmem:[#allocation2] sm:$0xff] %vm86_vm1, %v862_v37  ;;  %vm2629_vm1 = vmmov %vm2628_vm0 }
 0x2e6   :  { %v864_v16 = vpop.permute.xlu1 %863 }
 0x2e7   :  { %v2384_v20 = vsel %vm77_vm2, %v862_v37, %v864_v16 }
 0x2e8   :  { %v1272_v4 = vmul.f32 %v1263_v62, %v2384_v20  ;;  %v1343_v57 = vmul.f32 %v1334_v12, %v2384_v20  ;;  %v1414_v24 = vmul.f32 %v1405_v17, %v2384_v20 }
 0x2ec   :  { %v866_v40 = vpop.permute.xlu0 %865  ;;  %v2386_v25 = vld [vmem:[#allocation2] sm:$0xff] }
 0x2ed   :  { %v2389_v32 = vsel %vm77_vm2, %v864_v16, %v866_v40  ;;  %1139 = vrot.lane.b32.xlu1 %v2386_v25, %s1823_s16  ;;  %v1342_v29 = vmul.f32 %v1327_v39, %v2386_v25  ;;  %v1271_v46 = vmul.f32 %v1256_v36, %v2386_v25  ;;  %v1200_v1 = vmul.f32 %v2376_v42, %v2386_v25 }
 0x2ee   :  { %v868_v31 = vpop.permute.xlu1 %867  ;;  %v1729_v30 = vpack.i.bf16 %v2389_v32, %v2384_v20  ;;  %v1415_v61 = vmul.f32 %v1406_v58, %v2389_v32  ;;  %v1273_v51 = vmul.f32 %v1264_v33, %v2389_v32  ;;  %v1344_v5 = vmul.f32 %v1335_v47, %v2389_v32 }
 0x2ef   :  { %v2395_v44 = vsel %vm77_vm2, %v866_v40, %v868_v31  ;;  %881 = vst.msk [vmem:[#allocation2 + $0x20] sm:$0xff] %vm77_vm2, %v868_v31  ;;  %1352 = vrot.lane.b32.xlu0 %v1342_v29, %s1827_s21  ;;  %v1413_v13 = vmul.f32 %v2364_v19, %v2386_v25  ;;  %v1202_v28 = vmul.f32 %v1193_v21, %v2389_v32  ;;  %vm2630_vm2 = vmmov %vm2628_vm0 }
 0x2f0   :  { %v1011_v48 = vpop.permute.xlu0 %1010  ;;  %v1416_v56 = vmul.f32 %v1407_v55, %v2395_v44  ;;  %v1749_v50 = vpack.i.bf16 %v1273_v51, %v1272_v4  ;;  %v1759_v22 = vpack.i.bf16 %v1344_v5, %v1343_v57  ;;  %v1274_v16 = vmul.f32 %v1265_v41, %v2395_v44 }
 0x2f1   :  { %1281 = vrot.lane.b32.xlu1 %v1271_v46, %s1824_s17  ;;  %v1026_v18 = vmul.f32 %v2386_v25, %v1011_v48  ;;  %v1739_v19 = vpack.i.bf16 %v1414_v24, %v1413_v13 }
 0x2f2   :  { %v1013_v53 = vpop.permute.xlu1 %1012  ;;  %v1744_v63 = vpack.i.bf16 %v1416_v56, %v1415_v61 }
 0x2f3   :  { %1210 = vrot.lane.b32.xlu0 %v1200_v1, %s1828_s22  ;;  %v1018_v37 = vsel %vm232_vm6, %v1011_v48, %v1013_v53 }
 0x2f4   :  { %v2405_v54 = vpop.permute.xlu0 %1014  ;;  %v1027_v29 = vmul.f32 %v1018_v37, %v2384_v20 }
 0x2f5   :  { %1036 = vrot.lane.b32.xlu1 %v1026_v18, %s1825_s19  ;;  %v1019_v36 = vsel %vm232_vm6, %v1013_v53, %v2405_v54 }
 0x2f6   :  { %v2414_v60 = vpop.permute.xlu1 %1016  ;;  %v2421_v15 = vld [vmem:[#allocation2 + $0x20] sm:$0xff] }
 0x2f7   :  { %v1734_v3 = vpack.i.bf16 %v2421_v15, %v2395_v44  ;;  %v1417_v49 = vmul.f32 %v1404_v35, %v2421_v15  ;;  %v1192_v35 = vsel %vm413_vm5, %v2376_v42, %v1187_v43  ;;  %v1275_v39 = vmul.f32 %v2370_v38, %v2421_v15 }
 0x2f8   :  { %v1082_v59 = vpop.permute.xlu0 %1081  ;;  %v1201_v26 = vmul.f32 %v1192_v35, %v2384_v20  ;;  %v1028_v42 = vmul.f32 %v1019_v36, %v2389_v32  ;;  %v1346_v52 = vmul.f32 %v2374_v10, %v2421_v15  ;;  %v1336_v38 = vsel %vm561_vm4, %v2372_v9, %v2374_v10  ;;  %vm2632_vm4 = vmmov %vm2631_vm3 }
 0x2f9   :  { %v1097_v27 = vmul.f32 %v2386_v25, %v1082_v59  ;;  %1730 = vrot.lane.b32.xlu1 %v1729_v30, %s1823_s16  ;;  %v1754_v46 = vpack.i.bf16 %v1275_v39, %v1274_v16  ;;  %v1345_v55 = vmul.f32 %v1336_v38, %v2395_v44  ;;  %v1204_v9 = vmul.f32 %v2380_v45, %v2421_v15 }
 0x2fa   :  { %v1084_v0 = vpop.permute.xlu1 %1083  ;;  %v1769_v43 = vpack.i.bf16 %v1202_v28, %v1201_v26  ;;  %v1779_v1 = vpack.i.bf16 %v1028_v42, %v1027_v29  ;;  %v1194_v10 = vsel %vm413_vm5, %v2378_v14, %v2380_v45  ;;  %v1030_v62 = vmul.f32 %v2414_v60, %v2421_v15 }
 0x2fb   :  { %1107 = vrot.lane.b32.xlu0 %v1097_v27, %s1829_s23  ;;  %v1089_v48 = vsel %vm306_vm7, %v1082_v59, %v1084_v0  ;;  %v1764_v58 = vpack.i.bf16 %v1346_v52, %v1345_v55  ;;  %v1020_v59 = vsel %vm232_vm6, %v2405_v54, %v2414_v60  ;;  %vm2633_vm5 = vcmask 900096  }
 0x2fc   :  { %v2426_v2 = vpop.permute.xlu0 %1085  ;;  %v1098_v56 = vmul.f32 %v1089_v48, %v2384_v20  ;;  %v1029_v51 = vmul.f32 %v1020_v59, %v2395_v44  ;;  %vm2634_vm6 = vmmov %vm2633_vm5 }
 0x2fd   :  { %1745 = vrot.lane.b32.xlu1 %v1744_v63, %s1826_s20  ;;  %v1090_v40 = vsel %vm306_vm7, %v1084_v0, %v2426_v2  ;;  %v1203_v63 = vmul.f32 %v1194_v10, %v2395_v44 }
 0x2fe   :  { %v1088_v23 = vpop.permute.xlu1 %1087  ;;  %v1099_v18 = vmul.f32 %v1090_v40, %v2389_v32  ;;  %v1784_v47 = vpack.i.bf16 %v1030_v62, %v1029_v51 }
 0x2ff   :  { %1735 = vrot.lane.b32.xlu0 %v1734_v3, %s1823_s16  ;;  %v1774_v45 = vpack.i.bf16 %v1204_v9, %v1203_v63  ;;  %v1091_v54 = vsel %vm306_vm7, %v2426_v2, %v1088_v23  ;;  %vm2635_vm7 = vmmov %vm2631_vm3 }
 0x300   :  { %v940_v34 = vpop.permute.xlu0 %939  ;;  %v1789_v61 = vpack.i.bf16 %v1099_v18, %v1098_v56  ;;  %v1100_v0 = vmul.f32 %v1091_v54, %v2395_v44 }
 0x301   :  { %1750 = vrot.lane.b32.xlu1 %v1749_v50, %s1824_s17  ;;  %v1101_v50 = vmul.f32 %v1088_v23, %v2421_v15  ;;  %v955_v5 = vmul.f32 %v2386_v25, %v940_v34 }
 0x302   :  { %v942_v53 = vpop.permute.xlu1 %941 }
 0x303   :  { %1431 = vrot.lane.b32.xlu0 %v1417_v49, %s1826_s20  ;;  %v947_v27 = vsel %vm2629_vm1, %v940_v34, %v942_v53  ;;  %v1794_v12 = vpack.i.bf16 %v1101_v50, %v1100_v0 }
 0x304   :  { %v944_v31 = vpop.permute.xlu0 %943  ;;  %v956_v14 = vmul.f32 %v947_v27, %v2384_v20 }
 0x305   :  { %1760 = vrot.lane.b32.xlu1 %v1759_v22, %s1827_s21  ;;  %v948_v30 = vsel %vm2628_vm0, %v942_v53, %v944_v31 }
 0x306   :  { %v957_v33 = vmul.f32 %v948_v30, %v2389_v32  ;;  %v946_v4 = vpop.permute.xlu1 %945 }
 0x307   :  { %1740 = vrot.lane.b32.xlu0 %v1739_v19, %s1826_s20  ;;  %v949_v60 = vsel %vm2630_vm2, %v944_v31, %v946_v4  ;;  %v959_v49 = vmul.f32 %v2421_v15, %v946_v4 }
 0x308   :  { %v1799_v3 = vpack.i.bf16 %v957_v33, %v956_v14  ;;  %v958_v2 = vmul.f32 %v949_v60, %v2395_v44 }
 0x309   :  { %1770 = vrot.lane.b32.xlu1 %v1769_v43, %s1828_s22 }
 0x30a   :  { %v1804_v57 = vpack.i.bf16 %v959_v49, %v958_v2 }
 0x30b   :  { %1755 = vrot.lane.b32.xlu0 %v1754_v46, %s1824_s17 }
 0x30d   :  { %1780 = vrot.lane.b32.xlu1 %v1779_v1, %s1825_s19 }
 0x30f   :  { %1765 = vrot.lane.b32.xlu0 %v1764_v58, %s1827_s21 }
 0x311   :  { %1790 = vrot.lane.b32.xlu1 %v1789_v61, %s1829_s23  ;;  %v2532_v61 = vld [vmem:[%s2618_s1] ss:$8 sm:$0xf] }
 0x312   :  { %v895_v0 = vrot.slane %v2532_v61, %v1891_v7 }
 0x313   :  { %1775 = vrot.lane.b32.xlu0 %v1774_v45, %s1828_s22 }
 0x315   :  { %1800 = vrot.lane.b32.xlu1 %v1799_v3, %s1830_s24 }
 0x317   :  { %1785 = vrot.lane.b32.xlu0 %v1784_v47, %s1825_s19 }
 0x319   :  { %965 = vrot.lane.b32.xlu1 %v955_v5, %s1830_s24 }
 0x31b   :  { %1795 = vrot.lane.b32.xlu0 %v1794_v12, %s1829_s23 }
 0x31f   :  { %1805 = vrot.lane.b32.xlu0 %v1804_v57, %s1830_s24 }
 0x35f   :  { %v1140_v13 = vpop.permute.xlu1 %1139 }
 0x361   :  { %v1353_v17 = vpop.permute.xlu0 %1352 }
 0x363   :  { %v1282_v21 = vpop.permute.xlu1 %1281 }
 0x365   :  { %v1211_v34 = vpop.permute.xlu0 %1210 }
 0x367   :  { %v2512_v22 = vpop.permute.xlu1 %1036 }
 0x36b   :  { %v2514_v24 = vpop.permute.xlu1 %1730 }
 0x36c   :  { %v1732_v1 = vunpack.i.l.bf16 %v2514_v24  ;;  %v1733_v9 = vunpack.i.h.bf16 %v2514_v24 }
 0x36d   :  { %v2516_v28 = vpop.permute.xlu0 %1107 }
 0x36e   :  { %v1149_v3 = vsel %vm368_vm13, %v1140_v13, %v1732_v1  ;;  %v1150_v2 = vsel %vm368_vm13, %v1732_v1, %v1733_v9 }
 0x36f   :  { %v1746_v35 = vpop.permute.xlu1 %1745 }
 0x370   :  { %v1748_v36 = vunpack.i.h.bf16 %v1746_v35  ;;  %v1747_v15 = vunpack.i.l.bf16 %v1746_v35 }
 0x371   :  { %v2518_v23 = vpop.permute.xlu0 %1735 }
 0x372   :  { %v1435_v19 = vsel %vm663_vm9, %v1747_v15, %v1748_v36  ;;  %v1738_v50 = vunpack.i.h.bf16 %v2518_v23 }
 0x373   :  { %v1751_v26 = vpop.permute.xlu1 %1750  ;;  %v1500_v41 = vpack.c.bf16 %v1435_v19, %v1435_v19 }
 0x374   :  { %v1753_v46 = vunpack.i.h.bf16 %v1751_v26  ;;  %v1752_v52 = vunpack.i.l.bf16 %v1751_v26 }
 0x375   :  { %v1432_v39 = vpop.permute.xlu0 %1431  ;;  %v1512_v31 = vsel %vm737_vm10, %v1500_v41, 0 }
 0x376   :  { %v1436_v37 = vsel %vm663_vm9, %v1748_v36, %v1432_v39  ;;  %v1292_v63 = vsel %vm2631_vm3, %v1752_v52, %v1753_v46  ;;  %v1291_v4 = vsel %vm2632_vm4, %v1282_v21, %v1752_v52  ;;  %v1737_v21 = vunpack.i.l.bf16 %v2518_v23 }
 0x377   :  { %v1501_v42 = vpack.c.bf16 %v1436_v37, %v1436_v37  ;;  %v1761_v43 = vpop.permute.xlu1 %1760  ;;  %v891_v23 = vrot.slane %v2532_v61, %v1889_v6 }
 0x378   :  { %v1763_v16 = vunpack.i.h.bf16 %v1761_v43  ;;  %v1762_v40 = vunpack.i.l.bf16 %v1761_v43 }
 0x379   :  { %v1741_v29 = vpop.permute.xlu0 %1740  ;;  %1627 = vmatprep.subr.msk.bf16.mxu1 %vm737_vm10, %v1501_v42 }
 0x37a   :  { %v1743_v38 = vunpack.i.h.bf16 %v1741_v29  ;;  %v1742_v48 = vunpack.i.l.bf16 %v1741_v29  ;;  %1565 = vmatpush1.bf16.msra.mxu1 %v1512_v31  ;;  %v1363_v53 = vsel %vm590_vm11, %v1762_v40, %v1763_v16  ;;  %v1362_v33 = vsel %vm590_vm11, %v1353_v17, %v1762_v40 }
 0x37b   :  { %v1771_v18 = vpop.permute.xlu1 %1770  ;;  %v1495_v54 = vpack.c.bf16 %v1363_v53, %v1292_v63  ;;  %v1494_v60 = vpack.c.bf16 %v1362_v33, %v1291_v4  ;;  %v1151_v31 = vsel %vm368_vm13, %v1733_v9, %v1737_v21  ;;  %v909_v9 = vmul.f32 %v895_v0, %v2384_v20 }
 0x37c   :  { %v1434_v55 = vsel %vm663_vm9, %v1743_v38, %v1747_v15  ;;  %v1773_v30 = vunpack.i.h.bf16 %v1771_v18  ;;  %v1772_v56 = vunpack.i.l.bf16 %v1771_v18  ;;  %v1433_v58 = vsel %vm663_vm9, %v1742_v48, %v1743_v38  ;;  %vm2636_vm9 = vmmov %vm2631_vm3 }
 0x37d   :  { %v1499_v10 = vpack.c.bf16 %v1434_v55, %v1434_v55  ;;  %v1756_v59 = vpop.permute.xlu0 %1755  ;;  %v1498_v27 = vpack.c.bf16 %v1433_v58, %v1433_v58  ;;  %v1152_v48 = vsel %vm368_vm13, %v1737_v21, %v1738_v50 }
 0x37e   :  { %v1758_v51 = vunpack.i.h.bf16 %v1756_v59  ;;  %v1757_v62 = vunpack.i.l.bf16 %v1756_v59  ;;  %v1221_v47 = vsel %vm2633_vm5, %v1772_v56, %v1773_v30  ;;  %v1220_v5 = vsel %vm2634_vm6, %v1211_v34, %v1772_v56 }
 0x37f   :  { %v2536_v14 = vpop.permute.xlu1 %1780  ;;  %1625 = vmatprep.subr.msk.bf16.mxu0 %vm737_vm10, %v1499_v10  ;;  %v1506_v45 = vsel %vm737_vm10, %v1498_v27, 0  ;;  %v1491_v35 = vpack.c.bf16 %v1221_v47, %v1150_v2  ;;  %v1490_v39 = vpack.c.bf16 %v1220_v5, %v1149_v3  ;;  %vm2637_vm10 = vmmov %vm2633_vm5  ;;  %v903_v47 = vrot.slane %v2532_v61, %v1893_v8 }
 0x380   :  { %1524 = vmatpush1.bf16.msra.mxu0 %v1506_v45  ;;  %v1783_v49 = vunpack.i.h.bf16 %v2536_v14  ;;  %v1782_v57 = vunpack.i.l.bf16 %v2536_v14  ;;  %v1293_v24 = vsel %vm2635_vm7, %v1753_v46, %v1757_v62  ;;  %v1294_v36 = vsel %vm2636_vm9, %v1757_v62, %v1758_v51 }
 0x381   :  { %v1766_v12 = vpop.permute.xlu0 %1765  ;;  %1525 = vmatprep.subr.bf16.mxu0 %v1495_v54  ;;  %v911_v8 = vmul.f32 %v903_v47, %v2395_v44  ;;  %v1810_v44 = vld [vmem:[%s2619_s0 + $0x8] sm:$0xff] }
 0x382   :  { %v1768_v13 = vunpack.i.h.bf16 %v1766_v12  ;;  %v1767_v17 = vunpack.i.l.bf16 %v1766_v12  ;;  %v1047_v29 = vsel %vm261_vm15, %v1782_v57, %v1783_v49  ;;  %v1046_v55 = vsel %vm261_vm15, %v2512_v22, %v1782_v57  ;;  %v856_v22 = vld [vmem:[%s2623_s7] sm:$0xff] }
 0x383   :  { %v1791_v7 = vpop.permute.xlu1 %1790  ;;  %v1445_v4 = vpack.c.bf16 %v856_v22, %v856_v22 }
 0x384   :  { %v1364_v34 = vsel %vm590_vm11, %v1763_v16, %v1767_v17  ;;  %v1793_v15 = vunpack.i.h.bf16 %v1791_v7  ;;  %v1792_v19 = vunpack.i.l.bf16 %v1791_v7  ;;  %1526 = vmatpush1.bf16.msra.mxu0 %v1494_v60  ;;  %v1365_v26 = vsel %vm590_vm11, %v1767_v17, %v1768_v13  ;;  %vm2638_vm11 = vmmov %vm2633_vm5 }
 0x385   :  { %v1496_v41 = vpack.c.bf16 %v1364_v34, %v1293_v24  ;;  %v1776_v37 = vpop.permute.xlu0 %1775  ;;  %1527 = vmatprep.subr.bf16.mxu0 %v1491_v35  ;;  %v1497_v42 = vpack.c.bf16 %v1365_v26, %v1294_v36  ;;  %v1811_v26 = vld [vmem:[%s2619_s0 + $0x10] sm:$0xff] }
 0x386   :  { %v1778_v43 = vunpack.i.h.bf16 %v1776_v37  ;;  %v1777_v40 = vunpack.i.l.bf16 %v1776_v37  ;;  %v1118_v16 = vsel %vm335_vm8, %v1792_v19, %v1793_v15  ;;  %v1117_v46 = vsel %vm335_vm8, %v2516_v28, %v1792_v19  ;;  %v1812_v37 = vld [vmem:[%s2619_s0 + $0x18] sm:$0xff] }
 0x387   :  { %v1801_v52 = vpop.permute.xlu1 %1800  ;;  %1566 = vmatprep.subr.bf16.mxu1 %v1497_v42  ;;  %v1487_v38 = vpack.c.bf16 %v1118_v16, %v1047_v29  ;;  %v1486_v10 = vpack.c.bf16 %v1117_v46, %v1046_v55 }
 0x388   :  { %v1222_v6 = vsel %vm2637_vm10, %v1773_v30, %v1777_v40  ;;  %v1803_v1 = vunpack.i.h.bf16 %v1801_v52  ;;  %v1802_v18 = vunpack.i.l.bf16 %v1801_v52  ;;  %1528 = vmatpush1.bf16.msra.mxu0 %v1490_v39  ;;  %1567 = vmatpush1.bf16.msra.mxu1 %v1496_v41  ;;  %v1223_v53 = vsel %vm2638_vm11, %v1777_v40, %v1778_v43 }
 0x389   :  { %v1492_v56 = vpack.c.bf16 %v1222_v6, %v1151_v31  ;;  %v1786_v58 = vpop.permute.xlu0 %1785  ;;  %1529 = vmatprep.subr.bf16.mxu0 %v1487_v38  ;;  %v1493_v28 = vpack.c.bf16 %v1223_v53, %v1152_v48  ;;  %v908_v30 = vmul.f32 %v2386_v25, %v891_v23  ;;  %v899_v25 = vrot.slane %v2532_v61, %v1897_v11 }
 0x38a   :  { %v976_v59 = vsel %vm187_vm12, %v1802_v18, %v1803_v1  ;;  %v1788_v63 = vunpack.i.h.bf16 %v1786_v58  ;;  %v1787_v51 = vunpack.i.l.bf16 %v1786_v58 }
 0x38b   :  { %v966_v27 = vpop.permute.xlu1 %965  ;;  %1568 = vmatprep.subr.bf16.mxu1 %v1493_v28  ;;  %v1483_v33 = vpack.c.bf16 %v976_v59, %v909_v9  ;;  %v910_v17 = vmul.f32 %v899_v25, %v2389_v32  ;;  %v1809_v32 = vld [vmem:[%s2619_s0] sm:$0xff] }
 0x38c   :  { %v975_v62 = vsel %vm187_vm12, %v966_v27, %v1802_v18  ;;  %1530 = vmatpush1.bf16.msra.mxu0 %v1486_v10  ;;  %1569 = vmatpush1.bf16.msra.mxu1 %v1492_v56  ;;  %v1048_v0 = vsel %vm261_vm15, %v1783_v49, %v1787_v51  ;;  %v1049_v60 = vsel %vm261_vm15, %v1787_v51, %v1788_v63 }
 0x38d   :  { %v1482_v45 = vpack.c.bf16 %v975_v62, %v908_v30  ;;  %v1796_v20 = vpop.permute.xlu0 %1795  ;;  %1531 = vmatprep.subr.bf16.mxu0 %v1483_v33 }
 0x38e   :  { %v1798_v54 = vunpack.i.h.bf16 %v1796_v20  ;;  %v1797_v3 = vunpack.i.l.bf16 %v1796_v20 }
 0x390   :  { %v1119_v50 = vsel %vm335_vm8, %v1793_v15, %v1797_v3  ;;  %1532 = vmatpush1.bf16.msra.mxu0 %v1482_v45  ;;  %v1120_v5 = vsel %vm335_vm8, %v1797_v3, %v1798_v54 }
 0x391   :  { %v1488_v12 = vpack.c.bf16 %v1119_v50, %v1048_v0  ;;  %v1806_v2 = vpop.permute.xlu0 %1805  ;;  %v1489_v57 = vpack.c.bf16 %v1120_v5, %v1049_v60 }
 0x392   :  { %v1808_v13 = vunpack.i.h.bf16 %v1806_v2  ;;  %v1807_v11 = vunpack.i.l.bf16 %v1806_v2 }
 0x393   :  { %1570 = vmatprep.subr.bf16.mxu1 %v1489_v57  ;;  %1626 = vmatmul.mubr.msk.bf16.vlgmr.msra.gmra.mxu0 %vm733_vm14, %v1445_v4 }
 0x394   :  { %v977_v61 = vsel %vm187_vm12, %v1803_v1, %v1807_v11  ;;  %1571 = vmatpush1.bf16.msra.mxu1 %v1488_v12  ;;  %v978_v14 = vsel %vm187_vm12, %v1807_v11, %v1808_v13 }
 0x395   :  { %v1484_v49 = vpack.c.bf16 %v977_v61, %v910_v17  ;;  %v1485_v21 = vpack.c.bf16 %v978_v14, %v911_v8 }
 0x397   :  { %1572 = vmatprep.subr.bf16.mxu1 %v1485_v21 }
 0x398   :  { %1573 = vmatpush1.bf16.msra.mxu1 %v1484_v49 }
 0x39b   :  { %1628 = vmatmul.mubr.msk.bf16.vlgmr.msra.gmra.mxu1 %vm733_vm14, %v1445_v4 }
 0x453   :  { %v1551_v24 = vpop.f32.mrf.mxu0 }
 0x454   :  { %v1552_v7 = vadd.f32 %v1809_v32, %v1551_v24 }
 0x455   :  { %v1553_v35 = vpop.f32.mrf.mxu0 }
 0x456   :  { %1599 = vst [vmem:[%s2624_s8] sm:$0xff] %v1552_v7  ;;  %v1554_v36 = vadd.f32 %v1810_v44, %v1553_v35 }
 0x457   :  { %v1555_v34 = vpop.f32.mrf.mxu0 }
 0x458   :  { %1600 = vst [vmem:[%s2624_s8 + $0x8] sm:$0xff] %v1554_v36 }
 0x459   :  { %v1556_v15 = vpop.f32.mrf.mxu0 }
 0x45b   :  { %v1592_v19 = vpop.f32.mrf.mxu1 }
 0x45c   :  { %v1593_v39 = vadd.f32 %v1811_v26, %v1592_v19 }
 0x45d   :  { %v1594_v41 = vpop.f32.mrf.mxu1 }
 0x45e   :  { %1601 = vst [vmem:[%s2624_s8 + $0x10] sm:$0xff] %v1593_v39  ;;  %v1595_v42 = vadd.f32 %v1812_v37, %v1594_v41 }
 0x45f   :  { %v1596_v23 = vpop.f32.mrf.mxu1 }
 0x460   :  { %1602 = vst [vmem:[%s2624_s8 + $0x18] sm:$0xff] %v1595_v42 }
 0x461   :  { %v1597_v43 = vpop.f32.mrf.mxu1 }

// kernel: unet2d_forward.38
= control target key start
LH: loop header
LB: loop body
LE: loop exit
PB: predicated region body
PF: predicated region fallthrough
CT: control target
= control target key end

     0   :  { %v1046_v0 = vmov 0   ;;  %vm31_vm0 = vcmask 146432   ;;  %v1047_v5 = vmov 0.0   ;;  %s1048_s15 = smov 9   ;;  %s1050_s22 = smov 16   ;;  %vm79_vm1 = vcmask 1047624   ;;  %s1388_s3 = inlined_call_operand.vmem [shape: f32[16,1], index: 3, kind: input, shape index: {}]   ;;  %s1389_s2 = inlined_call_operand.vmem [shape: f32[16,1], index: 2, kind: input, shape index: {}]   ;;  %s1390_s0 = inlined_call_operand.vmem [shape: f32[16,128], index: 0, kind: input, shape index: {}]   ;;  %s1391_s1 = inlined_call_operand.vmem [shape: f32[9,128], index: 1, kind: input, shape index: {}]   ;;  %s1392_s5 = inlined_call_operand.vmem [shape: f32[16,1], index: 5, kind: input, shape index: {}]   ;;  %s1393_s4 = inlined_call_operand.vmem [shape: f32[16,144], index: 4, kind: input, shape index: {}]   ;;  %s1394_s6 = inlined_call_operand.vmem [shape: f32[16,1], index: 6, kind: input, shape index: {}]   ;;  %s1395_s7 = inlined_call_operand.vmem [shape: f32[16,144], index: 7, kind: input, shape index: {}]   ;;  %s1396_s8 = inlined_call_operand.vmem [shape: f32[16,128], index: 8, kind: output, shape index: {}]  }
   0x1   :  { %885 = vset.pattern.permute.xlu1 %v1046_v0  ;;  %884 = vset.pattern.permute.xlu0 %v1046_v0  ;;  %v51_v1 = vld [vmem:[%s1388_s3] sm:$0xff]  ;;  %v52_v3 = vld [vmem:[%s1388_s3 + $0x8] sm:$0xff]  ;;  %30 = vst [vmem:[#allocation2] sm:$0xff] %v1047_v5  ;;  %32 = vst.msk [vmem:[#allocation2 + $0x8] sm:$0xff] %vm31_vm0, %v1047_v5  ;;  %s1051_s23 = smov 10   ;;  %s1052_s28 = smov 8  }
   0x2   :  { %v37_v2 = vld [vmem:[%s1389_s2] sm:$0xff]  ;;  %55 = vperm.xlu1 %885, %v51_v1   ;;  %v38_v4 = vld [vmem:[%s1389_s2 + $0x8] sm:$0xff]  ;;  %404 = vmatprep.subr.bf16.mxu0 %v1046_v0  ;;  %33 = vst [vmem:[#allocation2 + $0x10] sm:$0xff] %v1047_v5  ;;  %34 = vst.msk [vmem:[#allocation2 + $0x18] sm:$0xff] %vm31_vm0, %v1047_v5  ;;  %s1053_s29 = smov 2   ;;  %s1054_s12 = smov 1  }
   0x3   :  { %41 = vperm.xlu0 %884, %v37_v2   ;;  %801 = vmatprep.subr.bf16.mxu1 %v1046_v0  ;;  %v1128_v6 = vld [vmem:[%s1390_s0] sm:$0xff]  ;;  %v1134_v10 = vld [vmem:[%s1390_s0 + $0x8] sm:$0xff]  ;;  %s1049_s0 = smov 17   ;;  %s1055_s13 = smov 18   ;;  %vm81_vm2 = vcmask 72704   ;;  %vm400_vm3 = vcmask 130048  }
   0x4   :  { %v1141_v17 = vld [vmem:[%s1391_s1 + $0x7] ss:$0 sm:$0xff]  ;;  %v1149_v19 = vld [vmem:[%s1391_s1 + $0x6] ss:$0 sm:$0xff]  ;;  %v1154_v20 = vld [vmem:[%s1391_s1 + $0x5] ss:$0 sm:$0xff] }
   0x5   :  { %v1163_v21 = vld [vmem:[%s1391_s1 + $0x3] ss:$0 sm:$0xff]  ;;  %v1168_v22 = vld [vmem:[%s1391_s1 + $0x2] ss:$0 sm:$0xff]  ;;  %v1177_v23 = vld [vmem:[%s1391_s1 + $0x1] ss:$0 sm:$0xff] }
   0x6   :  { %60 = vperm.xlu1 %885, %v52_v3   ;;  %v1182_v24 = vld [vmem:[%s1391_s1 + $0x8] ss:$0 sm:$0xff]  ;;  %s1056_s14 = smov 111   ;;  %s1057_s2 = smov 112   ;;  %vm328_vm4 = vcmask 908288   ;;  %vm292_vm5 = vcmask 916480  }
   0x7   :  { %46 = vperm.xlu0 %884, %v38_v4   ;;  %s1058_s3 = smov 118   ;;  %s1059_s16 = smov 119   ;;  %vm256_vm6 = vcmask 965632   ;;  %vm220_vm7 = vcmask 973824   ;;  %vm197_vm8 = vcmask 982016   ;;  %vm161_vm9 = vcmask 1031168  }
   0x8   :  { %s1060_s17 = smov 120   ;;  %s1061_s18 = smov 126   ;;  %vm125_vm10 = vcmask 1039360   ;;  %vm364_vm11 = vcmask 900096  }
   0x9   :  { %s1062_s19 = smov 127   ;;  %s1063_s20 = smov 110  }
  0x7d   :  { %v56_v7 = vpop.permute.xlu1 %55 }
  0x7e   :  { %v42_v8 = vpop.permute.xlu0 %41 }
  0x7f   :  { %v49_v9 = vmul.f32 %v42_v8, %v1128_v6 }
  0x81   :  { %v63_v11 = vadd.f32 %v56_v7, %v49_v9  ;;  %v61_v15 = vpop.permute.xlu1 %60 }
  0x82   :  { %v47_v12 = vpop.permute.xlu0 %46 }
  0x83   :  { %v65_v13 = vmax.f32 %v63_v11, 0.0  ;;  %v50_v14 = vmul.f32 %v47_v12, %v1134_v10 }
  0x85   :  { %v64_v16 = vadd.f32 %v61_v15, %v50_v14  ;;  %73 = vrot.lane.b32.xlu0 %v65_v13, %s1048_s15 }
  0x87   :  { %v66_v18 = vmax.f32 %v64_v16, 0.0 }
  0x89   :  { %75 = vrot.lane.b32.xlu1 %v66_v18, %s1048_s15  ;;  %309 = vrot.lane.b32.xlu0 %v1141_v17, %s1049_s0 }
  0x8d   :  { %273 = vrot.lane.b32.xlu1 %v1149_v19, %s1050_s22  ;;  %237 = vrot.lane.b32.xlu0 %v1154_v20, %s1051_s23 }
  0x91   :  { %178 = vrot.lane.b32.xlu1 %v1163_v21, %s1052_s28  ;;  %142 = vrot.lane.b32.xlu0 %v1168_v22, %s1053_s29 }
  0x95   :  { %106 = vrot.lane.b32.xlu1 %v1177_v23, %s1054_s12  ;;  %345 = vrot.lane.b32.xlu0 %v1182_v24, %s1055_s13 }
  0xf7   :  { %v74_v25 = vpop.permute.xlu0 %73 }
  0xf8   :  { %80 = vst.msk [vmem:[#allocation2] sm:$0xff] %vm79_vm1, %v74_v25 }
  0xf9   :  { %82 = vst.msk [vmem:[#allocation2 + $0x8] sm:$0xff] %vm81_vm2, %v74_v25 }
  0xfb   :  { %v76_v26 = vpop.permute.xlu1 %75  ;;  %v310_v27 = vpop.permute.xlu0 %309 }
  0xfc   :  { %83 = vst.msk [vmem:[#allocation2 + $0x10] sm:$0xff] %vm79_vm1, %v76_v26 }
  0xfd   :  { %84 = vst.msk [vmem:[#allocation2 + $0x18] sm:$0xff] %vm81_vm2, %v76_v26 }
  0xff   :  { %v1192_v28 = vld [vmem:[#allocation2] sm:$0xff]  ;;  %v274_v30 = vpop.permute.xlu1 %273  ;;  %v238_v38 = vpop.permute.xlu0 %237 }
 0x100   :  { %v300_v29 = vld [vmem:[#allocation2 + $0x8] sm:$0xff]  ;;  %v312_v31 = vmul.f32 %v310_v27, %v1192_v28  ;;  %v276_v33 = vmul.f32 %v1192_v28, %v274_v30  ;;  %v240_v41 = vmul.f32 %v1192_v28, %v238_v38 }
 0x101   :  { %v313_v32 = vmul.f32 %v310_v27, %v300_v29  ;;  %v277_v34 = vmul.f32 %v300_v29, %v274_v30  ;;  %v241_v42 = vmul.f32 %v300_v29, %v238_v38  ;;  %v911_v54 = vpack.i.bf16 %v300_v29, %v1192_v28 }
 0x103   :  { %v886_v35 = vpack.i.bf16 %v313_v32, %v312_v31  ;;  %v1196_v36 = vld [vmem:[#allocation2 + $0x10] sm:$0xff]  ;;  %v896_v43 = vpack.i.bf16 %v277_v34, %v276_v33  ;;  %v906_v47 = vpack.i.bf16 %v241_v42, %v240_v41  ;;  %v179_v50 = vpop.permute.xlu1 %178  ;;  %v143_v55 = vpop.permute.xlu0 %142  ;;  %v459_v33 = vld [vmem:[%s1394_s6] sm:$0xff]  ;;  %v446_v34 = vld [vmem:[%s1392_s5 + $0x8] sm:$0xff] }
 0x104   :  { %v1198_v37 = vld [vmem:[#allocation2 + $0x18] sm:$0xff]  ;;  %v314_v39 = vmul.f32 %v310_v27, %v1196_v36  ;;  %v278_v44 = vmul.f32 %v1196_v36, %v274_v30  ;;  %v242_v48 = vmul.f32 %v1196_v36, %v238_v38  ;;  %v181_v52 = vmul.f32 %v1192_v28, %v179_v50 }
 0x105   :  { %v315_v40 = vmul.f32 %v310_v27, %v1198_v37  ;;  %887 = vrot.lane.b32.xlu1 %v886_v35, %s1056_s14  ;;  %v279_v45 = vmul.f32 %v1198_v37, %v274_v30  ;;  %v243_v49 = vmul.f32 %v1198_v37, %v238_v38  ;;  %v182_v53 = vmul.f32 %v300_v29, %v179_v50  ;;  %v445_v27 = vld [vmem:[%s1392_s5] sm:$0xff]  ;;  %v70_v30 = vld [vmem:[%s1393_s4 + $0x18] sm:$0xff]  ;;  %v460_v35 = vld [vmem:[%s1394_s6 + $0x8] sm:$0xff] }
 0x106   :  { %v145_v57 = vmul.f32 %v1192_v28, %v143_v55  ;;  %v146_v58 = vmul.f32 %v300_v29, %v143_v55  ;;  %v183_v60 = vmul.f32 %v1196_v36, %v179_v50  ;;  %v184_v61 = vmul.f32 %v1198_v37, %v179_v50 }
 0x107   :  { %v891_v46 = vpack.i.bf16 %v315_v40, %v314_v39  ;;  %v901_v51 = vpack.i.bf16 %v279_v45, %v278_v44  ;;  %v916_v56 = vpack.i.bf16 %v243_v49, %v242_v48  ;;  %v926_v59 = vpack.i.bf16 %v182_v53, %v181_v52  ;;  %v107_v62 = vpop.permute.xlu1 %106  ;;  %v346_v7 = vpop.permute.xlu0 %345 }
 0x108   :  { %v921_v63 = vpack.i.bf16 %v1198_v37, %v1196_v36  ;;  %v109_v1 = vmul.f32 %v1192_v28, %v107_v62  ;;  %v110_v2 = vmul.f32 %v300_v29, %v107_v62  ;;  %v936_v3 = vpack.i.bf16 %v146_v58, %v145_v57 }
 0x109   :  { %897 = vrot.lane.b32.xlu1 %v896_v43, %s1057_s2  ;;  %892 = vrot.lane.b32.xlu0 %v891_v46, %s1056_s14  ;;  %v147_v4 = vmul.f32 %v1196_v36, %v143_v55  ;;  %v148_v5 = vmul.f32 %v1198_v37, %v143_v55  ;;  %v931_v8 = vpack.i.bf16 %v184_v61, %v183_v60 }
 0x10a   :  { %v348_v9 = vmul.f32 %v346_v7, %v1192_v28  ;;  %v349_v11 = vmul.f32 %v346_v7, %v300_v29  ;;  %v946_v12 = vpack.i.bf16 %v110_v2, %v109_v1  ;;  %v111_v13 = vmul.f32 %v1196_v36, %v107_v62  ;;  %v68_v29 = vld [vmem:[%s1393_s4 + $0x8] sm:$0xff] }
 0x10b   :  { %v112_v14 = vmul.f32 %v1198_v37, %v107_v62  ;;  %v941_v15 = vpack.i.bf16 %v148_v5, %v147_v4  ;;  %v350_v18 = vmul.f32 %v346_v7, %v1196_v36  ;;  %v351_v25 = vmul.f32 %v346_v7, %v1198_v37 }
 0x10c   :  { %v956_v16 = vpack.i.bf16 %v349_v11, %v348_v9  ;;  %v372_v32 = vpack.c.bf16 %v70_v30, %v68_v29 }
 0x10d   :  { %907 = vrot.lane.b32.xlu1 %v906_v47, %s1058_s3  ;;  %902 = vrot.lane.b32.xlu0 %v901_v51, %s1057_s2  ;;  %v951_v26 = vpack.i.bf16 %v112_v14, %v111_v13  ;;  %v961_v31 = vpack.i.bf16 %v351_v25, %v350_v18 }
 0x10e   :  { %856 = vmatprep.mubr.msk.bf16.mxu0 %vm400_vm3, %v372_v32 }
 0x111   :  { %912 = vrot.lane.b32.xlu1 %v911_v54, %s1059_s16  ;;  %917 = vrot.lane.b32.xlu0 %v916_v56, %s1058_s3 }
 0x115   :  { %927 = vrot.lane.b32.xlu1 %v926_v59, %s1060_s17  ;;  %922 = vrot.lane.b32.xlu0 %v921_v63, %s1059_s16 }
 0x119   :  { %937 = vrot.lane.b32.xlu1 %v936_v3, %s1061_s18  ;;  %932 = vrot.lane.b32.xlu0 %v931_v8, %s1060_s17 }
 0x11d   :  { %947 = vrot.lane.b32.xlu1 %v946_v12, %s1062_s19  ;;  %942 = vrot.lane.b32.xlu0 %v941_v15, %s1061_s18 }
 0x121   :  { %957 = vrot.lane.b32.xlu1 %v956_v16, %s1063_s20  ;;  %952 = vrot.lane.b32.xlu0 %v951_v26, %s1062_s19 }
 0x125   :  { %449 = vperm.xlu1 %885, %v445_v27   ;;  %962 = vrot.lane.b32.xlu0 %v961_v31, %s1063_s20 }
 0x129   :  { %463 = vperm.xlu1 %885, %v459_v33   ;;  %454 = vperm.xlu0 %884, %v446_v34  }
 0x12d   :  { %468 = vperm.xlu0 %884, %v460_v35  }
 0x177   :  { %v888_v37 = vpop.permute.xlu1 %887 }
 0x178   :  { %v890_v38 = vunpack.i.h.bf16 %v888_v37  ;;  %v889_v39 = vunpack.i.l.bf16 %v888_v37 }
 0x17a   :  { %v329_v47 = vsel %vm328_vm4, %v889_v39, %v890_v38 }
 0x17b   :  { %v898_v40 = vpop.permute.xlu1 %897  ;;  %v893_v41 = vpop.permute.xlu0 %892 }
 0x17c   :  { %v895_v42 = vunpack.i.h.bf16 %v893_v41  ;;  %v894_v43 = vunpack.i.l.bf16 %v893_v41  ;;  %v900_v44 = vunpack.i.h.bf16 %v898_v40  ;;  %v899_v45 = vunpack.i.l.bf16 %v898_v40 }
 0x17e   :  { %v330_v48 = vsel %vm328_vm4, %v894_v43, %v895_v42  ;;  %v293_v56 = vsel %vm292_vm5, %v899_v45, %v900_v44 }
 0x17f   :  { %v908_v46 = vpop.permute.xlu1 %907  ;;  %v903_v49 = vpop.permute.xlu0 %902  ;;  %v398_v50 = vpack.c.bf16 %v330_v48, %v329_v47  ;;  %v1280_v47 = vld [vmem:[%s1391_s1] ss:$0 sm:$0xff] }
 0x180   :  { %v905_v51 = vunpack.i.h.bf16 %v903_v49  ;;  %v904_v52 = vunpack.i.l.bf16 %v903_v49  ;;  %v910_v53 = vunpack.i.h.bf16 %v908_v46  ;;  %v909_v54 = vunpack.i.l.bf16 %v908_v46 }
 0x181   :  { %405 = vmatpush1.bf16.msra.mxu0 %v398_v50 }
 0x182   :  { %406 = vmatprep.subr.bf16.mxu0 %v1046_v0  ;;  %v294_v57 = vsel %vm292_vm5, %v904_v52, %v905_v51  ;;  %v257_v2 = vsel %vm256_vm6, %v909_v54, %v910_v53  ;;  %v93_v51 = vmul.f32 %v1280_v47, %v1196_v36  ;;  %v92_v54 = vmul.f32 %v1280_v47, %v1192_v28  ;;  %v69_v36 = vld [vmem:[%s1393_s4 + $0x10] sm:$0xff] }
 0x183   :  { %v913_v55 = vpop.permute.xlu1 %912  ;;  %v918_v58 = vpop.permute.xlu0 %917  ;;  %v397_v59 = vpack.c.bf16 %v294_v57, %v293_v56 }
 0x184   :  { %v920_v60 = vunpack.i.h.bf16 %v918_v58  ;;  %v919_v61 = vunpack.i.l.bf16 %v918_v58  ;;  %v915_v62 = vunpack.i.h.bf16 %v913_v55  ;;  %v914_v63 = vunpack.i.l.bf16 %v913_v55 }
 0x185   :  { %407 = vmatpush1.bf16.msra.mxu0 %v397_v59  ;;  %v391_v57 = vpack.c.bf16 %v93_v51, %v92_v54  ;;  %v67_v59 = vld [vmem:[%s1393_s4] sm:$0xff] }
 0x186   :  { %408 = vmatprep.subr.bf16.mxu0 %v1046_v0  ;;  %v258_v3 = vsel %vm256_vm6, %v919_v61, %v920_v60  ;;  %v221_v13 = vsel %vm220_vm7, %v914_v63, %v915_v62  ;;  %v371_v61 = vpack.c.bf16 %v69_v36, %v67_v59 }
 0x187   :  { %v928_v1 = vpop.permute.xlu1 %927  ;;  %v923_v4 = vpop.permute.xlu0 %922  ;;  %v396_v5 = vpack.c.bf16 %v258_v3, %v257_v2 }
 0x188   :  { %v925_v7 = vunpack.i.h.bf16 %v923_v4  ;;  %v924_v8 = vunpack.i.l.bf16 %v923_v4  ;;  %v930_v9 = vunpack.i.h.bf16 %v928_v1  ;;  %v929_v11 = vunpack.i.l.bf16 %v928_v1 }
 0x189   :  { %409 = vmatpush1.bf16.msra.mxu0 %v396_v5 }
 0x18a   :  { %410 = vmatprep.subr.bf16.mxu0 %v1046_v0  ;;  %v222_v14 = vsel %vm220_vm7, %v924_v8, %v925_v7  ;;  %v198_v29 = vsel %vm197_vm8, %v929_v11, %v930_v9 }
 0x18b   :  { %v938_v12 = vpop.permute.xlu1 %937  ;;  %v933_v15 = vpop.permute.xlu0 %932  ;;  %v395_v16 = vpack.c.bf16 %v222_v14, %v221_v13 }
 0x18c   :  { %v935_v18 = vunpack.i.h.bf16 %v933_v15  ;;  %v934_v25 = vunpack.i.l.bf16 %v933_v15  ;;  %v940_v26 = vunpack.i.h.bf16 %v938_v12  ;;  %v939_v27 = vunpack.i.l.bf16 %v938_v12 }
 0x18d   :  { %411 = vmatpush1.bf16.msra.mxu0 %v395_v16 }
 0x18e   :  { %412 = vmatprep.subr.bf16.mxu0 %v1046_v0  ;;  %v199_v30 = vsel %vm197_vm8, %v934_v25, %v935_v18  ;;  %v162_v39 = vsel %vm161_vm9, %v939_v27, %v940_v26 }
 0x18f   :  { %v948_v31 = vpop.permute.xlu1 %947  ;;  %v943_v32 = vpop.permute.xlu0 %942  ;;  %v394_v33 = vpack.c.bf16 %v199_v30, %v198_v29 }
 0x190   :  { %v945_v34 = vunpack.i.h.bf16 %v943_v32  ;;  %v944_v35 = vunpack.i.l.bf16 %v943_v32  ;;  %v950_v37 = vunpack.i.h.bf16 %v948_v31  ;;  %v949_v38 = vunpack.i.l.bf16 %v948_v31 }
 0x191   :  { %413 = vmatpush1.bf16.msra.mxu0 %v394_v33 }
 0x192   :  { %414 = vmatprep.subr.bf16.mxu0 %v1046_v0  ;;  %v163_v40 = vsel %vm161_vm9, %v944_v35, %v945_v34  ;;  %v126_v45 = vsel %vm125_vm10, %v949_v38, %v950_v37 }
 0x193   :  { %v953_v41 = vpop.permute.xlu0 %952  ;;  %v393_v42 = vpack.c.bf16 %v163_v40, %v162_v39  ;;  %v958_v48 = vpop.permute.xlu1 %957 }
 0x194   :  { %v955_v43 = vunpack.i.h.bf16 %v953_v41  ;;  %v954_v44 = vunpack.i.l.bf16 %v953_v41  ;;  %v960_v55 = vunpack.i.h.bf16 %v958_v48  ;;  %v959_v56 = vunpack.i.l.bf16 %v958_v48 }
 0x195   :  { %415 = vmatpush1.bf16.msra.mxu0 %v393_v42 }
 0x196   :  { %416 = vmatprep.subr.bf16.mxu0 %v1046_v0  ;;  %v127_v46 = vsel %vm125_vm10, %v954_v44, %v955_v43  ;;  %v365_v28 = vsel %vm364_vm11, %v959_v56, %v960_v55 }
 0x197   :  { %v963_v49 = vpop.permute.xlu0 %962  ;;  %v392_v50 = vpack.c.bf16 %v127_v46, %v126_v45 }
 0x198   :  { %v965_v52 = vunpack.i.h.bf16 %v963_v49  ;;  %v964_v53 = vunpack.i.l.bf16 %v963_v49 }
 0x199   :  { %417 = vmatpush1.bf16.msra.mxu0 %v392_v50 }
 0x19a   :  { %418 = vmatprep.subr.bf16.mxu0 %v1046_v0  ;;  %v366_v58 = vsel %vm364_vm11, %v964_v53, %v965_v52 }
 0x19b   :  { %v399_v60 = vpack.c.bf16 %v366_v58, %v365_v28 }
 0x19d   :  { %419 = vmatpush1.bf16.msra.mxu0 %v391_v57 }
 0x19e   :  { %434 = vmatprep.subr.bf16.mxu0 %v1046_v0 }
 0x1a0   :  { %v450_v62 = vpop.permute.xlu1 %449 }
 0x1a1   :  { %435 = vmatpush2.bf16.msra.mxu0 %v399_v60 }
 0x1a4   :  { %437 = vmatmul.mubr.bf16.vlgmr.msra.gmra.mxu0 %v371_v61  ;;  %v455_v63 = vpop.permute.xlu0 %454  ;;  %v464_v3 = vpop.permute.xlu1 %463 }
 0x1a8   :  { %v469_v11 = vpop.permute.xlu0 %468 }
 0x264   :  { %v438_v1 = vpop.f32.mrf.mxu0 }
 0x265   :  { %v457_v2 = vmul.f32 %v450_v62, %v438_v1 }
 0x266   :  { %v440_v4 = vpop.f32.mrf.mxu0 }
 0x267   :  { %v471_v5 = vadd.f32 %v464_v3, %v457_v2 }
 0x268   :  { %v441_v7 = vpop.f32.mrf.mxu0 }
 0x269   :  { %v473_v8 = vmax.f32 %v471_v5, 0.0  ;;  %v458_v9 = vmul.f32 %v455_v63, %v441_v7 }
 0x26a   :  { %v443_v12 = vpop.f32.mrf.mxu0 }
 0x26b   :  { %v472_v13 = vadd.f32 %v469_v11, %v458_v9  ;;  %481 = vrot.lane.b32.xlu1 %v473_v8, %s1048_s15 }
 0x26d   :  { %v474_v14 = vmax.f32 %v472_v13, 0.0  ;;  %v476_v13 = vld [vmem:[%s1395_s7 + $0x8] sm:$0xff] }
 0x26f   :  { %709 = vrot.lane.b32.xlu1 %v1141_v17, %s1049_s0  ;;  %483 = vrot.lane.b32.xlu0 %v474_v14, %s1048_s15  ;;  %v478_v14 = vld [vmem:[%s1395_s7 + $0x18] sm:$0xff] }
 0x273   :  { %639 = vrot.lane.b32.xlu1 %v1154_v20, %s1051_s23  ;;  %674 = vrot.lane.b32.xlu0 %v1149_v19, %s1050_s22 }
 0x277   :  { %547 = vrot.lane.b32.xlu1 %v1168_v22, %s1053_s29  ;;  %582 = vrot.lane.b32.xlu0 %v1163_v21, %s1052_s28 }
 0x27b   :  { %744 = vrot.lane.b32.xlu1 %v1182_v24, %s1055_s13  ;;  %512 = vrot.lane.b32.xlu0 %v1177_v23, %s1054_s12 }
 0x2dd   :  { %v482_v17 = vpop.permute.xlu1 %481 }
 0x2de   :  { %487 = vst.msk [vmem:[#allocation2] sm:$0xff] %vm79_vm1, %v482_v17 }
 0x2df   :  { %488 = vst.msk [vmem:[#allocation2 + $0x8] sm:$0xff] %vm81_vm2, %v482_v17 }
 0x2e1   :  { %v484_v20 = vpop.permute.xlu0 %483  ;;  %v710_v19 = vpop.permute.xlu1 %709 }
 0x2e2   :  { %489 = vst.msk [vmem:[#allocation2 + $0x10] sm:$0xff] %vm79_vm1, %v484_v20 }
 0x2e3   :  { %490 = vst.msk [vmem:[#allocation2 + $0x18] sm:$0xff] %vm81_vm2, %v484_v20  ;;  %v770_v20 = vpack.c.bf16 %v478_v14, %v476_v13 }
 0x2e5   :  { %v699_v22 = vld [vmem:[#allocation2] sm:$0xff]  ;;  %v675_v21 = vpop.permute.xlu0 %674  ;;  %v640_v23 = vpop.permute.xlu1 %639  ;;  %865 = vmatprep.mubr.msk.bf16.mxu1 %vm400_vm3, %v770_v20 }
 0x2e6   :  { %v700_v15 = vld [vmem:[#allocation2 + $0x8] sm:$0xff]  ;;  %v712_v16 = vmul.f32 %v710_v19, %v699_v22  ;;  %v677_v24 = vmul.f32 %v699_v22, %v675_v21  ;;  %v642_v30 = vmul.f32 %v699_v22, %v640_v23  ;;  %v1321_v41 = vmul.f32 %v1280_v47, %v699_v22 }
 0x2e7   :  { %v713_v18 = vmul.f32 %v710_v19, %v700_v15  ;;  %v678_v25 = vmul.f32 %v700_v15, %v675_v21  ;;  %v643_v31 = vmul.f32 %v700_v15, %v640_v23  ;;  %v981_v45 = vpack.i.bf16 %v700_v15, %v699_v22 }
 0x2e9   :  { %v966_v26 = vpack.i.bf16 %v713_v18, %v712_v16  ;;  %v631_v27 = vld [vmem:[#allocation2 + $0x10] sm:$0xff]  ;;  %v971_v32 = vpack.i.bf16 %v678_v25, %v677_v24  ;;  %v976_v39 = vpack.i.bf16 %v643_v31, %v642_v30  ;;  %v583_v40 = vpop.permute.xlu0 %582  ;;  %v548_v51 = vpop.permute.xlu1 %547 }
 0x2ea   :  { %v632_v29 = vld [vmem:[#allocation2 + $0x18] sm:$0xff]  ;;  %v714_v33 = vmul.f32 %v710_v19, %v631_v27  ;;  %v679_v35 = vmul.f32 %v675_v21, %v631_v27  ;;  %v1324_v42 = vmul.f32 %v1280_v47, %v631_v27  ;;  %v644_v43 = vmul.f32 %v640_v23, %v631_v27 }
 0x2eb   :  { %967 = vrot.lane.b32.xlu0 %v966_v26, %s1056_s14  ;;  %v715_v34 = vmul.f32 %v710_v19, %v632_v29  ;;  %v680_v37 = vmul.f32 %v675_v21, %v632_v29  ;;  %v645_v44 = vmul.f32 %v640_v23, %v632_v29  ;;  %v585_v46 = vmul.f32 %v699_v22, %v583_v40 }
 0x2ec   :  { %v586_v48 = vmul.f32 %v700_v15, %v583_v40  ;;  %v789_v50 = vpack.c.bf16 %v1324_v42, %v1321_v41  ;;  %v550_v52 = vmul.f32 %v699_v22, %v548_v51  ;;  %v551_v53 = vmul.f32 %v700_v15, %v548_v51 }
 0x2ed   :  { %v986_v38 = vpack.i.bf16 %v715_v34, %v714_v33  ;;  %v991_v49 = vpack.i.bf16 %v680_v37, %v679_v35  ;;  %v996_v54 = vpack.i.bf16 %v645_v44, %v644_v43  ;;  %v513_v47 = vpop.permute.xlu0 %512  ;;  %v587_v56 = vmul.f32 %v631_v27, %v583_v40  ;;  %v745_v60 = vpop.permute.xlu1 %744 }
 0x2ee   :  { %v1006_v55 = vpack.i.bf16 %v586_v48, %v585_v46  ;;  %v588_v57 = vmul.f32 %v632_v29, %v583_v40  ;;  %v515_v58 = vmul.f32 %v699_v22, %v513_v47  ;;  %v516_v59 = vmul.f32 %v700_v15, %v513_v47 }
 0x2ef   :  { %972 = vrot.lane.b32.xlu0 %v971_v32, %s1057_s2  ;;  %987 = vrot.lane.b32.xlu1 %v986_v38, %s1056_s14  ;;  %v1001_v36 = vpack.i.bf16 %v632_v29, %v631_v27  ;;  %v1011_v28 = vpack.i.bf16 %v551_v53, %v550_v52  ;;  %v552_v61 = vmul.f32 %v631_v27, %v548_v51 }
 0x2f0   :  { %v553_v62 = vmul.f32 %v632_v29, %v548_v51  ;;  %v747_v63 = vmul.f32 %v745_v60, %v699_v22  ;;  %v748_v1 = vmul.f32 %v745_v60, %v700_v15  ;;  %v1021_v2 = vpack.i.bf16 %v588_v57, %v587_v56 }
 0x2f1   :  { %v1016_v3 = vpack.i.bf16 %v516_v59, %v515_v58  ;;  %v517_v4 = vmul.f32 %v631_v27, %v513_v47  ;;  %v518_v5 = vmul.f32 %v632_v29, %v513_v47  ;;  %v749_v9 = vmul.f32 %v745_v60, %v631_v27 }
 0x2f2   :  { %v1026_v7 = vpack.i.bf16 %v553_v62, %v552_v61  ;;  %v1036_v8 = vpack.i.bf16 %v748_v1, %v747_v63  ;;  %v750_v11 = vmul.f32 %v745_v60, %v632_v29 }
 0x2f3   :  { %977 = vrot.lane.b32.xlu0 %v976_v39, %s1058_s3  ;;  %992 = vrot.lane.b32.xlu1 %v991_v49, %s1057_s2  ;;  %v1031_v12 = vpack.i.bf16 %v518_v5, %v517_v4 }
 0x2f4   :  { %v1041_v17 = vpack.i.bf16 %v750_v11, %v749_v9 }
 0x2f7   :  { %982 = vrot.lane.b32.xlu0 %v981_v45, %s1059_s16  ;;  %997 = vrot.lane.b32.xlu1 %v996_v54, %s1058_s3 }
 0x2fb   :  { %1007 = vrot.lane.b32.xlu0 %v1006_v55, %s1060_s17  ;;  %1002 = vrot.lane.b32.xlu1 %v1001_v36, %s1059_s16 }
 0x2ff   :  { %1012 = vrot.lane.b32.xlu0 %v1011_v28, %s1061_s18  ;;  %1022 = vrot.lane.b32.xlu1 %v1021_v2, %s1060_s17 }
 0x303   :  { %1017 = vrot.lane.b32.xlu0 %v1016_v3, %s1062_s19  ;;  %1027 = vrot.lane.b32.xlu1 %v1026_v7, %s1061_s18 }
 0x307   :  { %1037 = vrot.lane.b32.xlu0 %v1036_v8, %s1063_s20  ;;  %1032 = vrot.lane.b32.xlu1 %v1031_v12, %s1062_s19 }
 0x30b   :  { %1042 = vrot.lane.b32.xlu1 %v1041_v17, %s1063_s20 }
 0x35d   :  { %v968_v19 = vpop.permute.xlu0 %967 }
 0x35e   :  { %v970_v15 = vunpack.i.h.bf16 %v968_v19  ;;  %v969_v21 = vunpack.i.l.bf16 %v968_v19 }
 0x360   :  { %v728_v27 = vsel %vm328_vm4, %v969_v21, %v970_v15 }
 0x361   :  { %v973_v22 = vpop.permute.xlu0 %972  ;;  %v988_v16 = vpop.permute.xlu1 %987 }
 0x362   :  { %v990_v24 = vunpack.i.h.bf16 %v988_v16  ;;  %v989_v25 = vunpack.i.l.bf16 %v988_v16  ;;  %v975_v26 = vunpack.i.h.bf16 %v973_v22  ;;  %v974_v23 = vunpack.i.l.bf16 %v973_v22 }
 0x364   :  { %v729_v29 = vsel %vm328_vm4, %v989_v25, %v990_v24  ;;  %v693_v38 = vsel %vm292_vm5, %v974_v23, %v975_v26 }
 0x365   :  { %v978_v18 = vpop.permute.xlu0 %977  ;;  %v993_v30 = vpop.permute.xlu1 %992  ;;  %v796_v31 = vpack.c.bf16 %v729_v29, %v728_v27 }
 0x366   :  { %v995_v33 = vunpack.i.h.bf16 %v993_v30  ;;  %v994_v34 = vunpack.i.l.bf16 %v993_v30  ;;  %v980_v35 = vunpack.i.h.bf16 %v978_v18  ;;  %v979_v37 = vunpack.i.l.bf16 %v978_v18  ;;  %v475_v30 = vld [vmem:[%s1395_s7] sm:$0xff] }
 0x367   :  { %802 = vmatpush1.bf16.msra.mxu1 %v796_v31  ;;  %v477_v31 = vld [vmem:[%s1395_s7 + $0x10] sm:$0xff] }
 0x368   :  { %803 = vmatprep.subr.bf16.mxu1 %v1046_v0  ;;  %v694_v39 = vsel %vm292_vm5, %v994_v34, %v995_v33  ;;  %v658_v51 = vsel %vm256_vm6, %v979_v37, %v980_v35  ;;  %v769_v34 = vpack.c.bf16 %v477_v31, %v475_v30 }
 0x369   :  { %v983_v32 = vpop.permute.xlu0 %982  ;;  %v998_v40 = vpop.permute.xlu1 %997  ;;  %v795_v43 = vpack.c.bf16 %v694_v39, %v693_v38 }
 0x36a   :  { %v1000_v45 = vunpack.i.h.bf16 %v998_v40  ;;  %v999_v46 = vunpack.i.l.bf16 %v998_v40  ;;  %v985_v48 = vunpack.i.h.bf16 %v983_v32  ;;  %v984_v49 = vunpack.i.l.bf16 %v983_v32 }
 0x36b   :  { %804 = vmatpush1.bf16.msra.mxu1 %v795_v43 }
 0x36c   :  { %805 = vmatprep.subr.bf16.mxu1 %v1046_v0  ;;  %v659_v52 = vsel %vm256_vm6, %v999_v46, %v1000_v45  ;;  %v623_v59 = vsel %vm220_vm7, %v984_v49, %v985_v48 }
 0x36d   :  { %v1008_v44 = vpop.permute.xlu0 %1007  ;;  %v1003_v53 = vpop.permute.xlu1 %1002  ;;  %v794_v54 = vpack.c.bf16 %v659_v52, %v658_v51 }
 0x36e   :  { %v1005_v55 = vunpack.i.h.bf16 %v1003_v53  ;;  %v1004_v47 = vunpack.i.l.bf16 %v1003_v53  ;;  %v1010_v57 = vunpack.i.h.bf16 %v1008_v44  ;;  %v1009_v58 = vunpack.i.l.bf16 %v1008_v44 }
 0x36f   :  { %806 = vmatpush1.bf16.msra.mxu1 %v794_v54 }
 0x370   :  { %807 = vmatprep.subr.bf16.mxu1 %v1046_v0  ;;  %v624_v36 = vsel %vm220_vm7, %v1004_v47, %v1005_v55  ;;  %v601_v2 = vsel %vm197_vm8, %v1009_v58, %v1010_v57 }
 0x371   :  { %v1013_v56 = vpop.permute.xlu0 %1012  ;;  %v1023_v28 = vpop.permute.xlu1 %1022  ;;  %v793_v60 = vpack.c.bf16 %v624_v36, %v623_v59 }
 0x372   :  { %v1025_v61 = vunpack.i.h.bf16 %v1023_v28  ;;  %v1024_v62 = vunpack.i.l.bf16 %v1023_v28  ;;  %v1015_v63 = vunpack.i.h.bf16 %v1013_v56  ;;  %v1014_v1 = vunpack.i.l.bf16 %v1013_v56 }
 0x373   :  { %808 = vmatpush1.bf16.msra.mxu1 %v793_v60 }
 0x374   :  { %809 = vmatprep.subr.bf16.mxu1 %v1046_v0  ;;  %v602_v3 = vsel %vm197_vm8, %v1024_v62, %v1025_v61  ;;  %v566_v13 = vsel %vm161_vm9, %v1014_v1, %v1015_v63 }
 0x375   :  { %v1028_v4 = vpop.permute.xlu1 %1027  ;;  %v1018_v5 = vpop.permute.xlu0 %1017  ;;  %v792_v7 = vpack.c.bf16 %v602_v3, %v601_v2 }
 0x376   :  { %v1030_v8 = vunpack.i.h.bf16 %v1028_v4  ;;  %v1029_v9 = vunpack.i.l.bf16 %v1028_v4  ;;  %v1020_v11 = vunpack.i.h.bf16 %v1018_v5  ;;  %v1019_v12 = vunpack.i.l.bf16 %v1018_v5 }
 0x377   :  { %810 = vmatpush1.bf16.msra.mxu1 %v792_v7 }
 0x378   :  { %811 = vmatprep.subr.bf16.mxu1 %v1046_v0  ;;  %v567_v14 = vsel %vm161_vm9, %v1029_v9, %v1030_v8  ;;  %v531_v15 = vsel %vm125_vm10, %v1019_v12, %v1020_v11 }
 0x379   :  { %v1033_v17 = vpop.permute.xlu1 %1032  ;;  %v791_v20 = vpack.c.bf16 %v567_v14, %v566_v13  ;;  %v1038_v16 = vpop.permute.xlu0 %1037 }
 0x37a   :  { %v1035_v19 = vunpack.i.h.bf16 %v1033_v17  ;;  %v1034_v22 = vunpack.i.l.bf16 %v1033_v17  ;;  %v1040_v23 = vunpack.i.h.bf16 %v1038_v16  ;;  %v1039_v27 = vunpack.i.l.bf16 %v1038_v16 }
 0x37b   :  { %812 = vmatpush1.bf16.msra.mxu1 %v791_v20 }
 0x37c   :  { %813 = vmatprep.subr.bf16.mxu1 %v1046_v0  ;;  %v532_v21 = vsel %vm125_vm10, %v1034_v22, %v1035_v19  ;;  %v763_v32 = vsel %vm364_vm11, %v1039_v27, %v1040_v23 }
 0x37d   :  { %v1043_v18 = vpop.permute.xlu1 %1042  ;;  %v790_v24 = vpack.c.bf16 %v532_v21, %v531_v15 }
 0x37e   :  { %v1045_v25 = vunpack.i.h.bf16 %v1043_v18  ;;  %v1044_v26 = vunpack.i.l.bf16 %v1043_v18 }
 0x37f   :  { %814 = vmatpush1.bf16.msra.mxu1 %v790_v24 }
 0x380   :  { %815 = vmatprep.subr.bf16.mxu1 %v1046_v0  ;;  %v764_v29 = vsel %vm364_vm11, %v1044_v26, %v1045_v25 }
 0x381   :  { %v797_v33 = vpack.c.bf16 %v764_v29, %v763_v32 }
 0x383   :  { %816 = vmatpush1.bf16.msra.mxu1 %v789_v50 }
 0x384   :  { %831 = vmatprep.subr.bf16.mxu1 %v1046_v0 }
 0x387   :  { %832 = vmatpush2.bf16.msra.mxu1 %v797_v33 }
 0x38a   :  { %834 = vmatmul.mubr.bf16.vlgmr.msra.gmra.mxu1 %v769_v34 }
 0x44a   :  { %v835_v35 = vpop.f32.mrf.mxu1 }
 0x44b   :  { %v836_v41 = vadd.f32 %v835_v35, %v1128_v6 }
 0x44c   :  { %v837_v42 = vpop.f32.mrf.mxu1 }
 0x44d   :  { %842 = vst [vmem:[%s1396_s8] sm:$0xff] %v836_v41 }
 0x44e   :  { %v838_v50 = vpop.f32.mrf.mxu1 }
 0x44f   :  { %v839_v37 = vadd.f32 %v838_v50, %v1134_v10 }
 0x450   :  { %v840_v38 = vpop.f32.mrf.mxu1 }
 0x451   :  { %843 = vst [vmem:[%s1396_s8 + $0x8] sm:$0xff] %v839_v37 }

// kernel: unet2d_forward.41
= control target key start
LH: loop header
LB: loop body
LE: loop exit
PB: predicated region body
PF: predicated region fallthrough
CT: control target
= control target key end

     0   :  { %v240_v0 = vmov 0   ;;  %vm148_vm0 = vcmask 523264   ;;  %vm208_vm1 = vcmask 261120   ;;  %s364_s3 = inlined_call_operand.vmem [shape: f32[64,1], index: 3, kind: input, shape index: {}]   ;;  %s365_s2 = inlined_call_operand.vmem [shape: f32[64,1], index: 2, kind: input, shape index: {}]   ;;  %s366_s1 = inlined_call_operand.vmem [shape: f32[32,64], index: 1, kind: input, shape index: {}]   ;;  %s367_s0 = inlined_call_operand.vmem [shape: f32[64,32], index: 0, kind: input, shape index: {}]   ;;  %s368_s4 = inlined_call_operand.vmem [shape: f32[32,32], index: 4, kind: output, shape index: {}]  }
   0x1   :  { %239 = vset.pattern.permute.xlu1 %v240_v0  ;;  %238 = vset.pattern.permute.xlu0 %v240_v0  ;;  %v88_v1 = vld [vmem:[%s364_s3 + $0x30] sm:$0xff]  ;;  %v89_v3 = vld [vmem:[%s364_s3 + $0x38] sm:$0xff]  ;;  %v31_v5 = vld [vmem:[%s365_s2 + $0x28] sm:$0xff] }
   0x2   :  { %v32_v2 = vld [vmem:[%s365_s2 + $0x30] sm:$0xff]  ;;  %122 = vperm.xlu1 %239, %v88_v1   ;;  %v33_v4 = vld [vmem:[%s365_s2 + $0x38] sm:$0xff]  ;;  %v30_v6 = vld [vmem:[%s365_s2 + $0x20] sm:$0xff] }
   0x3   :  { %66 = vperm.xlu0 %238, %v32_v2   ;;  %v87_v7 = vld [vmem:[%s364_s3 + $0x28] sm:$0xff]  ;;  %v86_v8 = vld [vmem:[%s364_s3 + $0x20] sm:$0xff]  ;;  %v29_v9 = vld [vmem:[%s365_s2 + $0x18] sm:$0xff] }
   0x4   :  { %v28_v10 = vld [vmem:[%s365_s2 + $0x10] sm:$0xff]  ;;  %v85_v11 = vld [vmem:[%s364_s3 + $0x18] sm:$0xff]  ;;  %v27_v13 = vld [vmem:[%s365_s2 + $0x8] sm:$0xff] }
   0x5   :  { %v84_v12 = vld [vmem:[%s364_s3 + $0x10] sm:$0xff]  ;;  %v26_v14 = vld [vmem:[%s365_s2] sm:$0xff]  ;;  %v83_v15 = vld [vmem:[%s364_s3 + $0x8] sm:$0xff] }
   0x6   :  { %127 = vperm.xlu1 %239, %v89_v3   ;;  %v82_v16 = vld [vmem:[%s364_s3] sm:$0xff]  ;;  %v139_v18 = vld [vmem:[%s366_s1 + $0x8] sm:$0xff]  ;;  %v24_v22 = vld [vmem:[%s367_s0 + $0x30] sm:$0xff] }
   0x7   :  { %71 = vperm.xlu0 %238, %v33_v4   ;;  %v138_v17 = vld [vmem:[%s366_s1] sm:$0xff]  ;;  %v25_v23 = vld [vmem:[%s367_s0 + $0x38] sm:$0xff]  ;;  %v23_v31 = vld [vmem:[%s367_s0 + $0x28] sm:$0xff] }
   0x8   :  { %v142_v19 = vpack.c.bf16 %v139_v18, %v138_v17  ;;  %v22_v33 = vld [vmem:[%s367_s0 + $0x20] sm:$0xff]  ;;  %v21_v43 = vld [vmem:[%s367_s0 + $0x18] sm:$0xff]  ;;  %v20_v45 = vld [vmem:[%s367_s0 + $0x10] sm:$0xff] }
   0x9   :  { %v19_v54 = vld [vmem:[%s367_s0 + $0x8] sm:$0xff]  ;;  %v18_v56 = vld [vmem:[%s367_s0] sm:$0xff]  ;;  %v140_v63 = vld [vmem:[%s366_s1 + $0x10] sm:$0xff] }
   0xa   :  { %61 = vperm.xlu1 %239, %v31_v5   ;;  %233 = vmatprep.mubr.msk.bf16.mxu0 %vm148_vm0, %v142_v19  ;;  %v141_v0 = vld [vmem:[%s366_s1 + $0x18] sm:$0xff] }
   0xb   :  { %56 = vperm.xlu0 %238, %v30_v6   ;;  %v143_v2 = vpack.c.bf16 %v141_v0, %v140_v63 }
   0xe   :  { %117 = vperm.xlu1 %239, %v87_v7  }
   0xf   :  { %112 = vperm.xlu0 %238, %v86_v8  }
  0x12   :  { %51 = vperm.xlu1 %239, %v29_v9  }
  0x13   :  { %46 = vperm.xlu0 %238, %v28_v10  }
  0x16   :  { %107 = vperm.xlu1 %239, %v85_v11  }
  0x17   :  { %102 = vperm.xlu0 %238, %v84_v12  }
  0x1a   :  { %41 = vperm.xlu1 %239, %v27_v13  }
  0x1b   :  { %36 = vperm.xlu0 %238, %v26_v14  }
  0x1e   :  { %97 = vperm.xlu1 %239, %v83_v15  }
  0x1f   :  { %92 = vperm.xlu0 %238, %v82_v16  }
  0x7d   :  { %v123_v20 = vpop.permute.xlu1 %122 }
  0x7e   :  { %v67_v21 = vpop.permute.xlu0 %66 }
  0x7f   :  { %v80_v24 = vmul.f32 %v67_v21, %v24_v22 }
  0x81   :  { %v128_v25 = vpop.permute.xlu1 %127  ;;  %v136_v28 = vadd.f32 %v123_v20, %v80_v24 }
  0x82   :  { %v72_v26 = vpop.permute.xlu0 %71 }
  0x83   :  { %v81_v27 = vmul.f32 %v72_v26, %v25_v23 }
  0x85   :  { %v137_v29 = vadd.f32 %v128_v25, %v81_v27  ;;  %v62_v30 = vpop.permute.xlu1 %61 }
  0x86   :  { %v57_v32 = vpop.permute.xlu0 %56  ;;  %v79_v35 = vmul.f32 %v62_v30, %v23_v31 }
  0x87   :  { %v147_v34 = vpack.c.bf16 %v137_v29, %v136_v28  ;;  %v78_v36 = vmul.f32 %v57_v32, %v22_v33 }
  0x89   :  { %225 = vmatprep.subr.bf16.mxu0 %v147_v34  ;;  %v118_v37 = vpop.permute.xlu1 %117 }
  0x8a   :  { %v113_v38 = vpop.permute.xlu0 %112  ;;  %226 = vmatpush3.bf16.msra.mxu0 %v147_v34  ;;  %v135_v39 = vadd.f32 %v118_v37, %v79_v35 }
  0x8b   :  { %v134_v40 = vadd.f32 %v113_v38, %v78_v36 }
  0x8d   :  { %v146_v41 = vpack.c.bf16 %v135_v39, %v134_v40  ;;  %v52_v42 = vpop.permute.xlu1 %51 }
  0x8e   :  { %v47_v44 = vpop.permute.xlu0 %46  ;;  %v77_v46 = vmul.f32 %v52_v42, %v21_v43 }
  0x8f   :  { %227 = vmatprep.subr.bf16.mxu0 %v146_v41  ;;  %v76_v47 = vmul.f32 %v47_v44, %v20_v45 }
  0x90   :  { %228 = vmatpush3.bf16.msra.mxu0 %v146_v41 }
  0x91   :  { %v108_v48 = vpop.permute.xlu1 %107 }
  0x92   :  { %v103_v49 = vpop.permute.xlu0 %102  ;;  %v133_v50 = vadd.f32 %v108_v48, %v77_v46 }
  0x93   :  { %v132_v51 = vadd.f32 %v103_v49, %v76_v47 }
  0x95   :  { %v145_v52 = vpack.c.bf16 %v133_v50, %v132_v51  ;;  %v42_v53 = vpop.permute.xlu1 %41 }
  0x96   :  { %v37_v55 = vpop.permute.xlu0 %36  ;;  %v75_v57 = vmul.f32 %v42_v53, %v19_v54 }
  0x97   :  { %229 = vmatprep.subr.bf16.mxu0 %v145_v52  ;;  %v74_v58 = vmul.f32 %v37_v55, %v18_v56 }
  0x98   :  { %230 = vmatpush3.bf16.msra.mxu0 %v145_v52 }
  0x99   :  { %v98_v59 = vpop.permute.xlu1 %97 }
  0x9a   :  { %v93_v60 = vpop.permute.xlu0 %92  ;;  %v131_v61 = vadd.f32 %v98_v59, %v75_v57 }
  0x9b   :  { %v130_v62 = vadd.f32 %v93_v60, %v74_v58 }
  0x9d   :  { %v144_v1 = vpack.c.bf16 %v131_v61, %v130_v62 }
  0x9f   :  { %231 = vmatprep.subr.bf16.mxu0 %v144_v1 }
  0xa0   :  { %232 = vmatpush3.bf16.msra.mxu0 %v144_v1 }
  0xa3   :  { %234 = vmatmul.mubr.msk.bf16.vlgmr.msra.gmra.mxu0 %vm148_vm0, %v143_v2 }
 0x163   :  { %v235_v3 = vpop.f32.mrf.mxu0 }
 0x164   :  { %v206_v4 = vmax.f32 %v235_v3, 0.0 }
 0x165   :  { %v189_v5 = vpop.f32.mrf.mxu0 }
 0x166   :  { %211 = vst.msk [vmem:[%s368_s4 + $0x10] sm:$0xff] %vm208_vm1, %v206_v4  ;;  %v204_v6 = vmax.f32 %v189_v5, 0.0 }
 0x167   :  { %v236_v7 = vpop.f32.mrf.mxu0 }
 0x168   :  { %209 = vst.msk [vmem:[%s368_s4] sm:$0xff] %vm208_vm1, %v204_v6  ;;  %v207_v8 = vmax.f32 %v236_v7, 0.0 }
 0x169   :  { %v192_v9 = vpop.f32.mrf.mxu0 }
 0x16a   :  { %212 = vst.msk [vmem:[%s368_s4 + $0x18] sm:$0xff] %vm208_vm1, %v207_v8  ;;  %v205_v10 = vmax.f32 %v192_v9, 0.0 }
 0x16c   :  { %210 = vst.msk [vmem:[%s368_s4 + $0x8] sm:$0xff] %vm208_vm1, %v205_v10 }

// kernel: unet2d_forward.45
= control target key start
LH: loop header
LB: loop body
LE: loop exit
PB: predicated region body
PF: predicated region fallthrough
CT: control target
= control target key end

     0   :  { %v419_v0 = vmov 0   ;;  %vm351_vm0 = vcmask 64512   ;;  %s645_s3 = inlined_call_operand.vmem [shape: f32[128,1], index: 3, kind: input, shape index: {}]   ;;  %s646_s2 = inlined_call_operand.vmem [shape: f32[128,1], index: 2, kind: input, shape index: {}]   ;;  %s647_s1 = inlined_call_operand.vmem [shape: f32[64,128], index: 1, kind: input, shape index: {}]   ;;  %s648_s0 = inlined_call_operand.vmem [shape: f32[128,8], index: 0, kind: input, shape index: {}]   ;;  %s649_s4 = inlined_call_operand.vmem [shape: f32[64,8], index: 4, kind: output, shape index: {}]  }
   0x1   :  { %418 = vset.pattern.permute.xlu1 %v419_v0  ;;  %417 = vset.pattern.permute.xlu0 %v419_v0  ;;  %v160_v1 = vld [vmem:[%s645_s3 + $0x70] sm:$0xff]  ;;  %v161_v3 = vld [vmem:[%s645_s3 + $0x78] sm:$0xff]  ;;  %v47_v5 = vld [vmem:[%s646_s2 + $0x68] sm:$0xff] }
   0x2   :  { %v48_v2 = vld [vmem:[%s646_s2 + $0x70] sm:$0xff]  ;;  %234 = vperm.xlu1 %418, %v160_v1   ;;  %v49_v4 = vld [vmem:[%s646_s2 + $0x78] sm:$0xff]  ;;  %v46_v6 = vld [vmem:[%s646_s2 + $0x60] sm:$0xff] }
   0x3   :  { %122 = vperm.xlu0 %417, %v48_v2   ;;  %v159_v7 = vld [vmem:[%s645_s3 + $0x68] sm:$0xff]  ;;  %v158_v8 = vld [vmem:[%s645_s3 + $0x60] sm:$0xff]  ;;  %v45_v9 = vld [vmem:[%s646_s2 + $0x58] sm:$0xff] }
   0x4   :  { %v44_v10 = vld [vmem:[%s646_s2 + $0x50] sm:$0xff]  ;;  %v157_v11 = vld [vmem:[%s645_s3 + $0x58] sm:$0xff]  ;;  %v43_v13 = vld [vmem:[%s646_s2 + $0x48] sm:$0xff] }
   0x5   :  { %v156_v12 = vld [vmem:[%s645_s3 + $0x50] sm:$0xff]  ;;  %v42_v14 = vld [vmem:[%s646_s2 + $0x40] sm:$0xff]  ;;  %v155_v15 = vld [vmem:[%s645_s3 + $0x48] sm:$0xff] }
   0x6   :  { %239 = vperm.xlu1 %418, %v161_v3   ;;  %v154_v16 = vld [vmem:[%s645_s3 + $0x40] sm:$0xff]  ;;  %v41_v17 = vld [vmem:[%s646_s2 + $0x38] sm:$0xff]  ;;  %v40_v18 = vld [vmem:[%s646_s2 + $0x30] sm:$0xff] }
   0x7   :  { %127 = vperm.xlu0 %417, %v49_v4   ;;  %v153_v19 = vld [vmem:[%s645_s3 + $0x38] sm:$0xff]  ;;  %v152_v20 = vld [vmem:[%s645_s3 + $0x30] sm:$0xff]  ;;  %v39_v21 = vld [vmem:[%s646_s2 + $0x28] sm:$0xff] }
   0x8   :  { %v38_v22 = vld [vmem:[%s646_s2 + $0x20] sm:$0xff]  ;;  %v151_v23 = vld [vmem:[%s645_s3 + $0x28] sm:$0xff]  ;;  %v37_v25 = vld [vmem:[%s646_s2 + $0x18] sm:$0xff] }
   0x9   :  { %v150_v24 = vld [vmem:[%s645_s3 + $0x20] sm:$0xff]  ;;  %v36_v26 = vld [vmem:[%s646_s2 + $0x10] sm:$0xff]  ;;  %v149_v27 = vld [vmem:[%s645_s3 + $0x18] sm:$0xff] }
   0xa   :  { %117 = vperm.xlu1 %418, %v47_v5   ;;  %v148_v28 = vld [vmem:[%s645_s3 + $0x10] sm:$0xff]  ;;  %v35_v29 = vld [vmem:[%s646_s2 + $0x8] sm:$0xff]  ;;  %v34_v30 = vld [vmem:[%s646_s2] sm:$0xff] }
   0xb   :  { %112 = vperm.xlu0 %417, %v46_v6   ;;  %v147_v31 = vld [vmem:[%s645_s3 + $0x8] sm:$0xff]  ;;  %v146_v32 = vld [vmem:[%s645_s3] sm:$0xff]  ;;  %v32_v41 = vld [vmem:[%s648_s0 + $0x70] sm:$0xff] }
   0xc   :  { %v258_v33 = vld [vmem:[%s647_s1] sm:$0xff]  ;;  %v259_v34 = vld [vmem:[%s647_s1 + $0x8] sm:$0xff]  ;;  %v33_v42 = vld [vmem:[%s648_s0 + $0x78] sm:$0xff] }
   0xd   :  { %v262_v35 = vld [vmem:[%s647_s1 + $0x20] sm:$0xff]  ;;  %v266_v36 = vpack.c.bf16 %v259_v34, %v258_v33  ;;  %v263_v37 = vld [vmem:[%s647_s1 + $0x28] sm:$0xff]  ;;  %v29_v62 = vld [vmem:[%s648_s0 + $0x58] sm:$0xff] }
   0xe   :  { %229 = vperm.xlu1 %418, %v159_v7   ;;  %v268_v38 = vpack.c.bf16 %v263_v37, %v262_v35  ;;  %v31_v50 = vld [vmem:[%s648_s0 + $0x68] sm:$0xff]  ;;  %v30_v52 = vld [vmem:[%s648_s0 + $0x60] sm:$0xff]  ;;  %v28_v0 = vld [vmem:[%s648_s0 + $0x50] sm:$0xff] }
   0xf   :  { %224 = vperm.xlu0 %417, %v158_v8   ;;  %392 = vmatprep.mubr.bf16.mxu0 %v266_v36  ;;  %v22_v33 = vld [vmem:[%s648_s0 + $0x20] sm:$0xff] }
  0x10   :  { %396 = vmatprep.mubr.bf16.mxu1 %v268_v38 }
  0x12   :  { %107 = vperm.xlu1 %418, %v45_v9   ;;  %v27_v9 = vld [vmem:[%s648_s0 + $0x48] sm:$0xff] }
  0x13   :  { %102 = vperm.xlu0 %417, %v44_v10  }
  0x16   :  { %219 = vperm.xlu1 %418, %v157_v11   ;;  %v26_v11 = vld [vmem:[%s648_s0 + $0x40] sm:$0xff] }
  0x17   :  { %214 = vperm.xlu0 %417, %v156_v12  }
  0x1a   :  { %97 = vperm.xlu1 %418, %v43_v13  }
  0x1b   :  { %92 = vperm.xlu0 %417, %v42_v14  }
  0x1e   :  { %209 = vperm.xlu1 %418, %v155_v15  }
  0x1f   :  { %204 = vperm.xlu0 %417, %v154_v16  }
  0x22   :  { %87 = vperm.xlu1 %418, %v41_v17  }
  0x23   :  { %82 = vperm.xlu0 %417, %v40_v18  }
  0x26   :  { %199 = vperm.xlu1 %418, %v153_v19  }
  0x27   :  { %194 = vperm.xlu0 %417, %v152_v20   ;;  %v25_v20 = vld [vmem:[%s648_s0 + $0x38] sm:$0xff] }
  0x2a   :  { %77 = vperm.xlu1 %418, %v39_v21  }
  0x2b   :  { %72 = vperm.xlu0 %417, %v38_v22   ;;  %v24_v22 = vld [vmem:[%s648_s0 + $0x30] sm:$0xff] }
  0x2e   :  { %189 = vperm.xlu1 %418, %v151_v23  }
  0x2f   :  { %184 = vperm.xlu0 %417, %v150_v24  }
  0x32   :  { %67 = vperm.xlu1 %418, %v37_v25  }
  0x33   :  { %62 = vperm.xlu0 %417, %v36_v26  }
  0x36   :  { %179 = vperm.xlu1 %418, %v149_v27  }
  0x37   :  { %174 = vperm.xlu0 %417, %v148_v28  }
  0x3a   :  { %57 = vperm.xlu1 %418, %v35_v29  }
  0x3b   :  { %52 = vperm.xlu0 %417, %v34_v30  }
  0x3e   :  { %169 = vperm.xlu1 %418, %v147_v31   ;;  %v23_v31 = vld [vmem:[%s648_s0 + $0x28] sm:$0xff] }
  0x3f   :  { %164 = vperm.xlu0 %417, %v146_v32  }
  0x7d   :  { %v235_v39 = vpop.permute.xlu1 %234 }
  0x7e   :  { %v123_v40 = vpop.permute.xlu0 %122 }
  0x7f   :  { %v144_v43 = vmul.f32 %v123_v40, %v32_v41 }
  0x81   :  { %v240_v44 = vpop.permute.xlu1 %239  ;;  %v256_v47 = vadd.f32 %v235_v39, %v144_v43 }
  0x82   :  { %v128_v45 = vpop.permute.xlu0 %127 }
  0x83   :  { %v145_v46 = vmul.f32 %v128_v45, %v33_v42  ;;  %v21_v42 = vld [vmem:[%s648_s0 + $0x18] sm:$0xff] }
  0x85   :  { %v257_v48 = vadd.f32 %v240_v44, %v145_v46  ;;  %v118_v49 = vpop.permute.xlu1 %117  ;;  %v20_v44 = vld [vmem:[%s648_s0 + $0x10] sm:$0xff] }
  0x86   :  { %v113_v51 = vpop.permute.xlu0 %112  ;;  %v143_v54 = vmul.f32 %v118_v49, %v31_v50 }
  0x87   :  { %v277_v53 = vpack.c.bf16 %v257_v48, %v256_v47  ;;  %v142_v55 = vmul.f32 %v113_v51, %v30_v52 }
  0x89   :  { %376 = vmatprep.subr.bf16.mxu0 %v277_v53  ;;  %400 = vmatprep.subr.bf16.mxu1 %v277_v53  ;;  %v230_v56 = vpop.permute.xlu1 %229 }
  0x8a   :  { %v225_v57 = vpop.permute.xlu0 %224  ;;  %377 = vmatpush3.bf16.msra.mxu0 %v277_v53  ;;  %408 = vmatpush3.bf16.msra.mxu1 %v277_v53  ;;  %v255_v58 = vadd.f32 %v230_v56, %v143_v54  ;;  %v19_v53 = vld [vmem:[%s648_s0 + $0x8] sm:$0xff] }
  0x8b   :  { %v254_v59 = vadd.f32 %v225_v57, %v142_v55  ;;  %v18_v55 = vld [vmem:[%s648_s0] sm:$0xff] }
  0x8d   :  { %v276_v60 = vpack.c.bf16 %v255_v58, %v254_v59  ;;  %v108_v61 = vpop.permute.xlu1 %107 }
  0x8e   :  { %v103_v63 = vpop.permute.xlu0 %102  ;;  %v141_v1 = vmul.f32 %v108_v61, %v29_v62  ;;  %v260_v62 = vld [vmem:[%s647_s1 + $0x10] sm:$0xff] }
  0x8f   :  { %378 = vmatprep.subr.bf16.mxu0 %v276_v60  ;;  %401 = vmatprep.subr.bf16.mxu1 %v276_v60  ;;  %v140_v2 = vmul.f32 %v103_v63, %v28_v0  ;;  %v261_v63 = vld [vmem:[%s647_s1 + $0x18] sm:$0xff]  ;;  %v264_v0 = vld [vmem:[%s647_s1 + $0x30] sm:$0xff] }
  0x90   :  { %379 = vmatpush3.bf16.msra.mxu0 %v276_v60  ;;  %409 = vmatpush3.bf16.msra.mxu1 %v276_v60 }
  0x91   :  { %v220_v3 = vpop.permute.xlu1 %219 }
  0x92   :  { %v215_v4 = vpop.permute.xlu0 %214  ;;  %v253_v5 = vadd.f32 %v220_v3, %v141_v1  ;;  %v265_v1 = vld [vmem:[%s647_s1 + $0x38] sm:$0xff]  ;;  %v267_v3 = vpack.c.bf16 %v261_v63, %v260_v62 }
  0x93   :  { %v252_v6 = vadd.f32 %v215_v4, %v140_v2  ;;  %v269_v4 = vpack.c.bf16 %v265_v1, %v264_v0 }
  0x95   :  { %v275_v7 = vpack.c.bf16 %v253_v5, %v252_v6  ;;  %v98_v8 = vpop.permute.xlu1 %97 }
  0x96   :  { %v93_v10 = vpop.permute.xlu0 %92  ;;  %v139_v12 = vmul.f32 %v98_v8, %v27_v9 }
  0x97   :  { %380 = vmatprep.subr.bf16.mxu0 %v275_v7  ;;  %402 = vmatprep.subr.bf16.mxu1 %v275_v7  ;;  %v138_v13 = vmul.f32 %v93_v10, %v26_v11 }
  0x98   :  { %381 = vmatpush3.bf16.msra.mxu0 %v275_v7  ;;  %410 = vmatpush3.bf16.msra.mxu1 %v275_v7 }
  0x99   :  { %v210_v14 = vpop.permute.xlu1 %209 }
  0x9a   :  { %v205_v15 = vpop.permute.xlu0 %204  ;;  %v251_v16 = vadd.f32 %v210_v14, %v139_v12 }
  0x9b   :  { %v250_v17 = vadd.f32 %v205_v15, %v138_v13 }
  0x9d   :  { %v274_v18 = vpack.c.bf16 %v251_v16, %v250_v17  ;;  %v88_v19 = vpop.permute.xlu1 %87 }
  0x9e   :  { %v83_v21 = vpop.permute.xlu0 %82  ;;  %v137_v23 = vmul.f32 %v88_v19, %v25_v20 }
  0x9f   :  { %382 = vmatprep.subr.bf16.mxu0 %v274_v18  ;;  %403 = vmatprep.subr.bf16.mxu1 %v274_v18  ;;  %v136_v24 = vmul.f32 %v83_v21, %v24_v22 }
  0xa0   :  { %383 = vmatpush3.bf16.msra.mxu0 %v274_v18  ;;  %411 = vmatpush3.bf16.msra.mxu1 %v274_v18 }
  0xa1   :  { %v200_v25 = vpop.permute.xlu1 %199 }
  0xa2   :  { %v195_v26 = vpop.permute.xlu0 %194  ;;  %v249_v27 = vadd.f32 %v200_v25, %v137_v23 }
  0xa3   :  { %v248_v28 = vadd.f32 %v195_v26, %v136_v24 }
  0xa5   :  { %v273_v29 = vpack.c.bf16 %v249_v27, %v248_v28  ;;  %v78_v30 = vpop.permute.xlu1 %77 }
  0xa6   :  { %v73_v32 = vpop.permute.xlu0 %72  ;;  %v135_v34 = vmul.f32 %v78_v30, %v23_v31 }
  0xa7   :  { %384 = vmatprep.subr.bf16.mxu0 %v273_v29  ;;  %404 = vmatprep.subr.bf16.mxu1 %v273_v29  ;;  %v134_v35 = vmul.f32 %v73_v32, %v22_v33 }
  0xa8   :  { %385 = vmatpush3.bf16.msra.mxu0 %v273_v29  ;;  %412 = vmatpush3.bf16.msra.mxu1 %v273_v29 }
  0xa9   :  { %v190_v36 = vpop.permute.xlu1 %189 }
  0xaa   :  { %v185_v37 = vpop.permute.xlu0 %184  ;;  %v247_v38 = vadd.f32 %v190_v36, %v135_v34 }
  0xab   :  { %v246_v39 = vadd.f32 %v185_v37, %v134_v35 }
  0xad   :  { %v272_v40 = vpack.c.bf16 %v247_v38, %v246_v39  ;;  %v68_v41 = vpop.permute.xlu1 %67 }
  0xae   :  { %v63_v43 = vpop.permute.xlu0 %62  ;;  %v133_v45 = vmul.f32 %v68_v41, %v21_v42 }
  0xaf   :  { %386 = vmatprep.subr.bf16.mxu0 %v272_v40  ;;  %405 = vmatprep.subr.bf16.mxu1 %v272_v40  ;;  %v132_v46 = vmul.f32 %v63_v43, %v20_v44 }
  0xb0   :  { %387 = vmatpush3.bf16.msra.mxu0 %v272_v40  ;;  %413 = vmatpush3.bf16.msra.mxu1 %v272_v40 }
  0xb1   :  { %v180_v47 = vpop.permute.xlu1 %179 }
  0xb2   :  { %v175_v48 = vpop.permute.xlu0 %174  ;;  %v245_v49 = vadd.f32 %v180_v47, %v133_v45 }
  0xb3   :  { %v244_v50 = vadd.f32 %v175_v48, %v132_v46 }
  0xb5   :  { %v271_v51 = vpack.c.bf16 %v245_v49, %v244_v50  ;;  %v58_v52 = vpop.permute.xlu1 %57 }
  0xb6   :  { %v53_v54 = vpop.permute.xlu0 %52  ;;  %v131_v56 = vmul.f32 %v58_v52, %v19_v53 }
  0xb7   :  { %388 = vmatprep.subr.bf16.mxu0 %v271_v51  ;;  %406 = vmatprep.subr.bf16.mxu1 %v271_v51  ;;  %v130_v57 = vmul.f32 %v53_v54, %v18_v55 }
  0xb8   :  { %389 = vmatpush3.bf16.msra.mxu0 %v271_v51  ;;  %414 = vmatpush3.bf16.msra.mxu1 %v271_v51 }
  0xb9   :  { %v170_v58 = vpop.permute.xlu1 %169 }
  0xba   :  { %v165_v59 = vpop.permute.xlu0 %164  ;;  %v243_v60 = vadd.f32 %v170_v58, %v131_v56 }
  0xbb   :  { %v242_v61 = vadd.f32 %v165_v59, %v130_v57 }
  0xbd   :  { %v270_v2 = vpack.c.bf16 %v243_v60, %v242_v61 }
  0xbf   :  { %390 = vmatprep.subr.bf16.mxu0 %v270_v2  ;;  %407 = vmatprep.subr.bf16.mxu1 %v270_v2 }
  0xc0   :  { %391 = vmatpush3.bf16.msra.mxu0 %v270_v2  ;;  %415 = vmatpush3.bf16.msra.mxu1 %v270_v2 }
  0xc3   :  { %393 = vmatmul.mubr.bf16.vlgmr.msra.gmra.mxu0 %v267_v3  ;;  %397 = vmatmul.mubr.bf16.vlgmr.msra.gmra.mxu1 %v269_v4 }
 0x183   :  { %v394_v5 = vpop.f32.mrf.mxu0  ;;  %v398_v6 = vpop.f32.mrf.mxu1 }
 0x184   :  { %v345_v7 = vmax.f32 %v394_v5, 0.0  ;;  %v349_v8 = vmax.f32 %v398_v6, 0.0 }
 0x185   :  { %v312_v9 = vpop.f32.mrf.mxu0  ;;  %v328_v10 = vpop.f32.mrf.mxu1 }
 0x186   :  { %354 = vst.msk [vmem:[%s649_s4 + $0x10] sm:$0xff] %vm351_vm0, %v345_v7  ;;  %358 = vst.msk [vmem:[%s649_s4 + $0x30] sm:$0xff] %vm351_vm0, %v349_v8  ;;  %v343_v11 = vmax.f32 %v312_v9, 0.0  ;;  %v347_v12 = vmax.f32 %v328_v10, 0.0 }
 0x187   :  { %v395_v13 = vpop.f32.mrf.mxu0  ;;  %v399_v14 = vpop.f32.mrf.mxu1 }
 0x188   :  { %352 = vst.msk [vmem:[%s649_s4] sm:$0xff] %vm351_vm0, %v343_v11  ;;  %356 = vst.msk [vmem:[%s649_s4 + $0x20] sm:$0xff] %vm351_vm0, %v347_v12  ;;  %v346_v15 = vmax.f32 %v395_v13, 0.0  ;;  %v350_v16 = vmax.f32 %v399_v14, 0.0 }
 0x189   :  { %v315_v17 = vpop.f32.mrf.mxu0  ;;  %v331_v18 = vpop.f32.mrf.mxu1 }
 0x18a   :  { %355 = vst.msk [vmem:[%s649_s4 + $0x18] sm:$0xff] %vm351_vm0, %v346_v15  ;;  %359 = vst.msk [vmem:[%s649_s4 + $0x38] sm:$0xff] %vm351_vm0, %v350_v16  ;;  %v344_v19 = vmax.f32 %v315_v17, 0.0  ;;  %v348_v20 = vmax.f32 %v331_v18, 0.0 }
 0x18c   :  { %353 = vst.msk [vmem:[%s649_s4 + $0x8] sm:$0xff] %vm351_vm0, %v344_v19  ;;  %357 = vst.msk [vmem:[%s649_s4 + $0x28] sm:$0xff] %vm351_vm0, %v348_v20 }

// kernel: unet2d_forward.52
= control target key start
LH: loop header
LB: loop body
LE: loop exit
PB: predicated region body
PF: predicated region fallthrough
CT: control target
= control target key end

     0   :  { %v380_v0 = vmov 0   ;;  %vm166_vm0 = vcmask 523264   ;;  %vm304_vm1 = vcmask 64512   ;;  %s598_s3 = inlined_call_operand.vmem [shape: f32[64,1], index: 3, kind: input, shape index: {}]   ;;  %s599_s2 = inlined_call_operand.vmem [shape: f32[64,1], index: 2, kind: input, shape index: {}]   ;;  %s600_s1 = inlined_call_operand.vmem [shape: f32[128,64], index: 1, kind: input, shape index: {}]   ;;  %s601_s0 = inlined_call_operand.vmem [shape: f32[64,8], index: 0, kind: input, shape index: {}]   ;;  %s602_s4 = inlined_call_operand.vmem [shape: f32[128,8], index: 4, kind: output, shape index: {}]  }
   0x1   :  { %379 = vset.pattern.permute.xlu1 %v380_v0  ;;  %378 = vset.pattern.permute.xlu0 %v380_v0  ;;  %v88_v1 = vld [vmem:[%s598_s3 + $0x30] sm:$0xff]  ;;  %v89_v3 = vld [vmem:[%s598_s3 + $0x38] sm:$0xff]  ;;  %v31_v5 = vld [vmem:[%s599_s2 + $0x28] sm:$0xff] }
   0x2   :  { %v32_v2 = vld [vmem:[%s599_s2 + $0x30] sm:$0xff]  ;;  %122 = vperm.xlu1 %379, %v88_v1   ;;  %v33_v4 = vld [vmem:[%s599_s2 + $0x38] sm:$0xff]  ;;  %v30_v6 = vld [vmem:[%s599_s2 + $0x20] sm:$0xff] }
   0x3   :  { %66 = vperm.xlu0 %378, %v32_v2   ;;  %v87_v7 = vld [vmem:[%s598_s3 + $0x28] sm:$0xff]  ;;  %v86_v8 = vld [vmem:[%s598_s3 + $0x20] sm:$0xff]  ;;  %v29_v9 = vld [vmem:[%s599_s2 + $0x18] sm:$0xff] }
   0x4   :  { %v28_v10 = vld [vmem:[%s599_s2 + $0x10] sm:$0xff]  ;;  %v85_v11 = vld [vmem:[%s598_s3 + $0x18] sm:$0xff]  ;;  %v27_v13 = vld [vmem:[%s599_s2 + $0x8] sm:$0xff] }
   0x5   :  { %v84_v12 = vld [vmem:[%s598_s3 + $0x10] sm:$0xff]  ;;  %v26_v14 = vld [vmem:[%s599_s2] sm:$0xff]  ;;  %v83_v15 = vld [vmem:[%s598_s3 + $0x8] sm:$0xff] }
   0x6   :  { %127 = vperm.xlu1 %379, %v89_v3   ;;  %v82_v16 = vld [vmem:[%s598_s3] sm:$0xff]  ;;  %v139_v18 = vld [vmem:[%s600_s1 + $0x8] sm:$0xff]  ;;  %v24_v25 = vld [vmem:[%s601_s0 + $0x30] sm:$0xff] }
   0x7   :  { %71 = vperm.xlu0 %378, %v33_v4   ;;  %v138_v17 = vld [vmem:[%s600_s1] sm:$0xff]  ;;  %v147_v21 = vld [vmem:[%s600_s1 + $0x48] sm:$0xff]  ;;  %v25_v26 = vld [vmem:[%s601_s0 + $0x38] sm:$0xff] }
   0x8   :  { %v146_v19 = vld [vmem:[%s600_s1 + $0x40] sm:$0xff]  ;;  %v154_v20 = vpack.c.bf16 %v139_v18, %v138_v17  ;;  %v23_v34 = vld [vmem:[%s601_s0 + $0x28] sm:$0xff]  ;;  %v21_v46 = vld [vmem:[%s601_s0 + $0x18] sm:$0xff] }
   0x9   :  { %v158_v22 = vpack.c.bf16 %v147_v21, %v146_v19  ;;  %v22_v36 = vld [vmem:[%s601_s0 + $0x20] sm:$0xff]  ;;  %v20_v48 = vld [vmem:[%s601_s0 + $0x10] sm:$0xff]  ;;  %v19_v57 = vld [vmem:[%s601_s0 + $0x8] sm:$0xff] }
   0xa   :  { %61 = vperm.xlu1 %379, %v31_v5   ;;  %353 = vmatprep.mubr.msk.bf16.mxu0 %vm166_vm0, %v154_v20  ;;  %v18_v59 = vld [vmem:[%s601_s0] sm:$0xff]  ;;  %v140_v2 = vld [vmem:[%s600_s1 + $0x10] sm:$0xff]  ;;  %v141_v3 = vld [vmem:[%s600_s1 + $0x18] sm:$0xff] }
   0xb   :  { %56 = vperm.xlu0 %378, %v30_v6   ;;  %361 = vmatprep.mubr.msk.bf16.mxu1 %vm166_vm0, %v158_v22  ;;  %v148_v4 = vld [vmem:[%s600_s1 + $0x50] sm:$0xff]  ;;  %v149_v5 = vld [vmem:[%s600_s1 + $0x58] sm:$0xff]  ;;  %v142_v6 = vld [vmem:[%s600_s1 + $0x20] sm:$0xff] }
   0xc   :  { %v152_v17 = vld [vmem:[%s600_s1 + $0x70] sm:$0xff]  ;;  %v153_v18 = vld [vmem:[%s600_s1 + $0x78] sm:$0xff] }
   0xd   :  { %v161_v20 = vpack.c.bf16 %v153_v18, %v152_v17 }
   0xe   :  { %117 = vperm.xlu1 %379, %v87_v7  }
   0xf   :  { %112 = vperm.xlu0 %378, %v86_v8   ;;  %v143_v8 = vld [vmem:[%s600_s1 + $0x28] sm:$0xff] }
  0x12   :  { %51 = vperm.xlu1 %379, %v29_v9   ;;  %v150_v9 = vld [vmem:[%s600_s1 + $0x60] sm:$0xff] }
  0x13   :  { %46 = vperm.xlu0 %378, %v28_v10   ;;  %v151_v10 = vld [vmem:[%s600_s1 + $0x68] sm:$0xff] }
  0x16   :  { %107 = vperm.xlu1 %379, %v85_v11   ;;  %v155_v11 = vpack.c.bf16 %v141_v3, %v140_v2 }
  0x17   :  { %102 = vperm.xlu0 %378, %v84_v12   ;;  %v159_v12 = vpack.c.bf16 %v149_v5, %v148_v4 }
  0x1a   :  { %41 = vperm.xlu1 %379, %v27_v13   ;;  %v156_v13 = vpack.c.bf16 %v143_v8, %v142_v6 }
  0x1b   :  { %36 = vperm.xlu0 %378, %v26_v14   ;;  %v160_v14 = vpack.c.bf16 %v151_v10, %v150_v9 }
  0x1e   :  { %97 = vperm.xlu1 %379, %v83_v15   ;;  %v144_v15 = vld [vmem:[%s600_s1 + $0x30] sm:$0xff] }
  0x1f   :  { %92 = vperm.xlu0 %378, %v82_v16   ;;  %v145_v16 = vld [vmem:[%s600_s1 + $0x38] sm:$0xff] }
  0x20   :  { %v157_v19 = vpack.c.bf16 %v145_v16, %v144_v15 }
  0x7d   :  { %v123_v23 = vpop.permute.xlu1 %122 }
  0x7e   :  { %v67_v24 = vpop.permute.xlu0 %66 }
  0x7f   :  { %v80_v27 = vmul.f32 %v67_v24, %v24_v25 }
  0x81   :  { %v128_v28 = vpop.permute.xlu1 %127  ;;  %v136_v31 = vadd.f32 %v123_v23, %v80_v27 }
  0x82   :  { %v72_v29 = vpop.permute.xlu0 %71 }
  0x83   :  { %v81_v30 = vmul.f32 %v72_v29, %v25_v26 }
  0x85   :  { %v137_v32 = vadd.f32 %v128_v28, %v81_v30  ;;  %v62_v33 = vpop.permute.xlu1 %61 }
  0x86   :  { %v57_v35 = vpop.permute.xlu0 %56  ;;  %v79_v38 = vmul.f32 %v62_v33, %v23_v34 }
  0x87   :  { %v165_v37 = vpack.c.bf16 %v137_v32, %v136_v31  ;;  %v78_v39 = vmul.f32 %v57_v35, %v22_v36 }
  0x89   :  { %345 = vmatprep.subr.bf16.mxu0 %v165_v37  ;;  %369 = vmatprep.subr.bf16.mxu1 %v165_v37  ;;  %v118_v40 = vpop.permute.xlu1 %117 }
  0x8a   :  { %v113_v41 = vpop.permute.xlu0 %112  ;;  %346 = vmatpush3.bf16.msra.mxu0 %v165_v37  ;;  %373 = vmatpush3.bf16.msra.mxu1 %v165_v37  ;;  %v135_v42 = vadd.f32 %v118_v40, %v79_v38 }
  0x8b   :  { %v134_v43 = vadd.f32 %v113_v41, %v78_v39 }
  0x8d   :  { %v164_v44 = vpack.c.bf16 %v135_v42, %v134_v43  ;;  %v52_v45 = vpop.permute.xlu1 %51 }
  0x8e   :  { %v47_v47 = vpop.permute.xlu0 %46  ;;  %v77_v49 = vmul.f32 %v52_v45, %v21_v46 }
  0x8f   :  { %347 = vmatprep.subr.bf16.mxu0 %v164_v44  ;;  %370 = vmatprep.subr.bf16.mxu1 %v164_v44  ;;  %v76_v50 = vmul.f32 %v47_v47, %v20_v48 }
  0x90   :  { %348 = vmatpush3.bf16.msra.mxu0 %v164_v44  ;;  %374 = vmatpush3.bf16.msra.mxu1 %v164_v44 }
  0x91   :  { %v108_v51 = vpop.permute.xlu1 %107 }
  0x92   :  { %v103_v52 = vpop.permute.xlu0 %102  ;;  %v133_v53 = vadd.f32 %v108_v51, %v77_v49 }
  0x93   :  { %v132_v54 = vadd.f32 %v103_v52, %v76_v50 }
  0x95   :  { %v163_v55 = vpack.c.bf16 %v133_v53, %v132_v54  ;;  %v42_v56 = vpop.permute.xlu1 %41 }
  0x96   :  { %v37_v58 = vpop.permute.xlu0 %36  ;;  %v75_v60 = vmul.f32 %v42_v56, %v19_v57 }
  0x97   :  { %349 = vmatprep.subr.bf16.mxu0 %v163_v55  ;;  %371 = vmatprep.subr.bf16.mxu1 %v163_v55  ;;  %v74_v61 = vmul.f32 %v37_v58, %v18_v59 }
  0x98   :  { %350 = vmatpush3.bf16.msra.mxu0 %v163_v55  ;;  %375 = vmatpush3.bf16.msra.mxu1 %v163_v55 }
  0x99   :  { %v98_v62 = vpop.permute.xlu1 %97 }
  0x9a   :  { %v93_v63 = vpop.permute.xlu0 %92  ;;  %v131_v0 = vadd.f32 %v98_v62, %v75_v60 }
  0x9b   :  { %v130_v1 = vadd.f32 %v93_v63, %v74_v61 }
  0x9d   :  { %v162_v7 = vpack.c.bf16 %v131_v0, %v130_v1 }
  0x9f   :  { %351 = vmatprep.subr.bf16.mxu0 %v162_v7  ;;  %372 = vmatprep.subr.bf16.mxu1 %v162_v7 }
  0xa0   :  { %352 = vmatpush3.bf16.msra.mxu0 %v162_v7  ;;  %376 = vmatpush3.bf16.msra.mxu1 %v162_v7 }
  0xa3   :  { %354 = vmatmul.mubr.msk.bf16.vlgmr.msra.gmra.mxu0 %vm166_vm0, %v155_v11  ;;  %362 = vmatmul.mubr.msk.bf16.vlgmr.msra.gmra.mxu1 %vm166_vm0, %v159_v12 }
  0xa4   :  { %357 = vmatprep.mubr.msk.bf16.mxu0 %vm166_vm0, %v156_v13  ;;  %365 = vmatprep.mubr.msk.bf16.mxu1 %vm166_vm0, %v160_v14 }
  0xab   :  { %358 = vmatmul.mubr.msk.bf16.gmra.mxu0 %vm166_vm0, %v157_v19  ;;  %366 = vmatmul.mubr.msk.bf16.gmra.mxu1 %vm166_vm0, %v161_v20 }
 0x163   :  { %v355_v21 = vpop.f32.mrf.mxu0  ;;  %v363_v22 = vpop.f32.mrf.mxu1 }
 0x164   :  { %v290_v23 = vmax.f32 %v355_v21, 0.0  ;;  %v298_v24 = vmax.f32 %v363_v22, 0.0 }
 0x165   :  { %v225_v25 = vpop.f32.mrf.mxu0  ;;  %v257_v26 = vpop.f32.mrf.mxu1 }
 0x166   :  { %307 = vst.msk [vmem:[%s602_s4 + $0x10] sm:$0xff] %vm304_vm1, %v290_v23  ;;  %315 = vst.msk [vmem:[%s602_s4 + $0x50] sm:$0xff] %vm304_vm1, %v298_v24  ;;  %v288_v27 = vmax.f32 %v225_v25, 0.0  ;;  %v296_v28 = vmax.f32 %v257_v26, 0.0 }
 0x167   :  { %v356_v29 = vpop.f32.mrf.mxu0  ;;  %v364_v30 = vpop.f32.mrf.mxu1 }
 0x168   :  { %305 = vst.msk [vmem:[%s602_s4] sm:$0xff] %vm304_vm1, %v288_v27  ;;  %313 = vst.msk [vmem:[%s602_s4 + $0x40] sm:$0xff] %vm304_vm1, %v296_v28  ;;  %v291_v31 = vmax.f32 %v356_v29, 0.0  ;;  %v299_v32 = vmax.f32 %v364_v30, 0.0 }
 0x169   :  { %v228_v33 = vpop.f32.mrf.mxu0  ;;  %v260_v34 = vpop.f32.mrf.mxu1 }
 0x16a   :  { %308 = vst.msk [vmem:[%s602_s4 + $0x18] sm:$0xff] %vm304_vm1, %v291_v31  ;;  %316 = vst.msk [vmem:[%s602_s4 + $0x58] sm:$0xff] %vm304_vm1, %v299_v32  ;;  %v289_v35 = vmax.f32 %v228_v33, 0.0  ;;  %v297_v36 = vmax.f32 %v260_v34, 0.0 }
 0x16b   :  { %v359_v37 = vpop.f32.mrf.mxu0  ;;  %v367_v38 = vpop.f32.mrf.mxu1 }
 0x16c   :  { %306 = vst.msk [vmem:[%s602_s4 + $0x8] sm:$0xff] %vm304_vm1, %v289_v35  ;;  %314 = vst.msk [vmem:[%s602_s4 + $0x48] sm:$0xff] %vm304_vm1, %v297_v36  ;;  %v294_v39 = vmax.f32 %v359_v37, 0.0  ;;  %v302_v40 = vmax.f32 %v367_v38, 0.0 }
 0x16d   :  { %v241_v41 = vpop.f32.mrf.mxu0  ;;  %v273_v42 = vpop.f32.mrf.mxu1 }
 0x16e   :  { %311 = vst.msk [vmem:[%s602_s4 + $0x30] sm:$0xff] %vm304_vm1, %v294_v39  ;;  %319 = vst.msk [vmem:[%s602_s4 + $0x70] sm:$0xff] %vm304_vm1, %v302_v40  ;;  %v292_v43 = vmax.f32 %v241_v41, 0.0  ;;  %v300_v44 = vmax.f32 %v273_v42, 0.0 }
 0x16f   :  { %v360_v45 = vpop.f32.mrf.mxu0  ;;  %v368_v46 = vpop.f32.mrf.mxu1 }
 0x170   :  { %309 = vst.msk [vmem:[%s602_s4 + $0x20] sm:$0xff] %vm304_vm1, %v292_v43  ;;  %317 = vst.msk [vmem:[%s602_s4 + $0x60] sm:$0xff] %vm304_vm1, %v300_v44  ;;  %v295_v47 = vmax.f32 %v360_v45, 0.0  ;;  %v303_v48 = vmax.f32 %v368_v46, 0.0 }
 0x171   :  { %v244_v49 = vpop.f32.mrf.mxu0  ;;  %v276_v50 = vpop.f32.mrf.mxu1 }
 0x172   :  { %312 = vst.msk [vmem:[%s602_s4 + $0x38] sm:$0xff] %vm304_vm1, %v295_v47  ;;  %320 = vst.msk [vmem:[%s602_s4 + $0x78] sm:$0xff] %vm304_vm1, %v303_v48  ;;  %v293_v51 = vmax.f32 %v244_v49, 0.0  ;;  %v301_v52 = vmax.f32 %v276_v50, 0.0 }
 0x174   :  { %310 = vst.msk [vmem:[%s602_s4 + $0x28] sm:$0xff] %vm304_vm1, %v293_v51  ;;  %318 = vst.msk [vmem:[%s602_s4 + $0x68] sm:$0xff] %vm304_vm1, %v301_v52 }

// kernel: unet2d_forward.42
= control target key start
LH: loop header
LB: loop body
LE: loop exit
PB: predicated region body
PF: predicated region fallthrough
CT: control target
= control target key end

     0   :  { %v1285_v0 = vmov 0   ;;  %vm30_vm0 = vcmask 343040   ;;  %v1286_v9 = vmov 0.0   ;;  %s1288_s10 = smov 4   ;;  %s1289_s11 = smov 9   ;;  %vm127_vm1 = vcmask 302120   ;;  %s1821_s3 = inlined_call_operand.vmem [shape: f32[32,1], index: 3, kind: input, shape index: {}]   ;;  %s1822_s2 = inlined_call_operand.vmem [shape: f32[32,1], index: 2, kind: input, shape index: {}]   ;;  %s1823_s0 = inlined_call_operand.vmem [shape: f32[32,32], index: 0, kind: input, shape index: {}]   ;;  %s1824_s1 = inlined_call_operand.vmem [shape: f32[9,32], index: 1, kind: input, shape index: {}]   ;;  %s1825_s4 = inlined_call_operand.vmem [shape: f32[32,288], index: 4, kind: input, shape index: {}]   ;;  %s1826_s5 = inlined_call_operand.vmem [shape: f32[32,1], index: 5, kind: input, shape index: {}]   ;;  %s1827_s6 = inlined_call_operand.vmem [shape: f32[32,1], index: 6, kind: input, shape index: {}]   ;;  %s1828_s7 = inlined_call_operand.vmem [shape: f32[32,288], index: 7, kind: input, shape index: {}]   ;;  %s1829_s8 = inlined_call_operand.vmem [shape: f32[32,32], index: 8, kind: output, shape index: {}]  }
   0x1   :  { %1280 = vset.pattern.permute.xlu1 %v1285_v0  ;;  %1279 = vset.pattern.permute.xlu0 %v1285_v0  ;;  %v69_v1 = vld [vmem:[%s1821_s3 + $0x10] sm:$0xff]  ;;  %v70_v3 = vld [vmem:[%s1821_s3 + $0x18] sm:$0xff]  ;;  %v40_v5 = vld [vmem:[%s1822_s2 + $0x8] sm:$0xff]  ;;  %33 = vst.msk [vmem:[#allocation2 + $0x10] sm:$0xff] %vm30_vm0, %v1286_v9  ;;  %s1290_s16 = smov 2   ;;  %s1291_s17 = smov 8  }
   0x2   :  { %v41_v2 = vld [vmem:[%s1822_s2 + $0x10] sm:$0xff]  ;;  %83 = vperm.xlu1 %1280, %v69_v1   ;;  %v42_v4 = vld [vmem:[%s1822_s2 + $0x18] sm:$0xff]  ;;  %v39_v6 = vld [vmem:[%s1822_s2] sm:$0xff]  ;;  %31 = vst.msk [vmem:[#allocation2] sm:$0xff] %vm30_vm0, %v1286_v9  ;;  %s1292_s2 = smov 1   ;;  %s1293_s22 = smov 6  }
   0x3   :  { %55 = vperm.xlu0 %1279, %v41_v2   ;;  %v68_v7 = vld [vmem:[%s1821_s3 + $0x8] sm:$0xff]  ;;  %v67_v8 = vld [vmem:[%s1821_s3] sm:$0xff]  ;;  %32 = vst.msk [vmem:[#allocation2 + $0x8] sm:$0xff] %vm30_vm0, %v1286_v9  ;;  %34 = vst.msk [vmem:[#allocation2 + $0x18] sm:$0xff] %vm30_vm0, %v1286_v9  ;;  %s1287_s3 = smov 5   ;;  %s1294_s25 = smov 10  }
   0x4   :  { %v37_v10 = vld [vmem:[%s1823_s0 + $0x10] sm:$0xff]  ;;  %v38_v14 = vld [vmem:[%s1823_s0 + $0x18] sm:$0xff]  ;;  %v36_v22 = vld [vmem:[%s1823_s0 + $0x8] sm:$0xff]  ;;  %vm145_vm2 = vcmask 261120   ;;  %s1295_s28 = smov 119   ;;  %s1296_s29 = smov 124  }
   0x5   :  { %v35_v24 = vld [vmem:[%s1823_s0] sm:$0xff]  ;;  %v1433_v40 = vld [vmem:[%s1824_s1 + $0x8] ss:$0 sm:$0xff]  ;;  %s1297_s30 = smov 120   ;;  %s1298_s9 = smov 126  }
   0x6   :  { %88 = vperm.xlu1 %1280, %v70_v3   ;;  %v1391_v34 = vld [vmem:[%s1824_s1 + $0x3] ss:$0 sm:$0xff]  ;;  %v1396_v35 = vld [vmem:[%s1824_s1 + $0x7] ss:$0 sm:$0xff]  ;;  %v1405_v36 = vld [vmem:[%s1824_s1 + $0x2] ss:$0 sm:$0xff] }
   0x7   :  { %60 = vperm.xlu0 %1279, %v42_v4   ;;  %v1410_v37 = vld [vmem:[%s1824_s1 + $0x6] ss:$0 sm:$0xff]  ;;  %v1419_v38 = vld [vmem:[%s1824_s1 + $0x1] ss:$0 sm:$0xff]  ;;  %v1424_v39 = vld [vmem:[%s1824_s1 + $0x5] ss:$0 sm:$0xff] }
   0x8   :  { %v1161_v43 = vld [vmem:[%s1824_s1] ss:$0 sm:$0xff]  ;;  %s1299_s12 = smov 122   ;;  %s1300_s13 = smov 127  }
   0x9   :  { %s1832_s14 = smov 123   ;;  %s1830_s21 = smov 118  }
   0xa   :  { %50 = vperm.xlu1 %1280, %v40_v5  }
   0xb   :  { %45 = vperm.xlu0 %1279, %v39_v6  }
   0xe   :  { %78 = vperm.xlu1 %1280, %v68_v7  }
   0xf   :  { %73 = vperm.xlu0 %1279, %v67_v8  }
  0x7d   :  { %v84_v11 = vpop.permute.xlu1 %83 }
  0x7e   :  { %v56_v12 = vpop.permute.xlu0 %55 }
  0x7f   :  { %v65_v13 = vmul.f32 %v56_v12, %v37_v10 }
  0x81   :  { %v93_v15 = vadd.f32 %v84_v11, %v65_v13  ;;  %v89_v16 = vpop.permute.xlu1 %88 }
  0x82   :  { %v61_v17 = vpop.permute.xlu0 %60 }
  0x83   :  { %v66_v18 = vmul.f32 %v61_v17, %v38_v14  ;;  %v97_v19 = vmax.f32 %v93_v15, 0.0 }
  0x85   :  { %v94_v20 = vadd.f32 %v89_v16, %v66_v18  ;;  %119 = vrot.lane.b32.xlu0 %v97_v19, %s1287_s3  ;;  %v51_v21 = vpop.permute.xlu1 %50 }
  0x86   :  { %v46_v23 = vpop.permute.xlu0 %45  ;;  %v64_v26 = vmul.f32 %v51_v21, %v36_v22  ;;  %v100_v21 = vld [vmem:[%s1825_s4 + $0x8] sm:$0xff]  ;;  %v103_v22 = vld [vmem:[%s1825_s4 + $0x20] sm:$0xff] }
  0x87   :  { %v98_v25 = vmax.f32 %v94_v20, 0.0  ;;  %v63_v27 = vmul.f32 %v46_v23, %v35_v24  ;;  %v434_v23 = vpack.c.bf16 %v103_v22, %v100_v21 }
  0x89   :  { %121 = vrot.lane.b32.xlu1 %v98_v25, %s1287_s3  ;;  %v79_v28 = vpop.permute.xlu1 %78  ;;  %531 = vmatprep.mubr.bf16.mxu0 %v434_v23 }
  0x8a   :  { %v74_v29 = vpop.permute.xlu0 %73  ;;  %v92_v30 = vadd.f32 %v79_v28, %v64_v26  ;;  %v101_v28 = vld [vmem:[%s1825_s4 + $0x10] sm:$0xff] }
  0x8b   :  { %v91_v31 = vadd.f32 %v74_v29, %v63_v27  ;;  %v104_v29 = vld [vmem:[%s1825_s4 + $0x28] sm:$0xff] }
  0x8c   :  { %v96_v32 = vmax.f32 %v92_v30, 0.0  ;;  %v600_v30 = vld [vmem:[%s1826_s5 + $0x18] sm:$0xff] }
  0x8d   :  { %v95_v33 = vmax.f32 %v91_v31, 0.0  ;;  %v599_v31 = vld [vmem:[%s1826_s5 + $0x10] sm:$0xff] }
  0x8e   :  { %117 = vrot.lane.b32.xlu1 %v96_v32, %s1287_s3  ;;  %v435_v32 = vpack.c.bf16 %v104_v29, %v101_v28 }
  0x8f   :  { %115 = vrot.lane.b32.xlu0 %v95_v33, %s1287_s3  ;;  %v628_v33 = vld [vmem:[%s1827_s6 + $0x18] sm:$0xff] }
  0x90   :  { %1249 = vmatprep.mubr.msk.bf16.mxu1 %vm145_vm2, %v435_v32 }
  0x92   :  { %234 = vrot.lane.b32.xlu1 %v1391_v34, %s1288_s10 }
  0x93   :  { %369 = vrot.lane.b32.xlu0 %v1396_v35, %s1289_s11 }
  0x96   :  { %197 = vrot.lane.b32.xlu1 %v1405_v36, %s1290_s16 }
  0x97   :  { %332 = vrot.lane.b32.xlu0 %v1410_v37, %s1291_s17 }
  0x9a   :  { %160 = vrot.lane.b32.xlu1 %v1419_v38, %s1292_s2 }
  0x9b   :  { %295 = vrot.lane.b32.xlu0 %v1424_v39, %s1293_s22 }
  0x9f   :  { %406 = vrot.lane.b32.xlu0 %v1433_v40, %s1294_s25 }
  0xf7   :  { %v120_v41 = vpop.permute.xlu0 %119 }
  0xf8   :  { %130 = vst.msk [vmem:[#allocation2 + $0x10] sm:$0xff] %vm127_vm1, %v120_v41  ;;  %v627_v41 = vld [vmem:[%s1827_s6 + $0x10] sm:$0xff] }
  0xfb   :  { %v122_v42 = vpop.permute.xlu1 %121 }
  0xfc   :  { %131 = vst.msk [vmem:[#allocation2 + $0x18] sm:$0xff] %vm127_vm1, %v122_v42  ;;  %v598_v42 = vld [vmem:[%s1826_s5 + $0x8] sm:$0xff] }
  0xff   :  { %v1442_v44 = vld [vmem:[#allocation2 + $0x10] sm:$0xff] }
 0x100   :  { %v143_v45 = vmul.f32 %v1161_v43, %v1442_v44  ;;  %v118_v46 = vpop.permute.xlu1 %117 }
 0x101   :  { %v116_v47 = vpop.permute.xlu0 %115  ;;  %129 = vst.msk [vmem:[#allocation2 + $0x8] sm:$0xff] %vm127_vm1, %v118_v46 }
 0x102   :  { %148 = vst.msk [vmem:[#allocation3 + $0x10] sm:$0xff] %vm145_vm2, %v143_v45  ;;  %v625_v45 = vld [vmem:[%s1827_s6] sm:$0xff] }
 0x103   :  { %128 = vst.msk [vmem:[#allocation2] sm:$0xff] %vm127_vm1, %v116_v47  ;;  %v1448_v48 = vld [vmem:[#allocation2 + $0x18] sm:$0xff] }
 0x104   :  { %v144_v49 = vmul.f32 %v1161_v43, %v1448_v48  ;;  %v235_v53 = vpop.permute.xlu1 %234 }
 0x105   :  { %v370_v50 = vpop.permute.xlu0 %369  ;;  %v240_v58 = vmul.f32 %v235_v53, %v1448_v48  ;;  %v239_v59 = vmul.f32 %v235_v53, %v1442_v44 }
 0x106   :  { %149 = vst.msk [vmem:[#allocation3 + $0x18] sm:$0xff] %vm145_vm2, %v144_v49  ;;  %v375_v51 = vmul.f32 %v370_v50, %v1448_v48  ;;  %v374_v52 = vmul.f32 %v370_v50, %v1442_v44 }
 0x108   :  { %386 = vrot.lane.b32.xlu0 %v375_v51, %s1295_s28  ;;  %384 = vrot.lane.b32.xlu1 %v374_v52, %s1295_s28  ;;  %v1456_v54 = vld [vmem:[#allocation2 + $0x8] sm:$0xff]  ;;  %v198_v3 = vpop.permute.xlu1 %197 }
 0x109   :  { %v142_v56 = vmul.f32 %v1161_v43, %v1456_v54  ;;  %v373_v60 = vmul.f32 %v370_v50, %v1456_v54  ;;  %v238_v62 = vmul.f32 %v235_v53, %v1456_v54  ;;  %v333_v0 = vpop.permute.xlu0 %332  ;;  %v203_v4 = vmul.f32 %v198_v3, %v1448_v48 }
 0x10a   :  { %v1458_v55 = vld [vmem:[#allocation2] sm:$0xff]  ;;  %v338_v1 = vmul.f32 %v333_v0, %v1448_v48  ;;  %v337_v2 = vmul.f32 %v333_v0, %v1442_v44  ;;  %v202_v5 = vmul.f32 %v198_v3, %v1442_v44  ;;  %v336_v6 = vmul.f32 %v333_v0, %v1456_v54 }
 0x10b   :  { %v141_v57 = vmul.f32 %v1161_v43, %v1458_v55  ;;  %147 = vst.msk [vmem:[#allocation3 + $0x8] sm:$0xff] %vm145_vm2, %v142_v56  ;;  %v372_v61 = vmul.f32 %v370_v50, %v1458_v55  ;;  %v237_v63 = vmul.f32 %v235_v53, %v1458_v55  ;;  %v335_v7 = vmul.f32 %v333_v0, %v1458_v55  ;;  %v597_v43 = vld [vmem:[%s1826_s5] sm:$0xff] }
 0x10c   :  { %251 = vrot.lane.b32.xlu0 %v240_v58, %s1296_s29  ;;  %249 = vrot.lane.b32.xlu1 %v239_v59, %s1296_s29  ;;  %v201_v8 = vmul.f32 %v198_v3, %v1456_v54  ;;  %v200_v9 = vmul.f32 %v198_v3, %v1458_v55  ;;  %v161_v13 = vpop.permute.xlu1 %160 }
 0x10d   :  { %146 = vst.msk [vmem:[#allocation3] sm:$0xff] %vm145_vm2, %v141_v57  ;;  %v296_v10 = vpop.permute.xlu0 %295  ;;  %v166_v14 = vmul.f32 %v161_v13, %v1448_v48  ;;  %v165_v15 = vmul.f32 %v161_v13, %v1442_v44  ;;  %v164_v18 = vmul.f32 %v161_v13, %v1456_v54  ;;  %v163_v19 = vmul.f32 %v161_v13, %v1458_v55 }
 0x10e   :  { %v301_v11 = vmul.f32 %v296_v10, %v1448_v48  ;;  %v300_v12 = vmul.f32 %v296_v10, %v1442_v44  ;;  %v299_v16 = vmul.f32 %v296_v10, %v1456_v54  ;;  %v298_v17 = vmul.f32 %v296_v10, %v1458_v55 }
 0x110   :  { %382 = vrot.lane.b32.xlu0 %v373_v60, %s1295_s28  ;;  %380 = vrot.lane.b32.xlu1 %v372_v61, %s1295_s28 }
 0x111   :  { %v407_v20 = vpop.permute.xlu0 %406 }
 0x112   :  { %v412_v24 = vmul.f32 %v407_v20, %v1448_v48  ;;  %v411_v25 = vmul.f32 %v407_v20, %v1442_v44  ;;  %v410_v26 = vmul.f32 %v407_v20, %v1456_v54  ;;  %v409_v27 = vmul.f32 %v407_v20, %v1458_v55 }
 0x114   :  { %247 = vrot.lane.b32.xlu0 %v238_v62, %s1296_s29  ;;  %245 = vrot.lane.b32.xlu1 %v237_v63, %s1296_s29 }
 0x118   :  { %349 = vrot.lane.b32.xlu0 %v338_v1, %s1297_s30  ;;  %347 = vrot.lane.b32.xlu1 %v337_v2, %s1297_s30 }
 0x11c   :  { %214 = vrot.lane.b32.xlu0 %v203_v4, %s1298_s9  ;;  %212 = vrot.lane.b32.xlu1 %v202_v5, %s1298_s9 }
 0x120   :  { %345 = vrot.lane.b32.xlu0 %v336_v6, %s1297_s30  ;;  %343 = vrot.lane.b32.xlu1 %v335_v7, %s1297_s30 }
 0x124   :  { %210 = vrot.lane.b32.xlu0 %v201_v8, %s1298_s9  ;;  %208 = vrot.lane.b32.xlu1 %v200_v9, %s1298_s9 }
 0x128   :  { %312 = vrot.lane.b32.xlu0 %v301_v11, %s1299_s12  ;;  %310 = vrot.lane.b32.xlu1 %v300_v12, %s1299_s12 }
 0x12c   :  { %177 = vrot.lane.b32.xlu0 %v166_v14, %s1300_s13  ;;  %175 = vrot.lane.b32.xlu1 %v165_v15, %s1300_s13 }
 0x130   :  { %308 = vrot.lane.b32.xlu0 %v299_v16, %s1299_s12  ;;  %306 = vrot.lane.b32.xlu1 %v298_v17, %s1299_s12 }
 0x134   :  { %173 = vrot.lane.b32.xlu0 %v164_v18, %s1300_s13  ;;  %171 = vrot.lane.b32.xlu1 %v163_v19, %s1300_s13 }
 0x138   :  { %275 = vrot.lane.b32.xlu0 %v1448_v48, %s1832_s14  ;;  %273 = vrot.lane.b32.xlu1 %v1442_v44, %s1832_s14  ;;  %v626_v44 = vld [vmem:[%s1827_s6 + $0x8] sm:$0xff] }
 0x13c   :  { %271 = vrot.lane.b32.xlu0 %v1456_v54, %s1832_s14  ;;  %269 = vrot.lane.b32.xlu1 %v1458_v55, %s1832_s14 }
 0x140   :  { %423 = vrot.lane.b32.xlu0 %v412_v24, %s1830_s21  ;;  %421 = vrot.lane.b32.xlu1 %v411_v25, %s1830_s21 }
 0x144   :  { %419 = vrot.lane.b32.xlu0 %v410_v26, %s1830_s21  ;;  %417 = vrot.lane.b32.xlu1 %v409_v27, %s1830_s21 }
 0x148   :  { %618 = vperm.xlu0 %1279, %v600_v30   ;;  %613 = vperm.xlu1 %1280, %v599_v31  }
 0x14c   :  { %646 = vperm.xlu0 %1279, %v628_v33   ;;  %641 = vperm.xlu1 %1280, %v627_v41  }
 0x150   :  { %608 = vperm.xlu0 %1279, %v598_v42   ;;  %603 = vperm.xlu1 %1280, %v597_v43  }
 0x154   :  { %636 = vperm.xlu0 %1279, %v626_v44   ;;  %631 = vperm.xlu1 %1280, %v625_v45  }
 0x17a   :  { %v385_v46 = vpop.permute.xlu1 %384  ;;  %v387_v47 = vpop.permute.xlu0 %386 }
 0x17b   :  { %394 = vst.msk [vmem:[#allocation3 + $0xf0] sm:$0xff] %vm145_vm2, %v385_v46  ;;  %395 = vst.msk [vmem:[#allocation3 + $0xf8] sm:$0xff] %vm145_vm2, %v387_v47 }
 0x17e   :  { %v250_v48 = vpop.permute.xlu1 %249  ;;  %v252_v49 = vpop.permute.xlu0 %251 }
 0x17f   :  { %259 = vst.msk [vmem:[#allocation3 + $0x70] sm:$0xff] %vm145_vm2, %v250_v48  ;;  %260 = vst.msk [vmem:[#allocation3 + $0x78] sm:$0xff] %vm145_vm2, %v252_v49 }
 0x182   :  { %v381_v50 = vpop.permute.xlu1 %380  ;;  %v383_v51 = vpop.permute.xlu0 %382  ;;  %v469_v52 = vld [vmem:[#allocation3 + $0xf0] sm:$0xff]  ;;  %v470_v53 = vld [vmem:[#allocation3 + $0xf8] sm:$0xff] }
 0x183   :  { %392 = vst.msk [vmem:[#allocation3 + $0xe0] sm:$0xff] %vm145_vm2, %v381_v50  ;;  %393 = vst.msk [vmem:[#allocation3 + $0xe8] sm:$0xff] %vm145_vm2, %v383_v51  ;;  %v490_v54 = vpack.c.bf16 %v470_v53, %v469_v52  ;;  %v442_v53 = vld [vmem:[#allocation3 + $0x18] sm:$0xff] }
 0x185   :  { %1181 = vmatprep.subr.bf16.mxu0 %v490_v54 }
 0x186   :  { %v246_v55 = vpop.permute.xlu1 %245  ;;  %v248_v56 = vpop.permute.xlu0 %247  ;;  %v453_v57 = vld [vmem:[#allocation3 + $0x70] sm:$0xff]  ;;  %v454_v58 = vld [vmem:[#allocation3 + $0x78] sm:$0xff] }
 0x187   :  { %257 = vst.msk [vmem:[#allocation3 + $0x60] sm:$0xff] %vm145_vm2, %v246_v55  ;;  %258 = vst.msk [vmem:[#allocation3 + $0x68] sm:$0xff] %vm145_vm2, %v248_v56  ;;  %v482_v59 = vpack.c.bf16 %v454_v58, %v453_v57 }
 0x189   :  { %1182 = vmatpush3.bf16.msra.mxu0 %v482_v59  ;;  %v441_v59 = vld [vmem:[#allocation3 + $0x10] sm:$0xff] }
 0x18a   :  { %v348_v60 = vpop.permute.xlu1 %347  ;;  %v350_v61 = vpop.permute.xlu0 %349  ;;  %v467_v62 = vld [vmem:[#allocation3 + $0xe0] sm:$0xff]  ;;  %v468_v63 = vld [vmem:[#allocation3 + $0xe8] sm:$0xff] }
 0x18b   :  { %357 = vst.msk [vmem:[#allocation3 + $0xd0] sm:$0xff] %vm145_vm2, %v348_v60  ;;  %358 = vst.msk [vmem:[#allocation3 + $0xd8] sm:$0xff] %vm145_vm2, %v350_v61  ;;  %v489_v0 = vpack.c.bf16 %v468_v63, %v467_v62  ;;  %v476_v60 = vpack.c.bf16 %v442_v53, %v441_v59  ;;  %v439_v61 = vld [vmem:[#allocation3] sm:$0xff]  ;;  %v440_v62 = vld [vmem:[#allocation3 + $0x8] sm:$0xff] }
 0x18c   :  { %v99_v63 = vld [vmem:[%s1825_s4] sm:$0xff] }
 0x18d   :  { %1183 = vmatprep.subr.bf16.mxu0 %v489_v0 }
 0x18e   :  { %v213_v1 = vpop.permute.xlu1 %212  ;;  %v215_v2 = vpop.permute.xlu0 %214  ;;  %v451_v3 = vld [vmem:[#allocation3 + $0x60] sm:$0xff]  ;;  %v452_v4 = vld [vmem:[#allocation3 + $0x68] sm:$0xff] }
 0x18f   :  { %222 = vst.msk [vmem:[#allocation3 + $0x50] sm:$0xff] %vm145_vm2, %v213_v1  ;;  %223 = vst.msk [vmem:[#allocation3 + $0x58] sm:$0xff] %vm145_vm2, %v215_v2  ;;  %v481_v5 = vpack.c.bf16 %v452_v4, %v451_v3  ;;  %v102_v4 = vld [vmem:[%s1825_s4 + $0x18] sm:$0xff] }
 0x191   :  { %1184 = vmatpush3.bf16.msra.mxu0 %v481_v5 }
 0x192   :  { %v344_v6 = vpop.permute.xlu1 %343  ;;  %v346_v7 = vpop.permute.xlu0 %345  ;;  %v465_v8 = vld [vmem:[#allocation3 + $0xd0] sm:$0xff]  ;;  %v466_v9 = vld [vmem:[#allocation3 + $0xd8] sm:$0xff] }
 0x193   :  { %355 = vst.msk [vmem:[#allocation3 + $0xc0] sm:$0xff] %vm145_vm2, %v344_v6  ;;  %356 = vst.msk [vmem:[#allocation3 + $0xc8] sm:$0xff] %vm145_vm2, %v346_v7  ;;  %v488_v10 = vpack.c.bf16 %v466_v9, %v465_v8  ;;  %v106_v6 = vld [vmem:[%s1825_s4 + $0x38] sm:$0xff]  ;;  %v109_v7 = vld [vmem:[%s1825_s4 + $0x50] sm:$0xff]  ;;  %v475_v8 = vpack.c.bf16 %v440_v62, %v439_v61  ;;  %v433_v9 = vpack.c.bf16 %v102_v4, %v99_v63 }
 0x195   :  { %1185 = vmatprep.subr.bf16.mxu0 %v488_v10 }
 0x196   :  { %v209_v11 = vpop.permute.xlu1 %208  ;;  %v211_v12 = vpop.permute.xlu0 %210  ;;  %v449_v13 = vld [vmem:[#allocation3 + $0x50] sm:$0xff]  ;;  %v450_v14 = vld [vmem:[#allocation3 + $0x58] sm:$0xff] }
 0x197   :  { %220 = vst.msk [vmem:[#allocation3 + $0x40] sm:$0xff] %vm145_vm2, %v209_v11  ;;  %221 = vst.msk [vmem:[#allocation3 + $0x48] sm:$0xff] %vm145_vm2, %v211_v12  ;;  %v480_v15 = vpack.c.bf16 %v450_v14, %v449_v13  ;;  %v437_v12 = vpack.c.bf16 %v109_v7, %v106_v6  ;;  %v105_v14 = vld [vmem:[%s1825_s4 + $0x30] sm:$0xff] }
 0x199   :  { %1186 = vmatpush3.bf16.msra.mxu0 %v480_v15  ;;  %v108_v15 = vld [vmem:[%s1825_s4 + $0x48] sm:$0xff] }
 0x19a   :  { %v311_v16 = vpop.permute.xlu1 %310  ;;  %v313_v17 = vpop.permute.xlu0 %312  ;;  %v463_v18 = vld [vmem:[#allocation3 + $0xc0] sm:$0xff]  ;;  %v464_v19 = vld [vmem:[#allocation3 + $0xc8] sm:$0xff] }
 0x19b   :  { %320 = vst.msk [vmem:[#allocation3 + $0xb0] sm:$0xff] %vm145_vm2, %v311_v16  ;;  %321 = vst.msk [vmem:[#allocation3 + $0xb8] sm:$0xff] %vm145_vm2, %v313_v17  ;;  %v487_v20 = vpack.c.bf16 %v464_v19, %v463_v18  ;;  %v107_v16 = vld [vmem:[%s1825_s4 + $0x40] sm:$0xff]  ;;  %v110_v19 = vld [vmem:[%s1825_s4 + $0x58] sm:$0xff] }
 0x19d   :  { %1187 = vmatprep.subr.bf16.mxu0 %v487_v20 }
 0x19e   :  { %v176_v21 = vpop.permute.xlu1 %175  ;;  %v178_v22 = vpop.permute.xlu0 %177  ;;  %v447_v23 = vld [vmem:[#allocation3 + $0x40] sm:$0xff]  ;;  %v448_v24 = vld [vmem:[#allocation3 + $0x48] sm:$0xff] }
 0x19f   :  { %185 = vst.msk [vmem:[#allocation3 + $0x30] sm:$0xff] %vm145_vm2, %v176_v21  ;;  %186 = vst.msk [vmem:[#allocation3 + $0x38] sm:$0xff] %vm145_vm2, %v178_v22  ;;  %v479_v25 = vpack.c.bf16 %v448_v24, %v447_v23  ;;  %v436_v21 = vpack.c.bf16 %v108_v15, %v105_v14  ;;  %v438_v22 = vpack.c.bf16 %v110_v19, %v107_v16 }
 0x1a1   :  { %1188 = vmatpush3.bf16.msra.mxu0 %v479_v25 }
 0x1a2   :  { %v307_v26 = vpop.permute.xlu1 %306  ;;  %v309_v27 = vpop.permute.xlu0 %308  ;;  %v461_v28 = vld [vmem:[#allocation3 + $0xb0] sm:$0xff]  ;;  %v462_v29 = vld [vmem:[#allocation3 + $0xb8] sm:$0xff] }
 0x1a3   :  { %318 = vst.msk [vmem:[#allocation3 + $0xa0] sm:$0xff] %vm145_vm2, %v307_v26  ;;  %319 = vst.msk [vmem:[#allocation3 + $0xa8] sm:$0xff] %vm145_vm2, %v309_v27  ;;  %v486_v30 = vpack.c.bf16 %v462_v29, %v461_v28 }
 0x1a5   :  { %1189 = vmatprep.subr.bf16.mxu0 %v486_v30 }
 0x1a6   :  { %v172_v31 = vpop.permute.xlu1 %171  ;;  %v174_v32 = vpop.permute.xlu0 %173  ;;  %v445_v33 = vld [vmem:[#allocation3 + $0x30] sm:$0xff]  ;;  %v446_v41 = vld [vmem:[#allocation3 + $0x38] sm:$0xff] }
 0x1a7   :  { %183 = vst.msk [vmem:[#allocation3 + $0x20] sm:$0xff] %vm145_vm2, %v172_v31  ;;  %184 = vst.msk [vmem:[#allocation3 + $0x28] sm:$0xff] %vm145_vm2, %v174_v32  ;;  %v478_v42 = vpack.c.bf16 %v446_v41, %v445_v33 }
 0x1a9   :  { %1190 = vmatpush3.bf16.msra.mxu0 %v478_v42 }
 0x1aa   :  { %v274_v43 = vpop.permute.xlu1 %273  ;;  %v276_v44 = vpop.permute.xlu0 %275  ;;  %v459_v45 = vld [vmem:[#allocation3 + $0xa0] sm:$0xff]  ;;  %v460_v46 = vld [vmem:[#allocation3 + $0xa8] sm:$0xff] }
 0x1ab   :  { %283 = vst.msk [vmem:[#allocation3 + $0x90] sm:$0xff] %vm145_vm2, %v274_v43  ;;  %284 = vst.msk [vmem:[#allocation3 + $0x98] sm:$0xff] %vm145_vm2, %v276_v44  ;;  %v485_v47 = vpack.c.bf16 %v460_v46, %v459_v45 }
 0x1ad   :  { %1191 = vmatprep.subr.bf16.mxu0 %v485_v47 }
 0x1ae   :  { %v270_v48 = vpop.permute.xlu1 %269  ;;  %v272_v49 = vpop.permute.xlu0 %271  ;;  %v443_v50 = vld [vmem:[#allocation3 + $0x20] sm:$0xff]  ;;  %v444_v51 = vld [vmem:[#allocation3 + $0x28] sm:$0xff] }
 0x1af   :  { %281 = vst.msk [vmem:[#allocation3 + $0x80] sm:$0xff] %vm145_vm2, %v270_v48  ;;  %282 = vst.msk [vmem:[#allocation3 + $0x88] sm:$0xff] %vm145_vm2, %v272_v49  ;;  %v477_v52 = vpack.c.bf16 %v444_v51, %v443_v50 }
 0x1b1   :  { %1192 = vmatpush3.bf16.msra.mxu0 %v477_v52 }
 0x1b2   :  { %v422_v54 = vpop.permute.xlu1 %421  ;;  %v424_v55 = vpop.permute.xlu0 %423  ;;  %v457_v56 = vld [vmem:[#allocation3 + $0x90] sm:$0xff]  ;;  %v458_v57 = vld [vmem:[#allocation3 + $0x98] sm:$0xff] }
 0x1b3   :  { %431 = vst.msk [vmem:[#allocation3 + $0x110] sm:$0xff] %vm145_vm2, %v422_v54  ;;  %432 = vst.msk [vmem:[#allocation3 + $0x118] sm:$0xff] %vm145_vm2, %v424_v55  ;;  %v484_v58 = vpack.c.bf16 %v458_v57, %v457_v56 }
 0x1b5   :  { %1193 = vmatprep.subr.bf16.mxu0 %v484_v58 }
 0x1b6   :  { %v418_v0 = vpop.permute.xlu1 %417  ;;  %1194 = vmatpush3.bf16.msra.mxu0 %v476_v60  ;;  %v420_v1 = vpop.permute.xlu0 %419  ;;  %v455_v2 = vld [vmem:[#allocation3 + $0x80] sm:$0xff]  ;;  %v456_v3 = vld [vmem:[#allocation3 + $0x88] sm:$0xff] }
 0x1b7   :  { %429 = vst.msk [vmem:[#allocation3 + $0x100] sm:$0xff] %vm145_vm2, %v418_v0  ;;  %430 = vst.msk [vmem:[#allocation3 + $0x108] sm:$0xff] %vm145_vm2, %v420_v1  ;;  %v483_v5 = vpack.c.bf16 %v456_v3, %v455_v2 }
 0x1b9   :  { %1195 = vmatprep.subr.bf16.mxu0 %v483_v5 }
 0x1ba   :  { %1196 = vmatpush3.bf16.msra.mxu0 %v475_v8  ;;  %v473_v10 = vld [vmem:[#allocation3 + $0x110] sm:$0xff]  ;;  %v474_v11 = vld [vmem:[#allocation3 + $0x118] sm:$0xff] }
 0x1bb   :  { %v492_v13 = vpack.c.bf16 %v474_v11, %v473_v10 }
 0x1bd   :  { %532 = vmatmul.mubr.bf16.vlgmr.msra.gmra.mxu0 %v433_v9  ;;  %1245 = vmatprep.subr.bf16.mxu1 %v492_v13 }
 0x1be   :  { %1246 = vmatpush3.bf16.msra.mxu1 %v492_v13  ;;  %v471_v17 = vld [vmem:[#allocation3 + $0x100] sm:$0xff]  ;;  %v472_v18 = vld [vmem:[#allocation3 + $0x108] sm:$0xff]  ;;  %539 = vmatprep.mubr.bf16.mxu0 %v437_v12 }
 0x1bf   :  { %v491_v20 = vpack.c.bf16 %v472_v18, %v471_v17 }
 0x1c1   :  { %1247 = vmatprep.subr.bf16.mxu1 %v491_v20 }
 0x1c2   :  { %1248 = vmatpush3.bf16.msra.mxu1 %v491_v20 }
 0x1c3   :  { %v614_v23 = vpop.permute.xlu1 %613  ;;  %v619_v26 = vpop.permute.xlu0 %618 }
 0x1c5   :  { %540 = vmatmul.mubr.bf16.gmra.mxu0 %v436_v21  ;;  %1250 = vmatmul.mubr.msk.bf16.vlgmr.msra.gmra.mxu1 %vm145_vm2, %v438_v22 }
 0x1c7   :  { %v642_v28 = vpop.permute.xlu1 %641  ;;  %v647_v32 = vpop.permute.xlu0 %646 }
 0x1cb   :  { %v604_v43 = vpop.permute.xlu1 %603  ;;  %v609_v56 = vpop.permute.xlu0 %608 }
 0x1cf   :  { %v632_v59 = vpop.permute.xlu1 %631  ;;  %v637_v1 = vpop.permute.xlu0 %636 }
 0x27d   :  { %v1197_v24 = vpop.f32.mrf.mxu0 }
 0x27f   :  { %v1198_v25 = vpop.f32.mrf.mxu0 }
 0x280   :  { %v1199_v33 = vadd.f32 %v1198_v25, %v1197_v24 }
 0x281   :  { %v1200_v27 = vpop.f32.mrf.mxu0 }
 0x283   :  { %v1201_v29 = vpop.f32.mrf.mxu0 }
 0x284   :  { %v1202_v48 = vadd.f32 %v1201_v29, %v1200_v27 }
 0x285   :  { %v1203_v30 = vpop.f32.mrf.mxu0  ;;  %v1251_v31 = vpop.f32.mrf.mxu1 }
 0x287   :  { %v1204_v41 = vpop.f32.mrf.mxu0  ;;  %v582_v42 = vpop.f32.mrf.mxu1 }
 0x288   :  { %v1205_v44 = vadd.f32 %v1204_v41, %v1203_v30  ;;  %v583_v45 = vadd.f32 %v1199_v33, %v582_v42 }
 0x289   :  { %v1206_v46 = vpop.f32.mrf.mxu0  ;;  %v1252_v47 = vpop.f32.mrf.mxu1 }
 0x28a   :  { %v591_v49 = vadd.f32 %v1251_v31, %v1205_v44  ;;  %v621_v53 = vmul.f32 %v604_v43, %v583_v45 }
 0x28b   :  { %v1207_v50 = vpop.f32.mrf.mxu0  ;;  %v585_v51 = vpop.f32.mrf.mxu1 }
 0x28c   :  { %v623_v52 = vmul.f32 %v614_v23, %v591_v49  ;;  %v1208_v54 = vadd.f32 %v1207_v50, %v1206_v46  ;;  %v586_v55 = vadd.f32 %v1202_v48, %v585_v51  ;;  %v649_v63 = vadd.f32 %v632_v59, %v621_v53  ;;  %v658_v51 = vld [vmem:[%s1828_s7 + $0x8] sm:$0xff] }
 0x28e   :  { %v594_v57 = vadd.f32 %v1252_v47, %v1208_v54  ;;  %v651_v58 = vadd.f32 %v642_v28, %v623_v52  ;;  %v622_v61 = vmul.f32 %v609_v56, %v586_v55  ;;  %v653_v2 = vmax.f32 %v649_v63, 0.0  ;;  %v661_v52 = vld [vmem:[%s1828_s7 + $0x20] sm:$0xff] }
 0x28f   :  { %v990_v53 = vpack.c.bf16 %v661_v52, %v658_v51 }
 0x290   :  { %v624_v60 = vmul.f32 %v619_v26, %v594_v57  ;;  %v655_v62 = vmax.f32 %v651_v58, 0.0  ;;  %v650_v4 = vadd.f32 %v637_v1, %v622_v61  ;;  %v659_v57 = vld [vmem:[%s1828_s7 + $0x10] sm:$0xff]  ;;  %v662_v58 = vld [vmem:[%s1828_s7 + $0x28] sm:$0xff] }
 0x291   :  { %1087 = vmatprep.mubr.bf16.mxu1 %v990_v53  ;;  %v991_v59 = vpack.c.bf16 %v662_v58, %v659_v57 }
 0x292   :  { %677 = vrot.lane.b32.xlu1 %v655_v62, %s1287_s3  ;;  %v652_v0 = vadd.f32 %v647_v32, %v624_v60  ;;  %v654_v5 = vmax.f32 %v650_v4, 0.0 }
 0x293   :  { %1257 = vmatprep.mubr.msk.bf16.mxu0 %vm145_vm2, %v991_v59 }
 0x294   :  { %v656_v3 = vmax.f32 %v652_v0, 0.0 }
 0x296   :  { %673 = vrot.lane.b32.xlu1 %v653_v2, %s1287_s3  ;;  %679 = vrot.lane.b32.xlu0 %v656_v3, %s1287_s3 }
 0x29a   :  { %925 = vrot.lane.b32.xlu1 %v1396_v35, %s1289_s11  ;;  %675 = vrot.lane.b32.xlu0 %v654_v5, %s1287_s3 }
 0x29e   :  { %888 = vrot.lane.b32.xlu1 %v1410_v37, %s1291_s17  ;;  %790 = vrot.lane.b32.xlu0 %v1391_v34, %s1288_s10  ;;  %v1171_v34 = vld [vmem:[%s1824_s1] ss:$0 sm:$0xff]  ;;  %s1834_s1 = smov 123  }
 0x2a2   :  { %851 = vrot.lane.b32.xlu1 %v1424_v39, %s1293_s22  ;;  %753 = vrot.lane.b32.xlu0 %v1405_v36, %s1290_s16 }
 0x2a6   :  { %962 = vrot.lane.b32.xlu1 %v1433_v40, %s1294_s25  ;;  %716 = vrot.lane.b32.xlu0 %v1419_v38, %s1292_s2  ;;  %s1835_s2 = smov 118  }
 0x304   :  { %v678_v35 = vpop.permute.xlu1 %677 }
 0x305   :  { %687 = vst.msk [vmem:[#allocation2 + $0x10] sm:$0xff] %vm127_vm1, %v678_v35 }
 0x308   :  { %v674_v6 = vpop.permute.xlu1 %673  ;;  %v680_v37 = vpop.permute.xlu0 %679 }
 0x309   :  { %685 = vst.msk [vmem:[#allocation2] sm:$0xff] %vm127_vm1, %v674_v6  ;;  %688 = vst.msk [vmem:[#allocation2 + $0x18] sm:$0xff] %vm127_vm1, %v680_v37 }
 0x30c   :  { %v676_v36 = vpop.permute.xlu0 %675  ;;  %v1642_v39 = vld [vmem:[#allocation2 + $0x10] sm:$0xff]  ;;  %v926_v40 = vpop.permute.xlu1 %925 }
 0x30d   :  { %686 = vst.msk [vmem:[#allocation2 + $0x8] sm:$0xff] %vm127_vm1, %v676_v36  ;;  %v700_v38 = vmul.f32 %v1171_v34, %v1642_v39  ;;  %v930_v27 = vmul.f32 %v1642_v39, %v926_v40 }
 0x30f   :  { %704 = vst.msk [vmem:[#allocation3 + $0x10] sm:$0xff] %vm145_vm2, %v700_v38 }
 0x310   :  { %v1647_v7 = vld [vmem:[#allocation2] sm:$0xff]  ;;  %v1649_v8 = vld [vmem:[#allocation2 + $0x18] sm:$0xff]  ;;  %v791_v10 = vpop.permute.xlu0 %790  ;;  %v889_v16 = vpop.permute.xlu1 %888 }
 0x311   :  { %v928_v9 = vmul.f32 %v926_v40, %v1647_v7  ;;  %v701_v11 = vmul.f32 %v1171_v34, %v1649_v8  ;;  %v698_v12 = vmul.f32 %v1171_v34, %v1647_v7  ;;  %v793_v15 = vmul.f32 %v1647_v7, %v791_v10 }
 0x312   :  { %v891_v19 = vmul.f32 %v1647_v7, %v889_v16  ;;  %v931_v28 = vmul.f32 %v1649_v8, %v926_v40  ;;  %v795_v29 = vmul.f32 %v1642_v39, %v791_v10  ;;  %v796_v30 = vmul.f32 %v1649_v8, %v791_v10 }
 0x313   :  { %936 = vrot.lane.b32.xlu0 %v928_v9, %s1295_s28  ;;  %705 = vst.msk [vmem:[#allocation3 + $0x18] sm:$0xff] %vm145_vm2, %v701_v11  ;;  %702 = vst.msk [vmem:[#allocation3] sm:$0xff] %vm145_vm2, %v698_v12  ;;  %v893_v31 = vmul.f32 %v1642_v39, %v889_v16  ;;  %v894_v32 = vmul.f32 %v1649_v8, %v889_v16 }
 0x314   :  { %v1655_v13 = vld [vmem:[#allocation2 + $0x8] sm:$0xff]  ;;  %v754_v20 = vpop.permute.xlu0 %753  ;;  %v852_v23 = vpop.permute.xlu1 %851 }
 0x315   :  { %v929_v14 = vmul.f32 %v926_v40, %v1655_v13  ;;  %v699_v17 = vmul.f32 %v1171_v34, %v1655_v13  ;;  %v794_v18 = vmul.f32 %v1655_v13, %v791_v10  ;;  %v892_v21 = vmul.f32 %v1655_v13, %v889_v16 }
 0x316   :  { %v756_v22 = vmul.f32 %v1647_v7, %v754_v20  ;;  %v757_v24 = vmul.f32 %v1655_v13, %v754_v20  ;;  %v854_v25 = vmul.f32 %v1647_v7, %v852_v23  ;;  %v855_v26 = vmul.f32 %v1655_v13, %v852_v23 }
 0x317   :  { %938 = vrot.lane.b32.xlu1 %v929_v14, %s1295_s28  ;;  %801 = vrot.lane.b32.xlu0 %v793_v15, %s1296_s29  ;;  %703 = vst.msk [vmem:[#allocation3 + $0x8] sm:$0xff] %vm145_vm2, %v699_v17  ;;  %v758_v33 = vmul.f32 %v1642_v39, %v754_v20  ;;  %v759_v41 = vmul.f32 %v1649_v8, %v754_v20 }
 0x318   :  { %v856_v42 = vmul.f32 %v1642_v39, %v852_v23  ;;  %v717_v43 = vpop.permute.xlu0 %716  ;;  %v857_v44 = vmul.f32 %v1649_v8, %v852_v23  ;;  %v963_v49 = vpop.permute.xlu1 %962 }
 0x319   :  { %v721_v45 = vmul.f32 %v1642_v39, %v717_v43  ;;  %v722_v46 = vmul.f32 %v1649_v8, %v717_v43  ;;  %v719_v47 = vmul.f32 %v1647_v7, %v717_v43  ;;  %v720_v48 = vmul.f32 %v1655_v13, %v717_v43 }
 0x31a   :  { %v967_v50 = vmul.f32 %v963_v49, %v1642_v39  ;;  %v965_v54 = vmul.f32 %v963_v49, %v1647_v7  ;;  %v968_v55 = vmul.f32 %v963_v49, %v1649_v8  ;;  %v966_v56 = vmul.f32 %v963_v49, %v1655_v13 }
 0x31b   :  { %803 = vrot.lane.b32.xlu1 %v794_v18, %s1296_s29  ;;  %899 = vrot.lane.b32.xlu0 %v891_v19, %s1297_s30 }
 0x31f   :  { %901 = vrot.lane.b32.xlu1 %v892_v21, %s1297_s30  ;;  %764 = vrot.lane.b32.xlu0 %v756_v22, %s1298_s9 }
 0x323   :  { %766 = vrot.lane.b32.xlu1 %v757_v24, %s1298_s9  ;;  %862 = vrot.lane.b32.xlu0 %v854_v25, %s1299_s12 }
 0x327   :  { %864 = vrot.lane.b32.xlu1 %v855_v26, %s1299_s12  ;;  %940 = vrot.lane.b32.xlu0 %v930_v27, %s1295_s28 }
 0x32b   :  { %942 = vrot.lane.b32.xlu1 %v931_v28, %s1295_s28  ;;  %805 = vrot.lane.b32.xlu0 %v795_v29, %s1296_s29 }
 0x32f   :  { %807 = vrot.lane.b32.xlu1 %v796_v30, %s1296_s29  ;;  %903 = vrot.lane.b32.xlu0 %v893_v31, %s1297_s30 }
 0x333   :  { %905 = vrot.lane.b32.xlu1 %v894_v32, %s1297_s30  ;;  %768 = vrot.lane.b32.xlu0 %v758_v33, %s1298_s9 }
 0x337   :  { %770 = vrot.lane.b32.xlu1 %v759_v41, %s1298_s9  ;;  %866 = vrot.lane.b32.xlu0 %v856_v42, %s1299_s12 }
 0x33b   :  { %868 = vrot.lane.b32.xlu1 %v857_v44, %s1299_s12  ;;  %731 = vrot.lane.b32.xlu0 %v721_v45, %s1300_s13 }
 0x33f   :  { %733 = vrot.lane.b32.xlu1 %v722_v46, %s1300_s13  ;;  %727 = vrot.lane.b32.xlu0 %v719_v47, %s1300_s13 }
 0x343   :  { %729 = vrot.lane.b32.xlu1 %v720_v48, %s1300_s13  ;;  %829 = vrot.lane.b32.xlu0 %v1642_v39, %s1834_s1 }
 0x347   :  { %831 = vrot.lane.b32.xlu1 %v1649_v8, %s1834_s1  ;;  %825 = vrot.lane.b32.xlu0 %v1647_v7, %s1834_s1 }
 0x34b   :  { %827 = vrot.lane.b32.xlu1 %v1655_v13, %s1834_s1  ;;  %977 = vrot.lane.b32.xlu0 %v967_v50, %s1835_s2 }
 0x34f   :  { %979 = vrot.lane.b32.xlu1 %v968_v55, %s1835_s2  ;;  %973 = vrot.lane.b32.xlu0 %v965_v54, %s1835_s2 }
 0x353   :  { %975 = vrot.lane.b32.xlu1 %v966_v56, %s1835_s2 }
 0x385   :  { %v937_v60 = vpop.permute.xlu0 %936 }
 0x386   :  { %948 = vst.msk [vmem:[#allocation3 + $0xe0] sm:$0xff] %vm145_vm2, %v937_v60 }
 0x389   :  { %v939_v61 = vpop.permute.xlu1 %938  ;;  %v802_v62 = vpop.permute.xlu0 %801 }
 0x38a   :  { %949 = vst.msk [vmem:[#allocation3 + $0xe8] sm:$0xff] %vm145_vm2, %v939_v61  ;;  %813 = vst.msk [vmem:[#allocation3 + $0x60] sm:$0xff] %vm145_vm2, %v802_v62  ;;  %v998_v61 = vld [vmem:[#allocation3 + $0x18] sm:$0xff] }
 0x38d   :  { %v804_v63 = vpop.permute.xlu1 %803  ;;  %v900_v0 = vpop.permute.xlu0 %899  ;;  %v1023_v15 = vld [vmem:[#allocation3 + $0xe0] sm:$0xff] }
 0x38e   :  { %814 = vst.msk [vmem:[#allocation3 + $0x68] sm:$0xff] %vm145_vm2, %v804_v63  ;;  %911 = vst.msk [vmem:[#allocation3 + $0xc0] sm:$0xff] %vm145_vm2, %v900_v0 }
 0x391   :  { %v902_v1 = vpop.permute.xlu1 %901  ;;  %v765_v2 = vpop.permute.xlu0 %764  ;;  %v1024_v9 = vld [vmem:[#allocation3 + $0xe8] sm:$0xff]  ;;  %v1007_v20 = vld [vmem:[#allocation3 + $0x60] sm:$0xff] }
 0x392   :  { %912 = vst.msk [vmem:[#allocation3 + $0xc8] sm:$0xff] %vm145_vm2, %v902_v1  ;;  %776 = vst.msk [vmem:[#allocation3 + $0x40] sm:$0xff] %vm145_vm2, %v765_v2  ;;  %v1045_v16 = vpack.c.bf16 %v1024_v9, %v1023_v15  ;;  %v666_v15 = vld [vmem:[%s1828_s7 + $0x48] sm:$0xff] }
 0x395   :  { %v767_v3 = vpop.permute.xlu1 %766  ;;  %v863_v4 = vpop.permute.xlu0 %862  ;;  %v1008_v17 = vld [vmem:[#allocation3 + $0x68] sm:$0xff]  ;;  %v1019_v31 = vld [vmem:[#allocation3 + $0xc0] sm:$0xff] }
 0x396   :  { %777 = vst.msk [vmem:[#allocation3 + $0x48] sm:$0xff] %vm145_vm2, %v767_v3  ;;  %874 = vst.msk [vmem:[#allocation3 + $0xa0] sm:$0xff] %vm145_vm2, %v863_v4  ;;  %v1037_v23 = vpack.c.bf16 %v1008_v17, %v1007_v20  ;;  %v997_v3 = vld [vmem:[#allocation3 + $0x10] sm:$0xff] }
 0x397   :  { %v1032_v4 = vpack.c.bf16 %v998_v61, %v997_v3 }
 0x399   :  { %v865_v5 = vpop.permute.xlu1 %864  ;;  %v941_v35 = vpop.permute.xlu0 %940  ;;  %v1020_v25 = vld [vmem:[#allocation3 + $0xc8] sm:$0xff]  ;;  %v1003_v43 = vld [vmem:[#allocation3 + $0x40] sm:$0xff] }
 0x39a   :  { %875 = vst.msk [vmem:[#allocation3 + $0xa8] sm:$0xff] %vm145_vm2, %v865_v5  ;;  %950 = vst.msk [vmem:[#allocation3 + $0xf0] sm:$0xff] %vm145_vm2, %v941_v35  ;;  %v1043_v32 = vpack.c.bf16 %v1020_v25, %v1019_v31  ;;  %v996_v5 = vld [vmem:[#allocation3 + $0x8] sm:$0xff]  ;;  %v657_v35 = vld [vmem:[%s1828_s7] sm:$0xff] }
 0x39b   :  { %v1281_v31 = vld [vmem:[%s1823_s0] sm:$0xff] }
 0x39d   :  { %v943_v6 = vpop.permute.xlu1 %942  ;;  %v806_v37 = vpop.permute.xlu0 %805  ;;  %v1004_v33 = vld [vmem:[#allocation3 + $0x48] sm:$0xff]  ;;  %v1015_v54 = vld [vmem:[#allocation3 + $0xa0] sm:$0xff] }
 0x39e   :  { %951 = vst.msk [vmem:[#allocation3 + $0xf8] sm:$0xff] %vm145_vm2, %v943_v6  ;;  %815 = vst.msk [vmem:[#allocation3 + $0x70] sm:$0xff] %vm145_vm2, %v806_v37  ;;  %v1035_v46 = vpack.c.bf16 %v1004_v33, %v1003_v43 }
 0x3a1   :  { %v808_v34 = vpop.permute.xlu1 %807  ;;  %v904_v36 = vpop.permute.xlu0 %903  ;;  %v1025_v40 = vld [vmem:[#allocation3 + $0xf0] sm:$0xff]  ;;  %v1016_v48 = vld [vmem:[#allocation3 + $0xa8] sm:$0xff] }
 0x3a2   :  { %816 = vst.msk [vmem:[#allocation3 + $0x78] sm:$0xff] %vm145_vm2, %v808_v34  ;;  %913 = vst.msk [vmem:[#allocation3 + $0xd0] sm:$0xff] %vm145_vm2, %v904_v36  ;;  %v1041_v55 = vpack.c.bf16 %v1016_v48, %v1015_v54  ;;  %v660_v36 = vld [vmem:[%s1828_s7 + $0x18] sm:$0xff]  ;;  %v1283_v48 = vld [vmem:[%s1823_s0 + $0x8] sm:$0xff] }
 0x3a3   :  { %v989_v9 = vpack.c.bf16 %v660_v36, %v657_v35 }
 0x3a5   :  { %v906_v39 = vpop.permute.xlu1 %905  ;;  %v769_v38 = vpop.permute.xlu0 %768  ;;  %v1026_v7 = vld [vmem:[#allocation3 + $0xf8] sm:$0xff]  ;;  %v1009_v12 = vld [vmem:[#allocation3 + $0x70] sm:$0xff] }
 0x3a6   :  { %914 = vst.msk [vmem:[#allocation3 + $0xd8] sm:$0xff] %vm145_vm2, %v906_v39  ;;  %778 = vst.msk [vmem:[#allocation3 + $0x50] sm:$0xff] %vm145_vm2, %v769_v38  ;;  %v1046_v8 = vpack.c.bf16 %v1026_v7, %v1025_v40  ;;  %v995_v38 = vld [vmem:[#allocation3] sm:$0xff]  ;;  %v664_v40 = vld [vmem:[%s1828_s7 + $0x38] sm:$0xff] }
 0x3a7   :  { %v667_v7 = vld [vmem:[%s1828_s7 + $0x50] sm:$0xff] }
 0x3a8   :  { %1213 = vmatprep.subr.bf16.mxu1 %v1046_v8  ;;  %v1031_v8 = vpack.c.bf16 %v996_v5, %v995_v38 }
 0x3a9   :  { %v771_v10 = vpop.permute.xlu1 %770  ;;  %v867_v11 = vpop.permute.xlu0 %866  ;;  %v1010_v13 = vld [vmem:[#allocation3 + $0x78] sm:$0xff]  ;;  %v1021_v21 = vld [vmem:[#allocation3 + $0xd0] sm:$0xff] }
 0x3aa   :  { %779 = vst.msk [vmem:[#allocation3 + $0x58] sm:$0xff] %vm145_vm2, %v771_v10  ;;  %876 = vst.msk [vmem:[#allocation3 + $0xb0] sm:$0xff] %vm145_vm2, %v867_v11  ;;  %v1038_v14 = vpack.c.bf16 %v1010_v13, %v1009_v12  ;;  %v993_v12 = vpack.c.bf16 %v667_v7, %v664_v40 }
 0x3ac   :  { %1214 = vmatpush3.bf16.msra.mxu1 %v1038_v14  ;;  %v663_v14 = vld [vmem:[%s1828_s7 + $0x30] sm:$0xff] }
 0x3ad   :  { %v869_v18 = vpop.permute.xlu1 %868  ;;  %1215 = vmatprep.subr.bf16.mxu1 %v1045_v16  ;;  %v732_v19 = vpop.permute.xlu0 %731  ;;  %v1022_v22 = vld [vmem:[#allocation3 + $0xd8] sm:$0xff]  ;;  %v1005_v28 = vld [vmem:[#allocation3 + $0x50] sm:$0xff]  ;;  %v665_v16 = vld [vmem:[%s1828_s7 + $0x40] sm:$0xff] }
 0x3ae   :  { %877 = vst.msk [vmem:[#allocation3 + $0xb8] sm:$0xff] %vm145_vm2, %v869_v18  ;;  %741 = vst.msk [vmem:[#allocation3 + $0x30] sm:$0xff] %vm145_vm2, %v732_v19  ;;  %v1044_v24 = vpack.c.bf16 %v1022_v22, %v1021_v21  ;;  %v668_v19 = vld [vmem:[%s1828_s7 + $0x58] sm:$0xff]  ;;  %v992_v21 = vpack.c.bf16 %v666_v15, %v663_v14 }
 0x3af   :  { %v994_v22 = vpack.c.bf16 %v668_v19, %v665_v16 }
 0x3b0   :  { %1216 = vmatpush3.bf16.msra.mxu1 %v1037_v23 }
 0x3b1   :  { %v734_v26 = vpop.permute.xlu1 %733  ;;  %1217 = vmatprep.subr.bf16.mxu1 %v1044_v24  ;;  %v728_v27 = vpop.permute.xlu0 %727  ;;  %v1006_v29 = vld [vmem:[#allocation3 + $0x58] sm:$0xff]  ;;  %v1017_v44 = vld [vmem:[#allocation3 + $0xb0] sm:$0xff] }
 0x3b2   :  { %742 = vst.msk [vmem:[#allocation3 + $0x38] sm:$0xff] %vm145_vm2, %v734_v26  ;;  %739 = vst.msk [vmem:[#allocation3 + $0x20] sm:$0xff] %vm145_vm2, %v728_v27  ;;  %v1036_v30 = vpack.c.bf16 %v1006_v29, %v1005_v28 }
 0x3b4   :  { %1218 = vmatpush3.bf16.msra.mxu1 %v1036_v30 }
 0x3b5   :  { %v730_v41 = vpop.permute.xlu1 %729  ;;  %1219 = vmatprep.subr.bf16.mxu1 %v1043_v32  ;;  %v830_v42 = vpop.permute.xlu0 %829  ;;  %v1018_v45 = vld [vmem:[#allocation3 + $0xb8] sm:$0xff]  ;;  %v1001_v51 = vld [vmem:[#allocation3 + $0x30] sm:$0xff] }
 0x3b6   :  { %740 = vst.msk [vmem:[#allocation3 + $0x28] sm:$0xff] %vm145_vm2, %v730_v41  ;;  %839 = vst.msk [vmem:[#allocation3 + $0x90] sm:$0xff] %vm145_vm2, %v830_v42  ;;  %v1042_v47 = vpack.c.bf16 %v1018_v45, %v1017_v44 }
 0x3b8   :  { %1220 = vmatpush3.bf16.msra.mxu1 %v1035_v46  ;;  %v1282_v46 = vld [vmem:[%s1823_s0 + $0x10] sm:$0xff] }
 0x3b9   :  { %v832_v49 = vpop.permute.xlu1 %831  ;;  %1221 = vmatprep.subr.bf16.mxu1 %v1042_v47  ;;  %v826_v50 = vpop.permute.xlu0 %825  ;;  %v1002_v52 = vld [vmem:[#allocation3 + $0x38] sm:$0xff]  ;;  %v999_v58 = vld [vmem:[#allocation3 + $0x20] sm:$0xff] }
 0x3ba   :  { %840 = vst.msk [vmem:[#allocation3 + $0x98] sm:$0xff] %vm145_vm2, %v832_v49  ;;  %837 = vst.msk [vmem:[#allocation3 + $0x80] sm:$0xff] %vm145_vm2, %v826_v50  ;;  %v1034_v53 = vpack.c.bf16 %v1002_v52, %v1001_v51 }
 0x3bc   :  { %1222 = vmatpush3.bf16.msra.mxu1 %v1034_v53 }
 0x3bd   :  { %v828_v56 = vpop.permute.xlu1 %827  ;;  %1223 = vmatprep.subr.bf16.mxu1 %v1041_v55  ;;  %v978_v57 = vpop.permute.xlu0 %977  ;;  %v1000_v59 = vld [vmem:[#allocation3 + $0x28] sm:$0xff]  ;;  %v1013_v0 = vld [vmem:[#allocation3 + $0x90] sm:$0xff]  ;;  %v1284_v55 = vld [vmem:[%s1823_s0 + $0x18] sm:$0xff] }
 0x3be   :  { %838 = vst.msk [vmem:[#allocation3 + $0x88] sm:$0xff] %vm145_vm2, %v828_v56  ;;  %987 = vst.msk [vmem:[#allocation3 + $0x110] sm:$0xff] %vm145_vm2, %v978_v57  ;;  %v1033_v60 = vpack.c.bf16 %v1000_v59, %v999_v58 }
 0x3c0   :  { %1224 = vmatpush3.bf16.msra.mxu1 %v1033_v60 }
 0x3c1   :  { %v980_v62 = vpop.permute.xlu1 %979  ;;  %v974_v63 = vpop.permute.xlu0 %973  ;;  %v1014_v1 = vld [vmem:[#allocation3 + $0x98] sm:$0xff]  ;;  %v1011_v37 = vld [vmem:[#allocation3 + $0x80] sm:$0xff] }
 0x3c2   :  { %988 = vst.msk [vmem:[#allocation3 + $0x118] sm:$0xff] %vm145_vm2, %v980_v62  ;;  %985 = vst.msk [vmem:[#allocation3 + $0x100] sm:$0xff] %vm145_vm2, %v974_v63  ;;  %v1040_v2 = vpack.c.bf16 %v1014_v1, %v1013_v0 }
 0x3c4   :  { %1225 = vmatprep.subr.bf16.mxu1 %v1040_v2 }
 0x3c5   :  { %v976_v6 = vpop.permute.xlu1 %975  ;;  %1226 = vmatpush3.bf16.msra.mxu1 %v1032_v4  ;;  %v1012_v34 = vld [vmem:[#allocation3 + $0x88] sm:$0xff]  ;;  %v1029_v10 = vld [vmem:[#allocation3 + $0x110] sm:$0xff] }
 0x3c6   :  { %986 = vst.msk [vmem:[#allocation3 + $0x108] sm:$0xff] %vm145_vm2, %v976_v6  ;;  %v1039_v39 = vpack.c.bf16 %v1012_v34, %v1011_v37 }
 0x3c8   :  { %1227 = vmatprep.subr.bf16.mxu1 %v1039_v39 }
 0x3c9   :  { %1228 = vmatpush3.bf16.msra.mxu1 %v1031_v8  ;;  %v1030_v11 = vld [vmem:[#allocation3 + $0x118] sm:$0xff]  ;;  %v1027_v17 = vld [vmem:[#allocation3 + $0x100] sm:$0xff] }
 0x3ca   :  { %v1048_v13 = vpack.c.bf16 %v1030_v11, %v1029_v10 }
 0x3cc   :  { %1088 = vmatmul.mubr.bf16.vlgmr.msra.gmra.mxu1 %v989_v9  ;;  %1253 = vmatprep.subr.bf16.mxu0 %v1048_v13 }
 0x3cd   :  { %1254 = vmatpush3.bf16.msra.mxu0 %v1048_v13  ;;  %v1028_v18 = vld [vmem:[#allocation3 + $0x108] sm:$0xff]  ;;  %1095 = vmatprep.mubr.bf16.mxu1 %v993_v12 }
 0x3ce   :  { %v1047_v20 = vpack.c.bf16 %v1028_v18, %v1027_v17 }
 0x3d0   :  { %1255 = vmatprep.subr.bf16.mxu0 %v1047_v20 }
 0x3d1   :  { %1256 = vmatpush3.bf16.msra.mxu0 %v1047_v20 }
 0x3d4   :  { %1096 = vmatmul.mubr.bf16.gmra.mxu1 %v992_v21  ;;  %1258 = vmatmul.mubr.msk.bf16.vlgmr.msra.gmra.mxu0 %vm145_vm2, %v994_v22 }
 0x48c   :  { %v1229_v23 = vpop.f32.mrf.mxu1 }
 0x48e   :  { %v1230_v24 = vpop.f32.mrf.mxu1 }
 0x48f   :  { %v1231_v26 = vadd.f32 %v1230_v24, %v1229_v23 }
 0x490   :  { %v1232_v25 = vpop.f32.mrf.mxu1 }
 0x491   :  { %v1090_v32 = vadd.f32 %v1281_v31, %v1231_v26 }
 0x492   :  { %v1233_v27 = vpop.f32.mrf.mxu1 }
 0x493   :  { %v1234_v30 = vadd.f32 %v1233_v27, %v1232_v25 }
 0x494   :  { %v1235_v28 = vpop.f32.mrf.mxu1  ;;  %v1259_v29 = vpop.f32.mrf.mxu0 }
 0x495   :  { %v1093_v49 = vadd.f32 %v1283_v48, %v1234_v30 }
 0x496   :  { %v1236_v33 = vpop.f32.mrf.mxu1  ;;  %v1138_v41 = vpop.f32.mrf.mxu0 }
 0x497   :  { %v1237_v42 = vadd.f32 %v1236_v33, %v1235_v28  ;;  %v1139_v43 = vadd.f32 %v1138_v41, %v1090_v32 }
 0x498   :  { %v1238_v44 = vpop.f32.mrf.mxu1  ;;  %v1260_v45 = vpop.f32.mrf.mxu0 }
 0x499   :  { %v1098_v47 = vadd.f32 %v1282_v46, %v1237_v42  ;;  %1153 = vst.msk [vmem:[%s1829_s8] sm:$0xff] %vm145_vm2, %v1139_v43 }
 0x49a   :  { %v1239_v50 = vpop.f32.mrf.mxu1  ;;  %v1141_v51 = vpop.f32.mrf.mxu0 }
 0x49b   :  { %v1147_v52 = vadd.f32 %v1259_v29, %v1098_v47  ;;  %v1240_v53 = vadd.f32 %v1239_v50, %v1238_v44  ;;  %v1142_v54 = vadd.f32 %v1141_v51, %v1093_v49 }
 0x49d   :  { %1155 = vst.msk [vmem:[%s1829_s8 + $0x10] sm:$0xff] %vm145_vm2, %v1147_v52  ;;  %v1101_v56 = vadd.f32 %v1284_v55, %v1240_v53  ;;  %1154 = vst.msk [vmem:[%s1829_s8 + $0x8] sm:$0xff] %vm145_vm2, %v1142_v54 }
 0x49f   :  { %v1150_v57 = vadd.f32 %v1260_v45, %v1101_v56 }
 0x4a1   :  { %1156 = vst.msk [vmem:[%s1829_s8 + $0x18] sm:$0xff] %vm145_vm2, %v1150_v57 }

// kernel: unet2d_forward.53
= control target key start
LH: loop header
LB: loop body
LE: loop exit
PB: predicated region body
PF: predicated region fallthrough
CT: control target
= control target key end

     0   :  { %v143_v3 = vmov 0   ;;  %vm54_vm0 = vcmask 261120   ;;  %s235_s0 = inlined_call_operand.vmem [shape: f32[32,32], index: 0, kind: input, shape index: {}]   ;;  %s236_s1 = inlined_call_operand.vmem [shape: f32[32,32], index: 1, kind: input, shape index: {}]   ;;  %s237_s2 = inlined_call_operand.vmem [shape: f32[32,1], index: 2, kind: input, shape index: {}]   ;;  %s238_s3 = inlined_call_operand.vmem [shape: f32[32,32], index: 3, kind: input, shape index: {}]   ;;  %s239_s4 = inlined_call_operand.vmem [shape: f32[32,32], index: 4, kind: output, shape index: {}]  }
   0x1   :  { %v20_v0 = vld [vmem:[%s235_s0 + $0x10] sm:$0xff]  ;;  %v21_v1 = vld [vmem:[%s235_s0 + $0x18] sm:$0xff]  ;;  %v18_v2 = vld [vmem:[%s235_s0] sm:$0xff]  ;;  %142 = vset.pattern.permute.xlu1 %v143_v3  ;;  %141 = vset.pattern.permute.xlu0 %v143_v3 }
   0x2   :  { %v29_v4 = vpack.c.bf16 %v21_v1, %v20_v0  ;;  %v19_v5 = vld [vmem:[%s235_s0 + $0x8] sm:$0xff]  ;;  %v22_v6 = vld [vmem:[%s236_s1] sm:$0xff]  ;;  %v32_v10 = vld [vmem:[%s237_s2 + $0x10] sm:$0xff] }
   0x3   :  { %v23_v7 = vld [vmem:[%s236_s1 + $0x8] sm:$0xff]  ;;  %v28_v8 = vpack.c.bf16 %v19_v5, %v18_v2  ;;  %46 = vperm.xlu1 %142, %v32_v10   ;;  %v30_v11 = vld [vmem:[%s237_s2] sm:$0xff]  ;;  %v24_v12 = vld [vmem:[%s236_s1 + $0x10] sm:$0xff] }
   0x4   :  { %v26_v9 = vpack.c.bf16 %v23_v7, %v22_v6  ;;  %132 = vmatprep.subr.bf16.mxu0 %v29_v4  ;;  %v25_v13 = vld [vmem:[%s236_s1 + $0x18] sm:$0xff]  ;;  %36 = vperm.xlu0 %141, %v30_v11   ;;  %v31_v15 = vld [vmem:[%s237_s2 + $0x8] sm:$0xff]  ;;  %v112_v20 = vld [vmem:[%s238_s3 + $0x10] sm:$0xff] }
   0x5   :  { %133 = vmatpush3.bf16.msra.mxu0 %v29_v4  ;;  %v33_v14 = vld [vmem:[%s237_s2 + $0x18] sm:$0xff]  ;;  %v27_v16 = vpack.c.bf16 %v25_v13, %v24_v12  ;;  %v110_v23 = vld [vmem:[%s238_s3] sm:$0xff]  ;;  %v111_v33 = vld [vmem:[%s238_s3 + $0x8] sm:$0xff] }
   0x6   :  { %136 = vmatprep.mubr.msk.bf16.mxu0 %vm54_vm0, %v26_v9  ;;  %134 = vmatprep.subr.bf16.mxu0 %v28_v8  ;;  %v113_v28 = vld [vmem:[%s238_s3 + $0x18] sm:$0xff] }
   0x7   :  { %51 = vperm.xlu1 %142, %v33_v14  }
   0x8   :  { %41 = vperm.xlu0 %141, %v31_v15  }
   0x9   :  { %135 = vmatpush3.bf16.msra.mxu0 %v28_v8 }
   0xc   :  { %137 = vmatmul.mubr.msk.bf16.vlgmr.msra.gmra.mxu0 %vm54_vm0, %v27_v16 }
  0x7e   :  { %v47_v17 = vpop.permute.xlu1 %46 }
  0x7f   :  { %v37_v18 = vpop.permute.xlu0 %36 }
  0x82   :  { %v52_v26 = vpop.permute.xlu1 %51 }
  0x83   :  { %v42_v31 = vpop.permute.xlu0 %41 }
  0xcc   :  { %v138_v19 = vpop.f32.mrf.mxu0 }
  0xcd   :  { %v104_v21 = vadd.f32 %v138_v19, %v47_v17 }
  0xce   :  { %v95_v22 = vpop.f32.mrf.mxu0 }
  0xcf   :  { %v116_v24 = vadd.f32 %v112_v20, %v104_v21  ;;  %v96_v25 = vadd.f32 %v95_v22, %v37_v18 }
  0xd0   :  { %v139_v27 = vpop.f32.mrf.mxu0 }
  0xd1   :  { %120 = vst.msk [vmem:[%s239_s4 + $0x10] sm:$0xff] %vm54_vm0, %v116_v24  ;;  %v114_v29 = vadd.f32 %v110_v23, %v96_v25  ;;  %v107_v30 = vadd.f32 %v139_v27, %v52_v26 }
  0xd2   :  { %v98_v32 = vpop.f32.mrf.mxu0 }
  0xd3   :  { %118 = vst.msk [vmem:[%s239_s4] sm:$0xff] %vm54_vm0, %v114_v29  ;;  %v117_v34 = vadd.f32 %v113_v28, %v107_v30  ;;  %v99_v35 = vadd.f32 %v98_v32, %v42_v31 }
  0xd5   :  { %121 = vst.msk [vmem:[%s239_s4 + $0x18] sm:$0xff] %vm54_vm0, %v117_v34  ;;  %v115_v36 = vadd.f32 %v111_v33, %v99_v35 }
  0xd7   :  { %119 = vst.msk [vmem:[%s239_s4 + $0x8] sm:$0xff] %vm54_vm0, %v115_v36 }

// kernel: unet2d_forward.57
= control target key start
LH: loop header
LB: loop body
LE: loop exit
PB: predicated region body
PF: predicated region fallthrough
CT: control target
= control target key end

     0   :  { %v219_v0 = vmov 0   ;;  %vm92_vm0 = vcmask 261120   ;;  %s341_s3 = inlined_call_operand.vmem [shape: f32[32,1], index: 3, kind: input, shape index: {}]   ;;  %s342_s2 = inlined_call_operand.vmem [shape: f32[32,1], index: 2, kind: input, shape index: {}]   ;;  %s343_s1 = inlined_call_operand.vmem [shape: f32[64,32], index: 1, kind: input, shape index: {}]   ;;  %s344_s0 = inlined_call_operand.vmem [shape: f32[32,32], index: 0, kind: input, shape index: {}]   ;;  %s345_s4 = inlined_call_operand.vmem [shape: f32[64,32], index: 4, kind: output, shape index: {}]  }
   0x1   :  { %218 = vset.pattern.permute.xlu1 %v219_v0  ;;  %217 = vset.pattern.permute.xlu0 %v219_v0  ;;  %v52_v1 = vld [vmem:[%s341_s3 + $0x10] sm:$0xff]  ;;  %v53_v3 = vld [vmem:[%s341_s3 + $0x18] sm:$0xff]  ;;  %v23_v5 = vld [vmem:[%s342_s2 + $0x8] sm:$0xff] }
   0x2   :  { %v24_v2 = vld [vmem:[%s342_s2 + $0x10] sm:$0xff]  ;;  %66 = vperm.xlu1 %218, %v52_v1   ;;  %v25_v4 = vld [vmem:[%s342_s2 + $0x18] sm:$0xff]  ;;  %v22_v6 = vld [vmem:[%s342_s2] sm:$0xff] }
   0x3   :  { %38 = vperm.xlu0 %217, %v24_v2   ;;  %v51_v7 = vld [vmem:[%s341_s3 + $0x8] sm:$0xff]  ;;  %v50_v8 = vld [vmem:[%s341_s3] sm:$0xff]  ;;  %v20_v17 = vld [vmem:[%s344_s0 + $0x10] sm:$0xff] }
   0x4   :  { %v78_v9 = vld [vmem:[%s343_s1] sm:$0xff]  ;;  %v79_v10 = vld [vmem:[%s343_s1 + $0x8] sm:$0xff]  ;;  %v21_v18 = vld [vmem:[%s344_s0 + $0x18] sm:$0xff] }
   0x5   :  { %v82_v11 = vld [vmem:[%s343_s1 + $0x20] sm:$0xff]  ;;  %v86_v12 = vpack.c.bf16 %v79_v10, %v78_v9  ;;  %v83_v13 = vld [vmem:[%s343_s1 + $0x28] sm:$0xff]  ;;  %v80_v36 = vld [vmem:[%s343_s1 + $0x10] sm:$0xff] }
   0x6   :  { %71 = vperm.xlu1 %218, %v53_v3   ;;  %v88_v14 = vpack.c.bf16 %v83_v13, %v82_v11  ;;  %v19_v26 = vld [vmem:[%s344_s0 + $0x8] sm:$0xff]  ;;  %v18_v28 = vld [vmem:[%s344_s0] sm:$0xff]  ;;  %v81_v37 = vld [vmem:[%s343_s1 + $0x18] sm:$0xff] }
   0x7   :  { %43 = vperm.xlu0 %217, %v25_v4   ;;  %204 = vmatprep.mubr.msk.bf16.mxu0 %vm92_vm0, %v86_v12  ;;  %v84_v38 = vld [vmem:[%s343_s1 + $0x30] sm:$0xff]  ;;  %v85_v39 = vld [vmem:[%s343_s1 + $0x38] sm:$0xff]  ;;  %v87_v41 = vpack.c.bf16 %v81_v37, %v80_v36 }
   0x8   :  { %208 = vmatprep.mubr.msk.bf16.mxu1 %vm92_vm0, %v88_v14  ;;  %v89_v42 = vpack.c.bf16 %v85_v39, %v84_v38 }
   0xa   :  { %33 = vperm.xlu1 %218, %v23_v5  }
   0xb   :  { %28 = vperm.xlu0 %217, %v22_v6  }
   0xe   :  { %61 = vperm.xlu1 %218, %v51_v7  }
   0xf   :  { %56 = vperm.xlu0 %217, %v50_v8  }
  0x7d   :  { %v67_v15 = vpop.permute.xlu1 %66 }
  0x7e   :  { %v39_v16 = vpop.permute.xlu0 %38 }
  0x7f   :  { %v48_v19 = vmul.f32 %v39_v16, %v20_v17 }
  0x81   :  { %v72_v20 = vpop.permute.xlu1 %71  ;;  %v76_v23 = vadd.f32 %v67_v15, %v48_v19 }
  0x82   :  { %v44_v21 = vpop.permute.xlu0 %43 }
  0x83   :  { %v49_v22 = vmul.f32 %v44_v21, %v21_v18 }
  0x85   :  { %v77_v24 = vadd.f32 %v72_v20, %v49_v22  ;;  %v34_v25 = vpop.permute.xlu1 %33 }
  0x86   :  { %v29_v27 = vpop.permute.xlu0 %28  ;;  %v47_v30 = vmul.f32 %v34_v25, %v19_v26 }
  0x87   :  { %v91_v29 = vpack.c.bf16 %v77_v24, %v76_v23  ;;  %v46_v31 = vmul.f32 %v29_v27, %v18_v28 }
  0x89   :  { %200 = vmatprep.subr.bf16.mxu0 %v91_v29  ;;  %212 = vmatprep.subr.bf16.mxu1 %v91_v29  ;;  %v62_v32 = vpop.permute.xlu1 %61 }
  0x8a   :  { %v57_v33 = vpop.permute.xlu0 %56  ;;  %201 = vmatpush3.bf16.msra.mxu0 %v91_v29  ;;  %214 = vmatpush3.bf16.msra.mxu1 %v91_v29  ;;  %v75_v34 = vadd.f32 %v62_v32, %v47_v30 }
  0x8b   :  { %v74_v35 = vadd.f32 %v57_v33, %v46_v31 }
  0x8d   :  { %v90_v40 = vpack.c.bf16 %v75_v34, %v74_v35 }
  0x8f   :  { %202 = vmatprep.subr.bf16.mxu0 %v90_v40  ;;  %213 = vmatprep.subr.bf16.mxu1 %v90_v40 }
  0x90   :  { %203 = vmatpush3.bf16.msra.mxu0 %v90_v40  ;;  %215 = vmatpush3.bf16.msra.mxu1 %v90_v40 }
  0x93   :  { %205 = vmatmul.mubr.msk.bf16.vlgmr.msra.gmra.mxu0 %vm92_vm0, %v87_v41  ;;  %209 = vmatmul.mubr.msk.bf16.vlgmr.msra.gmra.mxu1 %vm92_vm0, %v89_v42 }
 0x153   :  { %v206_v43 = vpop.f32.mrf.mxu0  ;;  %v210_v44 = vpop.f32.mrf.mxu1 }
 0x154   :  { %v172_v45 = vmax.f32 %v206_v43, 0.0  ;;  %v176_v46 = vmax.f32 %v210_v44, 0.0 }
 0x155   :  { %v139_v47 = vpop.f32.mrf.mxu0  ;;  %v155_v48 = vpop.f32.mrf.mxu1 }
 0x156   :  { %180 = vst.msk [vmem:[%s345_s4 + $0x10] sm:$0xff] %vm92_vm0, %v172_v45  ;;  %184 = vst.msk [vmem:[%s345_s4 + $0x30] sm:$0xff] %vm92_vm0, %v176_v46  ;;  %v170_v49 = vmax.f32 %v139_v47, 0.0  ;;  %v174_v50 = vmax.f32 %v155_v48, 0.0 }
 0x157   :  { %v207_v51 = vpop.f32.mrf.mxu0  ;;  %v211_v52 = vpop.f32.mrf.mxu1 }
 0x158   :  { %178 = vst.msk [vmem:[%s345_s4] sm:$0xff] %vm92_vm0, %v170_v49  ;;  %182 = vst.msk [vmem:[%s345_s4 + $0x20] sm:$0xff] %vm92_vm0, %v174_v50  ;;  %v173_v53 = vmax.f32 %v207_v51, 0.0  ;;  %v177_v54 = vmax.f32 %v211_v52, 0.0 }
 0x159   :  { %v142_v55 = vpop.f32.mrf.mxu0  ;;  %v158_v56 = vpop.f32.mrf.mxu1 }
 0x15a   :  { %181 = vst.msk [vmem:[%s345_s4 + $0x18] sm:$0xff] %vm92_vm0, %v173_v53  ;;  %185 = vst.msk [vmem:[%s345_s4 + $0x38] sm:$0xff] %vm92_vm0, %v177_v54  ;;  %v171_v57 = vmax.f32 %v142_v55, 0.0  ;;  %v175_v58 = vmax.f32 %v158_v56, 0.0 }
 0x15c   :  { %179 = vst.msk [vmem:[%s345_s4 + $0x8] sm:$0xff] %vm92_vm0, %v171_v57  ;;  %183 = vst.msk [vmem:[%s345_s4 + $0x28] sm:$0xff] %vm92_vm0, %v175_v58 }

// kernel: unet2d_forward.46
= control target key start
LH: loop header
LB: loop body
LE: loop exit
PB: predicated region body
PF: predicated region fallthrough
CT: control target
= control target key end

     0   :  { %v2452_v0 = vmov 0   ;;  %s2454_s19 = smov 1   ;;  %s2455_s23 = smov 5   ;;  %vm30_vm0 = vcmask 113664   ;;  %v2457_v23 = vmov 0.0   ;;  %vm239_vm1 = vcmask 89112   ;;  %s3642_s3 = inlined_call_operand.vmem [shape: f32[64,1], index: 3, kind: input, shape index: {}]   ;;  %s3643_s2 = inlined_call_operand.vmem [shape: f32[64,1], index: 2, kind: input, shape index: {}]   ;;  %s3644_s1 = inlined_call_operand.vmem [shape: f32[9,8], index: 1, kind: input, shape index: {}]   ;;  %s3645_s0 = inlined_call_operand.vmem [shape: f32[64,8], index: 0, kind: input, shape index: {}]   ;;  %s3646_s4 = inlined_call_operand.vmem [shape: f32[64,576], index: 4, kind: input, shape index: {}]   ;;  %s3647_s5 = inlined_call_operand.vmem [shape: f32[64,1], index: 5, kind: input, shape index: {}]   ;;  %s3648_s6 = inlined_call_operand.vmem [shape: f32[64,1], index: 6, kind: input, shape index: {}]   ;;  %s3649_s7 = inlined_call_operand.vmem [shape: f32[64,576], index: 7, kind: input, shape index: {}]   ;;  %s3650_s8 = inlined_call_operand.vmem [shape: f32[64,8], index: 8, kind: output, shape index: {}]  }
   0x1   :  { %2443 = vset.pattern.permute.xlu1 %v2452_v0  ;;  %2442 = vset.pattern.permute.xlu0 %v2452_v0  ;;  %v109_v1 = vld [vmem:[%s3642_s3 + $0x30] sm:$0xff]  ;;  %v110_v3 = vld [vmem:[%s3642_s3 + $0x38] sm:$0xff]  ;;  %v52_v5 = vld [vmem:[%s3643_s2 + $0x28] sm:$0xff]  ;;  %s2456_s24 = smov 4   ;;  %37 = vst.msk [vmem:[#allocation2 + $0x30] sm:$0xff] %vm30_vm0, %v2457_v23  ;;  %s2458_s9 = smov 6  }
   0x2   :  { %v53_v2 = vld [vmem:[%s3643_s2 + $0x30] sm:$0xff]  ;;  %143 = vperm.xlu1 %2443, %v109_v1   ;;  %v54_v4 = vld [vmem:[%s3643_s2 + $0x38] sm:$0xff]  ;;  %v51_v6 = vld [vmem:[%s3643_s2 + $0x20] sm:$0xff]  ;;  %31 = vst.msk [vmem:[#allocation2] sm:$0xff] %vm30_vm0, %v2457_v23  ;;  %s2459_s14 = smov 3   ;;  %vm269_vm2 = vcmask 64512  }
   0x3   :  { %87 = vperm.xlu0 %2442, %v53_v2   ;;  %v108_v7 = vld [vmem:[%s3642_s3 + $0x28] sm:$0xff]  ;;  %v107_v8 = vld [vmem:[%s3642_s3 + $0x20] sm:$0xff]  ;;  %v50_v9 = vld [vmem:[%s3643_s2 + $0x18] sm:$0xff]  ;;  %32 = vst.msk [vmem:[#allocation2 + $0x8] sm:$0xff] %vm30_vm0, %v2457_v23  ;;  %s2460_s10 = smov 125   ;;  %s2461_s11 = smov 126  }
   0x4   :  { %v49_v10 = vld [vmem:[%s3643_s2 + $0x10] sm:$0xff]  ;;  %v106_v11 = vld [vmem:[%s3642_s3 + $0x18] sm:$0xff]  ;;  %v48_v13 = vld [vmem:[%s3643_s2 + $0x8] sm:$0xff]  ;;  %33 = vst.msk [vmem:[#allocation2 + $0x10] sm:$0xff] %vm30_vm0, %v2457_v23  ;;  %s2462_s12 = smov 127   ;;  %s2463_s13 = smov 123  }
   0x5   :  { %v105_v12 = vld [vmem:[%s3642_s3 + $0x10] sm:$0xff]  ;;  %v47_v14 = vld [vmem:[%s3643_s2] sm:$0xff]  ;;  %v104_v15 = vld [vmem:[%s3642_s3 + $0x8] sm:$0xff]  ;;  %s2453_s2 = smov 2   ;;  %34 = vst.msk [vmem:[#allocation2 + $0x18] sm:$0xff] %vm30_vm0, %v2457_v23  ;;  %s2464_s15 = smov 124  }
   0x6   :  { %148 = vperm.xlu1 %2443, %v110_v3   ;;  %v103_v16 = vld [vmem:[%s3642_s3] sm:$0xff]  ;;  %35 = vst.msk [vmem:[#allocation2 + $0x20] sm:$0xff] %vm30_vm0, %v2457_v23  ;;  %36 = vst.msk [vmem:[#allocation2 + $0x28] sm:$0xff] %vm30_vm0, %v2457_v23  ;;  %v2203_v24 = vld [vmem:[%s3644_s1 + $0x8] ss:$0 sm:$0xff]  ;;  %s2465_s26 = smov 122  }
   0x7   :  { %92 = vperm.xlu0 %2442, %v54_v4   ;;  %v2199_v17 = vld [vmem:[%s3644_s1 + $0x3] ss:$0 sm:$0xff]  ;;  %v2197_v18 = vld [vmem:[%s3644_s1 + $0x1] ss:$0 sm:$0xff]  ;;  %v2202_v19 = vld [vmem:[%s3644_s1 + $0x7] ss:$0 sm:$0xff] }
   0x8   :  { %v2200_v20 = vld [vmem:[%s3644_s1 + $0x5] ss:$0 sm:$0xff]  ;;  %v2198_v21 = vld [vmem:[%s3644_s1 + $0x2] ss:$0 sm:$0xff]  ;;  %v2201_v22 = vld [vmem:[%s3644_s1 + $0x6] ss:$0 sm:$0xff] }
   0x9   :  { %38 = vst.msk [vmem:[#allocation2 + $0x38] sm:$0xff] %vm30_vm0, %v2457_v23  ;;  %v45_v25 = vld [vmem:[%s3645_s0 + $0x30] sm:$0xff]  ;;  %v46_v29 = vld [vmem:[%s3645_s0 + $0x38] sm:$0xff]  ;;  %v44_v37 = vld [vmem:[%s3645_s0 + $0x28] sm:$0xff]  ;;  %vm909_vm3 = vcmask 523264  }
   0xa   :  { %82 = vperm.xlu1 %2443, %v52_v5   ;;  %v43_v39 = vld [vmem:[%s3645_s0 + $0x20] sm:$0xff]  ;;  %v42_v50 = vld [vmem:[%s3645_s0 + $0x18] sm:$0xff]  ;;  %v41_v52 = vld [vmem:[%s3645_s0 + $0x10] sm:$0xff] }
   0xb   :  { %77 = vperm.xlu0 %2442, %v51_v6   ;;  %v40_v62 = vld [vmem:[%s3645_s0 + $0x8] sm:$0xff]  ;;  %v39_v0 = vld [vmem:[%s3645_s0] sm:$0xff] }
   0xe   :  { %138 = vperm.xlu1 %2443, %v108_v7  }
   0xf   :  { %133 = vperm.xlu0 %2442, %v107_v8  }
  0x12   :  { %72 = vperm.xlu1 %2443, %v50_v9  }
  0x13   :  { %67 = vperm.xlu0 %2442, %v49_v10  }
  0x16   :  { %128 = vperm.xlu1 %2443, %v106_v11  }
  0x17   :  { %123 = vperm.xlu0 %2442, %v105_v12  }
  0x1a   :  { %62 = vperm.xlu1 %2443, %v48_v13  }
  0x1b   :  { %57 = vperm.xlu0 %2442, %v47_v14  }
  0x1e   :  { %118 = vperm.xlu1 %2443, %v104_v15  }
  0x1f   :  { %113 = vperm.xlu0 %2442, %v103_v16  }
  0x22   :  { %292 = vrot.lane.b32.xlu1 %v2197_v18, %s2454_s19  ;;  %v2196_v18 = vld [vmem:[%s3644_s1] ss:$0 sm:$0xff] }
  0x23   :  { %422 = vrot.lane.b32.xlu0 %v2199_v17, %s2453_s2 }
  0x26   :  { %535 = vrot.lane.b32.xlu1 %v2200_v20, %s2456_s24 }
  0x27   :  { %665 = vrot.lane.b32.xlu0 %v2202_v19, %s2455_s23 }
  0x2a   :  { %600 = vrot.lane.b32.xlu1 %v2201_v22, %s2456_s24 }
  0x2b   :  { %357 = vrot.lane.b32.xlu0 %v2198_v21, %s2453_s2 }
  0x2f   :  { %730 = vrot.lane.b32.xlu0 %v2203_v24, %s2458_s9 }
  0x7d   :  { %v144_v26 = vpop.permute.xlu1 %143 }
  0x7e   :  { %v88_v27 = vpop.permute.xlu0 %87 }
  0x7f   :  { %v101_v28 = vmul.f32 %v88_v27, %v45_v25 }
  0x81   :  { %v157_v30 = vadd.f32 %v144_v26, %v101_v28  ;;  %v149_v31 = vpop.permute.xlu1 %148 }
  0x82   :  { %v93_v32 = vpop.permute.xlu0 %92 }
  0x83   :  { %v102_v33 = vmul.f32 %v93_v32, %v46_v29  ;;  %v165_v34 = vmax.f32 %v157_v30, 0.0 }
  0x85   :  { %v158_v35 = vadd.f32 %v149_v31, %v102_v33  ;;  %227 = vrot.lane.b32.xlu0 %v165_v34, %s2459_s14  ;;  %v83_v36 = vpop.permute.xlu1 %82 }
  0x86   :  { %v78_v38 = vpop.permute.xlu0 %77  ;;  %v100_v41 = vmul.f32 %v83_v36, %v44_v37 }
  0x87   :  { %v166_v40 = vmax.f32 %v158_v35, 0.0  ;;  %v99_v42 = vmul.f32 %v78_v38, %v43_v39 }
  0x89   :  { %229 = vrot.lane.b32.xlu1 %v166_v40, %s2459_s14  ;;  %v139_v43 = vpop.permute.xlu1 %138 }
  0x8a   :  { %v134_v44 = vpop.permute.xlu0 %133  ;;  %v156_v45 = vadd.f32 %v139_v43, %v100_v41 }
  0x8b   :  { %v155_v46 = vadd.f32 %v134_v44, %v99_v42 }
  0x8c   :  { %v164_v47 = vmax.f32 %v156_v45, 0.0 }
  0x8d   :  { %v163_v48 = vmax.f32 %v155_v46, 0.0  ;;  %v73_v49 = vpop.permute.xlu1 %72 }
  0x8e   :  { %v68_v51 = vpop.permute.xlu0 %67  ;;  %225 = vrot.lane.b32.xlu1 %v164_v47, %s2459_s14  ;;  %v98_v53 = vmul.f32 %v73_v49, %v42_v50 }
  0x8f   :  { %223 = vrot.lane.b32.xlu0 %v163_v48, %s2459_s14  ;;  %v97_v54 = vmul.f32 %v68_v51, %v41_v52 }
  0x91   :  { %v129_v55 = vpop.permute.xlu1 %128 }
  0x92   :  { %v124_v56 = vpop.permute.xlu0 %123  ;;  %v154_v57 = vadd.f32 %v129_v55, %v98_v53 }
  0x93   :  { %v153_v58 = vadd.f32 %v124_v56, %v97_v54 }
  0x94   :  { %v162_v59 = vmax.f32 %v154_v57, 0.0 }
  0x95   :  { %v161_v60 = vmax.f32 %v153_v58, 0.0  ;;  %v63_v61 = vpop.permute.xlu1 %62 }
  0x96   :  { %v58_v63 = vpop.permute.xlu0 %57  ;;  %221 = vrot.lane.b32.xlu1 %v162_v59, %s2459_s14  ;;  %v96_v1 = vmul.f32 %v63_v61, %v40_v62 }
  0x97   :  { %219 = vrot.lane.b32.xlu0 %v161_v60, %s2459_s14  ;;  %v95_v2 = vmul.f32 %v58_v63, %v39_v0 }
  0x99   :  { %v119_v3 = vpop.permute.xlu1 %118 }
  0x9a   :  { %v114_v4 = vpop.permute.xlu0 %113  ;;  %v152_v5 = vadd.f32 %v119_v3, %v96_v1 }
  0x9b   :  { %v151_v6 = vadd.f32 %v114_v4, %v95_v2 }
  0x9c   :  { %v160_v7 = vmax.f32 %v152_v5, 0.0 }
  0x9d   :  { %v159_v8 = vmax.f32 %v151_v6, 0.0  ;;  %v2623_v11 = vpop.permute.xlu1 %292 }
  0x9e   :  { %217 = vrot.lane.b32.xlu1 %v160_v7, %s2459_s14  ;;  %v2619_v9 = vpop.permute.xlu0 %422 }
  0x9f   :  { %215 = vrot.lane.b32.xlu0 %v159_v8, %s2459_s14 }
  0xa1   :  { %v2627_v13 = vpop.permute.xlu1 %535 }
  0xa2   :  { %v2621_v10 = vpop.permute.xlu0 %665 }
  0xa5   :  { %v2631_v15 = vpop.permute.xlu1 %600 }
  0xa6   :  { %v2625_v12 = vpop.permute.xlu0 %357 }
  0xaa   :  { %v2629_v14 = vpop.permute.xlu0 %730 }
  0xf7   :  { %v228_v16 = vpop.permute.xlu0 %227 }
  0xf8   :  { %246 = vst.msk [vmem:[#allocation2 + $0x30] sm:$0xff] %vm239_vm1, %v228_v16 }
  0xfb   :  { %v230_v17 = vpop.permute.xlu1 %229 }
  0xfc   :  { %247 = vst.msk [vmem:[#allocation2 + $0x38] sm:$0xff] %vm239_vm1, %v230_v17 }
  0xff   :  { %v2638_v19 = vld [vmem:[#allocation2 + $0x30] sm:$0xff] }
 0x100   :  { %v267_v20 = vmul.f32 %v2196_v18, %v2638_v19  ;;  %501 = vrot.lane.b32.xlu1 %v2638_v19, %s2460_s10  ;;  %v226_v21 = vpop.permute.xlu1 %225  ;;  %v431_v37 = vmul.f32 %v2619_v9, %v2638_v19  ;;  %v301_v39 = vmul.f32 %v2623_v11, %v2638_v19  ;;  %v674_v53 = vmul.f32 %v2621_v10, %v2638_v19 }
 0x101   :  { %v224_v22 = vpop.permute.xlu0 %223  ;;  %245 = vst.msk [vmem:[#allocation2 + $0x28] sm:$0xff] %vm239_vm1, %v226_v21  ;;  %v544_v55 = vmul.f32 %v2627_v13, %v2638_v19  ;;  %v366_v2 = vmul.f32 %v2625_v12, %v2638_v19 }
 0x102   :  { %276 = vst.msk [vmem:[#allocation3 + $0x30] sm:$0xff] %vm269_vm2, %v267_v20 }
 0x103   :  { %244 = vst.msk [vmem:[#allocation2 + $0x20] sm:$0xff] %vm239_vm1, %v224_v22  ;;  %v2646_v23 = vld [vmem:[#allocation2 + $0x38] sm:$0xff] }
 0x104   :  { %v268_v24 = vmul.f32 %v2196_v18, %v2646_v23  ;;  %503 = vrot.lane.b32.xlu0 %v2646_v23, %s2460_s10  ;;  %v432_v38 = vmul.f32 %v2619_v9, %v2646_v23  ;;  %v302_v40 = vmul.f32 %v2623_v11, %v2646_v23  ;;  %v675_v54 = vmul.f32 %v2621_v10, %v2646_v23 }
 0x105   :  { %v545_v56 = vmul.f32 %v2627_v13, %v2646_v23  ;;  %v367_v1 = vmul.f32 %v2625_v12, %v2646_v23  ;;  %v610_v20 = vmul.f32 %v2631_v15, %v2646_v23 }
 0x106   :  { %277 = vst.msk [vmem:[#allocation3 + $0x38] sm:$0xff] %vm269_vm2, %v268_v24  ;;  %v168_v24 = vld [vmem:[%s3646_s4 + $0x8] sm:$0xff] }
 0x108   :  { %v2652_v25 = vld [vmem:[#allocation2 + $0x28] sm:$0xff]  ;;  %v222_v27 = vpop.permute.xlu1 %221 }
 0x109   :  { %v220_v28 = vpop.permute.xlu0 %219  ;;  %v266_v29 = vmul.f32 %v2196_v18, %v2652_v25  ;;  %243 = vst.msk [vmem:[#allocation2 + $0x18] sm:$0xff] %vm239_vm1, %v222_v27  ;;  %499 = vrot.lane.b32.xlu0 %v2652_v25, %s2460_s10  ;;  %v430_v46 = vmul.f32 %v2619_v9, %v2652_v25  ;;  %v300_v48 = vmul.f32 %v2623_v11, %v2652_v25  ;;  %v173_v27 = vld [vmem:[%s3646_s4 + $0x30] sm:$0xff] }
 0x10a   :  { %v2654_v26 = vld [vmem:[#allocation2 + $0x20] sm:$0xff]  ;;  %242 = vst.msk [vmem:[#allocation2 + $0x10] sm:$0xff] %vm239_vm1, %v220_v28  ;;  %v673_v61 = vmul.f32 %v2621_v10, %v2652_v25  ;;  %v543_v63 = vmul.f32 %v2627_v13, %v2652_v25  ;;  %v365_v7 = vmul.f32 %v2625_v12, %v2652_v25  ;;  %v782_v28 = vpack.c.bf16 %v173_v27, %v168_v24 }
 0x10b   :  { %v265_v30 = vmul.f32 %v2196_v18, %v2654_v26  ;;  %497 = vrot.lane.b32.xlu1 %v2654_v26, %s2460_s10  ;;  %275 = vst.msk [vmem:[#allocation3 + $0x28] sm:$0xff] %vm269_vm2, %v266_v29  ;;  %v429_v45 = vmul.f32 %v2619_v9, %v2654_v26  ;;  %v299_v47 = vmul.f32 %v2623_v11, %v2654_v26 }
 0x10c   :  { %v672_v62 = vmul.f32 %v2621_v10, %v2654_v26  ;;  %v542_v0 = vmul.f32 %v2627_v13, %v2654_v26  ;;  %v364_v8 = vmul.f32 %v2625_v12, %v2654_v26  ;;  %v608_v29 = vmul.f32 %v2631_v15, %v2652_v25  ;;  %954 = vmatprep.mubr.bf16.mxu0 %v782_v28 }
 0x10d   :  { %274 = vst.msk [vmem:[#allocation3 + $0x20] sm:$0xff] %vm269_vm2, %v265_v30  ;;  %v607_v30 = vmul.f32 %v2631_v15, %v2654_v26 }
 0x110   :  { %v2666_v31 = vld [vmem:[#allocation2 + $0x18] sm:$0xff]  ;;  %v218_v33 = vpop.permute.xlu1 %217 }
 0x111   :  { %v2668_v32 = vld [vmem:[#allocation2 + $0x10] sm:$0xff]  ;;  %v216_v34 = vpop.permute.xlu0 %215  ;;  %v264_v35 = vmul.f32 %v2196_v18, %v2666_v31  ;;  %241 = vst.msk [vmem:[#allocation2 + $0x8] sm:$0xff] %vm239_vm1, %v218_v33  ;;  %495 = vrot.lane.b32.xlu0 %v2666_v31, %s2460_s10  ;;  %v428_v50 = vmul.f32 %v2619_v9, %v2666_v31  ;;  %v298_v52 = vmul.f32 %v2623_v11, %v2666_v31 }
 0x112   :  { %v263_v36 = vmul.f32 %v2196_v18, %v2668_v32  ;;  %240 = vst.msk [vmem:[#allocation2] sm:$0xff] %vm239_vm1, %v216_v34  ;;  %493 = vrot.lane.b32.xlu1 %v2668_v32, %s2460_s10  ;;  %v427_v49 = vmul.f32 %v2619_v9, %v2668_v32  ;;  %v297_v51 = vmul.f32 %v2623_v11, %v2668_v32 }
 0x113   :  { %273 = vst.msk [vmem:[#allocation3 + $0x18] sm:$0xff] %vm269_vm2, %v264_v35  ;;  %v671_v3 = vmul.f32 %v2621_v10, %v2666_v31  ;;  %v670_v4 = vmul.f32 %v2621_v10, %v2668_v32  ;;  %v541_v5 = vmul.f32 %v2627_v13, %v2666_v31  ;;  %v540_v6 = vmul.f32 %v2627_v13, %v2668_v32 }
 0x114   :  { %272 = vst.msk [vmem:[#allocation3 + $0x10] sm:$0xff] %vm269_vm2, %v263_v36  ;;  %v605_v33 = vmul.f32 %v2631_v15, %v2668_v32 }
 0x115   :  { %455 = vrot.lane.b32.xlu0 %v432_v38, %s2461_s11  ;;  %v175_v38 = vld [vmem:[%s3646_s4 + $0x40] sm:$0xff] }
 0x116   :  { %453 = vrot.lane.b32.xlu1 %v431_v37, %s2461_s11  ;;  %v170_v37 = vld [vmem:[%s3646_s4 + $0x18] sm:$0xff] }
 0x118   :  { %v2690_v41 = vld [vmem:[#allocation2 + $0x8] sm:$0xff] }
 0x119   :  { %v2692_v42 = vld [vmem:[#allocation2] sm:$0xff]  ;;  %v262_v43 = vmul.f32 %v2196_v18, %v2690_v41  ;;  %325 = vrot.lane.b32.xlu0 %v302_v40, %s2462_s12  ;;  %v426_v57 = vmul.f32 %v2619_v9, %v2690_v41  ;;  %v296_v59 = vmul.f32 %v2623_v11, %v2690_v41  ;;  %v539_v16 = vmul.f32 %v2627_v13, %v2690_v41 }
 0x11a   :  { %v261_v44 = vmul.f32 %v2196_v18, %v2692_v42  ;;  %323 = vrot.lane.b32.xlu1 %v301_v39, %s2462_s12  ;;  %v425_v58 = vmul.f32 %v2619_v9, %v2692_v42  ;;  %v295_v60 = vmul.f32 %v2623_v11, %v2692_v42  ;;  %v669_v9 = vmul.f32 %v2621_v10, %v2690_v41 }
 0x11b   :  { %271 = vst.msk [vmem:[#allocation3 + $0x8] sm:$0xff] %vm269_vm2, %v262_v43  ;;  %v668_v11 = vmul.f32 %v2621_v10, %v2692_v42  ;;  %v538_v17 = vmul.f32 %v2627_v13, %v2692_v42  ;;  %v363_v18 = vmul.f32 %v2625_v12, %v2666_v31  ;;  %v362_v10 = vmul.f32 %v2625_v12, %v2668_v32 }
 0x11c   :  { %270 = vst.msk [vmem:[#allocation3] sm:$0xff] %vm269_vm2, %v261_v44  ;;  %v609_v13 = vmul.f32 %v2631_v15, %v2638_v19  ;;  %v361_v21 = vmul.f32 %v2625_v12, %v2690_v41  ;;  %v360_v22 = vmul.f32 %v2625_v12, %v2692_v42  ;;  %v606_v12 = vmul.f32 %v2631_v15, %v2666_v31 }
 0x11d   :  { %451 = vrot.lane.b32.xlu0 %v430_v46, %s2461_s11  ;;  %v604_v34 = vmul.f32 %v2631_v15, %v2690_v41  ;;  %v603_v35 = vmul.f32 %v2631_v15, %v2692_v42  ;;  %v784_v39 = vpack.c.bf16 %v175_v38, %v170_v37  ;;  %v740_v40 = vmul.f32 %v2629_v14, %v2646_v23 }
 0x11e   :  { %449 = vrot.lane.b32.xlu1 %v429_v45, %s2461_s11  ;;  %v739_v43 = vmul.f32 %v2629_v14, %v2638_v19  ;;  %v738_v46 = vmul.f32 %v2629_v14, %v2652_v25  ;;  %v736_v19 = vmul.f32 %v2629_v14, %v2666_v31  ;;  %v735_v23 = vmul.f32 %v2629_v14, %v2668_v32  ;;  %v1124_v31 = vld [vmem:[%s3647_s5 + $0x38] sm:$0xff]  ;;  %v1123_v32 = vld [vmem:[%s3647_s5 + $0x30] sm:$0xff] }
 0x11f   :  { %1019 = vmatprep.mubr.bf16.mxu1 %v784_v39 }
 0x121   :  { %321 = vrot.lane.b32.xlu0 %v300_v48, %s2462_s12  ;;  %v734_v48 = vmul.f32 %v2629_v14, %v2690_v41 }
 0x122   :  { %319 = vrot.lane.b32.xlu1 %v299_v47, %s2462_s12  ;;  %v737_v47 = vmul.f32 %v2629_v14, %v2654_v26 }
 0x125   :  { %447 = vrot.lane.b32.xlu0 %v428_v50, %s2461_s11 }
 0x126   :  { %445 = vrot.lane.b32.xlu1 %v427_v49, %s2461_s11  ;;  %v733_v49 = vmul.f32 %v2629_v14, %v2692_v42  ;;  %v1180_v14 = vld [vmem:[%s3648_s6 + $0x38] sm:$0xff] }
 0x129   :  { %317 = vrot.lane.b32.xlu0 %v298_v52, %s2462_s12 }
 0x12a   :  { %315 = vrot.lane.b32.xlu1 %v297_v51, %s2462_s12 }
 0x12d   :  { %698 = vrot.lane.b32.xlu0 %v675_v54, %s2463_s13  ;;  %v1121_v54 = vld [vmem:[%s3647_s5 + $0x20] sm:$0xff] }
 0x12e   :  { %696 = vrot.lane.b32.xlu1 %v674_v53, %s2463_s13  ;;  %v1122_v53 = vld [vmem:[%s3647_s5 + $0x28] sm:$0xff] }
 0x131   :  { %568 = vrot.lane.b32.xlu0 %v545_v56, %s2464_s15 }
 0x132   :  { %566 = vrot.lane.b32.xlu1 %v544_v55, %s2464_s15 }
 0x135   :  { %443 = vrot.lane.b32.xlu0 %v426_v57, %s2461_s11 }
 0x136   :  { %441 = vrot.lane.b32.xlu1 %v425_v58, %s2461_s11 }
 0x139   :  { %313 = vrot.lane.b32.xlu0 %v296_v59, %s2462_s12 }
 0x13a   :  { %311 = vrot.lane.b32.xlu1 %v295_v60, %s2462_s12  ;;  %v1178_v60 = vld [vmem:[%s3648_s6 + $0x28] sm:$0xff] }
 0x13d   :  { %694 = vrot.lane.b32.xlu0 %v673_v61, %s2463_s13  ;;  %v1177_v61 = vld [vmem:[%s3648_s6 + $0x20] sm:$0xff] }
 0x13e   :  { %692 = vrot.lane.b32.xlu1 %v672_v62, %s2463_s13 }
 0x141   :  { %564 = vrot.lane.b32.xlu0 %v543_v63, %s2464_s15 }
 0x142   :  { %562 = vrot.lane.b32.xlu1 %v542_v0, %s2464_s15 }
 0x145   :  { %390 = vrot.lane.b32.xlu0 %v367_v1, %s2461_s11 }
 0x146   :  { %388 = vrot.lane.b32.xlu1 %v366_v2, %s2461_s11 }
 0x149   :  { %690 = vrot.lane.b32.xlu0 %v671_v3, %s2463_s13  ;;  %v1120_v3 = vld [vmem:[%s3647_s5 + $0x18] sm:$0xff] }
 0x14a   :  { %688 = vrot.lane.b32.xlu1 %v670_v4, %s2463_s13  ;;  %v1119_v4 = vld [vmem:[%s3647_s5 + $0x10] sm:$0xff] }
 0x14d   :  { %560 = vrot.lane.b32.xlu0 %v541_v5, %s2464_s15 }
 0x14e   :  { %558 = vrot.lane.b32.xlu1 %v540_v6, %s2464_s15 }
 0x151   :  { %386 = vrot.lane.b32.xlu0 %v365_v7, %s2461_s11 }
 0x152   :  { %384 = vrot.lane.b32.xlu1 %v364_v8, %s2461_s11 }
 0x155   :  { %686 = vrot.lane.b32.xlu0 %v669_v9, %s2463_s13 }
 0x156   :  { %684 = vrot.lane.b32.xlu1 %v668_v11, %s2463_s13  ;;  %v1176_v11 = vld [vmem:[%s3648_s6 + $0x18] sm:$0xff] }
 0x159   :  { %556 = vrot.lane.b32.xlu0 %v539_v16, %s2464_s15  ;;  %v1175_v16 = vld [vmem:[%s3648_s6 + $0x10] sm:$0xff] }
 0x15a   :  { %554 = vrot.lane.b32.xlu1 %v538_v17, %s2464_s15 }
 0x15d   :  { %382 = vrot.lane.b32.xlu0 %v363_v18, %s2461_s11 }
 0x15e   :  { %380 = vrot.lane.b32.xlu1 %v362_v10, %s2461_s11 }
 0x161   :  { %633 = vrot.lane.b32.xlu0 %v610_v20, %s2464_s15 }
 0x162   :  { %631 = vrot.lane.b32.xlu1 %v609_v13, %s2464_s15 }
 0x165   :  { %378 = vrot.lane.b32.xlu0 %v361_v21, %s2461_s11  ;;  %v1118_v21 = vld [vmem:[%s3647_s5 + $0x8] sm:$0xff] }
 0x166   :  { %376 = vrot.lane.b32.xlu1 %v360_v22, %s2461_s11  ;;  %v1117_v22 = vld [vmem:[%s3647_s5] sm:$0xff] }
 0x169   :  { %629 = vrot.lane.b32.xlu0 %v608_v29, %s2464_s15 }
 0x16a   :  { %627 = vrot.lane.b32.xlu1 %v607_v30, %s2464_s15 }
 0x16d   :  { %625 = vrot.lane.b32.xlu0 %v606_v12, %s2464_s15  ;;  %v1174_v12 = vld [vmem:[%s3648_s6 + $0x8] sm:$0xff] }
 0x16e   :  { %623 = vrot.lane.b32.xlu1 %v605_v33, %s2464_s15  ;;  %v1173_v33 = vld [vmem:[%s3648_s6] sm:$0xff] }
 0x171   :  { %621 = vrot.lane.b32.xlu0 %v604_v34, %s2464_s15 }
 0x172   :  { %v502_v36 = vpop.permute.xlu1 %501  ;;  %619 = vrot.lane.b32.xlu1 %v603_v35, %s2464_s15 }
 0x173   :  { %519 = vst.msk [vmem:[#allocation3 + $0x130] sm:$0xff] %vm269_vm2, %v502_v36 }
 0x175   :  { %491 = vrot.lane.b32.xlu0 %v2690_v41, %s2460_s10 }
 0x176   :  { %489 = vrot.lane.b32.xlu1 %v2692_v42, %s2460_s10  ;;  %v504_v15 = vpop.permute.xlu0 %503  ;;  %v1179_v42 = vld [vmem:[%s3648_s6 + $0x30] sm:$0xff] }
 0x177   :  { %520 = vst.msk [vmem:[#allocation3 + $0x138] sm:$0xff] %vm269_vm2, %v504_v15 }
 0x179   :  { %763 = vrot.lane.b32.xlu0 %v740_v40, %s2465_s26 }
 0x17a   :  { %761 = vrot.lane.b32.xlu1 %v739_v43, %s2465_s26 }
 0x17b   :  { %v500_v45 = vpop.permute.xlu0 %499 }
 0x17c   :  { %518 = vst.msk [vmem:[#allocation3 + $0x128] sm:$0xff] %vm269_vm2, %v500_v45 }
 0x17d   :  { %v498_v44 = vpop.permute.xlu1 %497  ;;  %759 = vrot.lane.b32.xlu0 %v738_v46, %s2465_s26 }
 0x17e   :  { %517 = vst.msk [vmem:[#allocation3 + $0x120] sm:$0xff] %vm269_vm2, %v498_v44  ;;  %757 = vrot.lane.b32.xlu1 %v737_v47, %s2465_s26 }
 0x181   :  { %755 = vrot.lane.b32.xlu0 %v736_v19, %s2465_s26 }
 0x182   :  { %753 = vrot.lane.b32.xlu1 %v735_v23, %s2465_s26 }
 0x183   :  { %v496_v26 = vpop.permute.xlu0 %495 }
 0x184   :  { %v494_v25 = vpop.permute.xlu1 %493  ;;  %516 = vst.msk [vmem:[#allocation3 + $0x118] sm:$0xff] %vm269_vm2, %v496_v26 }
 0x185   :  { %515 = vst.msk [vmem:[#allocation3 + $0x110] sm:$0xff] %vm269_vm2, %v494_v25  ;;  %751 = vrot.lane.b32.xlu0 %v734_v48, %s2465_s26 }
 0x186   :  { %749 = vrot.lane.b32.xlu1 %v733_v49, %s2465_s26 }
 0x187   :  { %v456_v50 = vpop.permute.xlu0 %455 }
 0x188   :  { %v454_v41 = vpop.permute.xlu1 %453  ;;  %472 = vst.msk [vmem:[#allocation3 + $0xf8] sm:$0xff] %vm269_vm2, %v456_v50 }
 0x189   :  { %471 = vst.msk [vmem:[#allocation3 + $0xf0] sm:$0xff] %vm269_vm2, %v454_v41  ;;  %1162 = vperm.xlu0 %2442, %v1124_v31  }
 0x18a   :  { %1157 = vperm.xlu1 %2443, %v1123_v32  }
 0x18b   :  { %v326_v52 = vpop.permute.xlu0 %325 }
 0x18c   :  { %v324_v51 = vpop.permute.xlu1 %323  ;;  %342 = vst.msk [vmem:[#allocation3 + $0x78] sm:$0xff] %vm269_vm2, %v326_v52 }
 0x18d   :  { %341 = vst.msk [vmem:[#allocation3 + $0x70] sm:$0xff] %vm269_vm2, %v324_v51  ;;  %1218 = vperm.xlu0 %2442, %v1180_v14  }
 0x18e   :  { %1213 = vperm.xlu1 %2443, %v1179_v42  }
 0x18f   :  { %v452_v56 = vpop.permute.xlu0 %451  ;;  %v832_v58 = vld [vmem:[#allocation3 + $0xf8] sm:$0xff] }
 0x190   :  { %v450_v55 = vpop.permute.xlu1 %449  ;;  %v831_v57 = vld [vmem:[#allocation3 + $0xf0] sm:$0xff]  ;;  %470 = vst.msk [vmem:[#allocation3 + $0xe8] sm:$0xff] %vm269_vm2, %v452_v56 }
 0x191   :  { %469 = vst.msk [vmem:[#allocation3 + $0xe0] sm:$0xff] %vm269_vm2, %v450_v55  ;;  %v888_v59 = vpack.c.bf16 %v832_v58, %v831_v57  ;;  %1152 = vperm.xlu0 %2442, %v1122_v53  }
 0x192   :  { %1147 = vperm.xlu1 %2443, %v1121_v54  }
 0x193   :  { %2220 = vmatprep.subr.bf16.mxu0 %v888_v59  ;;  %v322_v63 = vpop.permute.xlu0 %321  ;;  %v816_v1 = vld [vmem:[#allocation3 + $0x78] sm:$0xff] }
 0x194   :  { %v320_v62 = vpop.permute.xlu1 %319  ;;  %v815_v0 = vld [vmem:[#allocation3 + $0x70] sm:$0xff]  ;;  %340 = vst.msk [vmem:[#allocation3 + $0x68] sm:$0xff] %vm269_vm2, %v322_v63 }
 0x195   :  { %339 = vst.msk [vmem:[#allocation3 + $0x60] sm:$0xff] %vm269_vm2, %v320_v62  ;;  %v880_v2 = vpack.c.bf16 %v816_v1, %v815_v0  ;;  %1208 = vperm.xlu0 %2442, %v1178_v60  }
 0x196   :  { %1203 = vperm.xlu1 %2443, %v1177_v61   ;;  %v808_v61 = vld [vmem:[#allocation3 + $0x38] sm:$0xff] }
 0x197   :  { %2221 = vmatpush3.bf16.msra.mxu0 %v880_v2  ;;  %v448_v6 = vpop.permute.xlu0 %447  ;;  %v830_v8 = vld [vmem:[#allocation3 + $0xe8] sm:$0xff] }
 0x198   :  { %v446_v5 = vpop.permute.xlu1 %445  ;;  %v829_v7 = vld [vmem:[#allocation3 + $0xe0] sm:$0xff]  ;;  %468 = vst.msk [vmem:[#allocation3 + $0xd8] sm:$0xff] %vm269_vm2, %v448_v6 }
 0x199   :  { %467 = vst.msk [vmem:[#allocation3 + $0xd0] sm:$0xff] %vm269_vm2, %v446_v5  ;;  %v887_v9 = vpack.c.bf16 %v830_v8, %v829_v7  ;;  %1142 = vperm.xlu0 %2442, %v1120_v3   ;;  %v807_v3 = vld [vmem:[#allocation3 + $0x30] sm:$0xff] }
 0x19a   :  { %1137 = vperm.xlu1 %2443, %v1119_v4   ;;  %v876_v4 = vpack.c.bf16 %v808_v61, %v807_v3 }
 0x19b   :  { %2222 = vmatprep.subr.bf16.mxu0 %v887_v9  ;;  %v318_v18 = vpop.permute.xlu0 %317  ;;  %v814_v20 = vld [vmem:[#allocation3 + $0x68] sm:$0xff] }
 0x19c   :  { %v316_v17 = vpop.permute.xlu1 %315  ;;  %v813_v10 = vld [vmem:[#allocation3 + $0x60] sm:$0xff]  ;;  %338 = vst.msk [vmem:[#allocation3 + $0x58] sm:$0xff] %vm269_vm2, %v318_v18 }
 0x19d   :  { %337 = vst.msk [vmem:[#allocation3 + $0x50] sm:$0xff] %vm269_vm2, %v316_v17  ;;  %v879_v13 = vpack.c.bf16 %v814_v20, %v813_v10  ;;  %1198 = vperm.xlu0 %2442, %v1176_v11   ;;  %v805_v20 = vld [vmem:[#allocation3 + $0x20] sm:$0xff] }
 0x19e   :  { %1193 = vperm.xlu1 %2443, %v1175_v16  }
 0x19f   :  { %2223 = vmatpush3.bf16.msra.mxu0 %v879_v13  ;;  %v699_v27 = vpop.permute.xlu0 %698  ;;  %v828_v29 = vld [vmem:[#allocation3 + $0xd8] sm:$0xff]  ;;  %v806_v13 = vld [vmem:[#allocation3 + $0x28] sm:$0xff] }
 0x1a0   :  { %v697_v24 = vpop.permute.xlu1 %696  ;;  %v827_v28 = vld [vmem:[#allocation3 + $0xd0] sm:$0xff]  ;;  %715 = vst.msk [vmem:[#allocation3 + $0x1f8] sm:$0xff] %vm269_vm2, %v699_v27 }
 0x1a1   :  { %714 = vst.msk [vmem:[#allocation3 + $0x1f0] sm:$0xff] %vm269_vm2, %v697_v24  ;;  %v886_v30 = vpack.c.bf16 %v828_v29, %v827_v28  ;;  %1132 = vperm.xlu0 %2442, %v1118_v21   ;;  %v875_v29 = vpack.c.bf16 %v806_v13, %v805_v20  ;;  %v188_v13 = vld [vmem:[%s3646_s4 + $0xa8] sm:$0xff] }
 0x1a2   :  { %1127 = vperm.xlu1 %2443, %v1117_v22  }
 0x1a3   :  { %2224 = vmatprep.subr.bf16.mxu0 %v886_v30  ;;  %v569_v35 = vpop.permute.xlu0 %568  ;;  %v812_v37 = vld [vmem:[#allocation3 + $0x58] sm:$0xff] }
 0x1a4   :  { %v567_v34 = vpop.permute.xlu1 %566  ;;  %v811_v36 = vld [vmem:[#allocation3 + $0x50] sm:$0xff]  ;;  %585 = vst.msk [vmem:[#allocation3 + $0x178] sm:$0xff] %vm269_vm2, %v569_v35 }
 0x1a5   :  { %584 = vst.msk [vmem:[#allocation3 + $0x170] sm:$0xff] %vm269_vm2, %v567_v34  ;;  %v878_v38 = vpack.c.bf16 %v812_v37, %v811_v36  ;;  %1188 = vperm.xlu0 %2442, %v1174_v12  }
 0x1a6   :  { %1183 = vperm.xlu1 %2443, %v1173_v33  }
 0x1a7   :  { %2225 = vmatpush3.bf16.msra.mxu0 %v878_v38  ;;  %v444_v39 = vpop.permute.xlu0 %443  ;;  %v864_v43 = vld [vmem:[#allocation3 + $0x1f8] sm:$0xff] }
 0x1a8   :  { %v442_v15 = vpop.permute.xlu1 %441  ;;  %v863_v40 = vld [vmem:[#allocation3 + $0x1f0] sm:$0xff]  ;;  %466 = vst.msk [vmem:[#allocation3 + $0xc8] sm:$0xff] %vm269_vm2, %v444_v39 }
 0x1a9   :  { %465 = vst.msk [vmem:[#allocation3 + $0xc0] sm:$0xff] %vm269_vm2, %v442_v15  ;;  %v904_v44 = vpack.c.bf16 %v864_v43, %v863_v40  ;;  %v803_v40 = vld [vmem:[#allocation3 + $0x10] sm:$0xff]  ;;  %v804_v43 = vld [vmem:[#allocation3 + $0x18] sm:$0xff] }
 0x1ab   :  { %2260 = vmatprep.subr.bf16.mxu1 %v904_v44  ;;  %v314_v46 = vpop.permute.xlu0 %313  ;;  %v848_v19 = vld [vmem:[#allocation3 + $0x178] sm:$0xff] }
 0x1ac   :  { %v312_v45 = vpop.permute.xlu1 %311  ;;  %v847_v47 = vld [vmem:[#allocation3 + $0x170] sm:$0xff]  ;;  %336 = vst.msk [vmem:[#allocation3 + $0x48] sm:$0xff] %vm269_vm2, %v314_v46 }
 0x1ad   :  { %335 = vst.msk [vmem:[#allocation3 + $0x40] sm:$0xff] %vm269_vm2, %v312_v45  ;;  %v896_v23 = vpack.c.bf16 %v848_v19, %v847_v47 }
 0x1af   :  { %2261 = vmatpush3.bf16.msra.mxu1 %v896_v23  ;;  %v695_v26 = vpop.permute.xlu0 %694  ;;  %v826_v49 = vld [vmem:[#allocation3 + $0xc8] sm:$0xff]  ;;  %v874_v23 = vpack.c.bf16 %v804_v43, %v803_v40 }
 0x1b0   :  { %v693_v25 = vpop.permute.xlu1 %692  ;;  %v825_v48 = vld [vmem:[#allocation3 + $0xc0] sm:$0xff]  ;;  %713 = vst.msk [vmem:[#allocation3 + $0x1e8] sm:$0xff] %vm269_vm2, %v695_v26  ;;  %v192_v40 = vld [vmem:[%s3646_s4 + $0xc8] sm:$0xff] }
 0x1b1   :  { %712 = vst.msk [vmem:[#allocation3 + $0x1e0] sm:$0xff] %vm269_vm2, %v693_v25  ;;  %v885_v31 = vpack.c.bf16 %v826_v49, %v825_v48  ;;  %v840_v25 = vld [vmem:[#allocation3 + $0x138] sm:$0xff] }
 0x1b3   :  { %2226 = vmatprep.subr.bf16.mxu0 %v885_v31  ;;  %v565_v41 = vpop.permute.xlu0 %564  ;;  %v810_v14 = vld [vmem:[#allocation3 + $0x48] sm:$0xff] }
 0x1b4   :  { %v563_v32 = vpop.permute.xlu1 %562  ;;  %v809_v50 = vld [vmem:[#allocation3 + $0x40] sm:$0xff]  ;;  %583 = vst.msk [vmem:[#allocation3 + $0x168] sm:$0xff] %vm269_vm2, %v565_v41  ;;  %v839_v41 = vld [vmem:[#allocation3 + $0x130] sm:$0xff] }
 0x1b5   :  { %582 = vst.msk [vmem:[#allocation3 + $0x160] sm:$0xff] %vm269_vm2, %v563_v32  ;;  %v877_v42 = vpack.c.bf16 %v810_v14, %v809_v50  ;;  %v892_v50 = vpack.c.bf16 %v840_v25, %v839_v41  ;;  %v801_v14 = vld [vmem:[#allocation3] sm:$0xff] }
 0x1b7   :  { %2227 = vmatpush3.bf16.msra.mxu0 %v877_v42  ;;  %v391_v52 = vpop.permute.xlu0 %390  ;;  %v862_v54 = vld [vmem:[#allocation3 + $0x1e8] sm:$0xff] }
 0x1b8   :  { %v389_v51 = vpop.permute.xlu1 %388  ;;  %v861_v53 = vld [vmem:[#allocation3 + $0x1e0] sm:$0xff]  ;;  %407 = vst.msk [vmem:[#allocation3 + $0xb8] sm:$0xff] %vm269_vm2, %v391_v52  ;;  %v802_v42 = vld [vmem:[#allocation3 + $0x8] sm:$0xff] }
 0x1b9   :  { %406 = vst.msk [vmem:[#allocation3 + $0xb0] sm:$0xff] %vm269_vm2, %v389_v51  ;;  %v903_v55 = vpack.c.bf16 %v862_v54, %v861_v53  ;;  %v167_v51 = vld [vmem:[%s3646_s4] sm:$0xff] }
 0x1bb   :  { %2262 = vmatprep.subr.bf16.mxu1 %v903_v55  ;;  %v691_v57 = vpop.permute.xlu0 %690  ;;  %v846_v59 = vld [vmem:[#allocation3 + $0x168] sm:$0xff] }
 0x1bc   :  { %v689_v56 = vpop.permute.xlu1 %688  ;;  %v845_v58 = vld [vmem:[#allocation3 + $0x160] sm:$0xff]  ;;  %711 = vst.msk [vmem:[#allocation3 + $0x1d8] sm:$0xff] %vm269_vm2, %v691_v57 }
 0x1bd   :  { %710 = vst.msk [vmem:[#allocation3 + $0x1d0] sm:$0xff] %vm269_vm2, %v689_v56  ;;  %v895_v60 = vpack.c.bf16 %v846_v59, %v845_v58  ;;  %v172_v56 = vld [vmem:[%s3646_s4 + $0x28] sm:$0xff]  ;;  %v178_v58 = vld [vmem:[%s3646_s4 + $0x58] sm:$0xff]  ;;  %v183_v59 = vld [vmem:[%s3646_s4 + $0x80] sm:$0xff] }
 0x1be   :  { %v781_v61 = vpack.c.bf16 %v172_v56, %v167_v51 }
 0x1bf   :  { %2263 = vmatpush3.bf16.msra.mxu1 %v895_v60  ;;  %v561_v63 = vpop.permute.xlu0 %560  ;;  %v824_v1 = vld [vmem:[#allocation3 + $0xb8] sm:$0xff]  ;;  %v873_v60 = vpack.c.bf16 %v802_v42, %v801_v14  ;;  %v184_v14 = vld [vmem:[%s3646_s4 + $0x88] sm:$0xff]  ;;  %v197_v42 = vld [vmem:[%s3646_s4 + $0xf0] sm:$0xff] }
 0x1c0   :  { %v559_v62 = vpop.permute.xlu1 %558  ;;  %v823_v0 = vld [vmem:[#allocation3 + $0xb0] sm:$0xff]  ;;  %581 = vst.msk [vmem:[#allocation3 + $0x158] sm:$0xff] %vm269_vm2, %v561_v63  ;;  %v838_v63 = vld [vmem:[#allocation3 + $0x128] sm:$0xff] }
 0x1c1   :  { %580 = vst.msk [vmem:[#allocation3 + $0x150] sm:$0xff] %vm269_vm2, %v559_v62  ;;  %v884_v2 = vpack.c.bf16 %v824_v1, %v823_v0  ;;  %v837_v62 = vld [vmem:[#allocation3 + $0x120] sm:$0xff] }
 0x1c3   :  { %2228 = vmatprep.subr.bf16.mxu0 %v884_v2  ;;  %v387_v6 = vpop.permute.xlu0 %386  ;;  %v860_v8 = vld [vmem:[#allocation3 + $0x1d8] sm:$0xff] }
 0x1c4   :  { %v385_v5 = vpop.permute.xlu1 %384  ;;  %2229 = vmatpush3.bf16.msra.mxu0 %v876_v4  ;;  %v859_v7 = vld [vmem:[#allocation3 + $0x1d0] sm:$0xff]  ;;  %405 = vst.msk [vmem:[#allocation3 + $0xa8] sm:$0xff] %vm269_vm2, %v387_v6  ;;  %v787_v4 = vpack.c.bf16 %v183_v59, %v178_v58  ;;  %v891_v6 = vpack.c.bf16 %v838_v63, %v837_v62  ;;  %v195_v58 = vld [vmem:[%s3646_s4 + $0xe0] sm:$0xff] }
 0x1c5   :  { %404 = vst.msk [vmem:[#allocation3 + $0xa0] sm:$0xff] %vm269_vm2, %v385_v5  ;;  %v902_v9 = vpack.c.bf16 %v860_v8, %v859_v7  ;;  %v835_v7 = vld [vmem:[#allocation3 + $0x110] sm:$0xff]  ;;  %v836_v8 = vld [vmem:[#allocation3 + $0x118] sm:$0xff] }
 0x1c7   :  { %2264 = vmatprep.subr.bf16.mxu1 %v902_v9  ;;  %v687_v16 = vpop.permute.xlu0 %686  ;;  %v844_v18 = vld [vmem:[#allocation3 + $0x158] sm:$0xff]  ;;  %v177_v9 = vld [vmem:[%s3646_s4 + $0x50] sm:$0xff] }
 0x1c8   :  { %v685_v11 = vpop.permute.xlu1 %684  ;;  %v843_v17 = vld [vmem:[#allocation3 + $0x150] sm:$0xff]  ;;  %709 = vst.msk [vmem:[#allocation3 + $0x1c8] sm:$0xff] %vm269_vm2, %v687_v16 }
 0x1c9   :  { %708 = vst.msk [vmem:[#allocation3 + $0x1c0] sm:$0xff] %vm269_vm2, %v685_v11  ;;  %v894_v10 = vpack.c.bf16 %v844_v18, %v843_v17 }
 0x1cb   :  { %2265 = vmatpush3.bf16.msra.mxu1 %v894_v10  ;;  %v557_v22 = vpop.permute.xlu0 %556  ;;  %v822_v27 = vld [vmem:[#allocation3 + $0xa8] sm:$0xff]  ;;  %v182_v10 = vld [vmem:[%s3646_s4 + $0x78] sm:$0xff] }
 0x1cc   :  { %v555_v21 = vpop.permute.xlu1 %554  ;;  %v821_v24 = vld [vmem:[#allocation3 + $0xa0] sm:$0xff]  ;;  %579 = vst.msk [vmem:[#allocation3 + $0x148] sm:$0xff] %vm269_vm2, %v557_v22  ;;  %v890_v22 = vpack.c.bf16 %v836_v8, %v835_v7  ;;  %v186_v7 = vld [vmem:[%s3646_s4 + $0x98] sm:$0xff]  ;;  %v200_v8 = vld [vmem:[%s3646_s4 + $0x108] sm:$0xff] }
 0x1cd   :  { %578 = vst.msk [vmem:[#allocation3 + $0x140] sm:$0xff] %vm269_vm2, %v555_v21  ;;  %v883_v28 = vpack.c.bf16 %v822_v27, %v821_v24  ;;  %v193_v21 = vld [vmem:[%s3646_s4 + $0xd0] sm:$0xff]  ;;  %v786_v24 = vpack.c.bf16 %v182_v10, %v177_v9  ;;  %v196_v10 = vld [vmem:[%s3646_s4 + $0xe8] sm:$0xff] }
 0x1cf   :  { %2230 = vmatprep.subr.bf16.mxu0 %v883_v28  ;;  %v383_v12 = vpop.permute.xlu0 %382  ;;  %v858_v34 = vld [vmem:[#allocation3 + $0x1c8] sm:$0xff] }
 0x1d0   :  { %v381_v30 = vpop.permute.xlu1 %380  ;;  %2231 = vmatpush3.bf16.msra.mxu0 %v875_v29  ;;  %v857_v33 = vld [vmem:[#allocation3 + $0x1c0] sm:$0xff]  ;;  %403 = vst.msk [vmem:[#allocation3 + $0x98] sm:$0xff] %vm269_vm2, %v383_v12  ;;  %v792_v12 = vpack.c.bf16 %v193_v21, %v188_v13 }
 0x1d1   :  { %402 = vst.msk [vmem:[#allocation3 + $0x90] sm:$0xff] %vm269_vm2, %v381_v30  ;;  %v901_v35 = vpack.c.bf16 %v858_v34, %v857_v33  ;;  %v169_v34 = vld [vmem:[%s3646_s4 + $0x10] sm:$0xff] }
 0x1d3   :  { %2266 = vmatprep.subr.bf16.mxu1 %v901_v35  ;;  %v634_v37 = vpop.permute.xlu0 %633  ;;  %v842_v15 = vld [vmem:[#allocation3 + $0x148] sm:$0xff]  ;;  %v174_v35 = vld [vmem:[%s3646_s4 + $0x38] sm:$0xff] }
 0x1d4   :  { %v632_v36 = vpop.permute.xlu1 %631  ;;  %v841_v38 = vld [vmem:[#allocation3 + $0x140] sm:$0xff]  ;;  %650 = vst.msk [vmem:[#allocation3 + $0x1b8] sm:$0xff] %vm269_vm2, %v634_v37 }
 0x1d5   :  { %649 = vst.msk [vmem:[#allocation3 + $0x1b0] sm:$0xff] %vm269_vm2, %v632_v36  ;;  %v893_v39 = vpack.c.bf16 %v842_v15, %v841_v38  ;;  %v187_v36 = vld [vmem:[%s3646_s4 + $0xa0] sm:$0xff] }
 0x1d7   :  { %2267 = vmatpush3.bf16.msra.mxu1 %v893_v39  ;;  %v379_v45 = vpop.permute.xlu0 %378  ;;  %v820_v47 = vld [vmem:[#allocation3 + $0x98] sm:$0xff] }
 0x1d8   :  { %v377_v44 = vpop.permute.xlu1 %376  ;;  %v819_v46 = vld [vmem:[#allocation3 + $0x90] sm:$0xff]  ;;  %401 = vst.msk [vmem:[#allocation3 + $0x88] sm:$0xff] %vm269_vm2, %v379_v45 }
 0x1d9   :  { %400 = vst.msk [vmem:[#allocation3 + $0x80] sm:$0xff] %vm269_vm2, %v377_v44  ;;  %v882_v19 = vpack.c.bf16 %v820_v47, %v819_v46  ;;  %v180_v44 = vld [vmem:[%s3646_s4 + $0x68] sm:$0xff]  ;;  %v185_v45 = vld [vmem:[%s3646_s4 + $0x90] sm:$0xff]  ;;  %v783_v46 = vpack.c.bf16 %v174_v35, %v169_v34  ;;  %v198_v47 = vld [vmem:[%s3646_s4 + $0xf8] sm:$0xff] }
 0x1da   :  { %v2214_v34 = vld [vmem:[%s3644_s1 + $0x7] ss:$0 sm:$0xff]  ;;  %v2209_v35 = vld [vmem:[%s3644_s1 + $0x1] ss:$0 sm:$0xff] }
 0x1db   :  { %2232 = vmatprep.subr.bf16.mxu0 %v882_v19  ;;  %v630_v48 = vpop.permute.xlu0 %629  ;;  %v856_v31 = vld [vmem:[#allocation3 + $0x1b8] sm:$0xff]  ;;  %v203_v19 = vld [vmem:[%s3646_s4 + $0x120] sm:$0xff]  ;;  %1360 = vrot.lane.b32.xlu0 %v2209_v35, %s2454_s19 }
 0x1dc   :  { %v628_v26 = vpop.permute.xlu1 %627  ;;  %2233 = vmatpush3.bf16.msra.mxu0 %v874_v23  ;;  %v855_v49 = vld [vmem:[#allocation3 + $0x1b0] sm:$0xff]  ;;  %648 = vst.msk [vmem:[#allocation3 + $0x1a8] sm:$0xff] %vm269_vm2, %v630_v48  ;;  %v791_v23 = vpack.c.bf16 %v192_v40, %v187_v36  ;;  %v797_v41 = vpack.c.bf16 %v203_v19, %v198_v47  ;;  %v2210_v36 = vld [vmem:[%s3644_s1 + $0x2] ss:$0 sm:$0xff] }
 0x1dd   :  { %647 = vst.msk [vmem:[#allocation3 + $0x1a0] sm:$0xff] %vm269_vm2, %v628_v26  ;;  %v900_v32 = vpack.c.bf16 %v856_v31, %v855_v49  ;;  %v789_v31 = vpack.c.bf16 %v185_v45, %v180_v44 }
 0x1df   :  { %2268 = vmatprep.subr.bf16.mxu1 %v900_v32  ;;  %v626_v53 = vpop.permute.xlu0 %625  ;;  %v818_v55 = vld [vmem:[#allocation3 + $0x88] sm:$0xff] }
 0x1e0   :  { %v624_v52 = vpop.permute.xlu1 %623  ;;  %2269 = vmatpush3.bf16.msra.mxu1 %v892_v50  ;;  %v817_v54 = vld [vmem:[#allocation3 + $0x80] sm:$0xff]  ;;  %646 = vst.msk [vmem:[#allocation3 + $0x198] sm:$0xff] %vm269_vm2, %v626_v53 }
 0x1e1   :  { %645 = vst.msk [vmem:[#allocation3 + $0x190] sm:$0xff] %vm269_vm2, %v624_v52  ;;  %v881_v57 = vpack.c.bf16 %v818_v55, %v817_v54  ;;  %v179_v50 = vld [vmem:[%s3646_s4 + $0x60] sm:$0xff]  ;;  %v202_v55 = vld [vmem:[%s3646_s4 + $0x118] sm:$0xff] }
 0x1e2   :  { %v788_v59 = vpack.c.bf16 %v184_v14, %v179_v50  ;;  %v796_v62 = vpack.c.bf16 %v202_v55, %v197_v42 }
 0x1e3   :  { %2234 = vmatprep.subr.bf16.mxu0 %v881_v57  ;;  %v622_v1 = vpop.permute.xlu0 %621  ;;  %v854_v3 = vld [vmem:[#allocation3 + $0x1a8] sm:$0xff]  ;;  %v190_v57 = vld [vmem:[%s3646_s4 + $0xb8] sm:$0xff] }
 0x1e4   :  { %v620_v0 = vpop.permute.xlu1 %619  ;;  %2235 = vmatpush3.bf16.msra.mxu0 %v873_v60  ;;  %v853_v2 = vld [vmem:[#allocation3 + $0x1a0] sm:$0xff]  ;;  %644 = vst.msk [vmem:[#allocation3 + $0x188] sm:$0xff] %vm269_vm2, %v622_v1  ;;  %v794_v1 = vpack.c.bf16 %v195_v58, %v190_v57 }
 0x1e5   :  { %643 = vst.msk [vmem:[#allocation3 + $0x180] sm:$0xff] %vm269_vm2, %v620_v0  ;;  %v899_v5 = vpack.c.bf16 %v854_v3, %v853_v2  ;;  %v171_v60 = vld [vmem:[%s3646_s4 + $0x20] sm:$0xff] }
 0x1e7   :  { %955 = vmatmul.mubr.bf16.vlgmr.msra.gmra.mxu0 %v781_v61  ;;  %2270 = vmatprep.subr.bf16.mxu1 %v899_v5  ;;  %v492_v16 = vpop.permute.xlu0 %491  ;;  %v852_v18 = vld [vmem:[#allocation3 + $0x198] sm:$0xff]  ;;  %v176_v61 = vld [vmem:[%s3646_s4 + $0x48] sm:$0xff] }
 0x1e8   :  { %v490_v11 = vpop.permute.xlu1 %489  ;;  %2271 = vmatpush3.bf16.msra.mxu1 %v891_v6  ;;  %v851_v17 = vld [vmem:[#allocation3 + $0x190] sm:$0xff]  ;;  %962 = vmatprep.mubr.bf16.mxu0 %v787_v4  ;;  %514 = vst.msk [vmem:[#allocation3 + $0x108] sm:$0xff] %vm269_vm2, %v492_v16  ;;  %v785_v3 = vpack.c.bf16 %v176_v61, %v171_v60  ;;  %v194_v5 = vld [vmem:[%s3646_s4 + $0xd8] sm:$0xff] }
 0x1e9   :  { %513 = vst.msk [vmem:[#allocation3 + $0x100] sm:$0xff] %vm269_vm2, %v490_v11  ;;  %v898_v20 = vpack.c.bf16 %v852_v18, %v851_v17  ;;  %v189_v4 = vld [vmem:[%s3646_s4 + $0xb0] sm:$0xff]  ;;  %v191_v18 = vld [vmem:[%s3646_s4 + $0xc0] sm:$0xff] }
 0x1ea   :  { %v181_v6 = vld [vmem:[%s3646_s4 + $0x70] sm:$0xff] }
 0x1eb   :  { %2272 = vmatprep.subr.bf16.mxu1 %v898_v20  ;;  %v764_v28 = vpop.permute.xlu0 %763  ;;  %v850_v30 = vld [vmem:[#allocation3 + $0x188] sm:$0xff]  ;;  %v205_v16 = vld [vmem:[%s3646_s4 + $0x130] sm:$0xff]  ;;  %v793_v20 = vpack.c.bf16 %v194_v5, %v189_v4  ;;  %v790_v13 = vpack.c.bf16 %v186_v7, %v181_v6 }
 0x1ec   :  { %v762_v27 = vpop.permute.xlu1 %761  ;;  %2273 = vmatpush3.bf16.msra.mxu1 %v890_v22  ;;  %v849_v29 = vld [vmem:[#allocation3 + $0x180] sm:$0xff]  ;;  %780 = vst.msk [vmem:[#allocation3 + $0x238] sm:$0xff] %vm269_vm2, %v764_v28  ;;  %v799_v21 = vpack.c.bf16 %v205_v16, %v200_v8  ;;  %v795_v22 = vpack.c.bf16 %v196_v10, %v191_v18  ;;  %v201_v28 = vld [vmem:[%s3646_s4 + $0x110] sm:$0xff] }
 0x1ed   :  { %779 = vst.msk [vmem:[#allocation3 + $0x230] sm:$0xff] %vm269_vm2, %v762_v27  ;;  %v897_v33 = vpack.c.bf16 %v850_v30, %v849_v29  ;;  %v204_v27 = vld [vmem:[%s3646_s4 + $0x128] sm:$0xff]  ;;  %v206_v29 = vld [vmem:[%s3646_s4 + $0x138] sm:$0xff] }
 0x1ef   :  { %963 = vmatmul.mubr.bf16.gmra.mxu0 %v786_v24  ;;  %2274 = vmatprep.subr.bf16.mxu1 %v897_v33  ;;  %v760_v38 = vpop.permute.xlu0 %759  ;;  %v834_v39 = vld [vmem:[#allocation3 + $0x108] sm:$0xff]  ;;  %v199_v24 = vld [vmem:[%s3646_s4 + $0x100] sm:$0xff] }
 0x1f0   :  { %v758_v37 = vpop.permute.xlu1 %757  ;;  %v833_v15 = vld [vmem:[#allocation3 + $0x100] sm:$0xff]  ;;  %970 = vmatprep.mubr.bf16.mxu0 %v792_v12  ;;  %778 = vst.msk [vmem:[#allocation3 + $0x228] sm:$0xff] %vm269_vm2, %v760_v38  ;;  %v798_v30 = vpack.c.bf16 %v204_v27, %v199_v24  ;;  %v800_v12 = vpack.c.bf16 %v206_v29, %v201_v28  ;;  %v2215_v38 = vld [vmem:[%s3644_s1 + $0x8] ss:$0 sm:$0xff] }
 0x1f1   :  { %777 = vst.msk [vmem:[#allocation3 + $0x220] sm:$0xff] %vm269_vm2, %v758_v37  ;;  %v889_v43 = vpack.c.bf16 %v834_v39, %v833_v15  ;;  %v2211_v33 = vld [vmem:[%s3644_s1 + $0x3] ss:$0 sm:$0xff]  ;;  %v2212_v37 = vld [vmem:[%s3644_s1 + $0x5] ss:$0 sm:$0xff] }
 0x1f2   :  { %1490 = vrot.lane.b32.xlu1 %v2211_v33, %s2453_s2  ;;  %1603 = vrot.lane.b32.xlu0 %v2212_v37, %s2456_s24  ;;  %v2213_v15 = vld [vmem:[%s3644_s1 + $0x6] ss:$0 sm:$0xff] }
 0x1f3   :  { %2275 = vmatpush3.bf16.msra.mxu1 %v889_v43  ;;  %v756_v26 = vpop.permute.xlu0 %755  ;;  %v872_v49 = vld [vmem:[#allocation3 + $0x238] sm:$0xff] }
 0x1f4   :  { %v754_v25 = vpop.permute.xlu1 %753  ;;  %v871_v48 = vld [vmem:[#allocation3 + $0x230] sm:$0xff]  ;;  %776 = vst.msk [vmem:[#allocation3 + $0x218] sm:$0xff] %vm269_vm2, %v756_v26 }
 0x1f5   :  { %775 = vst.msk [vmem:[#allocation3 + $0x210] sm:$0xff] %vm269_vm2, %v754_v25  ;;  %v908_v32 = vpack.c.bf16 %v872_v49, %v871_v48 }
 0x1f6   :  { %1020 = vmatmul.mubr.bf16.vlgmr.msra.gmra.mxu1 %v783_v46  ;;  %1733 = vrot.lane.b32.xlu1 %v2214_v34, %s2455_s23 }
 0x1f7   :  { %971 = vmatmul.mubr.bf16.gmra.mxu0 %v791_v23  ;;  %2396 = vmatprep.subr.bf16.mxu0 %v908_v32  ;;  %v752_v52 = vpop.permute.xlu0 %751  ;;  %v870_v54 = vld [vmem:[#allocation3 + $0x228] sm:$0xff] }
 0x1f8   :  { %v750_v51 = vpop.permute.xlu1 %749  ;;  %2397 = vmatpush3.bf16.msra.mxu0 %v908_v32  ;;  %v869_v53 = vld [vmem:[#allocation3 + $0x220] sm:$0xff]  ;;  %1027 = vmatprep.mubr.bf16.mxu1 %v789_v31  ;;  %774 = vst.msk [vmem:[#allocation3 + $0x208] sm:$0xff] %vm269_vm2, %v752_v52 }
 0x1f9   :  { %773 = vst.msk [vmem:[#allocation3 + $0x200] sm:$0xff] %vm269_vm2, %v750_v51  ;;  %v907_v56 = vpack.c.bf16 %v870_v54, %v869_v53  ;;  %978 = vmatprep.mubr.bf16.mxu0 %v797_v41  ;;  %1668 = vrot.lane.b32.xlu0 %v2213_v15, %s2456_s24 }
 0x1fa   :  { %1425 = vrot.lane.b32.xlu1 %v2210_v36, %s2453_s2 }
 0x1fb   :  { %2398 = vmatprep.subr.bf16.mxu0 %v907_v56  ;;  %v868_v0 = vld [vmem:[#allocation3 + $0x218] sm:$0xff] }
 0x1fc   :  { %2399 = vmatpush3.bf16.msra.mxu0 %v907_v56  ;;  %v867_v63 = vld [vmem:[#allocation3 + $0x210] sm:$0xff] }
 0x1fd   :  { %v906_v2 = vpack.c.bf16 %v868_v0, %v867_v63 }
 0x1fe   :  { %1028 = vmatmul.mubr.bf16.gmra.mxu1 %v788_v59  ;;  %1798 = vrot.lane.b32.xlu1 %v2215_v38, %s2458_s9 }
 0x1ff   :  { %979 = vmatmul.mubr.bf16.gmra.mxu0 %v796_v62  ;;  %2400 = vmatprep.subr.bf16.mxu0 %v906_v2  ;;  %v866_v11 = vld [vmem:[#allocation3 + $0x208] sm:$0xff] }
 0x200   :  { %2401 = vmatpush3.bf16.msra.mxu0 %v906_v2  ;;  %v865_v9 = vld [vmem:[#allocation3 + $0x200] sm:$0xff]  ;;  %1035 = vmatprep.mubr.bf16.mxu1 %v794_v1 }
 0x201   :  { %v905_v17 = vpack.c.bf16 %v866_v11, %v865_v9  ;;  %2404 = vmatprep.mubr.msk.bf16.mxu0 %vm909_vm3, %v785_v3 }
 0x203   :  { %2402 = vmatprep.subr.bf16.mxu0 %v905_v17 }
 0x204   :  { %2403 = vmatpush3.bf16.msra.mxu0 %v905_v17  ;;  %v3126_v40 = vpop.permute.xlu0 %1162 }
 0x205   :  { %v3124_v39 = vpop.permute.xlu1 %1157 }
 0x206   :  { %1036 = vmatmul.mubr.bf16.gmra.mxu1 %v793_v20 }
 0x207   :  { %2405 = vmatmul.mubr.msk.bf16.vlgmr.msra.gmra.mxu0 %vm909_vm3, %v790_v13  ;;  %1043 = vmatprep.mubr.bf16.mxu1 %v799_v21 }
 0x208   :  { %2408 = vmatprep.mubr.msk.bf16.mxu0 %vm909_vm3, %v795_v22  ;;  %v3130_v47 = vpop.permute.xlu0 %1218 }
 0x209   :  { %v3128_v44 = vpop.permute.xlu1 %1213 }
 0x20c   :  { %v3134_v48 = vpop.permute.xlu0 %1152 }
 0x20d   :  { %v3132_v23 = vpop.permute.xlu1 %1147 }
 0x20e   :  { %1044 = vmatmul.mubr.bf16.gmra.mxu1 %v798_v30 }
 0x20f   :  { %2409 = vmatmul.mubr.msk.bf16.gmra.mxu0 %vm909_vm3, %v800_v12 }
 0x210   :  { %v3138_v42 = vpop.permute.xlu0 %1208 }
 0x211   :  { %v3136_v31 = vpop.permute.xlu1 %1203 }
 0x214   :  { %v1143_v58 = vpop.permute.xlu0 %1142 }
 0x215   :  { %v1138_v53 = vpop.permute.xlu1 %1137 }
 0x218   :  { %v1199_v5 = vpop.permute.xlu0 %1198 }
 0x219   :  { %v1194_v61 = vpop.permute.xlu1 %1193 }
 0x21c   :  { %v1133_v12 = vpop.permute.xlu0 %1132 }
 0x21d   :  { %v1128_v16 = vpop.permute.xlu1 %1127 }
 0x221   :  { %v1184_v15 = vpop.permute.xlu1 %1183 }
 0x2a7   :  { %v2236_v43 = vpop.f32.mrf.mxu0 }
 0x2a9   :  { %v2237_v45 = vpop.f32.mrf.mxu0 }
 0x2aa   :  { %v2238_v7 = vadd.f32 %v2237_v45, %v2236_v43 }
 0x2ab   :  { %v2239_v46 = vpop.f32.mrf.mxu0 }
 0x2ad   :  { %v2240_v19 = vpop.f32.mrf.mxu0 }
 0x2ae   :  { %v2241_v24 = vadd.f32 %v2240_v19, %v2239_v46 }
 0x2af   :  { %v2242_v25 = vpop.f32.mrf.mxu0 }
 0x2b1   :  { %v2243_v26 = vpop.f32.mrf.mxu0 }
 0x2b2   :  { %v2244_v2 = vadd.f32 %v2243_v26, %v2242_v25 }
 0x2b3   :  { %v2245_v49 = vpop.f32.mrf.mxu0 }
 0x2b5   :  { %v2246_v32 = vpop.f32.mrf.mxu0 }
 0x2b6   :  { %v2276_v41 = vpop.f32.mrf.mxu1  ;;  %v2247_v18 = vadd.f32 %v2246_v32, %v2245_v49 }
 0x2b7   :  { %v2248_v50 = vpop.f32.mrf.mxu0 }
 0x2b8   :  { %v2277_v14 = vpop.f32.mrf.mxu1 }
 0x2b9   :  { %v2249_v51 = vpop.f32.mrf.mxu0  ;;  %v2278_v3 = vadd.f32 %v2277_v14, %v2276_v41 }
 0x2ba   :  { %v2279_v52 = vpop.f32.mrf.mxu1  ;;  %v2250_v46 = vadd.f32 %v2249_v51, %v2248_v50 }
 0x2bb   :  { %v3140_v54 = vpop.f32.mrf.mxu0  ;;  %v1022_v21 = vadd.f32 %v2278_v3, %v2238_v7 }
 0x2bc   :  { %v2280_v55 = vpop.f32.mrf.mxu1 }
 0x2bd   :  { %v3142_v56 = vpop.f32.mrf.mxu0  ;;  %v2281_v10 = vadd.f32 %v2280_v55, %v2279_v52  ;;  %v1189_v55 = vpop.permute.xlu0 %1188 }
 0x2be   :  { %v2282_v57 = vpop.f32.mrf.mxu1 }
 0x2bf   :  { %v2254_v59 = vpop.f32.mrf.mxu0  ;;  %v1025_v38 = vadd.f32 %v2281_v10, %v2241_v24 }
 0x2c0   :  { %v2283_v60 = vpop.f32.mrf.mxu1 }
 0x2c1   :  { %v2255_v62 = vpop.f32.mrf.mxu0  ;;  %v2284_v63 = vadd.f32 %v2283_v60, %v2282_v57 }
 0x2c2   :  { %v2285_v0 = vpop.f32.mrf.mxu1  ;;  %v2256_v57 = vadd.f32 %v2255_v62, %v2254_v59 }
 0x2c3   :  { %v2257_v1 = vpop.f32.mrf.mxu0  ;;  %v1030_v11 = vadd.f32 %v2284_v63, %v2244_v2 }
 0x2c4   :  { %v2286_v4 = vpop.f32.mrf.mxu1 }
 0x2c5   :  { %v2258_v6 = vpop.f32.mrf.mxu0  ;;  %v2287_v8 = vadd.f32 %v2286_v4, %v2285_v0 }
 0x2c6   :  { %v2288_v9 = vpop.f32.mrf.mxu1  ;;  %v2259_v59 = vadd.f32 %v2258_v6, %v2257_v1 }
 0x2c7   :  { %v2406_v17 = vpop.f32.mrf.mxu0  ;;  %v1033_v30 = vadd.f32 %v2287_v8, %v2247_v18 }
 0x2c8   :  { %v1095_v20 = vadd.f32 %v2406_v17, %v1030_v11  ;;  %v2289_v13 = vpop.f32.mrf.mxu1 }
 0x2c9   :  { %v1086_v22 = vpop.f32.mrf.mxu0  ;;  %v2290_v43 = vadd.f32 %v2289_v13, %v2288_v9 }
 0x2ca   :  { %v1167_v27 = vmul.f32 %v1138_v53, %v1095_v20  ;;  %v1087_v28 = vadd.f32 %v1086_v22, %v1022_v21  ;;  %v2291_v29 = vpop.f32.mrf.mxu1 }
 0x2cb   :  { %v2407_v33 = vpop.f32.mrf.mxu0  ;;  %v1038_v63 = vadd.f32 %v2290_v43, %v2250_v46 }
 0x2cc   :  { %v1223_v34 = vadd.f32 %v1194_v61, %v1167_v27  ;;  %v1165_v35 = vmul.f32 %v1128_v16, %v1087_v28  ;;  %v1098_v36 = vadd.f32 %v2407_v33, %v1033_v30  ;;  %v2292_v37 = vpop.f32.mrf.mxu1 }
 0x2cd   :  { %v1089_v45 = vpop.f32.mrf.mxu0  ;;  %v2293_v60 = vadd.f32 %v2292_v37, %v2291_v29 }
 0x2ce   :  { %v1231_v25 = vmax.f32 %v1223_v34, 0.0  ;;  %v1221_v26 = vadd.f32 %v1184_v15, %v1165_v35  ;;  %v1168_v49 = vmul.f32 %v1143_v58, %v1098_v36  ;;  %v1090_v32 = vadd.f32 %v1089_v45, %v1025_v38  ;;  %v2294_v41 = vpop.f32.mrf.mxu1  ;;  %v2208_v34 = vld [vmem:[%s3644_s1] ss:$0 sm:$0xff] }
 0x2cf   :  { %v2410_v19 = vpop.f32.mrf.mxu0  ;;  %v2253_v58 = vadd.f32 %v3142_v56, %v3140_v54 }
 0x2d0   :  { %v1224_v14 = vadd.f32 %v1199_v5, %v1168_v49  ;;  %v1166_v52 = vmul.f32 %v1133_v12, %v1090_v32  ;;  %v2295_v53 = vpop.f32.mrf.mxu1  ;;  %1289 = vrot.lane.b32.xlu1 %v1231_v25, %s2459_s14  ;;  %v1229_v2 = vmax.f32 %v1221_v26, 0.0 }
 0x2d1   :  { %v2296_v61 = vadd.f32 %v2295_v53, %v2294_v41  ;;  %v1102_v0 = vpop.f32.mrf.mxu0  ;;  %v1041_v11 = vadd.f32 %v2293_v60, %v2253_v58 }
 0x2d2   :  { %v1232_v3 = vmax.f32 %v1224_v14, 0.0  ;;  %v1222_v4 = vadd.f32 %v1189_v55, %v1166_v52  ;;  %v2297_v7 = vpop.f32.mrf.mxu1  ;;  %v1103_v51 = vadd.f32 %v1102_v0, %v1038_v63 }
 0x2d3   :  { %v1046_v50 = vadd.f32 %v2296_v61, %v2256_v57  ;;  %v2411_v5 = vpop.f32.mrf.mxu0 }
 0x2d4   :  { %v2298_v8 = vpop.f32.mrf.mxu1  ;;  %1285 = vrot.lane.b32.xlu1 %v1229_v2, %s2459_s14  ;;  %1291 = vrot.lane.b32.xlu0 %v1232_v3, %s2459_s14  ;;  %v1230_v17 = vmax.f32 %v1222_v4, 0.0  ;;  %v1169_v10 = vmul.f32 %v3132_v23, %v1103_v51 }
 0x2d5   :  { %v1111_v62 = vadd.f32 %v2410_v19, %v1046_v50  ;;  %v2299_v9 = vadd.f32 %v2298_v8, %v2297_v7  ;;  %v1105_v16 = vpop.f32.mrf.mxu0 }
 0x2d6   :  { %v1106_v54 = vadd.f32 %v1105_v16, %v1041_v11  ;;  %v1225_v21 = vadd.f32 %v3136_v31, %v1169_v10  ;;  %v3162_v31 = vpop.permute.xlu1 %1490 }
 0x2d7   :  { %v1171_v18 = vmul.f32 %v3124_v39, %v1111_v62  ;;  %v1049_v20 = vadd.f32 %v2299_v9, %v2259_v59 }
 0x2d8   :  { %1287 = vrot.lane.b32.xlu0 %v1230_v17, %s2459_s14  ;;  %v1170_v6 = vmul.f32 %v3134_v48, %v1106_v54  ;;  %v1233_v24 = vmax.f32 %v1225_v21, 0.0  ;;  %v3166_v48 = vpop.permute.xlu0 %1360 }
 0x2d9   :  { %v1114_v56 = vadd.f32 %v2411_v5, %v1049_v20  ;;  %v1227_v13 = vadd.f32 %v3128_v44, %v1171_v18 }
 0x2da   :  { %v1226_v23 = vadd.f32 %v3138_v42, %v1170_v6 }
 0x2db   :  { %v1172_v1 = vmul.f32 %v3126_v40, %v1114_v56  ;;  %v1235_v22 = vmax.f32 %v1227_v13, 0.0  ;;  %v3164_v40 = vpop.permute.xlu1 %1733 }
 0x2dc   :  { %v1234_v44 = vmax.f32 %v1226_v23, 0.0 }
 0x2dd   :  { %1297 = vrot.lane.b32.xlu1 %v1235_v22, %s2459_s14  ;;  %v1228_v39 = vadd.f32 %v3130_v47, %v1172_v1  ;;  %v3170_v47 = vpop.permute.xlu0 %1603 }
 0x2df   :  { %v1236_v27 = vmax.f32 %v1228_v39, 0.0  ;;  %v3168_v28 = vpop.permute.xlu1 %1425 }
 0x2e1   :  { %1293 = vrot.lane.b32.xlu1 %v1233_v24, %s2459_s14  ;;  %1299 = vrot.lane.b32.xlu0 %v1236_v27, %s2459_s14  ;;  %v3174_v42 = vpop.permute.xlu0 %1668 }
 0x2e3   :  { %v3172_v29 = vpop.permute.xlu1 %1798 }
 0x2e5   :  { %1295 = vrot.lane.b32.xlu0 %v1234_v44, %s2459_s14 }
 0x342   :  { %v1290_v30 = vpop.permute.xlu1 %1289 }
 0x343   :  { %1311 = vst.msk [vmem:[#allocation2 + $0x10] sm:$0xff] %vm239_vm1, %v1290_v30 }
 0x346   :  { %v1286_v12 = vpop.permute.xlu1 %1285  ;;  %v1292_v33 = vpop.permute.xlu0 %1291 }
 0x347   :  { %1309 = vst.msk [vmem:[#allocation2] sm:$0xff] %vm239_vm1, %v1286_v12  ;;  %1312 = vst.msk [vmem:[#allocation2 + $0x18] sm:$0xff] %vm239_vm1, %v1292_v33 }
 0x34a   :  { %v1288_v35 = vpop.permute.xlu0 %1287  ;;  %v3182_v36 = vld [vmem:[#allocation2 + $0x10] sm:$0xff] }
 0x34b   :  { %1310 = vst.msk [vmem:[#allocation2 + $0x8] sm:$0xff] %vm239_vm1, %v1288_v35  ;;  %v1495_v37 = vmul.f32 %v3162_v31, %v3182_v36  ;;  %v1332_v38 = vmul.f32 %v2208_v34, %v3182_v36  ;;  %v1365_v45 = vmul.f32 %v3182_v36, %v3166_v48  ;;  %v1738_v19 = vmul.f32 %v3164_v40, %v3182_v36 }
 0x34c   :  { %v1608_v57 = vmul.f32 %v3170_v47, %v3182_v36  ;;  %v1430_v2 = vmul.f32 %v3182_v36, %v3168_v28 }
 0x34d   :  { %1513 = vrot.lane.b32.xlu0 %v1495_v37, %s2461_s11  ;;  %1340 = vst.msk [vmem:[#allocation3 + $0x10] sm:$0xff] %vm269_vm2, %v1332_v38 }
 0x34e   :  { %v3189_v15 = vld [vmem:[#allocation2 + $0x18] sm:$0xff]  ;;  %v3199_v26 = vld [vmem:[#allocation2] sm:$0xff] }
 0x34f   :  { %v1298_v43 = vpop.permute.xlu1 %1297  ;;  %v1496_v25 = vmul.f32 %v3162_v31, %v3189_v15  ;;  %v1333_v32 = vmul.f32 %v2208_v34, %v3189_v15  ;;  %v1366_v14 = vmul.f32 %v3189_v15, %v3166_v48  ;;  %v1330_v52 = vmul.f32 %v2208_v34, %v3199_v26 }
 0x350   :  { %1315 = vst.msk [vmem:[#allocation2 + $0x30] sm:$0xff] %vm239_vm1, %v1298_v43  ;;  %v1739_v60 = vmul.f32 %v3164_v40, %v3189_v15  ;;  %v1609_v3 = vmul.f32 %v3170_v47, %v3189_v15  ;;  %v1493_v7 = vmul.f32 %v3162_v31, %v3199_v26  ;;  %v1431_v58 = vmul.f32 %v3189_v15, %v3168_v28 }
 0x351   :  { %1383 = vrot.lane.b32.xlu0 %v1365_v45, %s2462_s12  ;;  %1515 = vrot.lane.b32.xlu1 %v1496_v25, %s2461_s11  ;;  %1341 = vst.msk [vmem:[#allocation3 + $0x18] sm:$0xff] %vm269_vm2, %v1333_v32  ;;  %1338 = vst.msk [vmem:[#allocation3] sm:$0xff] %vm269_vm2, %v1330_v52  ;;  %v1363_v9 = vmul.f32 %v3199_v26, %v3166_v48  ;;  %v1736_v16 = vmul.f32 %v3164_v40, %v3199_v26 }
 0x352   :  { %v3201_v49 = vld [vmem:[#allocation2 + $0x8] sm:$0xff]  ;;  %v1606_v18 = vmul.f32 %v3170_v47, %v3199_v26  ;;  %v1428_v20 = vmul.f32 %v3199_v26, %v3168_v28  ;;  %v1674_v32 = vmul.f32 %v3174_v42, %v3189_v15 }
 0x353   :  { %v1294_v41 = vpop.permute.xlu1 %1293  ;;  %v1300_v46 = vpop.permute.xlu0 %1299  ;;  %v1331_v53 = vmul.f32 %v2208_v34, %v3201_v49  ;;  %v1494_v11 = vmul.f32 %v3162_v31, %v3201_v49  ;;  %v1364_v17 = vmul.f32 %v3201_v49, %v3166_v48  ;;  %v1737_v10 = vmul.f32 %v3164_v40, %v3201_v49 }
 0x354   :  { %1313 = vst.msk [vmem:[#allocation2 + $0x20] sm:$0xff] %vm239_vm1, %v1294_v41  ;;  %1316 = vst.msk [vmem:[#allocation2 + $0x38] sm:$0xff] %vm239_vm1, %v1300_v46  ;;  %v1607_v54 = vmul.f32 %v3170_v47, %v3201_v49  ;;  %v1429_v56 = vmul.f32 %v3201_v49, %v3168_v28  ;;  %v1238_v41 = vld [vmem:[%s3649_s7 + $0x8] sm:$0xff]  ;;  %v1243_v46 = vld [vmem:[%s3649_s7 + $0x30] sm:$0xff]  ;;  %v1672_v52 = vmul.f32 %v3174_v42, %v3201_v49 }
 0x355   :  { %1756 = vrot.lane.b32.xlu0 %v1738_v19, %s2463_s13  ;;  %1385 = vrot.lane.b32.xlu1 %v1366_v14, %s2462_s12  ;;  %1339 = vst.msk [vmem:[#allocation3 + $0x8] sm:$0xff] %vm269_vm2, %v1331_v53  ;;  %v1850_v19 = vpack.c.bf16 %v1243_v46, %v1238_v41  ;;  %v1671_v14 = vmul.f32 %v3174_v42, %v3199_v26  ;;  %v1240_v53 = vld [vmem:[%s3649_s7 + $0x18] sm:$0xff] }
 0x357   :  { %v1296_v55 = vpop.permute.xlu0 %1295  ;;  %v3220_v61 = vld [vmem:[#allocation2 + $0x30] sm:$0xff]  ;;  %2021 = vmatprep.mubr.bf16.mxu1 %v1850_v19 }
 0x358   :  { %1314 = vst.msk [vmem:[#allocation2 + $0x28] sm:$0xff] %vm239_vm1, %v1296_v55  ;;  %v3228_v63 = vmul.f32 %v3172_v29, %v3220_v61  ;;  %v1336_v0 = vmul.f32 %v2208_v34, %v3220_v61  ;;  %v1499_v13 = vmul.f32 %v3220_v61, %v3162_v31  ;;  %v1369_v21 = vmul.f32 %v3220_v61, %v3166_v48  ;;  %v1245_v55 = vld [vmem:[%s3649_s7 + $0x40] sm:$0xff] }
 0x359   :  { %1626 = vrot.lane.b32.xlu0 %v1608_v57, %s2464_s15  ;;  %1758 = vrot.lane.b32.xlu1 %v1739_v60, %s2463_s13  ;;  %v1742_v6 = vmul.f32 %v3164_v40, %v3220_v61  ;;  %v1612_v39 = vmul.f32 %v3170_v47, %v3220_v61  ;;  %v1434_v23 = vmul.f32 %v3220_v61, %v3168_v28 }
 0x35a   :  { %1344 = vst.msk [vmem:[#allocation3 + $0x30] sm:$0xff] %vm269_vm2, %v1336_v0  ;;  %v1677_v44 = vmul.f32 %v3174_v42, %v3220_v61 }
 0x35b   :  { %v1548_v4 = vld [vmem:[#allocation2 + $0x38] sm:$0xff]  ;;  %v3242_v50 = vld [vmem:[#allocation2 + $0x20] sm:$0xff] }
 0x35c   :  { %v3247_v5 = vmul.f32 %v3172_v29, %v1548_v4  ;;  %v1337_v8 = vmul.f32 %v2208_v34, %v1548_v4  ;;  %v1334_v59 = vmul.f32 %v2208_v34, %v3242_v50  ;;  %v1500_v1 = vmul.f32 %v1548_v4, %v3162_v31 }
 0x35d   :  { %1448 = vrot.lane.b32.xlu0 %v1430_v2, %s2461_s11  ;;  %1628 = vrot.lane.b32.xlu1 %v1609_v3, %s2464_s15  ;;  %v1370_v22 = vmul.f32 %v1548_v4, %v3166_v48  ;;  %v1743_v24 = vmul.f32 %v3164_v40, %v1548_v4  ;;  %v1613_v27 = vmul.f32 %v3170_v47, %v1548_v4 }
 0x35e   :  { %1345 = vst.msk [vmem:[#allocation3 + $0x38] sm:$0xff] %vm269_vm2, %v1337_v8  ;;  %1342 = vst.msk [vmem:[#allocation3 + $0x20] sm:$0xff] %vm269_vm2, %v1334_v59  ;;  %v1435_v30 = vmul.f32 %v1548_v4, %v3168_v28  ;;  %v1497_v12 = vmul.f32 %v3162_v31, %v3242_v50  ;;  %v1678_v33 = vmul.f32 %v3174_v42, %v1548_v4 }
 0x35f   :  { %v3244_v51 = vld [vmem:[#allocation2 + $0x28] sm:$0xff]  ;;  %v1740_v37 = vmul.f32 %v3164_v40, %v3242_v50  ;;  %v1610_v43 = vmul.f32 %v3170_v47, %v3242_v50  ;;  %v1432_v45 = vmul.f32 %v3242_v50, %v3168_v28  ;;  %v1805_v60 = vmul.f32 %v3172_v29, %v3242_v50 }
 0x360   :  { %v1335_v62 = vmul.f32 %v2208_v34, %v3244_v51  ;;  %v1367_v34 = vmul.f32 %v3242_v50, %v3166_v48  ;;  %v1498_v35 = vmul.f32 %v3162_v31, %v3244_v51  ;;  %v1368_v38 = vmul.f32 %v3244_v51, %v3166_v48 }
 0x361   :  { %1509 = vrot.lane.b32.xlu0 %v1493_v7, %s2461_s11  ;;  %1450 = vrot.lane.b32.xlu1 %v1431_v58, %s2461_s11  ;;  %v1741_v31 = vmul.f32 %v3164_v40, %v3244_v51  ;;  %v1611_v48 = vmul.f32 %v3170_v47, %v3244_v51  ;;  %v1433_v25 = vmul.f32 %v3244_v51, %v3168_v28 }
 0x362   :  { %1343 = vst.msk [vmem:[#allocation3 + $0x28] sm:$0xff] %vm269_vm2, %v1335_v62  ;;  %v1675_v40 = vmul.f32 %v3174_v42, %v3242_v50  ;;  %v1673_v47 = vmul.f32 %v3174_v42, %v3182_v36  ;;  %v1676_v28 = vmul.f32 %v3174_v42, %v3244_v51  ;;  %v1852_v42 = vpack.c.bf16 %v1245_v55, %v1240_v53 }
 0x363   :  { %v1806_v2 = vmul.f32 %v3172_v29, %v3244_v51  ;;  %v1801_v7 = vmul.f32 %v3172_v29, %v3199_v26  ;;  %v1804_v58 = vmul.f32 %v3172_v29, %v3189_v15 }
 0x364   :  { %2086 = vmatprep.mubr.bf16.mxu0 %v1852_v42 }
 0x365   :  { %1379 = vrot.lane.b32.xlu0 %v1363_v9, %s2462_s12  ;;  %1511 = vrot.lane.b32.xlu1 %v1494_v11, %s2461_s11 }
 0x369   :  { %1752 = vrot.lane.b32.xlu0 %v1736_v16, %s2463_s13  ;;  %1381 = vrot.lane.b32.xlu1 %v1364_v17, %s2462_s12 }
 0x36d   :  { %1622 = vrot.lane.b32.xlu0 %v1606_v18, %s2464_s15  ;;  %1754 = vrot.lane.b32.xlu1 %v1737_v10, %s2463_s13 }
 0x371   :  { %1444 = vrot.lane.b32.xlu0 %v1428_v20, %s2461_s11  ;;  %1624 = vrot.lane.b32.xlu1 %v1607_v54, %s2464_s15 }
 0x375   :  { %1569 = vrot.lane.b32.xlu0 %v3220_v61, %s2460_s10  ;;  %1446 = vrot.lane.b32.xlu1 %v1429_v56, %s2461_s11 }
 0x379   :  { %1521 = vrot.lane.b32.xlu0 %v1499_v13, %s2461_s11  ;;  %1571 = vrot.lane.b32.xlu1 %v1548_v4, %s2460_s10 }
 0x37d   :  { %1391 = vrot.lane.b32.xlu0 %v1369_v21, %s2462_s12  ;;  %1523 = vrot.lane.b32.xlu1 %v1500_v1, %s2461_s11 }
 0x381   :  { %1764 = vrot.lane.b32.xlu0 %v1742_v6, %s2463_s13  ;;  %1393 = vrot.lane.b32.xlu1 %v1370_v22, %s2462_s12 }
 0x385   :  { %1634 = vrot.lane.b32.xlu0 %v1612_v39, %s2464_s15  ;;  %1766 = vrot.lane.b32.xlu1 %v1743_v24, %s2463_s13 }
 0x389   :  { %1456 = vrot.lane.b32.xlu0 %v1434_v23, %s2461_s11  ;;  %1636 = vrot.lane.b32.xlu1 %v1613_v27, %s2464_s15 }
 0x38d   :  { %1699 = vrot.lane.b32.xlu0 %v1677_v44, %s2464_s15  ;;  %1458 = vrot.lane.b32.xlu1 %v1435_v30, %s2461_s11 }
 0x391   :  { %1517 = vrot.lane.b32.xlu0 %v1497_v12, %s2461_s11  ;;  %1701 = vrot.lane.b32.xlu1 %v1678_v33, %s2464_s15 }
 0x395   :  { %1387 = vrot.lane.b32.xlu0 %v1367_v34, %s2462_s12  ;;  %1519 = vrot.lane.b32.xlu1 %v1498_v35, %s2461_s11 }
 0x399   :  { %1760 = vrot.lane.b32.xlu0 %v1740_v37, %s2463_s13  ;;  %1389 = vrot.lane.b32.xlu1 %v1368_v38, %s2462_s12 }
 0x39d   :  { %1630 = vrot.lane.b32.xlu0 %v1610_v43, %s2464_s15  ;;  %1762 = vrot.lane.b32.xlu1 %v1741_v31, %s2463_s13 }
 0x3a1   :  { %1452 = vrot.lane.b32.xlu0 %v1432_v45, %s2461_s11  ;;  %1632 = vrot.lane.b32.xlu1 %v1611_v48, %s2464_s15 }
 0x3a5   :  { %1565 = vrot.lane.b32.xlu0 %v3242_v50, %s2460_s10  ;;  %1454 = vrot.lane.b32.xlu1 %v1433_v25, %s2461_s11 }
 0x3a9   :  { %1695 = vrot.lane.b32.xlu0 %v1675_v40, %s2464_s15  ;;  %1567 = vrot.lane.b32.xlu1 %v3244_v51, %s2460_s10  ;;  %v1802_v51 = vmul.f32 %v3172_v29, %v3201_v49 }
 0x3ad   :  { %1691 = vrot.lane.b32.xlu0 %v1673_v47, %s2464_s15  ;;  %1693 = vrot.lane.b32.xlu1 %v1674_v32, %s2464_s15 }
 0x3b1   :  { %1561 = vrot.lane.b32.xlu0 %v3182_v36, %s2460_s10  ;;  %1697 = vrot.lane.b32.xlu1 %v1676_v28, %s2464_s15 }
 0x3b5   :  { %1687 = vrot.lane.b32.xlu0 %v1671_v14, %s2464_s15  ;;  %1563 = vrot.lane.b32.xlu1 %v3189_v15, %s2460_s10 }
 0x3b9   :  { %1557 = vrot.lane.b32.xlu0 %v3199_v26, %s2460_s10  ;;  %1689 = vrot.lane.b32.xlu1 %v1672_v52, %s2464_s15 }
 0x3bd   :  { %1829 = vrot.lane.b32.xlu0 %v3228_v63, %s2465_s26  ;;  %1559 = vrot.lane.b32.xlu1 %v3201_v49, %s2460_s10  ;;  %v1803_v63 = vmul.f32 %v3172_v29, %v3182_v36 }
 0x3bf   :  { %v1514_v57 = vpop.permute.xlu0 %1513 }
 0x3c0   :  { %1535 = vst.msk [vmem:[#allocation3 + $0xd0] sm:$0xff] %vm269_vm2, %v1514_v57 }
 0x3c1   :  { %1825 = vrot.lane.b32.xlu0 %v1805_v60, %s2465_s26  ;;  %1831 = vrot.lane.b32.xlu1 %v3247_v5, %s2465_s26 }
 0x3c3   :  { %v1516_v61 = vpop.permute.xlu1 %1515  ;;  %v1384_v0 = vpop.permute.xlu0 %1383 }
 0x3c4   :  { %1536 = vst.msk [vmem:[#allocation3 + $0xd8] sm:$0xff] %vm269_vm2, %v1516_v61  ;;  %1405 = vst.msk [vmem:[#allocation3 + $0x50] sm:$0xff] %vm269_vm2, %v1384_v0 }
 0x3c5   :  { %1821 = vrot.lane.b32.xlu0 %v1803_v63, %s2465_s26  ;;  %1827 = vrot.lane.b32.xlu1 %v1806_v2, %s2465_s26 }
 0x3c7   :  { %v1386_v3 = vpop.permute.xlu1 %1385  ;;  %v1757_v4 = vpop.permute.xlu0 %1756  ;;  %v1895_v63 = vld [vmem:[#allocation3 + $0xd0] sm:$0xff] }
 0x3c8   :  { %1406 = vst.msk [vmem:[#allocation3 + $0x58] sm:$0xff] %vm269_vm2, %v1386_v3  ;;  %1778 = vst.msk [vmem:[#allocation3 + $0x1d0] sm:$0xff] %vm269_vm2, %v1757_v4 }
 0x3c9   :  { %1817 = vrot.lane.b32.xlu0 %v1801_v7, %s2465_s26  ;;  %1823 = vrot.lane.b32.xlu1 %v1804_v58, %s2465_s26 }
 0x3cb   :  { %v1759_v36 = vpop.permute.xlu1 %1758  ;;  %v1627_v50 = vpop.permute.xlu0 %1626  ;;  %v1896_v55 = vld [vmem:[#allocation3 + $0xd8] sm:$0xff] }
 0x3cc   :  { %1779 = vst.msk [vmem:[#allocation3 + $0x1d8] sm:$0xff] %vm269_vm2, %v1759_v36  ;;  %1648 = vst.msk [vmem:[#allocation3 + $0x150] sm:$0xff] %vm269_vm2, %v1627_v50  ;;  %v1954_v2 = vpack.c.bf16 %v1896_v55, %v1895_v63  ;;  %v1879_v36 = vld [vmem:[#allocation3 + $0x50] sm:$0xff] }
 0x3cd   :  { %1819 = vrot.lane.b32.xlu1 %v1802_v51, %s2465_s26 }
 0x3cf   :  { %v1629_v15 = vpop.permute.xlu1 %1628  ;;  %v1449_v26 = vpop.permute.xlu0 %1448  ;;  %v1880_v3 = vld [vmem:[#allocation3 + $0x58] sm:$0xff] }
 0x3d0   :  { %1649 = vst.msk [vmem:[#allocation3 + $0x158] sm:$0xff] %vm269_vm2, %v1629_v15  ;;  %1470 = vst.msk [vmem:[#allocation3 + $0x90] sm:$0xff] %vm269_vm2, %v1449_v26  ;;  %v1946_v15 = vpack.c.bf16 %v1880_v3, %v1879_v36  ;;  %v1248_v36 = vld [vmem:[%s3649_s7 + $0x58] sm:$0xff] }
 0x3d3   :  { %v1451_v5 = vpop.permute.xlu1 %1450  ;;  %v1510_v8 = vpop.permute.xlu0 %1509 }
 0x3d4   :  { %1471 = vst.msk [vmem:[#allocation3 + $0x98] sm:$0xff] %vm269_vm2, %v1451_v5  ;;  %1533 = vst.msk [vmem:[#allocation3 + $0xc0] sm:$0xff] %vm269_vm2, %v1510_v8 }
 0x3d7   :  { %v1512_v59 = vpop.permute.xlu1 %1511  ;;  %v1380_v29 = vpop.permute.xlu0 %1379 }
 0x3d8   :  { %1534 = vst.msk [vmem:[#allocation3 + $0xc8] sm:$0xff] %vm269_vm2, %v1512_v59  ;;  %1403 = vst.msk [vmem:[#allocation3 + $0x40] sm:$0xff] %vm269_vm2, %v1380_v29 }
 0x3db   :  { %v1382_v49 = vpop.permute.xlu1 %1381  ;;  %v1753_v62 = vpop.permute.xlu0 %1752  ;;  %v1893_v5 = vld [vmem:[#allocation3 + $0xc0] sm:$0xff] }
 0x3dc   :  { %1404 = vst.msk [vmem:[#allocation3 + $0x48] sm:$0xff] %vm269_vm2, %v1382_v49  ;;  %1776 = vst.msk [vmem:[#allocation3 + $0x1c0] sm:$0xff] %vm269_vm2, %v1753_v62  ;;  %v1928_v49 = vld [vmem:[#allocation3 + $0x1d8] sm:$0xff] }
 0x3df   :  { %v1755_v9 = vpop.permute.xlu1 %1754  ;;  %v1623_v11 = vpop.permute.xlu0 %1622  ;;  %v1894_v4 = vld [vmem:[#allocation3 + $0xc8] sm:$0xff] }
 0x3e0   :  { %1777 = vst.msk [vmem:[#allocation3 + $0x1c8] sm:$0xff] %vm269_vm2, %v1755_v9  ;;  %1646 = vst.msk [vmem:[#allocation3 + $0x140] sm:$0xff] %vm269_vm2, %v1623_v11  ;;  %v1953_v8 = vpack.c.bf16 %v1894_v4, %v1893_v5  ;;  %v1877_v11 = vld [vmem:[#allocation3 + $0x40] sm:$0xff] }
 0x3e1   :  { %v1869_v4 = vld [vmem:[#allocation3] sm:$0xff] }
 0x3e3   :  { %v1625_v16 = vpop.permute.xlu1 %1624  ;;  %v1445_v17 = vpop.permute.xlu0 %1444  ;;  %v1878_v59 = vld [vmem:[#allocation3 + $0x48] sm:$0xff] }
 0x3e4   :  { %1647 = vst.msk [vmem:[#allocation3 + $0x148] sm:$0xff] %vm269_vm2, %v1625_v16  ;;  %1468 = vst.msk [vmem:[#allocation3 + $0x80] sm:$0xff] %vm269_vm2, %v1445_v17 }
 0x3e7   :  { %v1447_v18 = vpop.permute.xlu1 %1446  ;;  %v1570_v10 = vpop.permute.xlu0 %1569 }
 0x3e8   :  { %1469 = vst.msk [vmem:[#allocation3 + $0x88] sm:$0xff] %vm269_vm2, %v1447_v18  ;;  %1587 = vst.msk [vmem:[#allocation3 + $0x130] sm:$0xff] %vm269_vm2, %v1570_v10  ;;  %v1945_v18 = vpack.c.bf16 %v1878_v59, %v1877_v11 }
 0x3eb   :  { %v1572_v20 = vpop.permute.xlu1 %1571  ;;  %v1522_v54 = vpop.permute.xlu0 %1521  ;;  %v1885_v63 = vld [vmem:[#allocation3 + $0x80] sm:$0xff] }
 0x3ec   :  { %1588 = vst.msk [vmem:[#allocation3 + $0x138] sm:$0xff] %vm269_vm2, %v1572_v20  ;;  %1539 = vst.msk [vmem:[#allocation3 + $0xf0] sm:$0xff] %vm269_vm2, %v1522_v54  ;;  %v1927_v54 = vld [vmem:[#allocation3 + $0x1d0] sm:$0xff] }
 0x3ef   :  { %v1524_v56 = vpop.permute.xlu1 %1523  ;;  %v1392_v13 = vpop.permute.xlu0 %1391 }
 0x3f0   :  { %1540 = vst.msk [vmem:[#allocation3 + $0xf8] sm:$0xff] %vm269_vm2, %v1524_v56  ;;  %1409 = vst.msk [vmem:[#allocation3 + $0x70] sm:$0xff] %vm269_vm2, %v1392_v13  ;;  %v1970_v13 = vpack.c.bf16 %v1928_v49, %v1927_v54 }
 0x3f3   :  { %v1394_v21 = vpop.permute.xlu1 %1393  ;;  %v1765_v1 = vpop.permute.xlu0 %1764  ;;  %v1899_v39 = vld [vmem:[#allocation3 + $0xf0] sm:$0xff] }
 0x3f4   :  { %1410 = vst.msk [vmem:[#allocation3 + $0x78] sm:$0xff] %vm269_vm2, %v1394_v21  ;;  %1782 = vst.msk [vmem:[#allocation3 + $0x1f0] sm:$0xff] %vm269_vm2, %v1765_v1  ;;  %v1876_v21 = vld [vmem:[#allocation3 + $0x38] sm:$0xff] }
 0x3f5   :  { %v1912_v1 = vld [vmem:[#allocation3 + $0x158] sm:$0xff] }
 0x3f7   :  { %v1767_v6 = vpop.permute.xlu1 %1766  ;;  %v1635_v22 = vpop.permute.xlu0 %1634  ;;  %v1900_v24 = vld [vmem:[#allocation3 + $0xf8] sm:$0xff]  ;;  %v1883_v30 = vld [vmem:[#allocation3 + $0x70] sm:$0xff] }
 0x3f8   :  { %1783 = vst.msk [vmem:[#allocation3 + $0x1f8] sm:$0xff] %vm269_vm2, %v1767_v6  ;;  %1652 = vst.msk [vmem:[#allocation3 + $0x170] sm:$0xff] %vm269_vm2, %v1635_v22  ;;  %v1956_v23 = vpack.c.bf16 %v1900_v24, %v1899_v39  ;;  %v1875_v6 = vld [vmem:[#allocation3 + $0x30] sm:$0xff]  ;;  %v1926_v22 = vld [vmem:[#allocation3 + $0x1c8] sm:$0xff] }
 0x3fa   :  { %2308 = vmatprep.subr.bf16.mxu1 %v1956_v23  ;;  %v1911_v23 = vld [vmem:[#allocation3 + $0x150] sm:$0xff] }
 0x3fb   :  { %v1637_v27 = vpop.permute.xlu1 %1636  ;;  %v1457_v44 = vpop.permute.xlu0 %1456  ;;  %v1884_v12 = vld [vmem:[#allocation3 + $0x78] sm:$0xff]  ;;  %v1931_v37 = vld [vmem:[#allocation3 + $0x1f0] sm:$0xff] }
 0x3fc   :  { %1653 = vst.msk [vmem:[#allocation3 + $0x178] sm:$0xff] %vm269_vm2, %v1637_v27  ;;  %1474 = vst.msk [vmem:[#allocation3 + $0xb0] sm:$0xff] %vm269_vm2, %v1457_v44  ;;  %v1948_v33 = vpack.c.bf16 %v1884_v12, %v1883_v30  ;;  %v1944_v30 = vpack.c.bf16 %v1876_v21, %v1875_v6  ;;  %v1962_v12 = vpack.c.bf16 %v1912_v1, %v1911_v23  ;;  %v1247_v21 = vld [vmem:[%s3649_s7 + $0x50] sm:$0xff]  ;;  %v1252_v1 = vld [vmem:[%s3649_s7 + $0x78] sm:$0xff] }
 0x3fd   :  { %v1258_v6 = vld [vmem:[%s3649_s7 + $0xa8] sm:$0xff] }
 0x3fe   :  { %2309 = vmatpush3.bf16.msra.mxu1 %v1948_v33 }
 0x3ff   :  { %v1459_v34 = vpop.permute.xlu1 %1458  ;;  %v1700_v35 = vpop.permute.xlu0 %1699  ;;  %v1932_v38 = vld [vmem:[#allocation3 + $0x1f8] sm:$0xff]  ;;  %v1915_v48 = vld [vmem:[#allocation3 + $0x170] sm:$0xff] }
 0x400   :  { %1475 = vst.msk [vmem:[#allocation3 + $0xb8] sm:$0xff] %vm269_vm2, %v1459_v34  ;;  %1717 = vst.msk [vmem:[#allocation3 + $0x1b0] sm:$0xff] %vm269_vm2, %v1700_v35  ;;  %v1972_v43 = vpack.c.bf16 %v1932_v38, %v1931_v37  ;;  %v1925_v34 = vld [vmem:[#allocation3 + $0x1c0] sm:$0xff]  ;;  %v1874_v37 = vld [vmem:[#allocation3 + $0x28] sm:$0xff] }
 0x401   :  { %v1969_v35 = vpack.c.bf16 %v1926_v22, %v1925_v34  ;;  %v1910_v38 = vld [vmem:[#allocation3 + $0x148] sm:$0xff] }
 0x402   :  { %2348 = vmatprep.subr.bf16.mxu0 %v1972_v43  ;;  %v1888_v43 = vld [vmem:[#allocation3 + $0x98] sm:$0xff] }
 0x403   :  { %v1702_v31 = vpop.permute.xlu1 %1701  ;;  %v1518_v45 = vpop.permute.xlu0 %1517  ;;  %v1916_v25 = vld [vmem:[#allocation3 + $0x178] sm:$0xff]  ;;  %v1891_v20 = vld [vmem:[#allocation3 + $0xb0] sm:$0xff] }
 0x404   :  { %1718 = vst.msk [vmem:[#allocation3 + $0x1b8] sm:$0xff] %vm269_vm2, %v1702_v31  ;;  %1537 = vst.msk [vmem:[#allocation3 + $0xe0] sm:$0xff] %vm269_vm2, %v1518_v45  ;;  %v1964_v40 = vpack.c.bf16 %v1916_v25, %v1915_v48  ;;  %v1873_v25 = vld [vmem:[#allocation3 + $0x20] sm:$0xff] }
 0x406   :  { %2349 = vmatpush3.bf16.msra.mxu0 %v1964_v40  ;;  %v1909_v40 = vld [vmem:[#allocation3 + $0x140] sm:$0xff] }
 0x407   :  { %v1520_v47 = vpop.permute.xlu1 %1519  ;;  %v1388_v32 = vpop.permute.xlu0 %1387  ;;  %v1892_v29 = vld [vmem:[#allocation3 + $0xb8] sm:$0xff] }
 0x408   :  { %1538 = vst.msk [vmem:[#allocation3 + $0xe8] sm:$0xff] %vm269_vm2, %v1520_v47  ;;  %1407 = vst.msk [vmem:[#allocation3 + $0x60] sm:$0xff] %vm269_vm2, %v1388_v32  ;;  %v1952_v56 = vpack.c.bf16 %v1892_v29, %v1891_v20  ;;  %v1943_v47 = vpack.c.bf16 %v1874_v37, %v1873_v25  ;;  %v1961_v32 = vpack.c.bf16 %v1910_v38, %v1909_v40  ;;  %v1257_v40 = vld [vmem:[%s3649_s7 + $0xa0] sm:$0xff] }
 0x40b   :  { %v1390_v28 = vpop.permute.xlu1 %1389  ;;  %v1761_v41 = vpop.permute.xlu0 %1760  ;;  %v1897_v14 = vld [vmem:[#allocation3 + $0xe0] sm:$0xff]  ;;  %v1924_v31 = vld [vmem:[#allocation3 + $0x1b8] sm:$0xff] }
 0x40c   :  { %1408 = vst.msk [vmem:[#allocation3 + $0x68] sm:$0xff] %vm269_vm2, %v1390_v28  ;;  %1780 = vst.msk [vmem:[#allocation3 + $0x1e0] sm:$0xff] %vm269_vm2, %v1761_v41  ;;  %v1887_v28 = vld [vmem:[#allocation3 + $0x90] sm:$0xff] }
 0x40d   :  { %v1923_v41 = vld [vmem:[#allocation3 + $0x1b0] sm:$0xff] }
 0x40f   :  { %v1763_v46 = vpop.permute.xlu1 %1762  ;;  %v1631_v19 = vpop.permute.xlu0 %1630  ;;  %v1898_v52 = vld [vmem:[#allocation3 + $0xe8] sm:$0xff]  ;;  %v1881_v60 = vld [vmem:[#allocation3 + $0x60] sm:$0xff] }
 0x410   :  { %1781 = vst.msk [vmem:[#allocation3 + $0x1e8] sm:$0xff] %vm269_vm2, %v1763_v46  ;;  %1650 = vst.msk [vmem:[#allocation3 + $0x160] sm:$0xff] %vm269_vm2, %v1631_v19  ;;  %v1955_v53 = vpack.c.bf16 %v1898_v52, %v1897_v14  ;;  %v1950_v46 = vpack.c.bf16 %v1888_v43, %v1887_v28  ;;  %v1968_v19 = vpack.c.bf16 %v1924_v31, %v1923_v41  ;;  %v1872_v14 = vld [vmem:[#allocation3 + $0x18] sm:$0xff] }
 0x411   :  { %v1908_v52 = vld [vmem:[#allocation3 + $0x138] sm:$0xff] }
 0x412   :  { %2310 = vmatprep.subr.bf16.mxu1 %v1955_v53  ;;  %v1886_v53 = vld [vmem:[#allocation3 + $0x88] sm:$0xff]  ;;  %v1268_v28 = vld [vmem:[%s3649_s7 + $0xf8] sm:$0xff] }
 0x413   :  { %v1633_v42 = vpop.permute.xlu1 %1632  ;;  %v1453_v57 = vpop.permute.xlu0 %1452  ;;  %v1882_v61 = vld [vmem:[#allocation3 + $0x68] sm:$0xff]  ;;  %v1929_v50 = vld [vmem:[#allocation3 + $0x1e0] sm:$0xff]  ;;  %v1949_v3 = vpack.c.bf16 %v1886_v53, %v1885_v63 }
 0x414   :  { %1651 = vst.msk [vmem:[#allocation3 + $0x168] sm:$0xff] %vm269_vm2, %v1633_v42  ;;  %1472 = vst.msk [vmem:[#allocation3 + $0xa0] sm:$0xff] %vm269_vm2, %v1453_v57  ;;  %v1947_v0 = vpack.c.bf16 %v1882_v61, %v1881_v60  ;;  %v1871_v57 = vld [vmem:[#allocation3 + $0x10] sm:$0xff] }
 0x415   :  { %v1907_v60 = vld [vmem:[#allocation3 + $0x130] sm:$0xff]  ;;  %v1942_v61 = vpack.c.bf16 %v1872_v14, %v1871_v57  ;;  %v1254_v57 = vld [vmem:[%s3649_s7 + $0x88] sm:$0xff] }
 0x416   :  { %2311 = vmatpush3.bf16.msra.mxu1 %v1947_v0  ;;  %v1960_v0 = vpack.c.bf16 %v1908_v52, %v1907_v60  ;;  %v1273_v52 = vld [vmem:[%s3649_s7 + $0x120] sm:$0xff] }
 0x417   :  { %v1455_v7 = vpop.permute.xlu1 %1454  ;;  %2312 = vmatprep.subr.bf16.mxu1 %v1954_v2  ;;  %v1566_v58 = vpop.permute.xlu0 %1565  ;;  %v1930_v51 = vld [vmem:[#allocation3 + $0x1e8] sm:$0xff]  ;;  %v1913_v16 = vld [vmem:[#allocation3 + $0x160] sm:$0xff]  ;;  %v1865_v60 = vpack.c.bf16 %v1273_v52, %v1268_v28 }
 0x418   :  { %1473 = vst.msk [vmem:[#allocation3 + $0xa8] sm:$0xff] %vm269_vm2, %v1455_v7  ;;  %1585 = vst.msk [vmem:[#allocation3 + $0x120] sm:$0xff] %vm269_vm2, %v1566_v58  ;;  %v1971_v26 = vpack.c.bf16 %v1930_v51, %v1929_v50  ;;  %v1870_v2 = vld [vmem:[#allocation3 + $0x8] sm:$0xff]  ;;  %v1237_v7 = vld [vmem:[%s3649_s7] sm:$0xff] }
 0x419   :  { %v1242_v58 = vld [vmem:[%s3649_s7 + $0x28] sm:$0xff]  ;;  %v1941_v49 = vpack.c.bf16 %v1870_v2, %v1869_v4 }
 0x41a   :  { %2313 = vmatpush3.bf16.msra.mxu1 %v1946_v15  ;;  %2350 = vmatprep.subr.bf16.mxu0 %v1971_v26  ;;  %v1253_v15 = vld [vmem:[%s3649_s7 + $0x80] sm:$0xff] }
 0x41b   :  { %v1568_v62 = vpop.permute.xlu1 %1567  ;;  %2314 = vmatprep.subr.bf16.mxu1 %v1953_v8  ;;  %v1696_v9 = vpop.permute.xlu0 %1695  ;;  %v1914_v17 = vld [vmem:[#allocation3 + $0x168] sm:$0xff]  ;;  %v1889_v27 = vld [vmem:[#allocation3 + $0xa0] sm:$0xff] }
 0x41c   :  { %1586 = vst.msk [vmem:[#allocation3 + $0x128] sm:$0xff] %vm269_vm2, %v1568_v62  ;;  %1715 = vst.msk [vmem:[#allocation3 + $0x1a0] sm:$0xff] %vm269_vm2, %v1696_v9  ;;  %v1963_v10 = vpack.c.bf16 %v1914_v17, %v1913_v16  ;;  %v1849_v16 = vpack.c.bf16 %v1242_v58, %v1237_v7  ;;  %v1267_v58 = vld [vmem:[%s3649_s7 + $0xf0] sm:$0xff] }
 0x41e   :  { %2315 = vmatpush3.bf16.msra.mxu1 %v1945_v18  ;;  %2351 = vmatpush3.bf16.msra.mxu0 %v1963_v10  ;;  %v1855_v18 = vpack.c.bf16 %v1253_v15, %v1248_v36  ;;  %v1272_v36 = vld [vmem:[%s3649_s7 + $0x118] sm:$0xff] }
 0x41f   :  { %v1694_v39 = vpop.permute.xlu1 %1693  ;;  %2316 = vmatprep.subr.bf16.mxu1 %v1952_v56  ;;  %2352 = vmatprep.subr.bf16.mxu0 %v1970_v13  ;;  %v1692_v24 = vpop.permute.xlu0 %1691  ;;  %v1890_v44 = vld [vmem:[#allocation3 + $0xa8] sm:$0xff]  ;;  %v1905_v9 = vld [vmem:[#allocation3 + $0x120] sm:$0xff] }
 0x420   :  { %1714 = vst.msk [vmem:[#allocation3 + $0x198] sm:$0xff] %vm269_vm2, %v1694_v39  ;;  %1713 = vst.msk [vmem:[#allocation3 + $0x190] sm:$0xff] %vm269_vm2, %v1692_v24  ;;  %v1951_v33 = vpack.c.bf16 %v1890_v44, %v1889_v27  ;;  %v1263_v27 = vld [vmem:[%s3649_s7 + $0xd0] sm:$0xff] }
 0x421   :  { %v1860_v34 = vpack.c.bf16 %v1263_v27, %v1258_v6  ;;  %v1269_v6 = vld [vmem:[%s3649_s7 + $0x100] sm:$0xff]  ;;  %v1276_v27 = vld [vmem:[%s3649_s7 + $0x138] sm:$0xff] }
 0x422   :  { %2317 = vmatpush3.bf16.msra.mxu1 %v1944_v30  ;;  %2353 = vmatpush3.bf16.msra.mxu0 %v1962_v12  ;;  %v1854_v30 = vpack.c.bf16 %v1252_v1, %v1247_v21  ;;  %v1239_v12 = vld [vmem:[%s3649_s7 + $0x10] sm:$0xff]  ;;  %v1266_v21 = vld [vmem:[%s3649_s7 + $0xe8] sm:$0xff] }
 0x423   :  { %v1698_v45 = vpop.permute.xlu1 %1697  ;;  %2318 = vmatprep.subr.bf16.mxu1 %v1951_v33  ;;  %2354 = vmatprep.subr.bf16.mxu0 %v1969_v35  ;;  %v1562_v48 = vpop.permute.xlu0 %1561  ;;  %v1921_v50 = vld [vmem:[#allocation3 + $0x1a0] sm:$0xff]  ;;  %v1906_v51 = vld [vmem:[#allocation3 + $0x128] sm:$0xff]  ;;  %v1244_v33 = vld [vmem:[%s3649_s7 + $0x38] sm:$0xff] }
 0x424   :  { %1716 = vst.msk [vmem:[#allocation3 + $0x1a8] sm:$0xff] %vm269_vm2, %v1698_v45  ;;  %1583 = vst.msk [vmem:[#allocation3 + $0x110] sm:$0xff] %vm269_vm2, %v1562_v48  ;;  %v1959_v11 = vpack.c.bf16 %v1906_v51, %v1905_v9  ;;  %v1250_v35 = vld [vmem:[%s3649_s7 + $0x68] sm:$0xff]  ;;  %v1255_v45 = vld [vmem:[%s3649_s7 + $0x90] sm:$0xff]  ;;  %v1851_v25 = vpack.c.bf16 %v1244_v33, %v1239_v12 }
 0x425   :  { %v1241_v51 = vld [vmem:[%s3649_s7 + $0x20] sm:$0xff]  ;;  %v1270_v9 = vld [vmem:[%s3649_s7 + $0x108] sm:$0xff] }
 0x426   :  { %2319 = vmatpush3.bf16.msra.mxu1 %v1943_v47  ;;  %2355 = vmatpush3.bf16.msra.mxu0 %v1961_v32  ;;  %v1262_v47 = vld [vmem:[%s3649_s7 + $0xc8] sm:$0xff]  ;;  %v1857_v32 = vpack.c.bf16 %v1255_v45, %v1250_v35 }
 0x427   :  { %v1564_v55 = vpop.permute.xlu1 %1563  ;;  %2320 = vmatprep.subr.bf16.mxu1 %v1950_v46  ;;  %2356 = vmatprep.subr.bf16.mxu0 %v1968_v19  ;;  %v1688_v42 = vpop.permute.xlu0 %1687  ;;  %v1919_v59 = vld [vmem:[#allocation3 + $0x190] sm:$0xff]  ;;  %v1920_v29 = vld [vmem:[#allocation3 + $0x198] sm:$0xff] }
 0x428   :  { %1584 = vst.msk [vmem:[#allocation3 + $0x118] sm:$0xff] %vm269_vm2, %v1564_v55  ;;  %1711 = vst.msk [vmem:[#allocation3 + $0x180] sm:$0xff] %vm269_vm2, %v1688_v42  ;;  %v1966_v17 = vpack.c.bf16 %v1920_v29, %v1919_v59  ;;  %v1859_v55 = vpack.c.bf16 %v1262_v47, %v1257_v40  ;;  %v1249_v42 = vld [vmem:[%s3649_s7 + $0x60] sm:$0xff]  ;;  %v1864_v59 = vpack.c.bf16 %v1272_v36, %v1267_v58  ;;  %v1259_v29 = vld [vmem:[%s3649_s7 + $0xb0] sm:$0xff] }
 0x429   :  { %v1856_v7 = vpack.c.bf16 %v1254_v57, %v1249_v42  ;;  %v2445_v58 = vld [vmem:[%s3645_s0] sm:$0xff] }
 0x42a   :  { %2321 = vmatpush3.bf16.msra.mxu1 %v1942_v61  ;;  %2357 = vmatpush3.bf16.msra.mxu0 %v1960_v0  ;;  %v1260_v61 = vld [vmem:[%s3649_s7 + $0xb8] sm:$0xff] }
 0x42b   :  { %v1690_v26 = vpop.permute.xlu1 %1689  ;;  %2322 = vmatprep.subr.bf16.mxu1 %v1949_v3  ;;  %v1558_v5 = vpop.permute.xlu0 %1557  ;;  %v1922_v8 = vld [vmem:[#allocation3 + $0x1a8] sm:$0xff]  ;;  %v1903_v54 = vld [vmem:[#allocation3 + $0x110] sm:$0xff]  ;;  %v1265_v3 = vld [vmem:[%s3649_s7 + $0xe0] sm:$0xff] }
 0x42c   :  { %1712 = vst.msk [vmem:[#allocation3 + $0x188] sm:$0xff] %vm269_vm2, %v1690_v26  ;;  %1581 = vst.msk [vmem:[#allocation3 + $0x100] sm:$0xff] %vm269_vm2, %v1558_v5  ;;  %v1967_v62 = vpack.c.bf16 %v1922_v8, %v1921_v50  ;;  %v1862_v50 = vpack.c.bf16 %v1265_v3, %v1260_v61  ;;  %v1246_v5 = vld [vmem:[%s3649_s7 + $0x48] sm:$0xff] }
 0x42e   :  { %2323 = vmatpush3.bf16.msra.mxu1 %v1941_v49  ;;  %2358 = vmatprep.subr.bf16.mxu0 %v1967_v62  ;;  %v1264_v49 = vld [vmem:[%s3649_s7 + $0xd8] sm:$0xff]  ;;  %v1853_v62 = vpack.c.bf16 %v1246_v5, %v1241_v51 }
 0x42f   :  { %v1560_v10 = vpop.permute.xlu1 %1559  ;;  %2359 = vmatpush3.bf16.msra.mxu0 %v1959_v11  ;;  %v1830_v20 = vpop.permute.xlu0 %1829  ;;  %v1904_v56 = vld [vmem:[#allocation3 + $0x118] sm:$0xff]  ;;  %v1917_v24 = vld [vmem:[#allocation3 + $0x180] sm:$0xff] }
 0x430   :  { %1582 = vst.msk [vmem:[#allocation3 + $0x108] sm:$0xff] %vm269_vm2, %v1560_v10  ;;  %1847 = vst.msk [vmem:[#allocation3 + $0x230] sm:$0xff] %vm269_vm2, %v1830_v20  ;;  %2360 = vmatprep.subr.bf16.mxu0 %v1966_v17  ;;  %v1958_v13 = vpack.c.bf16 %v1904_v56, %v1903_v54  ;;  %v1275_v17 = vld [vmem:[%s3649_s7 + $0x130] sm:$0xff]  ;;  %v1861_v10 = vpack.c.bf16 %v1264_v49, %v1259_v29  ;;  %v1256_v54 = vld [vmem:[%s3649_s7 + $0x98] sm:$0xff] }
 0x431   :  { %2022 = vmatmul.mubr.bf16.vlgmr.msra.gmra.mxu1 %v1849_v16  ;;  %v1251_v20 = vld [vmem:[%s3649_s7 + $0x70] sm:$0xff]  ;;  %v1867_v56 = vpack.c.bf16 %v1275_v17, %v1270_v9  ;;  %v2447_v17 = vld [vmem:[%s3645_s0 + $0x8] sm:$0xff] }
 0x432   :  { %2029 = vmatprep.mubr.bf16.mxu1 %v1855_v18  ;;  %v1858_v1 = vpack.c.bf16 %v1256_v54, %v1251_v20 }
 0x433   :  { %v1832_v22 = vpop.permute.xlu1 %1831  ;;  %2361 = vmatpush3.bf16.msra.mxu0 %v1958_v13  ;;  %v1826_v39 = vpop.permute.xlu0 %1825  ;;  %v1918_v23 = vld [vmem:[#allocation3 + $0x188] sm:$0xff]  ;;  %v1901_v43 = vld [vmem:[#allocation3 + $0x100] sm:$0xff] }
 0x434   :  { %1848 = vst.msk [vmem:[#allocation3 + $0x238] sm:$0xff] %vm269_vm2, %v1832_v22  ;;  %1845 = vst.msk [vmem:[#allocation3 + $0x220] sm:$0xff] %vm269_vm2, %v1826_v39  ;;  %v1965_v44 = vpack.c.bf16 %v1918_v23, %v1917_v24  ;;  %v1261_v13 = vld [vmem:[%s3649_s7 + $0xc0] sm:$0xff]  ;;  %v1274_v22 = vld [vmem:[%s3649_s7 + $0x128] sm:$0xff] }
 0x435   :  { %v1863_v39 = vpack.c.bf16 %v1266_v21, %v1261_v13  ;;  %v1866_v24 = vpack.c.bf16 %v1274_v22, %v1269_v6  ;;  %v1271_v23 = vld [vmem:[%s3649_s7 + $0x110] sm:$0xff]  ;;  %v2448_v22 = vld [vmem:[%s3645_s0 + $0x20] sm:$0xff] }
 0x436   :  { %2362 = vmatprep.subr.bf16.mxu0 %v1965_v44  ;;  %v1868_v44 = vpack.c.bf16 %v1276_v27, %v1271_v23 }
 0x437   :  { %v1828_v37 = vpop.permute.xlu1 %1827  ;;  %v1822_v38 = vpop.permute.xlu0 %1821  ;;  %v1902_v31 = vld [vmem:[#allocation3 + $0x108] sm:$0xff]  ;;  %v1939_v19 = vld [vmem:[#allocation3 + $0x230] sm:$0xff] }
 0x438   :  { %1846 = vst.msk [vmem:[#allocation3 + $0x228] sm:$0xff] %vm269_vm2, %v1828_v37  ;;  %1843 = vst.msk [vmem:[#allocation3 + $0x210] sm:$0xff] %vm269_vm2, %v1822_v38  ;;  %v1957_v48 = vpack.c.bf16 %v1902_v31, %v1901_v43 }
 0x439   :  { %2030 = vmatmul.mubr.bf16.gmra.mxu1 %v1854_v30 }
 0x43a   :  { %2363 = vmatpush3.bf16.msra.mxu0 %v1957_v48  ;;  %2037 = vmatprep.mubr.bf16.mxu1 %v1860_v34 }
 0x43b   :  { %v1824_v41 = vpop.permute.xlu1 %1823  ;;  %v1818_v46 = vpop.permute.xlu0 %1817  ;;  %v1940_v14 = vld [vmem:[#allocation3 + $0x238] sm:$0xff]  ;;  %v1937_v63 = vld [vmem:[#allocation3 + $0x220] sm:$0xff] }
 0x43c   :  { %1844 = vst.msk [vmem:[#allocation3 + $0x218] sm:$0xff] %vm269_vm2, %v1824_v41  ;;  %1841 = vst.msk [vmem:[#allocation3 + $0x200] sm:$0xff] %vm269_vm2, %v1818_v46  ;;  %v1976_v53 = vpack.c.bf16 %v1940_v14, %v1939_v19 }
 0x43d   :  { %2087 = vmatmul.mubr.bf16.vlgmr.msra.gmra.mxu0 %v1851_v25 }
 0x43e   :  { %2412 = vmatprep.subr.bf16.mxu1 %v1976_v53  ;;  %2094 = vmatprep.mubr.bf16.mxu0 %v1857_v32 }
 0x43f   :  { %v1820_v0 = vpop.permute.xlu1 %1819  ;;  %2413 = vmatpush3.bf16.msra.mxu1 %v1976_v53  ;;  %v1938_v2 = vld [vmem:[#allocation3 + $0x228] sm:$0xff]  ;;  %v1935_v15 = vld [vmem:[#allocation3 + $0x210] sm:$0xff] }
 0x440   :  { %1842 = vst.msk [vmem:[#allocation3 + $0x208] sm:$0xff] %vm269_vm2, %v1820_v0  ;;  %v1975_v4 = vpack.c.bf16 %v1938_v2, %v1937_v63  ;;  %v2444_v0 = vld [vmem:[%s3645_s0 + $0x10] sm:$0xff] }
 0x441   :  { %2038 = vmatmul.mubr.bf16.gmra.mxu1 %v1859_v55 }
 0x442   :  { %2414 = vmatprep.subr.bf16.mxu1 %v1975_v4  ;;  %2045 = vmatprep.mubr.bf16.mxu1 %v1865_v60 }
 0x443   :  { %2415 = vmatpush3.bf16.msra.mxu1 %v1975_v4  ;;  %v1936_v26 = vld [vmem:[#allocation3 + $0x218] sm:$0xff]  ;;  %v1933_v11 = vld [vmem:[#allocation3 + $0x200] sm:$0xff] }
 0x444   :  { %v1974_v8 = vpack.c.bf16 %v1936_v26, %v1935_v15 }
 0x445   :  { %2095 = vmatmul.mubr.bf16.gmra.mxu0 %v1856_v7 }
 0x446   :  { %2416 = vmatprep.subr.bf16.mxu1 %v1974_v8  ;;  %2102 = vmatprep.mubr.bf16.mxu0 %v1862_v50 }
 0x447   :  { %2417 = vmatpush3.bf16.msra.mxu1 %v1974_v8  ;;  %v1934_v16 = vld [vmem:[#allocation3 + $0x208] sm:$0xff]  ;;  %v2446_v8 = vld [vmem:[%s3645_s0 + $0x18] sm:$0xff] }
 0x448   :  { %v1973_v18 = vpack.c.bf16 %v1934_v16, %v1933_v11 }
 0x449   :  { %2046 = vmatmul.mubr.bf16.gmra.mxu1 %v1864_v59 }
 0x44a   :  { %2418 = vmatprep.subr.bf16.mxu1 %v1973_v18  ;;  %2420 = vmatprep.mubr.msk.bf16.mxu1 %vm909_vm3, %v1853_v62 }
 0x44b   :  { %2419 = vmatpush3.bf16.msra.mxu1 %v1973_v18 }
 0x44d   :  { %2103 = vmatmul.mubr.bf16.gmra.mxu0 %v1861_v10 }
 0x44e   :  { %2110 = vmatprep.mubr.bf16.mxu0 %v1867_v56 }
 0x451   :  { %2421 = vmatmul.mubr.msk.bf16.vlgmr.msra.gmra.mxu1 %vm909_vm3, %v1858_v1 }
 0x452   :  { %2424 = vmatprep.mubr.msk.bf16.mxu1 %vm909_vm3, %v1863_v39 }
 0x455   :  { %2111 = vmatmul.mubr.bf16.gmra.mxu0 %v1866_v24 }
 0x459   :  { %2425 = vmatmul.mubr.msk.bf16.gmra.mxu1 %vm909_vm3, %v1868_v44  ;;  %v2449_v44 = vld [vmem:[%s3645_s0 + $0x30] sm:$0xff] }
 0x4f1   :  { %v2324_v30 = vpop.f32.mrf.mxu1 }
 0x4f3   :  { %v2325_v12 = vpop.f32.mrf.mxu1 }
 0x4f4   :  { %v2326_v42 = vadd.f32 %v2325_v12, %v2324_v30 }
 0x4f5   :  { %v2327_v33 = vpop.f32.mrf.mxu1 }
 0x4f6   :  { %v2024_v36 = vadd.f32 %v2445_v58, %v2326_v42 }
 0x4f7   :  { %v2328_v34 = vpop.f32.mrf.mxu1 }
 0x4f8   :  { %v2329_v50 = vadd.f32 %v2328_v34, %v2327_v33 }
 0x4f9   :  { %v2330_v35 = vpop.f32.mrf.mxu1 }
 0x4fa   :  { %v2027_v18 = vadd.f32 %v2447_v17, %v2329_v50 }
 0x4fb   :  { %v2331_v37 = vpop.f32.mrf.mxu1 }
 0x4fc   :  { %v2332_v52 = vadd.f32 %v2331_v37, %v2330_v35 }
 0x4fd   :  { %v2333_v38 = vpop.f32.mrf.mxu1  ;;  %v2364_v43 = vpop.f32.mrf.mxu0 }
 0x4fe   :  { %v2032_v63 = vadd.f32 %v2444_v0, %v2332_v52 }
 0x4ff   :  { %v2334_v31 = vpop.f32.mrf.mxu1  ;;  %v2365_v45 = vpop.f32.mrf.mxu0 }
 0x500   :  { %v2335_v2 = vadd.f32 %v2334_v31, %v2333_v38  ;;  %v2366_v3 = vadd.f32 %v2365_v45, %v2364_v43  ;;  %v2450_v45 = vld [vmem:[%s3645_s0 + $0x28] sm:$0xff] }
 0x501   :  { %v2336_v48 = vpop.f32.mrf.mxu1  ;;  %v2367_v25 = vpop.f32.mrf.mxu0 }
 0x502   :  { %v2035_v59 = vadd.f32 %v2446_v8, %v2335_v2  ;;  %v2089_v62 = vadd.f32 %v2366_v3, %v2024_v36 }
 0x503   :  { %v2337_v40 = vpop.f32.mrf.mxu1  ;;  %v2368_v47 = vpop.f32.mrf.mxu0 }
 0x504   :  { %v2369_v29 = vadd.f32 %v2368_v47, %v2367_v25  ;;  %v2338_v9 = vadd.f32 %v2337_v40, %v2336_v48  ;;  %v2451_v47 = vld [vmem:[%s3645_s0 + $0x38] sm:$0xff] }
 0x505   :  { %v2339_v32 = vpop.f32.mrf.mxu1  ;;  %v2370_v28 = vpop.f32.mrf.mxu0 }
 0x506   :  { %v2092_v6 = vadd.f32 %v2369_v29, %v2027_v18  ;;  %v2040_v39 = vadd.f32 %v2448_v22, %v2338_v9 }
 0x507   :  { %v2340_v41 = vpop.f32.mrf.mxu1  ;;  %v2371_v46 = vpop.f32.mrf.mxu0 }
 0x508   :  { %v2372_v57 = vadd.f32 %v2371_v46, %v2370_v28  ;;  %v2341_v24 = vadd.f32 %v2340_v41, %v2339_v32 }
 0x509   :  { %v2342_v19 = vpop.f32.mrf.mxu1  ;;  %v2373_v14 = vpop.f32.mrf.mxu0 }
 0x50a   :  { %v2097_v15 = vadd.f32 %v2372_v57, %v2032_v63  ;;  %v2043_v48 = vadd.f32 %v2450_v45, %v2341_v24 }
 0x50b   :  { %v2343_v53 = vpop.f32.mrf.mxu1  ;;  %v2374_v55 = vpop.f32.mrf.mxu0 }
 0x50c   :  { %v2375_v51 = vadd.f32 %v2374_v55, %v2373_v14  ;;  %v2344_v10 = vadd.f32 %v2343_v53, %v2342_v19 }
 0x50d   :  { %v2345_v60 = vpop.f32.mrf.mxu1  ;;  %v2376_v61 = vpop.f32.mrf.mxu0 }
 0x50e   :  { %v2100_v54 = vadd.f32 %v2375_v51, %v2035_v59  ;;  %v2048_v30 = vadd.f32 %v2449_v44, %v2344_v10 }
 0x50f   :  { %v2346_v4 = vpop.f32.mrf.mxu1  ;;  %v2377_v7 = vpop.f32.mrf.mxu0 }
 0x510   :  { %v2378_v21 = vadd.f32 %v2377_v7, %v2376_v61  ;;  %v2347_v12 = vadd.f32 %v2346_v4, %v2345_v60 }
 0x511   :  { %v2422_v26 = vpop.f32.mrf.mxu1  ;;  %v2379_v5 = vpop.f32.mrf.mxu0 }
 0x512   :  { %v2162_v49 = vadd.f32 %v2422_v26, %v2097_v15  ;;  %v2105_v31 = vadd.f32 %v2378_v21, %v2040_v39  ;;  %v2051_v32 = vadd.f32 %v2451_v47, %v2347_v12 }
 0x513   :  { %v2153_v11 = vpop.f32.mrf.mxu1  ;;  %v2380_v16 = vpop.f32.mrf.mxu0 }
 0x514   :  { %2186 = vst.msk [vmem:[%s3650_s8 + $0x10] sm:$0xff] %vm269_vm2, %v2162_v49  ;;  %v2154_v20 = vadd.f32 %v2153_v11, %v2089_v62  ;;  %v2381_v38 = vadd.f32 %v2380_v16, %v2379_v5 }
 0x515   :  { %v2423_v56 = vpop.f32.mrf.mxu1  ;;  %v2382_v13 = vpop.f32.mrf.mxu0 }
 0x516   :  { %2184 = vst.msk [vmem:[%s3650_s8] sm:$0xff] %vm269_vm2, %v2154_v20  ;;  %v2165_v1 = vadd.f32 %v2423_v56, %v2100_v54  ;;  %v2108_v52 = vadd.f32 %v2381_v38, %v2043_v48 }
 0x517   :  { %v2156_v23 = vpop.f32.mrf.mxu1  ;;  %v2383_v27 = vpop.f32.mrf.mxu0 }
 0x518   :  { %2187 = vst.msk [vmem:[%s3650_s8 + $0x18] sm:$0xff] %vm269_vm2, %v2165_v1  ;;  %v2157_v33 = vadd.f32 %v2156_v23, %v2092_v6  ;;  %v2384_v34 = vadd.f32 %v2383_v27, %v2382_v13 }
 0x519   :  { %v2426_v35 = vpop.f32.mrf.mxu1  ;;  %v2385_v37 = vpop.f32.mrf.mxu0 }
 0x51a   :  { %2185 = vst.msk [vmem:[%s3650_s8 + $0x8] sm:$0xff] %vm269_vm2, %v2157_v33  ;;  %v2113_v43 = vadd.f32 %v2384_v34, %v2048_v30 }
 0x51b   :  { %v2169_v25 = vpop.f32.mrf.mxu1  ;;  %v2386_v40 = vpop.f32.mrf.mxu0 }
 0x51c   :  { %v2178_v28 = vadd.f32 %v2426_v35, %v2113_v43  ;;  %v2170_v41 = vadd.f32 %v2169_v25, %v2105_v31  ;;  %v2387_v46 = vadd.f32 %v2386_v40, %v2385_v37 }
 0x51d   :  { %v2427_v19 = vpop.f32.mrf.mxu1 }
 0x51e   :  { %2190 = vst.msk [vmem:[%s3650_s8 + $0x30] sm:$0xff] %vm269_vm2, %v2178_v28  ;;  %2188 = vst.msk [vmem:[%s3650_s8 + $0x20] sm:$0xff] %vm269_vm2, %v2170_v41  ;;  %v2116_v14 = vadd.f32 %v2387_v46, %v2051_v32 }
 0x51f   :  { %v2172_v53 = vpop.f32.mrf.mxu1 }
 0x520   :  { %v2181_v55 = vadd.f32 %v2427_v19, %v2116_v14  ;;  %v2173_v42 = vadd.f32 %v2172_v53, %v2108_v52 }
 0x522   :  { %2191 = vst.msk [vmem:[%s3650_s8 + $0x38] sm:$0xff] %vm269_vm2, %v2181_v55  ;;  %2189 = vst.msk [vmem:[%s3650_s8 + $0x28] sm:$0xff] %vm269_vm2, %v2173_v42 }

// kernel: unet2d_forward.58
= control target key start
LH: loop header
LB: loop body
LE: loop exit
PB: predicated region body
PF: predicated region fallthrough
CT: control target
= control target key end

     0   :  { %v104_v0 = vmov 0.0   ;;  %vm105_vm0 = vmmov 0   ;;  %v106_v6 = vmov 0   ;;  %vm36_vm1 = vcmask 130048   ;;  %s162_s0 = inlined_call_operand.vmem [shape: f32[16,128], index: 0, kind: input, shape index: {}]   ;;  %s163_s1 = inlined_call_operand.vmem [shape: f32[16,16], index: 1, kind: input, shape index: {}]   ;;  %s164_s2 = inlined_call_operand.vmem [shape: f32[16,1], index: 2, kind: input, shape index: {}]   ;;  %s165_s3 = inlined_call_operand.vmem [shape: f32[16,128], index: 3, kind: input, shape index: {}]   ;;  %s166_s4 = inlined_call_operand.vmem [shape: f32[16,128], index: 4, kind: output, shape index: {}]  }
   0x1   :  { %94 = vmatprep.subr.bf16.mxu0 %v104_v0  ;;  %v18_v1 = vld [vmem:[%s162_s0] sm:$0xff]  ;;  %v19_v2 = vld [vmem:[%s162_s0 + $0x8] sm:$0xff]  ;;  %96 = vmatprep.mubr.msk.bf16.mxu0 %vm105_vm0, %v104_v0 }
   0x2   :  { %v20_v3 = vld [vmem:[%s163_s1] sm:$0xff]  ;;  %v23_v4 = vpack.c.bf16 %v19_v2, %v18_v1  ;;  %v21_v5 = vld [vmem:[%s163_s1 + $0x8] sm:$0xff]  ;;  %103 = vset.pattern.permute.xlu0 %v106_v6 }
   0x3   :  { %v24_v7 = vld [vmem:[%s164_s2] sm:$0xff]  ;;  %v22_v8 = vpack.c.bf16 %v21_v5, %v20_v3  ;;  %v25_v9 = vld [vmem:[%s164_s2 + $0x8] sm:$0xff] }
   0x4   :  { %28 = vperm.xlu0 %103, %v24_v7   ;;  %95 = vmatpush3.bf16.msra.mxu0 %v23_v4  ;;  %v81_v12 = vld [vmem:[%s165_s3] sm:$0xff]  ;;  %v82_v18 = vld [vmem:[%s165_s3 + $0x8] sm:$0xff] }
   0x7   :  { %97 = vmatmul.mubr.msk.bf16.vlgmr.msra.gmra.mxu0 %vm36_vm1, %v22_v8 }
   0x8   :  { %33 = vperm.xlu0 %103, %v25_v9  }
  0x7f   :  { %v29_v10 = vpop.permute.xlu0 %28 }
  0x83   :  { %v34_v16 = vpop.permute.xlu0 %33 }
  0xc7   :  { %v74_v11 = vpop.f32.mrf.mxu0 }
  0xc8   :  { %v75_v13 = vadd.f32 %v74_v11, %v29_v10 }
  0xc9   :  { %v98_v14 = vpop.f32.mrf.mxu0 }
  0xca   :  { %v83_v15 = vadd.f32 %v81_v12, %v75_v13 }
  0xcb   :  { %v77_v17 = vpop.f32.mrf.mxu0 }
  0xcc   :  { %85 = vst [vmem:[%s166_s4] sm:$0xff] %v83_v15  ;;  %v78_v19 = vadd.f32 %v77_v17, %v34_v16 }
  0xcd   :  { %v99_v20 = vpop.f32.mrf.mxu0 }
  0xce   :  { %v84_v21 = vadd.f32 %v82_v18, %v78_v19 }
  0xd0   :  { %86 = vst [vmem:[%s166_s4 + $0x8] sm:$0xff] %v84_v21 }

// kernel: unet2d_forward.62
= control target key start
LH: loop header
LB: loop body
LE: loop exit
PB: predicated region body
PF: predicated region fallthrough
CT: control target
= control target key end

     0   :  { %v137_v0 = vmov 0   ;;  %vm55_vm0 = vcmask 130048   ;;  %s207_s3 = inlined_call_operand.vmem [shape: f32[16,1], index: 3, kind: input, shape index: {}]   ;;  %s208_s2 = inlined_call_operand.vmem [shape: f32[16,1], index: 2, kind: input, shape index: {}]   ;;  %s209_s1 = inlined_call_operand.vmem [shape: f32[32,16], index: 1, kind: input, shape index: {}]   ;;  %s210_s0 = inlined_call_operand.vmem [shape: f32[16,128], index: 0, kind: input, shape index: {}]   ;;  %s211_s4 = inlined_call_operand.vmem [shape: f32[32,128], index: 4, kind: output, shape index: {}]  }
   0x1   :  { %136 = vset.pattern.permute.xlu1 %v137_v0  ;;  %135 = vset.pattern.permute.xlu0 %v137_v0  ;;  %v34_v1 = vld [vmem:[%s207_s3] sm:$0xff]  ;;  %v35_v3 = vld [vmem:[%s207_s3 + $0x8] sm:$0xff]  ;;  %v50_v18 = vld [vmem:[%s209_s1 + $0x10] sm:$0xff] }
   0x2   :  { %v20_v2 = vld [vmem:[%s208_s2] sm:$0xff]  ;;  %38 = vperm.xlu1 %136, %v34_v1   ;;  %v21_v4 = vld [vmem:[%s208_s2 + $0x8] sm:$0xff]  ;;  %v51_v19 = vld [vmem:[%s209_s1 + $0x18] sm:$0xff] }
   0x3   :  { %24 = vperm.xlu0 %135, %v20_v2   ;;  %v48_v5 = vld [vmem:[%s209_s1] sm:$0xff]  ;;  %v49_v6 = vld [vmem:[%s209_s1 + $0x8] sm:$0xff]  ;;  %v53_v21 = vpack.c.bf16 %v51_v19, %v50_v18 }
   0x4   :  { %v52_v7 = vpack.c.bf16 %v49_v6, %v48_v5  ;;  %v18_v10 = vld [vmem:[%s210_s0] sm:$0xff]  ;;  %v19_v11 = vld [vmem:[%s210_s0 + $0x8] sm:$0xff] }
   0x6   :  { %43 = vperm.xlu1 %136, %v35_v3   ;;  %130 = vmatprep.mubr.msk.bf16.mxu0 %vm55_vm0, %v52_v7 }
   0x7   :  { %29 = vperm.xlu0 %135, %v21_v4  }
  0x7d   :  { %v39_v8 = vpop.permute.xlu1 %38 }
  0x7e   :  { %v25_v9 = vpop.permute.xlu0 %24 }
  0x7f   :  { %v32_v12 = vmul.f32 %v25_v9, %v18_v10 }
  0x81   :  { %v44_v15 = vpop.permute.xlu1 %43  ;;  %v46_v16 = vadd.f32 %v39_v8, %v32_v12 }
  0x82   :  { %v30_v13 = vpop.permute.xlu0 %29 }
  0x83   :  { %v33_v14 = vmul.f32 %v30_v13, %v19_v11 }
  0x85   :  { %v47_v17 = vadd.f32 %v44_v15, %v33_v14 }
  0x87   :  { %v54_v20 = vpack.c.bf16 %v47_v17, %v46_v16 }
  0x89   :  { %128 = vmatprep.subr.bf16.mxu0 %v54_v20 }
  0x8a   :  { %129 = vmatpush3.bf16.msra.mxu0 %v54_v20 }
  0x8d   :  { %131 = vmatmul.mubr.msk.bf16.vlgmr.msra.gmra.mxu0 %vm55_vm0, %v53_v21 }
 0x14d   :  { %v132_v22 = vpop.f32.mrf.mxu0 }
 0x14e   :  { %v113_v23 = vmax.f32 %v132_v22, 0.0 }
 0x14f   :  { %v96_v24 = vpop.f32.mrf.mxu0 }
 0x150   :  { %117 = vst [vmem:[%s211_s4 + $0x10] sm:$0xff] %v113_v23  ;;  %v111_v25 = vmax.f32 %v96_v24, 0.0 }
 0x151   :  { %v133_v26 = vpop.f32.mrf.mxu0 }
 0x152   :  { %115 = vst [vmem:[%s211_s4] sm:$0xff] %v111_v25  ;;  %v114_v27 = vmax.f32 %v133_v26, 0.0 }
 0x153   :  { %v99_v28 = vpop.f32.mrf.mxu0 }
 0x154   :  { %118 = vst [vmem:[%s211_s4 + $0x18] sm:$0xff] %v114_v27  ;;  %v112_v29 = vmax.f32 %v99_v28, 0.0 }
 0x156   :  { %116 = vst [vmem:[%s211_s4 + $0x8] sm:$0xff] %v112_v29 }

// kernel: unet2d_forward.63
= control target key start
LH: loop header
LB: loop body
LE: loop exit
PB: predicated region body
PF: predicated region fallthrough
CT: control target
= control target key end

     0   :  { %s421_s15 = smov 0   ;;  %s447_s0 = inlined_call_operand.vmem [shape: f32[8,512], index: 0, kind: input, shape index: {}]   ;;  %s448_s1 = inlined_call_operand.vmem [shape: f32[8,8], index: 1, kind: input, shape index: {}]   ;;  %s449_s2 = inlined_call_operand.vmem [shape: f32[8,1], index: 2, kind: input, shape index: {}]   ;;  %s450_s3 = inlined_call_operand.vmem [shape: f32[8,512], index: 3, kind: input, shape index: {}]   ;;  %s451_s4 = inlined_call_operand.vmem [shape: f32[8,512], index: 4, kind: output, shape index: {}]  }
   0x1 LB: > { %s362_s16 = sadd.s32 4294967295, %s393_s15   ;;  %p366_p0 = scmp.ge.s32.totalorder %s393_s15, 1  ;;  %s393_s15 = sphi %s421_s15, %s14_s15  }
   0x2   : > { %p174_p1 = scmp.lt.s32.totalorder %s393_s15, 3 }
   0x4   : > { %p175_p2 = pnand %p366_p0, %p174_p1 }
   0x5   : > { %s367_s17 = sshll.u32 (!%p175_p2), %s362_s16, 1 }
   0x6   : > { %178 = sbr.rel (%p175_p2) target bundleno = 221 (0xdd), region = 36  ;;  %p206_p3 = scmp.lt.s32.totalorder (!%p175_p2), %s367_s17, 3 }
   0xb   : > { %v230_v0 = vld [vmem:[%s449_s2] sm:$0xff]  ;;  %v395_v1 = vmov 0   ;;  %s453_s17 = smov (!%p206_p3, %s367_s17), 3  ;;  %vm240_vm0 = vcmask 1043456   ;;  %vm236_vm1 = vcmask 64512  }
   0xc   : > { %279 = vmatprep.mubr.bf16.mxu0 %v395_v1  ;;  %386 = vset.pattern.permute.xlu0 %v395_v1  ;;  %s368_s20 = sshll.u32 %s453_s17, 3  ;;  %v226_v4 = vld [vmem:[%s448_s1] sm:$0xff] }
   0xd   : > { %233 = vperm.xlu0 %386, %v230_v0   ;;  %s209_s23 = scalar_lea.vmem %s447_s0, %s368_s20  ;;  %v227_v8 = vpack.c.bf16 %v226_v4, %v226_v4  ;;  %s215_s28 = scalar_lea.vmem %s450_s3, %s368_s20 }
   0xe   : > { %v225_v2 = vld [vmem:[%s209_s23 + $0x8] sm:$0xff]  ;;  %v224_v3 = vld [vmem:[%s209_s23] sm:$0xff]  ;;  %s221_s5 = scalar_lea.vmem %s451_s4, %s368_s20 }
   0xf   : > { %v229_v5 = vpack.c.bf16 %v225_v2, %v225_v2  ;;  %v228_v6 = vpack.c.bf16 %v224_v3, %v224_v3  ;;  %v288_v11 = vld [vmem:[%s215_s28] sm:$0xff]  ;;  %v289_v14 = vld [vmem:[%s215_s28 + $0x8] sm:$0xff] }
  0x11   : > { %373 = vmatprep.subr.msk.bf16.mxu0 %vm240_vm0, %v229_v5  ;;  %v242_v7 = vsel %vm240_vm0, %v228_v6, 0 }
  0x12   : > { %262 = vmatpush1.bf16.msra.mxu0 %v242_v7 }
  0x15   : > { %374 = vmatmul.mubr.msk.bf16.vlgmr.msra.gmra.mxu0 %vm236_vm1, %v227_v8 }
  0x88   : > { %v234_v9 = vpop.permute.xlu0 %233 }
  0xd5   : > { %v281_v10 = vpop.f32.mrf.mxu0 }
  0xd6   : > { %v282_v12 = vadd.f32 %v281_v10, %v234_v9 }
  0xd7   : > { %v283_v13 = vpop.f32.mrf.mxu0 }
  0xd8   : > { %v290_v15 = vadd.f32 %v288_v11, %v282_v12  ;;  %v284_v16 = vadd.f32 %v283_v13, %v234_v9 }
  0xd9   : > { %v285_v17 = vpop.f32.mrf.mxu0 }
  0xda   : > { %292 = vst [vmem:[%s221_s5] sm:$0xff] %v290_v15  ;;  %v291_v18 = vadd.f32 %v289_v14, %v284_v16 }
  0xdb   : > { %v286_v19 = vpop.f32.mrf.mxu0 }
  0xdc   : > { %293 = vst [vmem:[%s221_s5 + $0x8] sm:$0xff] %v291_v18 }
  0xdd PF: > { %s14_s15 = sadd.s32 1, %s393_s15  }
  0xde   : > { %p11_p4 = scmp.ge.s32.totalorder %s14_s15, 4  }
  0xe0   :  { %13 = sbr.rel (!%p11_p4) target bundleno = 1 (0x1), region = 69 }

// kernel: unet2d_forward.64
= control target key start
LH: loop header
LB: loop body
LE: loop exit
PB: predicated region body
PF: predicated region fallthrough
CT: control target
= control target key end

     0   :  { %v306_v0 = vmov 0   ;;  %vm65_vm0 = vcmask 1043456   ;;  %vm61_vm1 = vcmask 64512   ;;  %s417_s1 = inlined_call_operand.vmem [shape: f32[8,1], index: 1, kind: input, shape index: {}]   ;;  %s418_s2 = inlined_call_operand.vmem [shape: f32[8,1], index: 2, kind: input, shape index: {}]   ;;  %s419_s4 = inlined_call_operand.vmem [shape: f32[8,1], index: 4, kind: input, shape index: {}]   ;;  %s420_s5 = inlined_call_operand.vmem [shape: f32[8,1], index: 5, kind: input, shape index: {}]   ;;  %s421_s0 = inlined_call_operand.vmem [shape: f32[8,512], index: 0, kind: input, shape index: {}]   ;;  %s422_s3 = inlined_call_operand.vmem [shape: f32[8,8], index: 3, kind: input, shape index: {}]   ;;  %s423_s6 = inlined_call_operand.vmem [shape: f32[8,8], index: 6, kind: input, shape index: {}]   ;;  %s424_s7 = inlined_call_operand.vmem [shape: f32[8,512], index: 7, kind: output, shape index: {}]  }
   0x1   :  { %304 = vset.pattern.permute.xlu0 %v306_v0  ;;  %v31_v1 = vld [vmem:[%s417_s1] sm:$0xff]  ;;  %110 = vmatprep.mubr.bf16.mxu0 %v306_v0  ;;  %v362_v5 = vld [vmem:[%s421_s0 + $0x8] sm:$0xff]  ;;  %v367_v7 = vld [vmem:[%s421_s0 + $0x18] sm:$0xff] }
   0x2   :  { %34 = vperm.xlu0 %304, %v31_v1   ;;  %151 = vmatprep.mubr.bf16.mxu1 %v306_v0  ;;  %v41_v2 = vld [vmem:[%s418_s2] sm:$0xff]  ;;  %v377_v9 = vld [vmem:[%s421_s0 + $0x10] sm:$0xff] }
   0x3   :  { %305 = vset.pattern.permute.xlu1 %v306_v0  ;;  %v160_v3 = vld [vmem:[%s419_s4] sm:$0xff] }
   0x4   :  { %163 = vperm.xlu1 %305, %v160_v3   ;;  %v170_v4 = vld [vmem:[%s420_s5] sm:$0xff] }
   0x5   :  { %v372_v8 = vld [vmem:[%s421_s0] sm:$0xff] }
   0x6   :  { %44 = vperm.xlu0 %304, %v41_v2   ;;  %v55_v23 = vld [vmem:[%s422_s3] sm:$0xff] }
   0x7   :  { %v56_v30 = vpack.c.bf16 %v55_v23, %v55_v23  ;;  %v184_v55 = vld [vmem:[%s423_s6] sm:$0xff] }
   0x8   :  { %173 = vperm.xlu1 %305, %v170_v4   ;;  %v185_v60 = vpack.c.bf16 %v184_v55, %v184_v55 }
  0x7d   :  { %v35_v6 = vpop.permute.xlu0 %34 }
  0x7e   :  { %v38_v10 = vmul.f32 %v35_v6, %v362_v5  ;;  %v40_v11 = vmul.f32 %v35_v6, %v367_v7  ;;  %v37_v12 = vmul.f32 %v35_v6, %v372_v8  ;;  %v39_v13 = vmul.f32 %v35_v6, %v377_v9 }
  0x7f   :  { %v164_v31 = vpop.permute.xlu1 %163 }
  0x81   :  { %v45_v14 = vpop.permute.xlu0 %44 }
  0x82   :  { %v48_v15 = vadd.f32 %v45_v14, %v38_v10  ;;  %v50_v16 = vadd.f32 %v45_v14, %v40_v11  ;;  %v47_v17 = vadd.f32 %v45_v14, %v37_v12  ;;  %v49_v18 = vadd.f32 %v45_v14, %v39_v13 }
  0x83   :  { %v174_v34 = vpop.permute.xlu1 %173 }
  0x84   :  { %v52_v19 = vmax.f32 %v48_v15, 0.0  ;;  %v54_v20 = vmax.f32 %v50_v16, 0.0  ;;  %v51_v21 = vmax.f32 %v47_v17, 0.0  ;;  %v53_v22 = vmax.f32 %v49_v18, 0.0 }
  0x86   :  { %v58_v24 = vpack.c.bf16 %v52_v19, %v52_v19  ;;  %v60_v25 = vpack.c.bf16 %v54_v20, %v54_v20  ;;  %v57_v26 = vpack.c.bf16 %v51_v21, %v51_v21  ;;  %v59_v27 = vpack.c.bf16 %v53_v22, %v53_v22 }
  0x88   :  { %295 = vmatprep.subr.msk.bf16.mxu0 %vm65_vm0, %v58_v24  ;;  %297 = vmatprep.subr.msk.bf16.mxu1 %vm65_vm0, %v60_v25  ;;  %v67_v28 = vsel %vm65_vm0, %v57_v26, 0  ;;  %v73_v29 = vsel %vm65_vm0, %v59_v27, 0 }
  0x89   :  { %93 = vmatpush1.bf16.msra.mxu0 %v67_v28  ;;  %134 = vmatpush1.bf16.msra.mxu1 %v73_v29 }
  0x8c   :  { %296 = vmatmul.mubr.msk.bf16.vlgmr.msra.gmra.mxu0 %vm61_vm1, %v56_v30  ;;  %298 = vmatmul.mubr.msk.bf16.vlgmr.msra.gmra.mxu1 %vm61_vm1, %v56_v30 }
  0x8d   :  { %237 = vmatprep.mubr.bf16.mxu0 %v306_v0  ;;  %278 = vmatprep.mubr.bf16.mxu1 %v306_v0 }
 0x14c   :  { %v112_v32 = vpop.f32.mrf.mxu0  ;;  %v153_v33 = vpop.f32.mrf.mxu1 }
 0x14d   :  { %v166_v35 = vmul.f32 %v164_v31, %v112_v32  ;;  %v168_v36 = vmul.f32 %v164_v31, %v153_v33 }
 0x14e   :  { %v114_v37 = vpop.f32.mrf.mxu0  ;;  %v155_v38 = vpop.f32.mrf.mxu1 }
 0x14f   :  { %v176_v39 = vadd.f32 %v174_v34, %v166_v35  ;;  %v178_v40 = vadd.f32 %v174_v34, %v168_v36  ;;  %v167_v41 = vmul.f32 %v164_v31, %v114_v37  ;;  %v169_v42 = vmul.f32 %v164_v31, %v155_v38 }
 0x150   :  { %v116_v43 = vpop.f32.mrf.mxu0  ;;  %v157_v44 = vpop.f32.mrf.mxu1 }
 0x151   :  { %v180_v45 = vmax.f32 %v176_v39, 0.0  ;;  %v182_v46 = vmax.f32 %v178_v40, 0.0  ;;  %v177_v47 = vadd.f32 %v174_v34, %v167_v41  ;;  %v179_v48 = vadd.f32 %v174_v34, %v169_v42 }
 0x152   :  { %v117_v49 = vpop.f32.mrf.mxu0  ;;  %v158_v50 = vpop.f32.mrf.mxu1 }
 0x153   :  { %v186_v51 = vpack.c.bf16 %v180_v45, %v180_v45  ;;  %v188_v52 = vpack.c.bf16 %v182_v46, %v182_v46  ;;  %v181_v53 = vmax.f32 %v177_v47, 0.0  ;;  %v183_v54 = vmax.f32 %v179_v48, 0.0 }
 0x155   :  { %v187_v56 = vpack.c.bf16 %v181_v53, %v181_v53  ;;  %v189_v57 = vpack.c.bf16 %v183_v54, %v183_v54  ;;  %v194_v58 = vsel %vm65_vm0, %v186_v51, 0  ;;  %v200_v59 = vsel %vm65_vm0, %v188_v52, 0 }
 0x157   :  { %299 = vmatprep.subr.msk.bf16.mxu0 %vm65_vm0, %v187_v56  ;;  %301 = vmatprep.subr.msk.bf16.mxu1 %vm65_vm0, %v189_v57 }
 0x158   :  { %220 = vmatpush1.bf16.msra.mxu0 %v194_v58  ;;  %261 = vmatpush1.bf16.msra.mxu1 %v200_v59 }
 0x15b   :  { %300 = vmatmul.mubr.msk.bf16.vlgmr.msra.gmra.mxu0 %vm61_vm1, %v185_v60  ;;  %302 = vmatmul.mubr.msk.bf16.vlgmr.msra.gmra.mxu1 %vm61_vm1, %v185_v60 }
 0x21b   :  { %v239_v61 = vpop.f32.mrf.mxu0  ;;  %v280_v62 = vpop.f32.mrf.mxu1 }
 0x21c   :  { %v240_v63 = vadd.f32 %v239_v61, %v372_v8  ;;  %v281_v0 = vadd.f32 %v280_v62, %v377_v9 }
 0x21d   :  { %v241_v1 = vpop.f32.mrf.mxu0  ;;  %v282_v2 = vpop.f32.mrf.mxu1 }
 0x21e   :  { %287 = vst [vmem:[%s424_s7] sm:$0xff] %v240_v63  ;;  %289 = vst [vmem:[%s424_s7 + $0x10] sm:$0xff] %v281_v0  ;;  %v242_v3 = vadd.f32 %v241_v1, %v362_v5  ;;  %v283_v4 = vadd.f32 %v282_v2, %v367_v7 }
 0x21f   :  { %v243_v6 = vpop.f32.mrf.mxu0  ;;  %v284_v10 = vpop.f32.mrf.mxu1 }
 0x220   :  { %288 = vst [vmem:[%s424_s7 + $0x8] sm:$0xff] %v242_v3  ;;  %290 = vst [vmem:[%s424_s7 + $0x18] sm:$0xff] %v283_v4 }
 0x221   :  { %v244_v8 = vpop.f32.mrf.mxu0  ;;  %v285_v9 = vpop.f32.mrf.mxu1 }

// kernel: unet2d_forward.65
= control target key start
LH: loop header
LB: loop body
LE: loop exit
PB: predicated region body
PF: predicated region fallthrough
CT: control target
= control target key end

     0   :  { %s443_s18 = smov 0   ;;  %s476_s0 = inlined_call_operand.vmem [shape: f32[8,512], index: 0, kind: input, shape index: {}]   ;;  %s477_s1 = inlined_call_operand.vmem [shape: f32[2,8], index: 1, kind: input, shape index: {}]   ;;  %s478_s2 = inlined_call_operand.vmem [shape: f32[8,1], index: 2, kind: input, shape index: {}]   ;;  %s479_s3 = inlined_call_operand.vmem [shape: f32[8,1], index: 3, kind: input, shape index: {}]   ;;  %s480_s4 = inlined_call_operand.vmem [shape: f32[2,1], index: 4, kind: input, shape index: {}]   ;;  %s481_s5 = inlined_call_operand.vmem [shape: f32[2,512], index: 5, kind: output, shape index: {}]  }
   0x1 LB: > { %s379_s19 = sadd.s32 4294967295, %s410_s18   ;;  %p383_p0 = scmp.ge.s32.totalorder %s410_s18, 1  ;;  %s410_s18 = sphi %s443_s18, %s15_s18  }
   0x2   : > { %p188_p1 = scmp.lt.s32.totalorder %s410_s18, 3 }
   0x4   : > { %p189_p2 = pnand %p383_p0, %p188_p1 }
   0x5   : > { %s384_s26 = sshll.u32 (!%p189_p2), %s379_s19, 1 }
   0x6   : > { %192 = sbr.rel (%p189_p2) target bundleno = 351 (0x15f), region = 40  ;;  %p217_p3 = scmp.lt.s32.totalorder (!%p189_p2), %s384_s26, 3 }
   0xb   : > { %v231_v0 = vld [vmem:[%s478_s2] sm:$0xff]  ;;  %v412_v1 = vmov 0   ;;  %s483_s26 = smov (!%p217_p3, %s384_s26), 3  ;;  %vm263_vm0 = vcmask 1043456   ;;  %vm259_vm1 = vcmask 64512  }
   0xc   : > { %402 = vset.pattern.permute.xlu0 %v412_v1  ;;  %302 = vmatprep.mubr.bf16.mxu0 %v412_v1  ;;  %v239_v2 = vld [vmem:[%s479_s3] sm:$0xff]  ;;  %s385_s27 = sshll.u32 %s483_s26, 3  ;;  %s387_s8 = sshll.u32 %s483_s26, 1 }
   0xd   : > { %234 = vperm.xlu0 %402, %v231_v0   ;;  %403 = vset.pattern.permute.xlu1 %v412_v1  ;;  %v253_v3 = vld [vmem:[%s480_s4] sm:$0x3]  ;;  %s220_s30 = scalar_lea.vmem %s476_s0, %s385_s27  ;;  %s226_s11 = scalar_lea.vmem %s481_s5, %s387_s8 }
   0xe   : > { %256 = vperm.xlu1 %403, %v253_v3   ;;  %v229_v5 = vld [vmem:[%s220_s30] sm:$0xff]  ;;  %v230_v6 = vld [vmem:[%s220_s30 + $0x8] sm:$0xff] }
   0xf   : > { %v249_v14 = vld [vmem:[%s477_s1] sm:$0x3] }
  0x10   : > { %v250_v18 = vpack.c.bf16 %v249_v14, %v249_v14 }
  0x11   : > { %242 = vperm.xlu0 %402, %v239_v2  }
  0x88   : > { %v235_v4 = vpop.permute.xlu0 %234 }
  0x89   : > { %v237_v7 = vmul.f32 %v235_v4, %v229_v5  ;;  %v238_v8 = vmul.f32 %v235_v4, %v230_v6  ;;  %v257_v19 = vpop.permute.xlu1 %256 }
  0x8c   : > { %v243_v9 = vpop.permute.xlu0 %242 }
  0x8d   : > { %v245_v10 = vadd.f32 %v243_v9, %v237_v7  ;;  %v246_v11 = vadd.f32 %v243_v9, %v238_v8 }
  0x8f   : > { %v247_v12 = vmax.f32 %v245_v10, 0.0  ;;  %v248_v13 = vmax.f32 %v246_v11, 0.0 }
  0x91   : > { %v251_v15 = vpack.c.bf16 %v247_v12, %v247_v12  ;;  %v252_v16 = vpack.c.bf16 %v248_v13, %v248_v13 }
  0x93   : > { %388 = vmatprep.subr.msk.bf16.mxu0 %vm263_vm0, %v252_v16  ;;  %v265_v17 = vsel %vm263_vm0, %v251_v15, 0 }
  0x94   : > { %285 = vmatpush1.bf16.msra.mxu0 %v265_v17 }
  0x97   : > { %389 = vmatmul.mubr.msk.bf16.vlgmr.msra.gmra.mxu0 %vm259_vm1, %v250_v18 }
 0x157   : > { %v304_v20 = vpop.f32.mrf.mxu0 }
 0x158   : > { %v305_v22 = vadd.f32 %v304_v20, %v257_v19 }
 0x159   : > { %v306_v21 = vpop.f32.mrf.mxu0 }
 0x15a   : > { %v307_v23 = vadd.f32 %v306_v21, %v257_v19 }
 0x15b   : > { %v308_v24 = vpop.f32.mrf.mxu0 }
 0x15c   : > { %v313_v25 = vcombine.low %v305_v22, %v307_v23 }
 0x15d   : > { %v309_v26 = vpop.f32.mrf.mxu0 }
 0x15e   : > { %390 = vst.sshfl [vmem:[%s226_s11] sm:$0x33 pattern:$0x76325410] %v313_v25 }
 0x15f PF: > { %s15_s18 = sadd.s32 1, %s410_s18  }
 0x160   : > { %p12_p4 = scmp.ge.s32.totalorder %s15_s18, 4  }
 0x162   :  { %14 = sbr.rel (!%p12_p4) target bundleno = 1 (0x1), region = 70 }

</bundles_post_ra>
